<compile_context>
chip_gen: v6e
topology: v6e:2x2x1
jax: 0.10.0
libtpu: 0.0.40
codegen_flags: <defaults>
</compile_context>

<pallas_src>
import math

import jax
import jax.numpy as jnp
from jax.experimental import pallas as pl
from jax.experimental.pallas import tpu as pltpu

NUM_HEADS = 8
NUM_LAYERS = 2
LN_EPS = 1e-8
NEG_INF = -1e30


def _layernorm(x, g, b):
    mu = jnp.mean(x, axis=-1, keepdims=True)
    var = jnp.mean(jnp.square(x - mu), axis=-1, keepdims=True)
    return (x - mu) * jax.lax.rsqrt(var + LN_EPS) * g + b


def _log2feats_kernel(x_ref, pos_ref,
                      wq_ref, bq_ref, wkv_ref, bkv_ref, wo_ref, bo_ref,
                      ln1g_ref, ln1b_ref, ln2g_ref, ln2b_ref,
                      fw1_ref, fb1_ref, fw2_ref, fb2_ref,
                      lnfg_ref, lnfb_ref,
                      o_ref):
    B, S, E = x_ref.shape
    H = NUM_HEADS
    Dh = E // H
    M = B * S
    scale = 1.0 / math.sqrt(Dh)

    # Positional-embedding add + elementwise timeline mask.  (The torch code
    # mutates log_seqs in place before building the mask; replicate that.)
    seqs3 = x_ref[...].astype(jnp.float32) + pos_ref[...].astype(jnp.float32)[None]
    keep = (seqs3 != 0.0).astype(jnp.float32).reshape(M, E)   # == ~timeline_mask
    seqs = seqs3.reshape(M, E) * keep                          # [M, E], f32

    # Causal "allowed" mask: True on/below the diagonal.
    row = jax.lax.broadcasted_iota(jnp.int32, (S, S), 0)
    col = jax.lax.broadcasted_iota(jnp.int32, (S, S), 1)
    allowed = (row >= col)[None]                               # [1, S, S]

    for l in range(NUM_LAYERS):                 # statically unrolled: 2 blocks
        wq, bq = wq_ref[l], bq_ref[l]           # bf16 [E,E], f32 [1,E]
        wkv, bkv = wkv_ref[l], bkv_ref[l]       # bf16 [E,2E], f32 [1,2E]
        wo, bo = wo_ref[l], bo_ref[l]
        g1, b1 = ln1g_ref[l], ln1b_ref[l]
        g2, b2 = ln2g_ref[l], ln2b_ref[l]
        fw1, fb1 = fw1_ref[l], fb1_ref[l]
        fw2, fb2 = fw2_ref[l], fb2_ref[l]

        # --- attention sub-block: Q from LayerNorm(seqs), K/V from raw seqs ---
        q_in = _layernorm(seqs, g1, b1)                         # f32 [M, E]
        q = jnp.dot(q_in.astype(jnp.bfloat16), wq,
                    preferred_element_type=jnp.float32) + bq    # f32 [M, E]
        kv = jnp.dot(seqs.astype(jnp.bfloat16), wkv,
                     preferred_element_type=jnp.float32) + bkv  # f32 [M, 2E]
        k, v = kv[:, :E], kv[:, E:]

        q3 = q.reshape(B, S, E).astype(jnp.bfloat16)
        k3 = k.reshape(B, S, E).astype(jnp.bfloat16)
        v3 = v.reshape(B, S, E).astype(jnp.bfloat16)

        heads = []
        for h in range(H):                      # static loop over heads
            lo = h * Dh
            qh = q3[:, :, lo:lo + Dh]
            kh = k3[:, :, lo:lo + Dh]
            vh = v3[:, :, lo:lo + Dh]
            # scores batched over the B_TILE sequences: [B, S, S] (f32 acc)
            s = jnp.einsum('bqd,bkd->bqk', qh, kh,
                           preferred_element_type=jnp.float32) * scale
            s = jnp.where(allowed, s, NEG_INF)
            s = s - jnp.max(s, axis=-1, keepdims=True)
            p = jnp.exp(s)
            inv = pl.reciprocal(jnp.sum(p, axis=-1, keepdims=True), approx=True)
            p = p * inv
            ctx_h = jnp.einsum('bqk,bkd->bqd', p.astype(jnp.bfloat16), vh,
                               preferred_element_type=jnp.float32)   # [B,S,Dh]
            heads.append(ctx_h.reshape(M, Dh))
        ctx = jnp.concatenate(heads, axis=-1)                         # [M, E]
        mha = jnp.dot(ctx.astype(jnp.bfloat16), wo,
                      preferred_element_type=jnp.float32) + bo

        # Residual uses the LayerNorm'd query (SASRec quirk: seqs = Q + mha).
        seqs = q_in + mha

        # --- feed-forward sub-block (Conv1d k=1 == Linear) ---
        hdn = _layernorm(seqs, g2, b2)
        ff = jnp.maximum(
            jnp.dot(hdn.astype(jnp.bfloat16), fw1,
                    preferred_element_type=jnp.float32) + fb1, 0.0)
        ff = jnp.dot(ff.astype(jnp.bfloat16), fw2,
                     preferred_element_type=jnp.float32) + fb2
        seqs = (ff + hdn) * keep                 # FFN residual + timeline mask

    out = _layernorm(seqs, lnfg_ref[...], lnfb_ref[...])
    o_ref[...] = out.reshape(B, S, E).astype(o_ref.dtype)


def _pick_b_tile(bs, s, target_rows=256):
    """Largest divisor of bs with b_tile*s <= target_rows, preferring a grid of
    >= 2 steps so both v7x TensorCores get work."""
    divisors = [d for d in range(1, bs + 1) if bs % d == 0]
    cands = [d for d in divisors if d * s <= target_rows] or [1]
    pref = [d for d in cands if bs // d >= 2]
    return max(pref) if pref else max(cands)


def log2feats(log_seqs, params, b_tile=None):
    """Pallas equivalent of Log2feats.forward (inference).

    log_seqs : [bs, seq_len, emb_dim]  (already-embedded sequence, float)
    returns  : [bs, seq_len, emb_dim]
    """
    bs, S, E = log_seqs.shape
    assert E % NUM_HEADS == 0
    if b_tile is None:
        b_tile = _pick_b_tile(bs, S)
    assert bs % b_tile == 0
    grid = (bs // b_tile,)

    row3 = lambda b: (b, 0, 0)
    c3 = lambda b: (0, 0, 0)
    c2 = lambda b: (0, 0)

    def w3(shape):
        return pl.BlockSpec(shape, c3)

    def w2(shape):
        return pl.BlockSpec(shape, c2)

    # MXU-native bf16 weights (halves resident VMEM + DMA); biases / LN params
    # / pos-emb stay f32 for the VPU-side math.
    wq = params["wq"].astype(jnp.bfloat16)
    wkv = params["wkv"].astype(jnp.bfloat16)
    wo = params["wo"].astype(jnp.bfloat16)
    fw1 = params["fw1"].astype(jnp.bfloat16)
    fw2 = params["fw2"].astype(jnp.bfloat16)

    in_specs = [
        pl.BlockSpec((b_tile, S, E), row3),                       # activations
        w2((S, E)),                                               # pos_emb
        w3((NUM_LAYERS, E, E)), w3((NUM_LAYERS, 1, E)),           # Q proj
        w3((NUM_LAYERS, E, 2 * E)), w3((NUM_LAYERS, 1, 2 * E)),   # K/V proj
        w3((NUM_LAYERS, E, E)), w3((NUM_LAYERS, 1, E)),           # out proj
        w3((NUM_LAYERS, 1, E)), w3((NUM_LAYERS, 1, E)),           # attn LN
        w3((NUM_LAYERS, 1, E)), w3((NUM_LAYERS, 1, E)),           # fwd LN
        w3((NUM_LAYERS, E, E)), w3((NUM_LAYERS, 1, E)),           # ffn conv1
        w3((NUM_LAYERS, E, E)), w3((NUM_LAYERS, 1, E)),           # ffn conv2
        w2((1, E)), w2((1, E)),                                   # last LN
    ]

    flops_per_seq = NUM_LAYERS * (
        2 * S * E * E                                       # Q projection
        + 2 * S * E * 2 * E                                 # K/V projection
        + 2 * NUM_HEADS * (2 * S * S * (E // NUM_HEADS))    # scores + ctx
        + 2 * S * E * E                                     # output projection
        + 2 * (2 * S * E * E)                               # FFN
    )
    weight_bytes = sum(int(w.size) * 2 for w in (wq, wkv, wo, fw1, fw2)) + sum(
        int(params[k].size) * 4
        for k in ("bq", "bkv", "bo", "ln1_g", "ln1_b", "ln2_g", "ln2_b",
                  "fb1", "fb2", "lnf_g", "lnf_b", "pos"))
    cost = pl.CostEstimate(
        flops=int(bs * flops_per_seq),
        transcendentals=int(bs * NUM_LAYERS * NUM_HEADS * S * S),
        bytes_accessed=int(4 * 2 * log_seqs.size + weight_bytes),
    )

    # Explicit scoped-VMEM budget: resident weights (double-buffered by the
    # pipeline) + a generous live-activation slab; clamp to v7x's 64 MiB.
    act_bytes = 12 * b_tile * S * max(E, 128) * 4
    vmem_limit = int(min(64 * 1024 * 1024,
                         max(32 * 1024 * 1024, 3 * weight_bytes + act_bytes)))

    return pl.pallas_call(
        _log2feats_kernel,
        grid=grid,
        in_specs=in_specs,
        out_specs=pl.BlockSpec((b_tile, S, E), row3),
        out_shape=jax.ShapeDtypeStruct((bs, S, E), jnp.float32),
        compiler_params=pltpu.CompilerParams(
            dimension_semantics=("parallel",),
            vmem_limit_bytes=vmem_limit),
        cost_estimate=cost,
    )(log_seqs, params["pos"],
      wq, params["bq"], wkv, params["bkv"], wo, params["bo"],
      params["ln1_g"], params["ln1_b"], params["ln2_g"], params["ln2_b"],
      fw1, params["fb1"], fw2, params["fb2"],
      params["lnf_g"], params["lnf_b"])


def init_params(key, seq_len, emb_dim):
    """Synthetic weights with nn.Linear/Conv1d-like scales (stored transposed
    so that y = x @ W + b)."""
    E = emb_dim
    ks = jax.random.split(key, 17)
    bound = 1.0 / math.sqrt(E)

    def u(k, shape):
        return jax.random.uniform(k, shape, jnp.float32, -bound, bound)

    return {
        "pos":   0.1 * jax.random.normal(ks[0], (seq_len, E), jnp.float32),
        "wq":    u(ks[1], (NUM_LAYERS, E, E)),
        "bq":    u(ks[2], (NUM_LAYERS, 1, E)),
        "wkv":   u(ks[3], (NUM_LAYERS, E, 2 * E)),
        "bkv":   u(ks[4], (NUM_LAYERS, 1, 2 * E)),
        "wo":    u(ks[5], (NUM_LAYERS, E, E)),
        "bo":    u(ks[6], (NUM_LAYERS, 1, E)),
        "ln1_g": 1.0 + 0.1 * jax.random.normal(ks[7], (NUM_LAYERS, 1, E), jnp.float32),
        "ln1_b": 0.1 * jax.random.normal(ks[8], (NUM_LAYERS, 1, E), jnp.float32),
        "ln2_g": 1.0 + 0.1 * jax.random.normal(ks[9], (NUM_LAYERS, 1, E), jnp.float32),
        "ln2_b": 0.1 * jax.random.normal(ks[10], (NUM_LAYERS, 1, E), jnp.float32),
        "fw1":   u(ks[11], (NUM_LAYERS, E, E)),
        "fb1":   u(ks[12], (NUM_LAYERS, 1, E)),
        "fw2":   u(ks[13], (NUM_LAYERS, E, E)),
        "fb2":   u(ks[14], (NUM_LAYERS, 1, E)),
        "lnf_g": 1.0 + 0.1 * jax.random.normal(ks[15], (1, E), jnp.float32),
        "lnf_b": 0.1 * jax.random.normal(ks[16], (1, E), jnp.float32),
    }


def log2feats_ref(log_seqs, params):
    """Pure-JAX reference with identical (inference-mode) math, f32 throughout."""
    B, S, E = log_seqs.shape
    H, Dh = NUM_HEADS, E // NUM_HEADS
    seqs = log_seqs + params["pos"][None]
    keep = (seqs != 0.0).astype(jnp.float32)
    seqs = seqs * keep
    allowed = jnp.tril(jnp.ones((S, S), dtype=bool))

    def ln(x, g, b):
        mu = jnp.mean(x, -1, keepdims=True)
        var = jnp.mean((x - mu) ** 2, -1, keepdims=True)
        return (x - mu) / jnp.sqrt(var + LN_EPS) * g + b

    for l in range(NUM_LAYERS):
        q_in = ln(seqs, params["ln1_g"][l], params["ln1_b"][l])
        q = q_in @ params["wq"][l] + params["bq"][l]
        kv = seqs @ params["wkv"][l] + params["bkv"][l]
        k, v = kv[..., :E], kv[..., E:]
        qh = q.reshape(B, S, H, Dh)
        kh = k.reshape(B, S, H, Dh)
        vh = v.reshape(B, S, H, Dh)
        s = jnp.einsum("bqhd,bkhd->bhqk", qh, kh) / math.sqrt(Dh)
        s = jnp.where(allowed[None, None], s, NEG_INF)
        p = jax.nn.softmax(s, axis=-1)
        ctx = jnp.einsum("bhqk,bkhd->bqhd", p, vh).reshape(B, S, E)
        mha = ctx @ params["wo"][l] + params["bo"][l]
        seqs = q_in + mha
        hdn = ln(seqs, params["ln2_g"][l], params["ln2_b"][l])
        ff = jnp.maximum(hdn @ params["fw1"][l] + params["fb1"][l], 0.0)
        ff = ff @ params["fw2"][l] + params["fb2"][l]
        seqs = (ff + hdn) * keep
    return ln(seqs, params["lnf_g"], params["lnf_b"])


if __name__ == "__main__":
    emb_dim = 32      # user_emb_dim == item_emb_dim (required by the module)
    seq_len = 8
    batch = 8         # -> B_TILE=4, grid=2 (both v7x TensorCores busy)

    key = jax.random.PRNGKey(0)
    kp, kx = jax.random.split(key)
    params = init_params(kp, seq_len, emb_dim)

    log_seqs = jax.random.normal(kx, (batch, seq_len, emb_dim), jnp.float32)
    # Force a couple of positions to be exactly zero after the pos-emb add so
    # the timeline-mask path is actually exercised.
    log_seqs = log_seqs.at[0, :2, :].set(-params["pos"][:2, :])

    out = log2feats(log_seqs, params)
    jax.block_until_ready(out)

    ref = log2feats_ref(log_seqs, params)
    assert out.shape == (batch, seq_len, emb_dim)
    err = float(jnp.max(jnp.abs(out - ref)))
    # Matmuls run in bf16 on the MXU (f32 accumulation) -> relaxed tolerance.
    assert jnp.allclose(out, ref, atol=5e-2, rtol=5e-2), f"max abs err {err}"

    print("KERNEL_OK")
</pallas_src>

<mosaic_0001>
module attributes {stable_mosaic.version = 11 : i64} {
  func.func @_log2feats_kernel(%arg0: i32, %arg1: memref<4x8x32xf32, #tpu.memory_space<vmem>>, %arg2: memref<8x32xf32, #tpu.memory_space<vmem>>, %arg3: memref<2x32x32xbf16, #tpu.memory_space<vmem>>, %arg4: memref<2x1x32xf32, #tpu.memory_space<vmem>>, %arg5: memref<2x32x64xbf16, #tpu.memory_space<vmem>>, %arg6: memref<2x1x64xf32, #tpu.memory_space<vmem>>, %arg7: memref<2x32x32xbf16, #tpu.memory_space<vmem>>, %arg8: memref<2x1x32xf32, #tpu.memory_space<vmem>>, %arg9: memref<2x1x32xf32, #tpu.memory_space<vmem>>, %arg10: memref<2x1x32xf32, #tpu.memory_space<vmem>>, %arg11: memref<2x1x32xf32, #tpu.memory_space<vmem>>, %arg12: memref<2x1x32xf32, #tpu.memory_space<vmem>>, %arg13: memref<2x32x32xbf16, #tpu.memory_space<vmem>>, %arg14: memref<2x1x32xf32, #tpu.memory_space<vmem>>, %arg15: memref<2x32x32xbf16, #tpu.memory_space<vmem>>, %arg16: memref<2x1x32xf32, #tpu.memory_space<vmem>>, %arg17: memref<1x32xf32, #tpu.memory_space<vmem>>, %arg18: memref<1x32xf32, #tpu.memory_space<vmem>>, %arg19: memref<4x8x32xf32, #tpu.memory_space<vmem>>) attributes {dimension_semantics = [#tpu.dimension_semantics<parallel>], iteration_bounds = array<i64: 2>, scalar_prefetch = 0 : i64, scratch_operands = 0 : i64, tpu.core_type = #tpu.core_type<tc>, window_params = [{transform_indices = @transform_0, window_bounds = array<i64: 4, 8, 32>}, {pipeline_mode = #tpu.pipeline_mode<synchronous>, transform_indices = @transform_1, window_bounds = array<i64: 8, 32>}, {pipeline_mode = #tpu.pipeline_mode<synchronous>, transform_indices = @transform_2, window_bounds = array<i64: 2, 32, 32>}, {pipeline_mode = #tpu.pipeline_mode<synchronous>, transform_indices = @transform_3, window_bounds = array<i64: 2, 1, 32>}, {pipeline_mode = #tpu.pipeline_mode<synchronous>, transform_indices = @transform_4, window_bounds = array<i64: 2, 32, 64>}, {pipeline_mode = #tpu.pipeline_mode<synchronous>, transform_indices = @transform_5, window_bounds = array<i64: 2, 1, 64>}, {pipeline_mode = #tpu.pipeline_mode<synchronous>, transform_indices = @transform_6, window_bounds = array<i64: 2, 32, 32>}, {pipeline_mode = #tpu.pipeline_mode<synchronous>, transform_indices = @transform_7, window_bounds = array<i64: 2, 1, 32>}, {pipeline_mode = #tpu.pipeline_mode<synchronous>, transform_indices = @transform_8, window_bounds = array<i64: 2, 1, 32>}, {pipeline_mode = #tpu.pipeline_mode<synchronous>, transform_indices = @transform_9, window_bounds = array<i64: 2, 1, 32>}, {pipeline_mode = #tpu.pipeline_mode<synchronous>, transform_indices = @transform_10, window_bounds = array<i64: 2, 1, 32>}, {pipeline_mode = #tpu.pipeline_mode<synchronous>, transform_indices = @transform_11, window_bounds = array<i64: 2, 1, 32>}, {pipeline_mode = #tpu.pipeline_mode<synchronous>, transform_indices = @transform_12, window_bounds = array<i64: 2, 32, 32>}, {pipeline_mode = #tpu.pipeline_mode<synchronous>, transform_indices = @transform_13, window_bounds = array<i64: 2, 1, 32>}, {pipeline_mode = #tpu.pipeline_mode<synchronous>, transform_indices = @transform_14, window_bounds = array<i64: 2, 32, 32>}, {pipeline_mode = #tpu.pipeline_mode<synchronous>, transform_indices = @transform_15, window_bounds = array<i64: 2, 1, 32>}, {pipeline_mode = #tpu.pipeline_mode<synchronous>, transform_indices = @transform_16, window_bounds = array<i64: 1, 32>}, {pipeline_mode = #tpu.pipeline_mode<synchronous>, transform_indices = @transform_17, window_bounds = array<i64: 1, 32>}, {transform_indices = @transform_18, window_bounds = array<i64: 4, 8, 32>}]} {
    %c0 = arith.constant 0 : index
    %c0_0 = arith.constant 0 : index
    %c0_1 = arith.constant 0 : index
    %0 = vector.load %arg1[%c0, %c0_0, %c0_1] : memref<4x8x32xf32, #tpu.memory_space<vmem>>, vector<4x8x32xf32>
    %c0_2 = arith.constant 0 : index
    %c0_3 = arith.constant 0 : index
    %1 = vector.load %arg2[%c0_2, %c0_3] : memref<8x32xf32, #tpu.memory_space<vmem>>, vector<8x32xf32>
    %2 = vector.shape_cast %1 : vector<8x32xf32> to vector<1x8x32xf32>
    %3 = vector.broadcast %2 : vector<1x8x32xf32> to vector<4x8x32xf32>
    %4 = arith.addf %0, %3 : vector<4x8x32xf32>
    %cst = arith.constant 0.000000e+00 : f32
    %5 = vector.broadcast %cst : f32 to vector<4x8x32xf32>
    %6 = arith.cmpf one, %4, %5 : vector<4x8x32xf32>
    %7 = arith.extui %6 : vector<4x8x32xi1> to vector<4x8x32xi32>
    %8 = arith.sitofp %7 : vector<4x8x32xi32> to vector<4x8x32xf32>
    %9 = vector.shape_cast %8 : vector<4x8x32xf32> to vector<32x32xf32>
    %10 = vector.shape_cast %4 : vector<4x8x32xf32> to vector<32x32xf32>
    %11 = arith.mulf %10, %9 : vector<32x32xf32>
    %12 = tpu.iota {dimensions = array<i32: 0>} : vector<8x8xi32>
    %13 = tpu.iota {dimensions = array<i32: 1>} : vector<8x8xi32>
    %14 = arith.cmpi sge, %12, %13 : vector<8x8xi32>
    %15 = vector.shape_cast %14 : vector<8x8xi1> to vector<1x8x8xi1>
    %c0_4 = arith.constant 0 : index
    %c0_5 = arith.constant 0 : index
    %c0_6 = arith.constant 0 : index
    %16 = vector.load %arg3[%c0_4, %c0_5, %c0_6] : memref<2x32x32xbf16, #tpu.memory_space<vmem>>, vector<1x32x32xbf16>
    %17 = vector.shape_cast %16 : vector<1x32x32xbf16> to vector<32x32xbf16>
    %c0_7 = arith.constant 0 : index
    %c0_8 = arith.constant 0 : index
    %c0_9 = arith.constant 0 : index
    %18 = vector.load %arg4[%c0_7, %c0_8, %c0_9] : memref<2x1x32xf32, #tpu.memory_space<vmem>>, vector<1x1x32xf32>
    %19 = vector.shape_cast %18 : vector<1x1x32xf32> to vector<1x32xf32>
    %c0_10 = arith.constant 0 : index
    %c0_11 = arith.constant 0 : index
    %c0_12 = arith.constant 0 : index
    %20 = vector.load %arg5[%c0_10, %c0_11, %c0_12] : memref<2x32x64xbf16, #tpu.memory_space<vmem>>, vector<1x32x64xbf16>
    %21 = vector.shape_cast %20 : vector<1x32x64xbf16> to vector<32x64xbf16>
    %c0_13 = arith.constant 0 : index
    %c0_14 = arith.constant 0 : index
    %c0_15 = arith.constant 0 : index
    %22 = vector.load %arg6[%c0_13, %c0_14, %c0_15] : memref<2x1x64xf32, #tpu.memory_space<vmem>>, vector<1x1x64xf32>
    %23 = vector.shape_cast %22 : vector<1x1x64xf32> to vector<1x64xf32>
    %c0_16 = arith.constant 0 : index
    %c0_17 = arith.constant 0 : index
    %c0_18 = arith.constant 0 : index
    %24 = vector.load %arg7[%c0_16, %c0_17, %c0_18] : memref<2x32x32xbf16, #tpu.memory_space<vmem>>, vector<1x32x32xbf16>
    %25 = vector.shape_cast %24 : vector<1x32x32xbf16> to vector<32x32xbf16>
    %c0_19 = arith.constant 0 : index
    %c0_20 = arith.constant 0 : index
    %c0_21 = arith.constant 0 : index
    %26 = vector.load %arg8[%c0_19, %c0_20, %c0_21] : memref<2x1x32xf32, #tpu.memory_space<vmem>>, vector<1x1x32xf32>
    %27 = vector.shape_cast %26 : vector<1x1x32xf32> to vector<1x32xf32>
    %c0_22 = arith.constant 0 : index
    %c0_23 = arith.constant 0 : index
    %c0_24 = arith.constant 0 : index
    %28 = vector.load %arg9[%c0_22, %c0_23, %c0_24] : memref<2x1x32xf32, #tpu.memory_space<vmem>>, vector<1x1x32xf32>
    %29 = vector.shape_cast %28 : vector<1x1x32xf32> to vector<1x32xf32>
    %c0_25 = arith.constant 0 : index
    %c0_26 = arith.constant 0 : index
    %c0_27 = arith.constant 0 : index
    %30 = vector.load %arg10[%c0_25, %c0_26, %c0_27] : memref<2x1x32xf32, #tpu.memory_space<vmem>>, vector<1x1x32xf32>
    %31 = vector.shape_cast %30 : vector<1x1x32xf32> to vector<1x32xf32>
    %c0_28 = arith.constant 0 : index
    %c0_29 = arith.constant 0 : index
    %c0_30 = arith.constant 0 : index
    %32 = vector.load %arg11[%c0_28, %c0_29, %c0_30] : memref<2x1x32xf32, #tpu.memory_space<vmem>>, vector<1x1x32xf32>
    %33 = vector.shape_cast %32 : vector<1x1x32xf32> to vector<1x32xf32>
    %c0_31 = arith.constant 0 : index
    %c0_32 = arith.constant 0 : index
    %c0_33 = arith.constant 0 : index
    %34 = vector.load %arg12[%c0_31, %c0_32, %c0_33] : memref<2x1x32xf32, #tpu.memory_space<vmem>>, vector<1x1x32xf32>
    %35 = vector.shape_cast %34 : vector<1x1x32xf32> to vector<1x32xf32>
    %c0_34 = arith.constant 0 : index
    %c0_35 = arith.constant 0 : index
    %c0_36 = arith.constant 0 : index
    %36 = vector.load %arg13[%c0_34, %c0_35, %c0_36] : memref<2x32x32xbf16, #tpu.memory_space<vmem>>, vector<1x32x32xbf16>
    %37 = vector.shape_cast %36 : vector<1x32x32xbf16> to vector<32x32xbf16>
    %c0_37 = arith.constant 0 : index
    %c0_38 = arith.constant 0 : index
    %c0_39 = arith.constant 0 : index
    %38 = vector.load %arg14[%c0_37, %c0_38, %c0_39] : memref<2x1x32xf32, #tpu.memory_space<vmem>>, vector<1x1x32xf32>
    %39 = vector.shape_cast %38 : vector<1x1x32xf32> to vector<1x32xf32>
    %c0_40 = arith.constant 0 : index
    %c0_41 = arith.constant 0 : index
    %c0_42 = arith.constant 0 : index
    %40 = vector.load %arg15[%c0_40, %c0_41, %c0_42] : memref<2x32x32xbf16, #tpu.memory_space<vmem>>, vector<1x32x32xbf16>
    %41 = vector.shape_cast %40 : vector<1x32x32xbf16> to vector<32x32xbf16>
    %c0_43 = arith.constant 0 : index
    %c0_44 = arith.constant 0 : index
    %c0_45 = arith.constant 0 : index
    %42 = vector.load %arg16[%c0_43, %c0_44, %c0_45] : memref<2x1x32xf32, #tpu.memory_space<vmem>>, vector<1x1x32xf32>
    %43 = vector.shape_cast %42 : vector<1x1x32xf32> to vector<1x32xf32>
    %cst_46 = arith.constant dense<0.000000e+00> : vector<32xf32>
    %44 = vector.multi_reduction <add>, %11, %cst_46 [1] : vector<32x32xf32> to vector<32xf32>
    %45 = vector.shape_cast %44 : vector<32xf32> to vector<32x1xf32>
    %cst_47 = arith.constant 3.200000e+01 : f32
    %46 = vector.broadcast %cst_47 : f32 to vector<32x1xf32>
    %47 = arith.divf %45, %46 : vector<32x1xf32>
    %48 = vector.broadcast %47 : vector<32x1xf32> to vector<32x32xf32>
    %49 = arith.subf %11, %48 : vector<32x32xf32>
    %50 = arith.mulf %49, %49 : vector<32x32xf32>
    %cst_48 = arith.constant dense<0.000000e+00> : vector<32xf32>
    %51 = vector.multi_reduction <add>, %50, %cst_48 [1] : vector<32x32xf32> to vector<32xf32>
    %52 = vector.shape_cast %51 : vector<32xf32> to vector<32x1xf32>
    %cst_49 = arith.constant 3.200000e+01 : f32
    %53 = vector.broadcast %cst_49 : f32 to vector<32x1xf32>
    %54 = arith.divf %52, %53 : vector<32x1xf32>
    %55 = vector.broadcast %47 : vector<32x1xf32> to vector<32x32xf32>
    %56 = arith.subf %11, %55 : vector<32x32xf32>
    %cst_50 = arith.constant 9.99999993E-9 : f32
    %57 = vector.broadcast %cst_50 : f32 to vector<32x1xf32>
    %58 = arith.addf %54, %57 : vector<32x1xf32>
    %59 = math.rsqrt %58 : vector<32x1xf32>
    %60 = vector.broadcast %59 : vector<32x1xf32> to vector<32x32xf32>
    %61 = arith.mulf %56, %60 : vector<32x32xf32>
    %62 = vector.broadcast %29 : vector<1x32xf32> to vector<32x32xf32>
    %63 = arith.mulf %61, %62 : vector<32x32xf32>
    %64 = vector.broadcast %31 : vector<1x32xf32> to vector<32x32xf32>
    %65 = arith.addf %63, %64 : vector<32x32xf32>
    %66 = arith.truncf %65 : vector<32x32xf32> to vector<32x32xbf16>
    %cst_51 = arith.constant dense<0.000000e+00> : vector<32x32xf32>
    %67 = tpu.matmul %66, %17, %cst_51 {dimension_numbers = #tpu.dot_dimension_numbers<[1], [0], [0], [1], [0, 0, 1, 1], [], []>} : vector<32x32xbf16>, vector<32x32xbf16>, vector<32x32xf32> -> vector<32x32xf32>
    %68 = vector.broadcast %19 : vector<1x32xf32> to vector<32x32xf32>
    %69 = arith.addf %67, %68 : vector<32x32xf32>
    %70 = arith.truncf %11 : vector<32x32xf32> to vector<32x32xbf16>
    %cst_52 = arith.constant dense<0.000000e+00> : vector<32x64xf32>
    %71 = tpu.matmul %70, %21, %cst_52 {dimension_numbers = #tpu.dot_dimension_numbers<[1], [0], [0], [1], [0, 0, 1, 1], [], []>} : vector<32x32xbf16>, vector<32x64xbf16>, vector<32x64xf32> -> vector<32x64xf32>
    %72 = vector.broadcast %23 : vector<1x64xf32> to vector<32x64xf32>
    %73 = arith.addf %71, %72 : vector<32x64xf32>
    %74 = vector.extract_strided_slice %73 {offsets = [0, 0], sizes = [32, 32], strides = [1, 1]} : vector<32x64xf32> to vector<32x32xf32>
    %75 = vector.extract_strided_slice %73 {offsets = [0, 32], sizes = [32, 32], strides = [1, 1]} : vector<32x64xf32> to vector<32x32xf32>
    %76 = vector.shape_cast %69 : vector<32x32xf32> to vector<4x8x32xf32>
    %77 = arith.truncf %76 : vector<4x8x32xf32> to vector<4x8x32xbf16>
    %78 = vector.shape_cast %74 : vector<32x32xf32> to vector<4x8x32xf32>
    %79 = arith.truncf %78 : vector<4x8x32xf32> to vector<4x8x32xbf16>
    %80 = vector.shape_cast %75 : vector<32x32xf32> to vector<4x8x32xf32>
    %81 = arith.truncf %80 : vector<4x8x32xf32> to vector<4x8x32xbf16>
    %82 = vector.extract_strided_slice %77 {offsets = [0, 0, 0], sizes = [4, 8, 4], strides = [1, 1, 1]} : vector<4x8x32xbf16> to vector<4x8x4xbf16>
    %83 = vector.extract_strided_slice %79 {offsets = [0, 0, 0], sizes = [4, 8, 4], strides = [1, 1, 1]} : vector<4x8x32xbf16> to vector<4x8x4xbf16>
    %84 = vector.extract_strided_slice %81 {offsets = [0, 0, 0], sizes = [4, 8, 4], strides = [1, 1, 1]} : vector<4x8x32xbf16> to vector<4x8x4xbf16>
    "tpu.trace_start"() <{level = 10 : i32, message = "bqd,bkd->bqk"}> : () -> ()
    %cst_53 = arith.constant dense<0.000000e+00> : vector<4x8x8xf32>
    %85 = tpu.matmul %82, %83, %cst_53 {dimension_numbers = #tpu.dot_dimension_numbers<[2], [2], [1], [1], [0, 0, 0, 1, 1, 1], [0], [0]>} : vector<4x8x4xbf16>, vector<4x8x4xbf16>, vector<4x8x8xf32> -> vector<4x8x8xf32>
    "tpu.trace_stop"() : () -> ()
    %cst_54 = arith.constant 5.000000e-01 : f32
    %86 = vector.broadcast %cst_54 : f32 to vector<4x8x8xf32>
    %87 = arith.mulf %85, %86 : vector<4x8x8xf32>
    %cst_55 = arith.constant -1.000000e+30 : f32
    %88 = vector.shape_cast %15 : vector<1x8x8xi1> to vector<1x8x8xi1>
    %89 = vector.broadcast %88 : vector<1x8x8xi1> to vector<4x8x8xi1>
    %90 = vector.broadcast %cst_55 : f32 to vector<4x8x8xf32>
    %91 = arith.select %89, %87, %90 : vector<4x8x8xi1>, vector<4x8x8xf32>
    %cst_56 = arith.constant dense<0xFF800000> : vector<4x8xf32>
    %92 = vector.multi_reduction <maximumf>, %91, %cst_56 [2] : vector<4x8x8xf32> to vector<4x8xf32>
    %93 = vector.shape_cast %92 : vector<4x8xf32> to vector<4x8x1xf32>
    %94 = vector.broadcast %93 : vector<4x8x1xf32> to vector<4x8x8xf32>
    %95 = arith.subf %91, %94 : vector<4x8x8xf32>
    %96 = math.exp %95 : vector<4x8x8xf32>
    %cst_57 = arith.constant dense<0.000000e+00> : vector<4x8xf32>
    %97 = vector.multi_reduction <add>, %96, %cst_57 [2] : vector<4x8x8xf32> to vector<4x8xf32>
    %98 = vector.shape_cast %97 : vector<4x8xf32> to vector<4x8x1xf32>
    %99 = tpu.reciprocal %98 {approx = true} : vector<4x8x1xf32> -> vector<4x8x1xf32>
    %100 = vector.broadcast %99 : vector<4x8x1xf32> to vector<4x8x8xf32>
    %101 = arith.mulf %96, %100 : vector<4x8x8xf32>
    %102 = arith.truncf %101 : vector<4x8x8xf32> to vector<4x8x8xbf16>
    "tpu.trace_start"() <{level = 10 : i32, message = "bqk,bkd->bqd"}> : () -> ()
    %cst_58 = arith.constant dense<0.000000e+00> : vector<4x8x4xf32>
    %103 = tpu.matmul %102, %84, %cst_58 {dimension_numbers = #tpu.dot_dimension_numbers<[2], [1], [1], [2], [0, 0, 0, 1, 1, 2], [0], [0]>} : vector<4x8x8xbf16>, vector<4x8x4xbf16>, vector<4x8x4xf32> -> vector<4x8x4xf32>
    "tpu.trace_stop"() : () -> ()
    %104 = vector.shape_cast %103 : vector<4x8x4xf32> to vector<32x4xf32>
    %105 = vector.extract_strided_slice %77 {offsets = [0, 0, 4], sizes = [4, 8, 4], strides = [1, 1, 1]} : vector<4x8x32xbf16> to vector<4x8x4xbf16>
    %106 = vector.extract_strided_slice %79 {offsets = [0, 0, 4], sizes = [4, 8, 4], strides = [1, 1, 1]} : vector<4x8x32xbf16> to vector<4x8x4xbf16>
    %107 = vector.extract_strided_slice %81 {offsets = [0, 0, 4], sizes = [4, 8, 4], strides = [1, 1, 1]} : vector<4x8x32xbf16> to vector<4x8x4xbf16>
    "tpu.trace_start"() <{level = 10 : i32, message = "bqd,bkd->bqk"}> : () -> ()
    %cst_59 = arith.constant dense<0.000000e+00> : vector<4x8x8xf32>
    %108 = tpu.matmul %105, %106, %cst_59 {dimension_numbers = #tpu.dot_dimension_numbers<[2], [2], [1], [1], [0, 0, 0, 1, 1, 1], [0], [0]>} : vector<4x8x4xbf16>, vector<4x8x4xbf16>, vector<4x8x8xf32> -> vector<4x8x8xf32>
    "tpu.trace_stop"() : () -> ()
    %cst_60 = arith.constant 5.000000e-01 : f32
    %109 = vector.broadcast %cst_60 : f32 to vector<4x8x8xf32>
    %110 = arith.mulf %108, %109 : vector<4x8x8xf32>
    %cst_61 = arith.constant -1.000000e+30 : f32
    %111 = vector.shape_cast %15 : vector<1x8x8xi1> to vector<1x8x8xi1>
    %112 = vector.broadcast %111 : vector<1x8x8xi1> to vector<4x8x8xi1>
    %113 = vector.broadcast %cst_61 : f32 to vector<4x8x8xf32>
    %114 = arith.select %112, %110, %113 : vector<4x8x8xi1>, vector<4x8x8xf32>
    %cst_62 = arith.constant dense<0xFF800000> : vector<4x8xf32>
    %115 = vector.multi_reduction <maximumf>, %114, %cst_62 [2] : vector<4x8x8xf32> to vector<4x8xf32>
    %116 = vector.shape_cast %115 : vector<4x8xf32> to vector<4x8x1xf32>
    %117 = vector.broadcast %116 : vector<4x8x1xf32> to vector<4x8x8xf32>
    %118 = arith.subf %114, %117 : vector<4x8x8xf32>
    %119 = math.exp %118 : vector<4x8x8xf32>
    %cst_63 = arith.constant dense<0.000000e+00> : vector<4x8xf32>
    %120 = vector.multi_reduction <add>, %119, %cst_63 [2] : vector<4x8x8xf32> to vector<4x8xf32>
    %121 = vector.shape_cast %120 : vector<4x8xf32> to vector<4x8x1xf32>
    %122 = tpu.reciprocal %121 {approx = true} : vector<4x8x1xf32> -> vector<4x8x1xf32>
    %123 = vector.broadcast %122 : vector<4x8x1xf32> to vector<4x8x8xf32>
    %124 = arith.mulf %119, %123 : vector<4x8x8xf32>
    %125 = arith.truncf %124 : vector<4x8x8xf32> to vector<4x8x8xbf16>
    "tpu.trace_start"() <{level = 10 : i32, message = "bqk,bkd->bqd"}> : () -> ()
    %cst_64 = arith.constant dense<0.000000e+00> : vector<4x8x4xf32>
    %126 = tpu.matmul %125, %107, %cst_64 {dimension_numbers = #tpu.dot_dimension_numbers<[2], [1], [1], [2], [0, 0, 0, 1, 1, 2], [0], [0]>} : vector<4x8x8xbf16>, vector<4x8x4xbf16>, vector<4x8x4xf32> -> vector<4x8x4xf32>
    "tpu.trace_stop"() : () -> ()
    %127 = vector.shape_cast %126 : vector<4x8x4xf32> to vector<32x4xf32>
    %128 = vector.extract_strided_slice %77 {offsets = [0, 0, 8], sizes = [4, 8, 4], strides = [1, 1, 1]} : vector<4x8x32xbf16> to vector<4x8x4xbf16>
    %129 = vector.extract_strided_slice %79 {offsets = [0, 0, 8], sizes = [4, 8, 4], strides = [1, 1, 1]} : vector<4x8x32xbf16> to vector<4x8x4xbf16>
    %130 = vector.extract_strided_slice %81 {offsets = [0, 0, 8], sizes = [4, 8, 4], strides = [1, 1, 1]} : vector<4x8x32xbf16> to vector<4x8x4xbf16>
    "tpu.trace_start"() <{level = 10 : i32, message = "bqd,bkd->bqk"}> : () -> ()
    %cst_65 = arith.constant dense<0.000000e+00> : vector<4x8x8xf32>
    %131 = tpu.matmul %128, %129, %cst_65 {dimension_numbers = #tpu.dot_dimension_numbers<[2], [2], [1], [1], [0, 0, 0, 1, 1, 1], [0], [0]>} : vector<4x8x4xbf16>, vector<4x8x4xbf16>, vector<4x8x8xf32> -> vector<4x8x8xf32>
    "tpu.trace_stop"() : () -> ()
    %cst_66 = arith.constant 5.000000e-01 : f32
    %132 = vector.broadcast %cst_66 : f32 to vector<4x8x8xf32>
    %133 = arith.mulf %131, %132 : vector<4x8x8xf32>
    %cst_67 = arith.constant -1.000000e+30 : f32
    %134 = vector.shape_cast %15 : vector<1x8x8xi1> to vector<1x8x8xi1>
    %135 = vector.broadcast %134 : vector<1x8x8xi1> to vector<4x8x8xi1>
    %136 = vector.broadcast %cst_67 : f32 to vector<4x8x8xf32>
    %137 = arith.select %135, %133, %136 : vector<4x8x8xi1>, vector<4x8x8xf32>
    %cst_68 = arith.constant dense<0xFF800000> : vector<4x8xf32>
    %138 = vector.multi_reduction <maximumf>, %137, %cst_68 [2] : vector<4x8x8xf32> to vector<4x8xf32>
    %139 = vector.shape_cast %138 : vector<4x8xf32> to vector<4x8x1xf32>
    %140 = vector.broadcast %139 : vector<4x8x1xf32> to vector<4x8x8xf32>
    %141 = arith.subf %137, %140 : vector<4x8x8xf32>
    %142 = math.exp %141 : vector<4x8x8xf32>
    %cst_69 = arith.constant dense<0.000000e+00> : vector<4x8xf32>
    %143 = vector.multi_reduction <add>, %142, %cst_69 [2] : vector<4x8x8xf32> to vector<4x8xf32>
    %144 = vector.shape_cast %143 : vector<4x8xf32> to vector<4x8x1xf32>
    %145 = tpu.reciprocal %144 {approx = true} : vector<4x8x1xf32> -> vector<4x8x1xf32>
    %146 = vector.broadcast %145 : vector<4x8x1xf32> to vector<4x8x8xf32>
    %147 = arith.mulf %142, %146 : vector<4x8x8xf32>
    %148 = arith.truncf %147 : vector<4x8x8xf32> to vector<4x8x8xbf16>
    "tpu.trace_start"() <{level = 10 : i32, message = "bqk,bkd->bqd"}> : () -> ()
    %cst_70 = arith.constant dense<0.000000e+00> : vector<4x8x4xf32>
    %149 = tpu.matmul %148, %130, %cst_70 {dimension_numbers = #tpu.dot_dimension_numbers<[2], [1], [1], [2], [0, 0, 0, 1, 1, 2], [0], [0]>} : vector<4x8x8xbf16>, vector<4x8x4xbf16>, vector<4x8x4xf32> -> vector<4x8x4xf32>
    "tpu.trace_stop"() : () -> ()
    %150 = vector.shape_cast %149 : vector<4x8x4xf32> to vector<32x4xf32>
    %151 = vector.extract_strided_slice %77 {offsets = [0, 0, 12], sizes = [4, 8, 4], strides = [1, 1, 1]} : vector<4x8x32xbf16> to vector<4x8x4xbf16>
    %152 = vector.extract_strided_slice %79 {offsets = [0, 0, 12], sizes = [4, 8, 4], strides = [1, 1, 1]} : vector<4x8x32xbf16> to vector<4x8x4xbf16>
    %153 = vector.extract_strided_slice %81 {offsets = [0, 0, 12], sizes = [4, 8, 4], strides = [1, 1, 1]} : vector<4x8x32xbf16> to vector<4x8x4xbf16>
    "tpu.trace_start"() <{level = 10 : i32, message = "bqd,bkd->bqk"}> : () -> ()
    %cst_71 = arith.constant dense<0.000000e+00> : vector<4x8x8xf32>
    %154 = tpu.matmul %151, %152, %cst_71 {dimension_numbers = #tpu.dot_dimension_numbers<[2], [2], [1], [1], [0, 0, 0, 1, 1, 1], [0], [0]>} : vector<4x8x4xbf16>, vector<4x8x4xbf16>, vector<4x8x8xf32> -> vector<4x8x8xf32>
    "tpu.trace_stop"() : () -> ()
    %cst_72 = arith.constant 5.000000e-01 : f32
    %155 = vector.broadcast %cst_72 : f32 to vector<4x8x8xf32>
    %156 = arith.mulf %154, %155 : vector<4x8x8xf32>
    %cst_73 = arith.constant -1.000000e+30 : f32
    %157 = vector.shape_cast %15 : vector<1x8x8xi1> to vector<1x8x8xi1>
    %158 = vector.broadcast %157 : vector<1x8x8xi1> to vector<4x8x8xi1>
    %159 = vector.broadcast %cst_73 : f32 to vector<4x8x8xf32>
    %160 = arith.select %158, %156, %159 : vector<4x8x8xi1>, vector<4x8x8xf32>
    %cst_74 = arith.constant dense<0xFF800000> : vector<4x8xf32>
    %161 = vector.multi_reduction <maximumf>, %160, %cst_74 [2] : vector<4x8x8xf32> to vector<4x8xf32>
    %162 = vector.shape_cast %161 : vector<4x8xf32> to vector<4x8x1xf32>
    %163 = vector.broadcast %162 : vector<4x8x1xf32> to vector<4x8x8xf32>
    %164 = arith.subf %160, %163 : vector<4x8x8xf32>
    %165 = math.exp %164 : vector<4x8x8xf32>
    %cst_75 = arith.constant dense<0.000000e+00> : vector<4x8xf32>
    %166 = vector.multi_reduction <add>, %165, %cst_75 [2] : vector<4x8x8xf32> to vector<4x8xf32>
    %167 = vector.shape_cast %166 : vector<4x8xf32> to vector<4x8x1xf32>
    %168 = tpu.reciprocal %167 {approx = true} : vector<4x8x1xf32> -> vector<4x8x1xf32>
    %169 = vector.broadcast %168 : vector<4x8x1xf32> to vector<4x8x8xf32>
    %170 = arith.mulf %165, %169 : vector<4x8x8xf32>
    %171 = arith.truncf %170 : vector<4x8x8xf32> to vector<4x8x8xbf16>
    "tpu.trace_start"() <{level = 10 : i32, message = "bqk,bkd->bqd"}> : () -> ()
    %cst_76 = arith.constant dense<0.000000e+00> : vector<4x8x4xf32>
    %172 = tpu.matmul %171, %153, %cst_76 {dimension_numbers = #tpu.dot_dimension_numbers<[2], [1], [1], [2], [0, 0, 0, 1, 1, 2], [0], [0]>} : vector<4x8x8xbf16>, vector<4x8x4xbf16>, vector<4x8x4xf32> -> vector<4x8x4xf32>
    "tpu.trace_stop"() : () -> ()
    %173 = vector.shape_cast %172 : vector<4x8x4xf32> to vector<32x4xf32>
    %174 = vector.extract_strided_slice %77 {offsets = [0, 0, 16], sizes = [4, 8, 4], strides = [1, 1, 1]} : vector<4x8x32xbf16> to vector<4x8x4xbf16>
    %175 = vector.extract_strided_slice %79 {offsets = [0, 0, 16], sizes = [4, 8, 4], strides = [1, 1, 1]} : vector<4x8x32xbf16> to vector<4x8x4xbf16>
    %176 = vector.extract_strided_slice %81 {offsets = [0, 0, 16], sizes = [4, 8, 4], strides = [1, 1, 1]} : vector<4x8x32xbf16> to vector<4x8x4xbf16>
    "tpu.trace_start"() <{level = 10 : i32, message = "bqd,bkd->bqk"}> : () -> ()
    %cst_77 = arith.constant dense<0.000000e+00> : vector<4x8x8xf32>
    %177 = tpu.matmul %174, %175, %cst_77 {dimension_numbers = #tpu.dot_dimension_numbers<[2], [2], [1], [1], [0, 0, 0, 1, 1, 1], [0], [0]>} : vector<4x8x4xbf16>, vector<4x8x4xbf16>, vector<4x8x8xf32> -> vector<4x8x8xf32>
    "tpu.trace_stop"() : () -> ()
    %cst_78 = arith.constant 5.000000e-01 : f32
    %178 = vector.broadcast %cst_78 : f32 to vector<4x8x8xf32>
    %179 = arith.mulf %177, %178 : vector<4x8x8xf32>
    %cst_79 = arith.constant -1.000000e+30 : f32
    %180 = vector.shape_cast %15 : vector<1x8x8xi1> to vector<1x8x8xi1>
    %181 = vector.broadcast %180 : vector<1x8x8xi1> to vector<4x8x8xi1>
    %182 = vector.broadcast %cst_79 : f32 to vector<4x8x8xf32>
    %183 = arith.select %181, %179, %182 : vector<4x8x8xi1>, vector<4x8x8xf32>
    %cst_80 = arith.constant dense<0xFF800000> : vector<4x8xf32>
    %184 = vector.multi_reduction <maximumf>, %183, %cst_80 [2] : vector<4x8x8xf32> to vector<4x8xf32>
    %185 = vector.shape_cast %184 : vector<4x8xf32> to vector<4x8x1xf32>
    %186 = vector.broadcast %185 : vector<4x8x1xf32> to vector<4x8x8xf32>
    %187 = arith.subf %183, %186 : vector<4x8x8xf32>
    %188 = math.exp %187 : vector<4x8x8xf32>
    %cst_81 = arith.constant dense<0.000000e+00> : vector<4x8xf32>
    %189 = vector.multi_reduction <add>, %188, %cst_81 [2] : vector<4x8x8xf32> to vector<4x8xf32>
    %190 = vector.shape_cast %189 : vector<4x8xf32> to vector<4x8x1xf32>
    %191 = tpu.reciprocal %190 {approx = true} : vector<4x8x1xf32> -> vector<4x8x1xf32>
    %192 = vector.broadcast %191 : vector<4x8x1xf32> to vector<4x8x8xf32>
    %193 = arith.mulf %188, %192 : vector<4x8x8xf32>
    %194 = arith.truncf %193 : vector<4x8x8xf32> to vector<4x8x8xbf16>
    "tpu.trace_start"() <{level = 10 : i32, message = "bqk,bkd->bqd"}> : () -> ()
    %cst_82 = arith.constant dense<0.000000e+00> : vector<4x8x4xf32>
    %195 = tpu.matmul %194, %176, %cst_82 {dimension_numbers = #tpu.dot_dimension_numbers<[2], [1], [1], [2], [0, 0, 0, 1, 1, 2], [0], [0]>} : vector<4x8x8xbf16>, vector<4x8x4xbf16>, vector<4x8x4xf32> -> vector<4x8x4xf32>
    "tpu.trace_stop"() : () -> ()
    %196 = vector.shape_cast %195 : vector<4x8x4xf32> to vector<32x4xf32>
    %197 = vector.extract_strided_slice %77 {offsets = [0, 0, 20], sizes = [4, 8, 4], strides = [1, 1, 1]} : vector<4x8x32xbf16> to vector<4x8x4xbf16>
    %198 = vector.extract_strided_slice %79 {offsets = [0, 0, 20], sizes = [4, 8, 4], strides = [1, 1, 1]} : vector<4x8x32xbf16> to vector<4x8x4xbf16>
    %199 = vector.extract_strided_slice %81 {offsets = [0, 0, 20], sizes = [4, 8, 4], strides = [1, 1, 1]} : vector<4x8x32xbf16> to vector<4x8x4xbf16>
    "tpu.trace_start"() <{level = 10 : i32, message = "bqd,bkd->bqk"}> : () -> ()
    %cst_83 = arith.constant dense<0.000000e+00> : vector<4x8x8xf32>
    %200 = tpu.matmul %197, %198, %cst_83 {dimension_numbers = #tpu.dot_dimension_numbers<[2], [2], [1], [1], [0, 0, 0, 1, 1, 1], [0], [0]>} : vector<4x8x4xbf16>, vector<4x8x4xbf16>, vector<4x8x8xf32> -> vector<4x8x8xf32>
    "tpu.trace_stop"() : () -> ()
    %cst_84 = arith.constant 5.000000e-01 : f32
    %201 = vector.broadcast %cst_84 : f32 to vector<4x8x8xf32>
    %202 = arith.mulf %200, %201 : vector<4x8x8xf32>
    %cst_85 = arith.constant -1.000000e+30 : f32
    %203 = vector.shape_cast %15 : vector<1x8x8xi1> to vector<1x8x8xi1>
    %204 = vector.broadcast %203 : vector<1x8x8xi1> to vector<4x8x8xi1>
    %205 = vector.broadcast %cst_85 : f32 to vector<4x8x8xf32>
    %206 = arith.select %204, %202, %205 : vector<4x8x8xi1>, vector<4x8x8xf32>
    %cst_86 = arith.constant dense<0xFF800000> : vector<4x8xf32>
    %207 = vector.multi_reduction <maximumf>, %206, %cst_86 [2] : vector<4x8x8xf32> to vector<4x8xf32>
    %208 = vector.shape_cast %207 : vector<4x8xf32> to vector<4x8x1xf32>
    %209 = vector.broadcast %208 : vector<4x8x1xf32> to vector<4x8x8xf32>
    %210 = arith.subf %206, %209 : vector<4x8x8xf32>
    %211 = math.exp %210 : vector<4x8x8xf32>
    %cst_87 = arith.constant dense<0.000000e+00> : vector<4x8xf32>
    %212 = vector.multi_reduction <add>, %211, %cst_87 [2] : vector<4x8x8xf32> to vector<4x8xf32>
    %213 = vector.shape_cast %212 : vector<4x8xf32> to vector<4x8x1xf32>
    %214 = tpu.reciprocal %213 {approx = true} : vector<4x8x1xf32> -> vector<4x8x1xf32>
    %215 = vector.broadcast %214 : vector<4x8x1xf32> to vector<4x8x8xf32>
    %216 = arith.mulf %211, %215 : vector<4x8x8xf32>
    %217 = arith.truncf %216 : vector<4x8x8xf32> to vector<4x8x8xbf16>
    "tpu.trace_start"() <{level = 10 : i32, message = "bqk,bkd->bqd"}> : () -> ()
    %cst_88 = arith.constant dense<0.000000e+00> : vector<4x8x4xf32>
    %218 = tpu.matmul %217, %199, %cst_88 {dimension_numbers = #tpu.dot_dimension_numbers<[2], [1], [1], [2], [0, 0, 0, 1, 1, 2], [0], [0]>} : vector<4x8x8xbf16>, vector<4x8x4xbf16>, vector<4x8x4xf32> -> vector<4x8x4xf32>
    "tpu.trace_stop"() : () -> ()
    %219 = vector.shape_cast %218 : vector<4x8x4xf32> to vector<32x4xf32>
    %220 = vector.extract_strided_slice %77 {offsets = [0, 0, 24], sizes = [4, 8, 4], strides = [1, 1, 1]} : vector<4x8x32xbf16> to vector<4x8x4xbf16>
    %221 = vector.extract_strided_slice %79 {offsets = [0, 0, 24], sizes = [4, 8, 4], strides = [1, 1, 1]} : vector<4x8x32xbf16> to vector<4x8x4xbf16>
    %222 = vector.extract_strided_slice %81 {offsets = [0, 0, 24], sizes = [4, 8, 4], strides = [1, 1, 1]} : vector<4x8x32xbf16> to vector<4x8x4xbf16>
    "tpu.trace_start"() <{level = 10 : i32, message = "bqd,bkd->bqk"}> : () -> ()
    %cst_89 = arith.constant dense<0.000000e+00> : vector<4x8x8xf32>
    %223 = tpu.matmul %220, %221, %cst_89 {dimension_numbers = #tpu.dot_dimension_numbers<[2], [2], [1], [1], [0, 0, 0, 1, 1, 1], [0], [0]>} : vector<4x8x4xbf16>, vector<4x8x4xbf16>, vector<4x8x8xf32> -> vector<4x8x8xf32>
    "tpu.trace_stop"() : () -> ()
    %cst_90 = arith.constant 5.000000e-01 : f32
    %224 = vector.broadcast %cst_90 : f32 to vector<4x8x8xf32>
    %225 = arith.mulf %223, %224 : vector<4x8x8xf32>
    %cst_91 = arith.constant -1.000000e+30 : f32
    %226 = vector.shape_cast %15 : vector<1x8x8xi1> to vector<1x8x8xi1>
    %227 = vector.broadcast %226 : vector<1x8x8xi1> to vector<4x8x8xi1>
    %228 = vector.broadcast %cst_91 : f32 to vector<4x8x8xf32>
    %229 = arith.select %227, %225, %228 : vector<4x8x8xi1>, vector<4x8x8xf32>
    %cst_92 = arith.constant dense<0xFF800000> : vector<4x8xf32>
    %230 = vector.multi_reduction <maximumf>, %229, %cst_92 [2] : vector<4x8x8xf32> to vector<4x8xf32>
    %231 = vector.shape_cast %230 : vector<4x8xf32> to vector<4x8x1xf32>
    %232 = vector.broadcast %231 : vector<4x8x1xf32> to vector<4x8x8xf32>
    %233 = arith.subf %229, %232 : vector<4x8x8xf32>
    %234 = math.exp %233 : vector<4x8x8xf32>
    %cst_93 = arith.constant dense<0.000000e+00> : vector<4x8xf32>
    %235 = vector.multi_reduction <add>, %234, %cst_93 [2] : vector<4x8x8xf32> to vector<4x8xf32>
    %236 = vector.shape_cast %235 : vector<4x8xf32> to vector<4x8x1xf32>
    %237 = tpu.reciprocal %236 {approx = true} : vector<4x8x1xf32> -> vector<4x8x1xf32>
    %238 = vector.broadcast %237 : vector<4x8x1xf32> to vector<4x8x8xf32>
    %239 = arith.mulf %234, %238 : vector<4x8x8xf32>
    %240 = arith.truncf %239 : vector<4x8x8xf32> to vector<4x8x8xbf16>
    "tpu.trace_start"() <{level = 10 : i32, message = "bqk,bkd->bqd"}> : () -> ()
    %cst_94 = arith.constant dense<0.000000e+00> : vector<4x8x4xf32>
    %241 = tpu.matmul %240, %222, %cst_94 {dimension_numbers = #tpu.dot_dimension_numbers<[2], [1], [1], [2], [0, 0, 0, 1, 1, 2], [0], [0]>} : vector<4x8x8xbf16>, vector<4x8x4xbf16>, vector<4x8x4xf32> -> vector<4x8x4xf32>
    "tpu.trace_stop"() : () -> ()
    %242 = vector.shape_cast %241 : vector<4x8x4xf32> to vector<32x4xf32>
    %243 = vector.extract_strided_slice %77 {offsets = [0, 0, 28], sizes = [4, 8, 4], strides = [1, 1, 1]} : vector<4x8x32xbf16> to vector<4x8x4xbf16>
    %244 = vector.extract_strided_slice %79 {offsets = [0, 0, 28], sizes = [4, 8, 4], strides = [1, 1, 1]} : vector<4x8x32xbf16> to vector<4x8x4xbf16>
    %245 = vector.extract_strided_slice %81 {offsets = [0, 0, 28], sizes = [4, 8, 4], strides = [1, 1, 1]} : vector<4x8x32xbf16> to vector<4x8x4xbf16>
    "tpu.trace_start"() <{level = 10 : i32, message = "bqd,bkd->bqk"}> : () -> ()
    %cst_95 = arith.constant dense<0.000000e+00> : vector<4x8x8xf32>
    %246 = tpu.matmul %243, %244, %cst_95 {dimension_numbers = #tpu.dot_dimension_numbers<[2], [2], [1], [1], [0, 0, 0, 1, 1, 1], [0], [0]>} : vector<4x8x4xbf16>, vector<4x8x4xbf16>, vector<4x8x8xf32> -> vector<4x8x8xf32>
    "tpu.trace_stop"() : () -> ()
    %cst_96 = arith.constant 5.000000e-01 : f32
    %247 = vector.broadcast %cst_96 : f32 to vector<4x8x8xf32>
    %248 = arith.mulf %246, %247 : vector<4x8x8xf32>
    %cst_97 = arith.constant -1.000000e+30 : f32
    %249 = vector.shape_cast %15 : vector<1x8x8xi1> to vector<1x8x8xi1>
    %250 = vector.broadcast %249 : vector<1x8x8xi1> to vector<4x8x8xi1>
    %251 = vector.broadcast %cst_97 : f32 to vector<4x8x8xf32>
    %252 = arith.select %250, %248, %251 : vector<4x8x8xi1>, vector<4x8x8xf32>
    %cst_98 = arith.constant dense<0xFF800000> : vector<4x8xf32>
    %253 = vector.multi_reduction <maximumf>, %252, %cst_98 [2] : vector<4x8x8xf32> to vector<4x8xf32>
    %254 = vector.shape_cast %253 : vector<4x8xf32> to vector<4x8x1xf32>
    %255 = vector.broadcast %254 : vector<4x8x1xf32> to vector<4x8x8xf32>
    %256 = arith.subf %252, %255 : vector<4x8x8xf32>
    %257 = math.exp %256 : vector<4x8x8xf32>
    %cst_99 = arith.constant dense<0.000000e+00> : vector<4x8xf32>
    %258 = vector.multi_reduction <add>, %257, %cst_99 [2] : vector<4x8x8xf32> to vector<4x8xf32>
    %259 = vector.shape_cast %258 : vector<4x8xf32> to vector<4x8x1xf32>
    %260 = tpu.reciprocal %259 {approx = true} : vector<4x8x1xf32> -> vector<4x8x1xf32>
    %261 = vector.broadcast %260 : vector<4x8x1xf32> to vector<4x8x8xf32>
    %262 = arith.mulf %257, %261 : vector<4x8x8xf32>
    %263 = arith.truncf %262 : vector<4x8x8xf32> to vector<4x8x8xbf16>
    "tpu.trace_start"() <{level = 10 : i32, message = "bqk,bkd->bqd"}> : () -> ()
    %cst_100 = arith.constant dense<0.000000e+00> : vector<4x8x4xf32>
    %264 = tpu.matmul %263, %245, %cst_100 {dimension_numbers = #tpu.dot_dimension_numbers<[2], [1], [1], [2], [0, 0, 0, 1, 1, 2], [0], [0]>} : vector<4x8x8xbf16>, vector<4x8x4xbf16>, vector<4x8x4xf32> -> vector<4x8x4xf32>
    "tpu.trace_stop"() : () -> ()
    %265 = vector.shape_cast %264 : vector<4x8x4xf32> to vector<32x4xf32>
    %266 = tpu.concatenate %104, %127, %150, %173, %196, %219, %242, %265 in 1 : vector<32x4xf32>, vector<32x4xf32>, vector<32x4xf32>, vector<32x4xf32>, vector<32x4xf32>, vector<32x4xf32>, vector<32x4xf32>, vector<32x4xf32> -> vector<32x32xf32>
    %267 = arith.truncf %266 : vector<32x32xf32> to vector<32x32xbf16>
    %cst_101 = arith.constant dense<0.000000e+00> : vector<32x32xf32>
    %268 = tpu.matmul %267, %25, %cst_101 {dimension_numbers = #tpu.dot_dimension_numbers<[1], [0], [0], [1], [0, 0, 1, 1], [], []>} : vector<32x32xbf16>, vector<32x32xbf16>, vector<32x32xf32> -> vector<32x32xf32>
    %269 = vector.broadcast %27 : vector<1x32xf32> to vector<32x32xf32>
    %270 = arith.addf %268, %269 : vector<32x32xf32>
    %271 = arith.addf %65, %270 : vector<32x32xf32>
    %cst_102 = arith.constant dense<0.000000e+00> : vector<32xf32>
    %272 = vector.multi_reduction <add>, %271, %cst_102 [1] : vector<32x32xf32> to vector<32xf32>
    %273 = vector.shape_cast %272 : vector<32xf32> to vector<32x1xf32>
    %cst_103 = arith.constant 3.200000e+01 : f32
    %274 = vector.broadcast %cst_103 : f32 to vector<32x1xf32>
    %275 = arith.divf %273, %274 : vector<32x1xf32>
    %276 = vector.broadcast %275 : vector<32x1xf32> to vector<32x32xf32>
    %277 = arith.subf %271, %276 : vector<32x32xf32>
    %278 = arith.mulf %277, %277 : vector<32x32xf32>
    %cst_104 = arith.constant dense<0.000000e+00> : vector<32xf32>
    %279 = vector.multi_reduction <add>, %278, %cst_104 [1] : vector<32x32xf32> to vector<32xf32>
    %280 = vector.shape_cast %279 : vector<32xf32> to vector<32x1xf32>
    %cst_105 = arith.constant 3.200000e+01 : f32
    %281 = vector.broadcast %cst_105 : f32 to vector<32x1xf32>
    %282 = arith.divf %280, %281 : vector<32x1xf32>
    %283 = vector.broadcast %275 : vector<32x1xf32> to vector<32x32xf32>
    %284 = arith.subf %271, %283 : vector<32x32xf32>
    %cst_106 = arith.constant 9.99999993E-9 : f32
    %285 = vector.broadcast %cst_106 : f32 to vector<32x1xf32>
    %286 = arith.addf %282, %285 : vector<32x1xf32>
    %287 = math.rsqrt %286 : vector<32x1xf32>
    %288 = vector.broadcast %287 : vector<32x1xf32> to vector<32x32xf32>
    %289 = arith.mulf %284, %288 : vector<32x32xf32>
    %290 = vector.broadcast %33 : vector<1x32xf32> to vector<32x32xf32>
    %291 = arith.mulf %289, %290 : vector<32x32xf32>
    %292 = vector.broadcast %35 : vector<1x32xf32> to vector<32x32xf32>
    %293 = arith.addf %291, %292 : vector<32x32xf32>
    %294 = arith.truncf %293 : vector<32x32xf32> to vector<32x32xbf16>
    %cst_107 = arith.constant dense<0.000000e+00> : vector<32x32xf32>
    %295 = tpu.matmul %294, %37, %cst_107 {dimension_numbers = #tpu.dot_dimension_numbers<[1], [0], [0], [1], [0, 0, 1, 1], [], []>} : vector<32x32xbf16>, vector<32x32xbf16>, vector<32x32xf32> -> vector<32x32xf32>
    %296 = vector.broadcast %39 : vector<1x32xf32> to vector<32x32xf32>
    %297 = arith.addf %295, %296 : vector<32x32xf32>
    %cst_108 = arith.constant 0.000000e+00 : f32
    %298 = vector.broadcast %cst_108 : f32 to vector<32x32xf32>
    %299 = arith.maximumf %297, %298 : vector<32x32xf32>
    %300 = arith.truncf %299 : vector<32x32xf32> to vector<32x32xbf16>
    %cst_109 = arith.constant dense<0.000000e+00> : vector<32x32xf32>
    %301 = tpu.matmul %300, %41, %cst_109 {dimension_numbers = #tpu.dot_dimension_numbers<[1], [0], [0], [1], [0, 0, 1, 1], [], []>} : vector<32x32xbf16>, vector<32x32xbf16>, vector<32x32xf32> -> vector<32x32xf32>
    %302 = vector.broadcast %43 : vector<1x32xf32> to vector<32x32xf32>
    %303 = arith.addf %301, %302 : vector<32x32xf32>
    %304 = arith.addf %303, %293 : vector<32x32xf32>
    %305 = arith.mulf %304, %9 : vector<32x32xf32>
    %c1 = arith.constant 1 : index
    %c0_110 = arith.constant 0 : index
    %c0_111 = arith.constant 0 : index
    %306 = vector.load %arg3[%c1, %c0_110, %c0_111] : memref<2x32x32xbf16, #tpu.memory_space<vmem>>, vector<1x32x32xbf16>
    %307 = vector.shape_cast %306 : vector<1x32x32xbf16> to vector<32x32xbf16>
    %c1_112 = arith.constant 1 : index
    %c0_113 = arith.constant 0 : index
    %c0_114 = arith.constant 0 : index
    %308 = vector.load %arg4[%c1_112, %c0_113, %c0_114] : memref<2x1x32xf32, #tpu.memory_space<vmem>>, vector<1x1x32xf32>
    %309 = vector.shape_cast %308 : vector<1x1x32xf32> to vector<1x32xf32>
    %c1_115 = arith.constant 1 : index
    %c0_116 = arith.constant 0 : index
    %c0_117 = arith.constant 0 : index
    %310 = vector.load %arg5[%c1_115, %c0_116, %c0_117] : memref<2x32x64xbf16, #tpu.memory_space<vmem>>, vector<1x32x64xbf16>
    %311 = vector.shape_cast %310 : vector<1x32x64xbf16> to vector<32x64xbf16>
    %c1_118 = arith.constant 1 : index
    %c0_119 = arith.constant 0 : index
    %c0_120 = arith.constant 0 : index
    %312 = vector.load %arg6[%c1_118, %c0_119, %c0_120] : memref<2x1x64xf32, #tpu.memory_space<vmem>>, vector<1x1x64xf32>
    %313 = vector.shape_cast %312 : vector<1x1x64xf32> to vector<1x64xf32>
    %c1_121 = arith.constant 1 : index
    %c0_122 = arith.constant 0 : index
    %c0_123 = arith.constant 0 : index
    %314 = vector.load %arg7[%c1_121, %c0_122, %c0_123] : memref<2x32x32xbf16, #tpu.memory_space<vmem>>, vector<1x32x32xbf16>
    %315 = vector.shape_cast %314 : vector<1x32x32xbf16> to vector<32x32xbf16>
    %c1_124 = arith.constant 1 : index
    %c0_125 = arith.constant 0 : index
    %c0_126 = arith.constant 0 : index
    %316 = vector.load %arg8[%c1_124, %c0_125, %c0_126] : memref<2x1x32xf32, #tpu.memory_space<vmem>>, vector<1x1x32xf32>
    %317 = vector.shape_cast %316 : vector<1x1x32xf32> to vector<1x32xf32>
    %c1_127 = arith.constant 1 : index
    %c0_128 = arith.constant 0 : index
    %c0_129 = arith.constant 0 : index
    %318 = vector.load %arg9[%c1_127, %c0_128, %c0_129] : memref<2x1x32xf32, #tpu.memory_space<vmem>>, vector<1x1x32xf32>
    %319 = vector.shape_cast %318 : vector<1x1x32xf32> to vector<1x32xf32>
    %c1_130 = arith.constant 1 : index
    %c0_131 = arith.constant 0 : index
    %c0_132 = arith.constant 0 : index
    %320 = vector.load %arg10[%c1_130, %c0_131, %c0_132] : memref<2x1x32xf32, #tpu.memory_space<vmem>>, vector<1x1x32xf32>
    %321 = vector.shape_cast %320 : vector<1x1x32xf32> to vector<1x32xf32>
    %c1_133 = arith.constant 1 : index
    %c0_134 = arith.constant 0 : index
    %c0_135 = arith.constant 0 : index
    %322 = vector.load %arg11[%c1_133, %c0_134, %c0_135] : memref<2x1x32xf32, #tpu.memory_space<vmem>>, vector<1x1x32xf32>
    %323 = vector.shape_cast %322 : vector<1x1x32xf32> to vector<1x32xf32>
    %c1_136 = arith.constant 1 : index
    %c0_137 = arith.constant 0 : index
    %c0_138 = arith.constant 0 : index
    %324 = vector.load %arg12[%c1_136, %c0_137, %c0_138] : memref<2x1x32xf32, #tpu.memory_space<vmem>>, vector<1x1x32xf32>
    %325 = vector.shape_cast %324 : vector<1x1x32xf32> to vector<1x32xf32>
    %c1_139 = arith.constant 1 : index
    %c0_140 = arith.constant 0 : index
    %c0_141 = arith.constant 0 : index
    %326 = vector.load %arg13[%c1_139, %c0_140, %c0_141] : memref<2x32x32xbf16, #tpu.memory_space<vmem>>, vector<1x32x32xbf16>
    %327 = vector.shape_cast %326 : vector<1x32x32xbf16> to vector<32x32xbf16>
    %c1_142 = arith.constant 1 : index
    %c0_143 = arith.constant 0 : index
    %c0_144 = arith.constant 0 : index
    %328 = vector.load %arg14[%c1_142, %c0_143, %c0_144] : memref<2x1x32xf32, #tpu.memory_space<vmem>>, vector<1x1x32xf32>
    %329 = vector.shape_cast %328 : vector<1x1x32xf32> to vector<1x32xf32>
    %c1_145 = arith.constant 1 : index
    %c0_146 = arith.constant 0 : index
    %c0_147 = arith.constant 0 : index
    %330 = vector.load %arg15[%c1_145, %c0_146, %c0_147] : memref<2x32x32xbf16, #tpu.memory_space<vmem>>, vector<1x32x32xbf16>
    %331 = vector.shape_cast %330 : vector<1x32x32xbf16> to vector<32x32xbf16>
    %c1_148 = arith.constant 1 : index
    %c0_149 = arith.constant 0 : index
    %c0_150 = arith.constant 0 : index
    %332 = vector.load %arg16[%c1_148, %c0_149, %c0_150] : memref<2x1x32xf32, #tpu.memory_space<vmem>>, vector<1x1x32xf32>
    %333 = vector.shape_cast %332 : vector<1x1x32xf32> to vector<1x32xf32>
    %cst_151 = arith.constant dense<0.000000e+00> : vector<32xf32>
    %334 = vector.multi_reduction <add>, %305, %cst_151 [1] : vector<32x32xf32> to vector<32xf32>
    %335 = vector.shape_cast %334 : vector<32xf32> to vector<32x1xf32>
    %cst_152 = arith.constant 3.200000e+01 : f32
    %336 = vector.broadcast %cst_152 : f32 to vector<32x1xf32>
    %337 = arith.divf %335, %336 : vector<32x1xf32>
    %338 = vector.broadcast %337 : vector<32x1xf32> to vector<32x32xf32>
    %339 = arith.subf %305, %338 : vector<32x32xf32>
    %340 = arith.mulf %339, %339 : vector<32x32xf32>
    %cst_153 = arith.constant dense<0.000000e+00> : vector<32xf32>
    %341 = vector.multi_reduction <add>, %340, %cst_153 [1] : vector<32x32xf32> to vector<32xf32>
    %342 = vector.shape_cast %341 : vector<32xf32> to vector<32x1xf32>
    %cst_154 = arith.constant 3.200000e+01 : f32
    %343 = vector.broadcast %cst_154 : f32 to vector<32x1xf32>
    %344 = arith.divf %342, %343 : vector<32x1xf32>
    %345 = vector.broadcast %337 : vector<32x1xf32> to vector<32x32xf32>
    %346 = arith.subf %305, %345 : vector<32x32xf32>
    %cst_155 = arith.constant 9.99999993E-9 : f32
    %347 = vector.broadcast %cst_155 : f32 to vector<32x1xf32>
    %348 = arith.addf %344, %347 : vector<32x1xf32>
    %349 = math.rsqrt %348 : vector<32x1xf32>
    %350 = vector.broadcast %349 : vector<32x1xf32> to vector<32x32xf32>
    %351 = arith.mulf %346, %350 : vector<32x32xf32>
    %352 = vector.broadcast %319 : vector<1x32xf32> to vector<32x32xf32>
    %353 = arith.mulf %351, %352 : vector<32x32xf32>
    %354 = vector.broadcast %321 : vector<1x32xf32> to vector<32x32xf32>
    %355 = arith.addf %353, %354 : vector<32x32xf32>
    %356 = arith.truncf %355 : vector<32x32xf32> to vector<32x32xbf16>
    %cst_156 = arith.constant dense<0.000000e+00> : vector<32x32xf32>
    %357 = tpu.matmul %356, %307, %cst_156 {dimension_numbers = #tpu.dot_dimension_numbers<[1], [0], [0], [1], [0, 0, 1, 1], [], []>} : vector<32x32xbf16>, vector<32x32xbf16>, vector<32x32xf32> -> vector<32x32xf32>
    %358 = vector.broadcast %309 : vector<1x32xf32> to vector<32x32xf32>
    %359 = arith.addf %357, %358 : vector<32x32xf32>
    %360 = arith.truncf %305 : vector<32x32xf32> to vector<32x32xbf16>
    %cst_157 = arith.constant dense<0.000000e+00> : vector<32x64xf32>
    %361 = tpu.matmul %360, %311, %cst_157 {dimension_numbers = #tpu.dot_dimension_numbers<[1], [0], [0], [1], [0, 0, 1, 1], [], []>} : vector<32x32xbf16>, vector<32x64xbf16>, vector<32x64xf32> -> vector<32x64xf32>
    %362 = vector.broadcast %313 : vector<1x64xf32> to vector<32x64xf32>
    %363 = arith.addf %361, %362 : vector<32x64xf32>
    %364 = vector.extract_strided_slice %363 {offsets = [0, 0], sizes = [32, 32], strides = [1, 1]} : vector<32x64xf32> to vector<32x32xf32>
    %365 = vector.extract_strided_slice %363 {offsets = [0, 32], sizes = [32, 32], strides = [1, 1]} : vector<32x64xf32> to vector<32x32xf32>
    %366 = vector.shape_cast %359 : vector<32x32xf32> to vector<4x8x32xf32>
    %367 = arith.truncf %366 : vector<4x8x32xf32> to vector<4x8x32xbf16>
    %368 = vector.shape_cast %364 : vector<32x32xf32> to vector<4x8x32xf32>
    %369 = arith.truncf %368 : vector<4x8x32xf32> to vector<4x8x32xbf16>
    %370 = vector.shape_cast %365 : vector<32x32xf32> to vector<4x8x32xf32>
    %371 = arith.truncf %370 : vector<4x8x32xf32> to vector<4x8x32xbf16>
    %372 = vector.extract_strided_slice %367 {offsets = [0, 0, 0], sizes = [4, 8, 4], strides = [1, 1, 1]} : vector<4x8x32xbf16> to vector<4x8x4xbf16>
    %373 = vector.extract_strided_slice %369 {offsets = [0, 0, 0], sizes = [4, 8, 4], strides = [1, 1, 1]} : vector<4x8x32xbf16> to vector<4x8x4xbf16>
    %374 = vector.extract_strided_slice %371 {offsets = [0, 0, 0], sizes = [4, 8, 4], strides = [1, 1, 1]} : vector<4x8x32xbf16> to vector<4x8x4xbf16>
    "tpu.trace_start"() <{level = 10 : i32, message = "bqd,bkd->bqk"}> : () -> ()
    %cst_158 = arith.constant dense<0.000000e+00> : vector<4x8x8xf32>
    %375 = tpu.matmul %372, %373, %cst_158 {dimension_numbers = #tpu.dot_dimension_numbers<[2], [2], [1], [1], [0, 0, 0, 1, 1, 1], [0], [0]>} : vector<4x8x4xbf16>, vector<4x8x4xbf16>, vector<4x8x8xf32> -> vector<4x8x8xf32>
    "tpu.trace_stop"() : () -> ()
    %cst_159 = arith.constant 5.000000e-01 : f32
    %376 = vector.broadcast %cst_159 : f32 to vector<4x8x8xf32>
    %377 = arith.mulf %375, %376 : vector<4x8x8xf32>
    %cst_160 = arith.constant -1.000000e+30 : f32
    %378 = vector.shape_cast %15 : vector<1x8x8xi1> to vector<1x8x8xi1>
    %379 = vector.broadcast %378 : vector<1x8x8xi1> to vector<4x8x8xi1>
    %380 = vector.broadcast %cst_160 : f32 to vector<4x8x8xf32>
    %381 = arith.select %379, %377, %380 : vector<4x8x8xi1>, vector<4x8x8xf32>
    %cst_161 = arith.constant dense<0xFF800000> : vector<4x8xf32>
    %382 = vector.multi_reduction <maximumf>, %381, %cst_161 [2] : vector<4x8x8xf32> to vector<4x8xf32>
    %383 = vector.shape_cast %382 : vector<4x8xf32> to vector<4x8x1xf32>
    %384 = vector.broadcast %383 : vector<4x8x1xf32> to vector<4x8x8xf32>
    %385 = arith.subf %381, %384 : vector<4x8x8xf32>
    %386 = math.exp %385 : vector<4x8x8xf32>
    %cst_162 = arith.constant dense<0.000000e+00> : vector<4x8xf32>
    %387 = vector.multi_reduction <add>, %386, %cst_162 [2] : vector<4x8x8xf32> to vector<4x8xf32>
    %388 = vector.shape_cast %387 : vector<4x8xf32> to vector<4x8x1xf32>
    %389 = tpu.reciprocal %388 {approx = true} : vector<4x8x1xf32> -> vector<4x8x1xf32>
    %390 = vector.broadcast %389 : vector<4x8x1xf32> to vector<4x8x8xf32>
    %391 = arith.mulf %386, %390 : vector<4x8x8xf32>
    %392 = arith.truncf %391 : vector<4x8x8xf32> to vector<4x8x8xbf16>
    "tpu.trace_start"() <{level = 10 : i32, message = "bqk,bkd->bqd"}> : () -> ()
    %cst_163 = arith.constant dense<0.000000e+00> : vector<4x8x4xf32>
    %393 = tpu.matmul %392, %374, %cst_163 {dimension_numbers = #tpu.dot_dimension_numbers<[2], [1], [1], [2], [0, 0, 0, 1, 1, 2], [0], [0]>} : vector<4x8x8xbf16>, vector<4x8x4xbf16>, vector<4x8x4xf32> -> vector<4x8x4xf32>
    "tpu.trace_stop"() : () -> ()
    %394 = vector.shape_cast %393 : vector<4x8x4xf32> to vector<32x4xf32>
    %395 = vector.extract_strided_slice %367 {offsets = [0, 0, 4], sizes = [4, 8, 4], strides = [1, 1, 1]} : vector<4x8x32xbf16> to vector<4x8x4xbf16>
    %396 = vector.extract_strided_slice %369 {offsets = [0, 0, 4], sizes = [4, 8, 4], strides = [1, 1, 1]} : vector<4x8x32xbf16> to vector<4x8x4xbf16>
    %397 = vector.extract_strided_slice %371 {offsets = [0, 0, 4], sizes = [4, 8, 4], strides = [1, 1, 1]} : vector<4x8x32xbf16> to vector<4x8x4xbf16>
    "tpu.trace_start"() <{level = 10 : i32, message = "bqd,bkd->bqk"}> : () -> ()
    %cst_164 = arith.constant dense<0.000000e+00> : vector<4x8x8xf32>
    %398 = tpu.matmul %395, %396, %cst_164 {dimension_numbers = #tpu.dot_dimension_numbers<[2], [2], [1], [1], [0, 0, 0, 1, 1, 1], [0], [0]>} : vector<4x8x4xbf16>, vector<4x8x4xbf16>, vector<4x8x8xf32> -> vector<4x8x8xf32>
    "tpu.trace_stop"() : () -> ()
    %cst_165 = arith.constant 5.000000e-01 : f32
    %399 = vector.broadcast %cst_165 : f32 to vector<4x8x8xf32>
    %400 = arith.mulf %398, %399 : vector<4x8x8xf32>
    %cst_166 = arith.constant -1.000000e+30 : f32
    %401 = vector.shape_cast %15 : vector<1x8x8xi1> to vector<1x8x8xi1>
    %402 = vector.broadcast %401 : vector<1x8x8xi1> to vector<4x8x8xi1>
    %403 = vector.broadcast %cst_166 : f32 to vector<4x8x8xf32>
    %404 = arith.select %402, %400, %403 : vector<4x8x8xi1>, vector<4x8x8xf32>
    %cst_167 = arith.constant dense<0xFF800000> : vector<4x8xf32>
    %405 = vector.multi_reduction <maximumf>, %404, %cst_167 [2] : vector<4x8x8xf32> to vector<4x8xf32>
    %406 = vector.shape_cast %405 : vector<4x8xf32> to vector<4x8x1xf32>
    %407 = vector.broadcast %406 : vector<4x8x1xf32> to vector<4x8x8xf32>
    %408 = arith.subf %404, %407 : vector<4x8x8xf32>
    %409 = math.exp %408 : vector<4x8x8xf32>
    %cst_168 = arith.constant dense<0.000000e+00> : vector<4x8xf32>
    %410 = vector.multi_reduction <add>, %409, %cst_168 [2] : vector<4x8x8xf32> to vector<4x8xf32>
    %411 = vector.shape_cast %410 : vector<4x8xf32> to vector<4x8x1xf32>
    %412 = tpu.reciprocal %411 {approx = true} : vector<4x8x1xf32> -> vector<4x8x1xf32>
    %413 = vector.broadcast %412 : vector<4x8x1xf32> to vector<4x8x8xf32>
    %414 = arith.mulf %409, %413 : vector<4x8x8xf32>
    %415 = arith.truncf %414 : vector<4x8x8xf32> to vector<4x8x8xbf16>
    "tpu.trace_start"() <{level = 10 : i32, message = "bqk,bkd->bqd"}> : () -> ()
    %cst_169 = arith.constant dense<0.000000e+00> : vector<4x8x4xf32>
    %416 = tpu.matmul %415, %397, %cst_169 {dimension_numbers = #tpu.dot_dimension_numbers<[2], [1], [1], [2], [0, 0, 0, 1, 1, 2], [0], [0]>} : vector<4x8x8xbf16>, vector<4x8x4xbf16>, vector<4x8x4xf32> -> vector<4x8x4xf32>
    "tpu.trace_stop"() : () -> ()
    %417 = vector.shape_cast %416 : vector<4x8x4xf32> to vector<32x4xf32>
    %418 = vector.extract_strided_slice %367 {offsets = [0, 0, 8], sizes = [4, 8, 4], strides = [1, 1, 1]} : vector<4x8x32xbf16> to vector<4x8x4xbf16>
    %419 = vector.extract_strided_slice %369 {offsets = [0, 0, 8], sizes = [4, 8, 4], strides = [1, 1, 1]} : vector<4x8x32xbf16> to vector<4x8x4xbf16>
    %420 = vector.extract_strided_slice %371 {offsets = [0, 0, 8], sizes = [4, 8, 4], strides = [1, 1, 1]} : vector<4x8x32xbf16> to vector<4x8x4xbf16>
    "tpu.trace_start"() <{level = 10 : i32, message = "bqd,bkd->bqk"}> : () -> ()
    %cst_170 = arith.constant dense<0.000000e+00> : vector<4x8x8xf32>
    %421 = tpu.matmul %418, %419, %cst_170 {dimension_numbers = #tpu.dot_dimension_numbers<[2], [2], [1], [1], [0, 0, 0, 1, 1, 1], [0], [0]>} : vector<4x8x4xbf16>, vector<4x8x4xbf16>, vector<4x8x8xf32> -> vector<4x8x8xf32>
    "tpu.trace_stop"() : () -> ()
    %cst_171 = arith.constant 5.000000e-01 : f32
    %422 = vector.broadcast %cst_171 : f32 to vector<4x8x8xf32>
    %423 = arith.mulf %421, %422 : vector<4x8x8xf32>
    %cst_172 = arith.constant -1.000000e+30 : f32
    %424 = vector.shape_cast %15 : vector<1x8x8xi1> to vector<1x8x8xi1>
    %425 = vector.broadcast %424 : vector<1x8x8xi1> to vector<4x8x8xi1>
    %426 = vector.broadcast %cst_172 : f32 to vector<4x8x8xf32>
    %427 = arith.select %425, %423, %426 : vector<4x8x8xi1>, vector<4x8x8xf32>
    %cst_173 = arith.constant dense<0xFF800000> : vector<4x8xf32>
    %428 = vector.multi_reduction <maximumf>, %427, %cst_173 [2] : vector<4x8x8xf32> to vector<4x8xf32>
    %429 = vector.shape_cast %428 : vector<4x8xf32> to vector<4x8x1xf32>
    %430 = vector.broadcast %429 : vector<4x8x1xf32> to vector<4x8x8xf32>
    %431 = arith.subf %427, %430 : vector<4x8x8xf32>
    %432 = math.exp %431 : vector<4x8x8xf32>
    %cst_174 = arith.constant dense<0.000000e+00> : vector<4x8xf32>
    %433 = vector.multi_reduction <add>, %432, %cst_174 [2] : vector<4x8x8xf32> to vector<4x8xf32>
    %434 = vector.shape_cast %433 : vector<4x8xf32> to vector<4x8x1xf32>
    %435 = tpu.reciprocal %434 {approx = true} : vector<4x8x1xf32> -> vector<4x8x1xf32>
    %436 = vector.broadcast %435 : vector<4x8x1xf32> to vector<4x8x8xf32>
    %437 = arith.mulf %432, %436 : vector<4x8x8xf32>
    %438 = arith.truncf %437 : vector<4x8x8xf32> to vector<4x8x8xbf16>
    "tpu.trace_start"() <{level = 10 : i32, message = "bqk,bkd->bqd"}> : () -> ()
    %cst_175 = arith.constant dense<0.000000e+00> : vector<4x8x4xf32>
    %439 = tpu.matmul %438, %420, %cst_175 {dimension_numbers = #tpu.dot_dimension_numbers<[2], [1], [1], [2], [0, 0, 0, 1, 1, 2], [0], [0]>} : vector<4x8x8xbf16>, vector<4x8x4xbf16>, vector<4x8x4xf32> -> vector<4x8x4xf32>
    "tpu.trace_stop"() : () -> ()
    %440 = vector.shape_cast %439 : vector<4x8x4xf32> to vector<32x4xf32>
    %441 = vector.extract_strided_slice %367 {offsets = [0, 0, 12], sizes = [4, 8, 4], strides = [1, 1, 1]} : vector<4x8x32xbf16> to vector<4x8x4xbf16>
    %442 = vector.extract_strided_slice %369 {offsets = [0, 0, 12], sizes = [4, 8, 4], strides = [1, 1, 1]} : vector<4x8x32xbf16> to vector<4x8x4xbf16>
    %443 = vector.extract_strided_slice %371 {offsets = [0, 0, 12], sizes = [4, 8, 4], strides = [1, 1, 1]} : vector<4x8x32xbf16> to vector<4x8x4xbf16>
    "tpu.trace_start"() <{level = 10 : i32, message = "bqd,bkd->bqk"}> : () -> ()
    %cst_176 = arith.constant dense<0.000000e+00> : vector<4x8x8xf32>
    %444 = tpu.matmul %441, %442, %cst_176 {dimension_numbers = #tpu.dot_dimension_numbers<[2], [2], [1], [1], [0, 0, 0, 1, 1, 1], [0], [0]>} : vector<4x8x4xbf16>, vector<4x8x4xbf16>, vector<4x8x8xf32> -> vector<4x8x8xf32>
    "tpu.trace_stop"() : () -> ()
    %cst_177 = arith.constant 5.000000e-01 : f32
    %445 = vector.broadcast %cst_177 : f32 to vector<4x8x8xf32>
    %446 = arith.mulf %444, %445 : vector<4x8x8xf32>
    %cst_178 = arith.constant -1.000000e+30 : f32
    %447 = vector.shape_cast %15 : vector<1x8x8xi1> to vector<1x8x8xi1>
    %448 = vector.broadcast %447 : vector<1x8x8xi1> to vector<4x8x8xi1>
    %449 = vector.broadcast %cst_178 : f32 to vector<4x8x8xf32>
    %450 = arith.select %448, %446, %449 : vector<4x8x8xi1>, vector<4x8x8xf32>
    %cst_179 = arith.constant dense<0xFF800000> : vector<4x8xf32>
    %451 = vector.multi_reduction <maximumf>, %450, %cst_179 [2] : vector<4x8x8xf32> to vector<4x8xf32>
    %452 = vector.shape_cast %451 : vector<4x8xf32> to vector<4x8x1xf32>
    %453 = vector.broadcast %452 : vector<4x8x1xf32> to vector<4x8x8xf32>
    %454 = arith.subf %450, %453 : vector<4x8x8xf32>
    %455 = math.exp %454 : vector<4x8x8xf32>
    %cst_180 = arith.constant dense<0.000000e+00> : vector<4x8xf32>
    %456 = vector.multi_reduction <add>, %455, %cst_180 [2] : vector<4x8x8xf32> to vector<4x8xf32>
    %457 = vector.shape_cast %456 : vector<4x8xf32> to vector<4x8x1xf32>
    %458 = tpu.reciprocal %457 {approx = true} : vector<4x8x1xf32> -> vector<4x8x1xf32>
    %459 = vector.broadcast %458 : vector<4x8x1xf32> to vector<4x8x8xf32>
    %460 = arith.mulf %455, %459 : vector<4x8x8xf32>
    %461 = arith.truncf %460 : vector<4x8x8xf32> to vector<4x8x8xbf16>
    "tpu.trace_start"() <{level = 10 : i32, message = "bqk,bkd->bqd"}> : () -> ()
    %cst_181 = arith.constant dense<0.000000e+00> : vector<4x8x4xf32>
    %462 = tpu.matmul %461, %443, %cst_181 {dimension_numbers = #tpu.dot_dimension_numbers<[2], [1], [1], [2], [0, 0, 0, 1, 1, 2], [0], [0]>} : vector<4x8x8xbf16>, vector<4x8x4xbf16>, vector<4x8x4xf32> -> vector<4x8x4xf32>
    "tpu.trace_stop"() : () -> ()
    %463 = vector.shape_cast %462 : vector<4x8x4xf32> to vector<32x4xf32>
    %464 = vector.extract_strided_slice %367 {offsets = [0, 0, 16], sizes = [4, 8, 4], strides = [1, 1, 1]} : vector<4x8x32xbf16> to vector<4x8x4xbf16>
    %465 = vector.extract_strided_slice %369 {offsets = [0, 0, 16], sizes = [4, 8, 4], strides = [1, 1, 1]} : vector<4x8x32xbf16> to vector<4x8x4xbf16>
    %466 = vector.extract_strided_slice %371 {offsets = [0, 0, 16], sizes = [4, 8, 4], strides = [1, 1, 1]} : vector<4x8x32xbf16> to vector<4x8x4xbf16>
    "tpu.trace_start"() <{level = 10 : i32, message = "bqd,bkd->bqk"}> : () -> ()
    %cst_182 = arith.constant dense<0.000000e+00> : vector<4x8x8xf32>
    %467 = tpu.matmul %464, %465, %cst_182 {dimension_numbers = #tpu.dot_dimension_numbers<[2], [2], [1], [1], [0, 0, 0, 1, 1, 1], [0], [0]>} : vector<4x8x4xbf16>, vector<4x8x4xbf16>, vector<4x8x8xf32> -> vector<4x8x8xf32>
    "tpu.trace_stop"() : () -> ()
    %cst_183 = arith.constant 5.000000e-01 : f32
    %468 = vector.broadcast %cst_183 : f32 to vector<4x8x8xf32>
    %469 = arith.mulf %467, %468 : vector<4x8x8xf32>
    %cst_184 = arith.constant -1.000000e+30 : f32
    %470 = vector.shape_cast %15 : vector<1x8x8xi1> to vector<1x8x8xi1>
    %471 = vector.broadcast %470 : vector<1x8x8xi1> to vector<4x8x8xi1>
    %472 = vector.broadcast %cst_184 : f32 to vector<4x8x8xf32>
    %473 = arith.select %471, %469, %472 : vector<4x8x8xi1>, vector<4x8x8xf32>
    %cst_185 = arith.constant dense<0xFF800000> : vector<4x8xf32>
    %474 = vector.multi_reduction <maximumf>, %473, %cst_185 [2] : vector<4x8x8xf32> to vector<4x8xf32>
    %475 = vector.shape_cast %474 : vector<4x8xf32> to vector<4x8x1xf32>
    %476 = vector.broadcast %475 : vector<4x8x1xf32> to vector<4x8x8xf32>
    %477 = arith.subf %473, %476 : vector<4x8x8xf32>
    %478 = math.exp %477 : vector<4x8x8xf32>
    %cst_186 = arith.constant dense<0.000000e+00> : vector<4x8xf32>
    %479 = vector.multi_reduction <add>, %478, %cst_186 [2] : vector<4x8x8xf32> to vector<4x8xf32>
    %480 = vector.shape_cast %479 : vector<4x8xf32> to vector<4x8x1xf32>
    %481 = tpu.reciprocal %480 {approx = true} : vector<4x8x1xf32> -> vector<4x8x1xf32>
    %482 = vector.broadcast %481 : vector<4x8x1xf32> to vector<4x8x8xf32>
    %483 = arith.mulf %478, %482 : vector<4x8x8xf32>
    %484 = arith.truncf %483 : vector<4x8x8xf32> to vector<4x8x8xbf16>
    "tpu.trace_start"() <{level = 10 : i32, message = "bqk,bkd->bqd"}> : () -> ()
    %cst_187 = arith.constant dense<0.000000e+00> : vector<4x8x4xf32>
    %485 = tpu.matmul %484, %466, %cst_187 {dimension_numbers = #tpu.dot_dimension_numbers<[2], [1], [1], [2], [0, 0, 0, 1, 1, 2], [0], [0]>} : vector<4x8x8xbf16>, vector<4x8x4xbf16>, vector<4x8x4xf32> -> vector<4x8x4xf32>
    "tpu.trace_stop"() : () -> ()
    %486 = vector.shape_cast %485 : vector<4x8x4xf32> to vector<32x4xf32>
    %487 = vector.extract_strided_slice %367 {offsets = [0, 0, 20], sizes = [4, 8, 4], strides = [1, 1, 1]} : vector<4x8x32xbf16> to vector<4x8x4xbf16>
    %488 = vector.extract_strided_slice %369 {offsets = [0, 0, 20], sizes = [4, 8, 4], strides = [1, 1, 1]} : vector<4x8x32xbf16> to vector<4x8x4xbf16>
    %489 = vector.extract_strided_slice %371 {offsets = [0, 0, 20], sizes = [4, 8, 4], strides = [1, 1, 1]} : vector<4x8x32xbf16> to vector<4x8x4xbf16>
    "tpu.trace_start"() <{level = 10 : i32, message = "bqd,bkd->bqk"}> : () -> ()
    %cst_188 = arith.constant dense<0.000000e+00> : vector<4x8x8xf32>
    %490 = tpu.matmul %487, %488, %cst_188 {dimension_numbers = #tpu.dot_dimension_numbers<[2], [2], [1], [1], [0, 0, 0, 1, 1, 1], [0], [0]>} : vector<4x8x4xbf16>, vector<4x8x4xbf16>, vector<4x8x8xf32> -> vector<4x8x8xf32>
    "tpu.trace_stop"() : () -> ()
    %cst_189 = arith.constant 5.000000e-01 : f32
    %491 = vector.broadcast %cst_189 : f32 to vector<4x8x8xf32>
    %492 = arith.mulf %490, %491 : vector<4x8x8xf32>
    %cst_190 = arith.constant -1.000000e+30 : f32
    %493 = vector.shape_cast %15 : vector<1x8x8xi1> to vector<1x8x8xi1>
    %494 = vector.broadcast %493 : vector<1x8x8xi1> to vector<4x8x8xi1>
    %495 = vector.broadcast %cst_190 : f32 to vector<4x8x8xf32>
    %496 = arith.select %494, %492, %495 : vector<4x8x8xi1>, vector<4x8x8xf32>
    %cst_191 = arith.constant dense<0xFF800000> : vector<4x8xf32>
    %497 = vector.multi_reduction <maximumf>, %496, %cst_191 [2] : vector<4x8x8xf32> to vector<4x8xf32>
    %498 = vector.shape_cast %497 : vector<4x8xf32> to vector<4x8x1xf32>
    %499 = vector.broadcast %498 : vector<4x8x1xf32> to vector<4x8x8xf32>
    %500 = arith.subf %496, %499 : vector<4x8x8xf32>
    %501 = math.exp %500 : vector<4x8x8xf32>
    %cst_192 = arith.constant dense<0.000000e+00> : vector<4x8xf32>
    %502 = vector.multi_reduction <add>, %501, %cst_192 [2] : vector<4x8x8xf32> to vector<4x8xf32>
    %503 = vector.shape_cast %502 : vector<4x8xf32> to vector<4x8x1xf32>
    %504 = tpu.reciprocal %503 {approx = true} : vector<4x8x1xf32> -> vector<4x8x1xf32>
    %505 = vector.broadcast %504 : vector<4x8x1xf32> to vector<4x8x8xf32>
    %506 = arith.mulf %501, %505 : vector<4x8x8xf32>
    %507 = arith.truncf %506 : vector<4x8x8xf32> to vector<4x8x8xbf16>
    "tpu.trace_start"() <{level = 10 : i32, message = "bqk,bkd->bqd"}> : () -> ()
    %cst_193 = arith.constant dense<0.000000e+00> : vector<4x8x4xf32>
    %508 = tpu.matmul %507, %489, %cst_193 {dimension_numbers = #tpu.dot_dimension_numbers<[2], [1], [1], [2], [0, 0, 0, 1, 1, 2], [0], [0]>} : vector<4x8x8xbf16>, vector<4x8x4xbf16>, vector<4x8x4xf32> -> vector<4x8x4xf32>
    "tpu.trace_stop"() : () -> ()
    %509 = vector.shape_cast %508 : vector<4x8x4xf32> to vector<32x4xf32>
    %510 = vector.extract_strided_slice %367 {offsets = [0, 0, 24], sizes = [4, 8, 4], strides = [1, 1, 1]} : vector<4x8x32xbf16> to vector<4x8x4xbf16>
    %511 = vector.extract_strided_slice %369 {offsets = [0, 0, 24], sizes = [4, 8, 4], strides = [1, 1, 1]} : vector<4x8x32xbf16> to vector<4x8x4xbf16>
    %512 = vector.extract_strided_slice %371 {offsets = [0, 0, 24], sizes = [4, 8, 4], strides = [1, 1, 1]} : vector<4x8x32xbf16> to vector<4x8x4xbf16>
    "tpu.trace_start"() <{level = 10 : i32, message = "bqd,bkd->bqk"}> : () -> ()
    %cst_194 = arith.constant dense<0.000000e+00> : vector<4x8x8xf32>
    %513 = tpu.matmul %510, %511, %cst_194 {dimension_numbers = #tpu.dot_dimension_numbers<[2], [2], [1], [1], [0, 0, 0, 1, 1, 1], [0], [0]>} : vector<4x8x4xbf16>, vector<4x8x4xbf16>, vector<4x8x8xf32> -> vector<4x8x8xf32>
    "tpu.trace_stop"() : () -> ()
    %cst_195 = arith.constant 5.000000e-01 : f32
    %514 = vector.broadcast %cst_195 : f32 to vector<4x8x8xf32>
    %515 = arith.mulf %513, %514 : vector<4x8x8xf32>
    %cst_196 = arith.constant -1.000000e+30 : f32
    %516 = vector.shape_cast %15 : vector<1x8x8xi1> to vector<1x8x8xi1>
    %517 = vector.broadcast %516 : vector<1x8x8xi1> to vector<4x8x8xi1>
    %518 = vector.broadcast %cst_196 : f32 to vector<4x8x8xf32>
    %519 = arith.select %517, %515, %518 : vector<4x8x8xi1>, vector<4x8x8xf32>
    %cst_197 = arith.constant dense<0xFF800000> : vector<4x8xf32>
    %520 = vector.multi_reduction <maximumf>, %519, %cst_197 [2] : vector<4x8x8xf32> to vector<4x8xf32>
    %521 = vector.shape_cast %520 : vector<4x8xf32> to vector<4x8x1xf32>
    %522 = vector.broadcast %521 : vector<4x8x1xf32> to vector<4x8x8xf32>
    %523 = arith.subf %519, %522 : vector<4x8x8xf32>
    %524 = math.exp %523 : vector<4x8x8xf32>
    %cst_198 = arith.constant dense<0.000000e+00> : vector<4x8xf32>
    %525 = vector.multi_reduction <add>, %524, %cst_198 [2] : vector<4x8x8xf32> to vector<4x8xf32>
    %526 = vector.shape_cast %525 : vector<4x8xf32> to vector<4x8x1xf32>
    %527 = tpu.reciprocal %526 {approx = true} : vector<4x8x1xf32> -> vector<4x8x1xf32>
    %528 = vector.broadcast %527 : vector<4x8x1xf32> to vector<4x8x8xf32>
    %529 = arith.mulf %524, %528 : vector<4x8x8xf32>
    %530 = arith.truncf %529 : vector<4x8x8xf32> to vector<4x8x8xbf16>
    "tpu.trace_start"() <{level = 10 : i32, message = "bqk,bkd->bqd"}> : () -> ()
    %cst_199 = arith.constant dense<0.000000e+00> : vector<4x8x4xf32>
    %531 = tpu.matmul %530, %512, %cst_199 {dimension_numbers = #tpu.dot_dimension_numbers<[2], [1], [1], [2], [0, 0, 0, 1, 1, 2], [0], [0]>} : vector<4x8x8xbf16>, vector<4x8x4xbf16>, vector<4x8x4xf32> -> vector<4x8x4xf32>
    "tpu.trace_stop"() : () -> ()
    %532 = vector.shape_cast %531 : vector<4x8x4xf32> to vector<32x4xf32>
    %533 = vector.extract_strided_slice %367 {offsets = [0, 0, 28], sizes = [4, 8, 4], strides = [1, 1, 1]} : vector<4x8x32xbf16> to vector<4x8x4xbf16>
    %534 = vector.extract_strided_slice %369 {offsets = [0, 0, 28], sizes = [4, 8, 4], strides = [1, 1, 1]} : vector<4x8x32xbf16> to vector<4x8x4xbf16>
    %535 = vector.extract_strided_slice %371 {offsets = [0, 0, 28], sizes = [4, 8, 4], strides = [1, 1, 1]} : vector<4x8x32xbf16> to vector<4x8x4xbf16>
    "tpu.trace_start"() <{level = 10 : i32, message = "bqd,bkd->bqk"}> : () -> ()
    %cst_200 = arith.constant dense<0.000000e+00> : vector<4x8x8xf32>
    %536 = tpu.matmul %533, %534, %cst_200 {dimension_numbers = #tpu.dot_dimension_numbers<[2], [2], [1], [1], [0, 0, 0, 1, 1, 1], [0], [0]>} : vector<4x8x4xbf16>, vector<4x8x4xbf16>, vector<4x8x8xf32> -> vector<4x8x8xf32>
    "tpu.trace_stop"() : () -> ()
    %cst_201 = arith.constant 5.000000e-01 : f32
    %537 = vector.broadcast %cst_201 : f32 to vector<4x8x8xf32>
    %538 = arith.mulf %536, %537 : vector<4x8x8xf32>
    %cst_202 = arith.constant -1.000000e+30 : f32
    %539 = vector.shape_cast %15 : vector<1x8x8xi1> to vector<1x8x8xi1>
    %540 = vector.broadcast %539 : vector<1x8x8xi1> to vector<4x8x8xi1>
    %541 = vector.broadcast %cst_202 : f32 to vector<4x8x8xf32>
    %542 = arith.select %540, %538, %541 : vector<4x8x8xi1>, vector<4x8x8xf32>
    %cst_203 = arith.constant dense<0xFF800000> : vector<4x8xf32>
    %543 = vector.multi_reduction <maximumf>, %542, %cst_203 [2] : vector<4x8x8xf32> to vector<4x8xf32>
    %544 = vector.shape_cast %543 : vector<4x8xf32> to vector<4x8x1xf32>
    %545 = vector.broadcast %544 : vector<4x8x1xf32> to vector<4x8x8xf32>
    %546 = arith.subf %542, %545 : vector<4x8x8xf32>
    %547 = math.exp %546 : vector<4x8x8xf32>
    %cst_204 = arith.constant dense<0.000000e+00> : vector<4x8xf32>
    %548 = vector.multi_reduction <add>, %547, %cst_204 [2] : vector<4x8x8xf32> to vector<4x8xf32>
    %549 = vector.shape_cast %548 : vector<4x8xf32> to vector<4x8x1xf32>
    %550 = tpu.reciprocal %549 {approx = true} : vector<4x8x1xf32> -> vector<4x8x1xf32>
    %551 = vector.broadcast %550 : vector<4x8x1xf32> to vector<4x8x8xf32>
    %552 = arith.mulf %547, %551 : vector<4x8x8xf32>
    %553 = arith.truncf %552 : vector<4x8x8xf32> to vector<4x8x8xbf16>
    "tpu.trace_start"() <{level = 10 : i32, message = "bqk,bkd->bqd"}> : () -> ()
    %cst_205 = arith.constant dense<0.000000e+00> : vector<4x8x4xf32>
    %554 = tpu.matmul %553, %535, %cst_205 {dimension_numbers = #tpu.dot_dimension_numbers<[2], [1], [1], [2], [0, 0, 0, 1, 1, 2], [0], [0]>} : vector<4x8x8xbf16>, vector<4x8x4xbf16>, vector<4x8x4xf32> -> vector<4x8x4xf32>
    "tpu.trace_stop"() : () -> ()
    %555 = vector.shape_cast %554 : vector<4x8x4xf32> to vector<32x4xf32>
    %556 = tpu.concatenate %394, %417, %440, %463, %486, %509, %532, %555 in 1 : vector<32x4xf32>, vector<32x4xf32>, vector<32x4xf32>, vector<32x4xf32>, vector<32x4xf32>, vector<32x4xf32>, vector<32x4xf32>, vector<32x4xf32> -> vector<32x32xf32>
    %557 = arith.truncf %556 : vector<32x32xf32> to vector<32x32xbf16>
    %cst_206 = arith.constant dense<0.000000e+00> : vector<32x32xf32>
    %558 = tpu.matmul %557, %315, %cst_206 {dimension_numbers = #tpu.dot_dimension_numbers<[1], [0], [0], [1], [0, 0, 1, 1], [], []>} : vector<32x32xbf16>, vector<32x32xbf16>, vector<32x32xf32> -> vector<32x32xf32>
    %559 = vector.broadcast %317 : vector<1x32xf32> to vector<32x32xf32>
    %560 = arith.addf %558, %559 : vector<32x32xf32>
    %561 = arith.addf %355, %560 : vector<32x32xf32>
    %cst_207 = arith.constant dense<0.000000e+00> : vector<32xf32>
    %562 = vector.multi_reduction <add>, %561, %cst_207 [1] : vector<32x32xf32> to vector<32xf32>
    %563 = vector.shape_cast %562 : vector<32xf32> to vector<32x1xf32>
    %cst_208 = arith.constant 3.200000e+01 : f32
    %564 = vector.broadcast %cst_208 : f32 to vector<32x1xf32>
    %565 = arith.divf %563, %564 : vector<32x1xf32>
    %566 = vector.broadcast %565 : vector<32x1xf32> to vector<32x32xf32>
    %567 = arith.subf %561, %566 : vector<32x32xf32>
    %568 = arith.mulf %567, %567 : vector<32x32xf32>
    %cst_209 = arith.constant dense<0.000000e+00> : vector<32xf32>
    %569 = vector.multi_reduction <add>, %568, %cst_209 [1] : vector<32x32xf32> to vector<32xf32>
    %570 = vector.shape_cast %569 : vector<32xf32> to vector<32x1xf32>
    %cst_210 = arith.constant 3.200000e+01 : f32
    %571 = vector.broadcast %cst_210 : f32 to vector<32x1xf32>
    %572 = arith.divf %570, %571 : vector<32x1xf32>
    %573 = vector.broadcast %565 : vector<32x1xf32> to vector<32x32xf32>
    %574 = arith.subf %561, %573 : vector<32x32xf32>
    %cst_211 = arith.constant 9.99999993E-9 : f32
    %575 = vector.broadcast %cst_211 : f32 to vector<32x1xf32>
    %576 = arith.addf %572, %575 : vector<32x1xf32>
    %577 = math.rsqrt %576 : vector<32x1xf32>
    %578 = vector.broadcast %577 : vector<32x1xf32> to vector<32x32xf32>
    %579 = arith.mulf %574, %578 : vector<32x32xf32>
    %580 = vector.broadcast %323 : vector<1x32xf32> to vector<32x32xf32>
    %581 = arith.mulf %579, %580 : vector<32x32xf32>
    %582 = vector.broadcast %325 : vector<1x32xf32> to vector<32x32xf32>
    %583 = arith.addf %581, %582 : vector<32x32xf32>
    %584 = arith.truncf %583 : vector<32x32xf32> to vector<32x32xbf16>
    %cst_212 = arith.constant dense<0.000000e+00> : vector<32x32xf32>
    %585 = tpu.matmul %584, %327, %cst_212 {dimension_numbers = #tpu.dot_dimension_numbers<[1], [0], [0], [1], [0, 0, 1, 1], [], []>} : vector<32x32xbf16>, vector<32x32xbf16>, vector<32x32xf32> -> vector<32x32xf32>
    %586 = vector.broadcast %329 : vector<1x32xf32> to vector<32x32xf32>
    %587 = arith.addf %585, %586 : vector<32x32xf32>
    %cst_213 = arith.constant 0.000000e+00 : f32
    %588 = vector.broadcast %cst_213 : f32 to vector<32x32xf32>
    %589 = arith.maximumf %587, %588 : vector<32x32xf32>
    %590 = arith.truncf %589 : vector<32x32xf32> to vector<32x32xbf16>
    %cst_214 = arith.constant dense<0.000000e+00> : vector<32x32xf32>
    %591 = tpu.matmul %590, %331, %cst_214 {dimension_numbers = #tpu.dot_dimension_numbers<[1], [0], [0], [1], [0, 0, 1, 1], [], []>} : vector<32x32xbf16>, vector<32x32xbf16>, vector<32x32xf32> -> vector<32x32xf32>
    %592 = vector.broadcast %333 : vector<1x32xf32> to vector<32x32xf32>
    %593 = arith.addf %591, %592 : vector<32x32xf32>
    %594 = arith.addf %593, %583 : vector<32x32xf32>
    %595 = arith.mulf %594, %9 : vector<32x32xf32>
    %c0_215 = arith.constant 0 : index
    %c0_216 = arith.constant 0 : index
    %596 = vector.load %arg17[%c0_215, %c0_216] : memref<1x32xf32, #tpu.memory_space<vmem>>, vector<1x32xf32>
    %c0_217 = arith.constant 0 : index
    %c0_218 = arith.constant 0 : index
    %597 = vector.load %arg18[%c0_217, %c0_218] : memref<1x32xf32, #tpu.memory_space<vmem>>, vector<1x32xf32>
    %cst_219 = arith.constant dense<0.000000e+00> : vector<32xf32>
    %598 = vector.multi_reduction <add>, %595, %cst_219 [1] : vector<32x32xf32> to vector<32xf32>
    %599 = vector.shape_cast %598 : vector<32xf32> to vector<32x1xf32>
    %cst_220 = arith.constant 3.200000e+01 : f32
    %600 = vector.broadcast %cst_220 : f32 to vector<32x1xf32>
    %601 = arith.divf %599, %600 : vector<32x1xf32>
    %602 = vector.broadcast %601 : vector<32x1xf32> to vector<32x32xf32>
    %603 = arith.subf %595, %602 : vector<32x32xf32>
    %604 = arith.mulf %603, %603 : vector<32x32xf32>
    %cst_221 = arith.constant dense<0.000000e+00> : vector<32xf32>
    %605 = vector.multi_reduction <add>, %604, %cst_221 [1] : vector<32x32xf32> to vector<32xf32>
    %606 = vector.shape_cast %605 : vector<32xf32> to vector<32x1xf32>
    %cst_222 = arith.constant 3.200000e+01 : f32
    %607 = vector.broadcast %cst_222 : f32 to vector<32x1xf32>
    %608 = arith.divf %606, %607 : vector<32x1xf32>
    %609 = vector.broadcast %601 : vector<32x1xf32> to vector<32x32xf32>
    %610 = arith.subf %595, %609 : vector<32x32xf32>
    %cst_223 = arith.constant 9.99999993E-9 : f32
    %611 = vector.broadcast %cst_223 : f32 to vector<32x1xf32>
    %612 = arith.addf %608, %611 : vector<32x1xf32>
    %613 = math.rsqrt %612 : vector<32x1xf32>
    %614 = vector.broadcast %613 : vector<32x1xf32> to vector<32x32xf32>
    %615 = arith.mulf %610, %614 : vector<32x32xf32>
    %616 = vector.broadcast %596 : vector<1x32xf32> to vector<32x32xf32>
    %617 = arith.mulf %615, %616 : vector<32x32xf32>
    %618 = vector.broadcast %597 : vector<1x32xf32> to vector<32x32xf32>
    %619 = arith.addf %617, %618 : vector<32x32xf32>
    %620 = vector.shape_cast %619 : vector<32x32xf32> to vector<4x8x32xf32>
    %c0_224 = arith.constant 0 : index
    %c0_225 = arith.constant 0 : index
    %c0_226 = arith.constant 0 : index
    %621 = vector.load %arg19[%c0_224, %c0_225, %c0_226] : memref<4x8x32xf32, #tpu.memory_space<vmem>>, vector<4x8x32xf32>
    tpu.vector_store %arg19[%c0_224, %c0_225, %c0_226], %620 {strides = array<i32>} : memref<4x8x32xf32, #tpu.memory_space<vmem>>, vector<4x8x32xf32>,
    return
  }
  func.func @transform_0(%arg0: i32) -> (i32, i32, i32) {
    %c0_i32 = arith.constant 0 : i32
    %c0_i32_0 = arith.constant 0 : i32
    %c0_i32_1 = arith.constant 0 : i32
    return %arg0, %c0_i32, %c0_i32_0 : i32, i32, i32
  }
  func.func @transform_1(%arg0: i32) -> (i32, i32) {
    %c0_i32 = arith.constant 0 : i32
    %c0_i32_0 = arith.constant 0 : i32
    %c0_i32_1 = arith.constant 0 : i32
    return %c0_i32, %c0_i32_0 : i32, i32
  }
  func.func @transform_2(%arg0: i32) -> (i32, i32, i32) {
    %c0_i32 = arith.constant 0 : i32
    %c0_i32_0 = arith.constant 0 : i32
    %c0_i32_1 = arith.constant 0 : i32
    %c0_i32_2 = arith.constant 0 : i32
    return %c0_i32, %c0_i32_0, %c0_i32_1 : i32, i32, i32
  }
  func.func @transform_3(%arg0: i32) -> (i32, i32, i32) {
    %c0_i32 = arith.constant 0 : i32
    %c0_i32_0 = arith.constant 0 : i32
    %c0_i32_1 = arith.constant 0 : i32
    %c0_i32_2 = arith.constant 0 : i32
    return %c0_i32, %c0_i32_0, %c0_i32_1 : i32, i32, i32
  }
  func.func @transform_4(%arg0: i32) -> (i32, i32, i32) {
    %c0_i32 = arith.constant 0 : i32
    %c0_i32_0 = arith.constant 0 : i32
    %c0_i32_1 = arith.constant 0 : i32
    %c0_i32_2 = arith.constant 0 : i32
    return %c0_i32, %c0_i32_0, %c0_i32_1 : i32, i32, i32
  }
  func.func @transform_5(%arg0: i32) -> (i32, i32, i32) {
    %c0_i32 = arith.constant 0 : i32
    %c0_i32_0 = arith.constant 0 : i32
    %c0_i32_1 = arith.constant 0 : i32
    %c0_i32_2 = arith.constant 0 : i32
    return %c0_i32, %c0_i32_0, %c0_i32_1 : i32, i32, i32
  }
  func.func @transform_6(%arg0: i32) -> (i32, i32, i32) {
    %c0_i32 = arith.constant 0 : i32
    %c0_i32_0 = arith.constant 0 : i32
    %c0_i32_1 = arith.constant 0 : i32
    %c0_i32_2 = arith.constant 0 : i32
    return %c0_i32, %c0_i32_0, %c0_i32_1 : i32, i32, i32
  }
  func.func @transform_7(%arg0: i32) -> (i32, i32, i32) {
    %c0_i32 = arith.constant 0 : i32
    %c0_i32_0 = arith.constant 0 : i32
    %c0_i32_1 = arith.constant 0 : i32
    %c0_i32_2 = arith.constant 0 : i32
    return %c0_i32, %c0_i32_0, %c0_i32_1 : i32, i32, i32
  }
  func.func @transform_8(%arg0: i32) -> (i32, i32, i32) {
    %c0_i32 = arith.constant 0 : i32
    %c0_i32_0 = arith.constant 0 : i32
    %c0_i32_1 = arith.constant 0 : i32
    %c0_i32_2 = arith.constant 0 : i32
    return %c0_i32, %c0_i32_0, %c0_i32_1 : i32, i32, i32
  }
  func.func @transform_9(%arg0: i32) -> (i32, i32, i32) {
    %c0_i32 = arith.constant 0 : i32
    %c0_i32_0 = arith.constant 0 : i32
    %c0_i32_1 = arith.constant 0 : i32
    %c0_i32_2 = arith.constant 0 : i32
    return %c0_i32, %c0_i32_0, %c0_i32_1 : i32, i32, i32
  }
  func.func @transform_10(%arg0: i32) -> (i32, i32, i32) {
    %c0_i32 = arith.constant 0 : i32
    %c0_i32_0 = arith.constant 0 : i32
    %c0_i32_1 = arith.constant 0 : i32
    %c0_i32_2 = arith.constant 0 : i32
    return %c0_i32, %c0_i32_0, %c0_i32_1 : i32, i32, i32
  }
  func.func @transform_11(%arg0: i32) -> (i32, i32, i32) {
    %c0_i32 = arith.constant 0 : i32
    %c0_i32_0 = arith.constant 0 : i32
    %c0_i32_1 = arith.constant 0 : i32
    %c0_i32_2 = arith.constant 0 : i32
    return %c0_i32, %c0_i32_0, %c0_i32_1 : i32, i32, i32
  }
  func.func @transform_12(%arg0: i32) -> (i32, i32, i32) {
    %c0_i32 = arith.constant 0 : i32
    %c0_i32_0 = arith.constant 0 : i32
    %c0_i32_1 = arith.constant 0 : i32
    %c0_i32_2 = arith.constant 0 : i32
    return %c0_i32, %c0_i32_0, %c0_i32_1 : i32, i32, i32
  }
  func.func @transform_13(%arg0: i32) -> (i32, i32, i32) {
    %c0_i32 = arith.constant 0 : i32
    %c0_i32_0 = arith.constant 0 : i32
    %c0_i32_1 = arith.constant 0 : i32
    %c0_i32_2 = arith.constant 0 : i32
    return %c0_i32, %c0_i32_0, %c0_i32_1 : i32, i32, i32
  }
  func.func @transform_14(%arg0: i32) -> (i32, i32, i32) {
    %c0_i32 = arith.constant 0 : i32
    %c0_i32_0 = arith.constant 0 : i32
    %c0_i32_1 = arith.constant 0 : i32
    %c0_i32_2 = arith.constant 0 : i32
    return %c0_i32, %c0_i32_0, %c0_i32_1 : i32, i32, i32
  }
  func.func @transform_15(%arg0: i32) -> (i32, i32, i32) {
    %c0_i32 = arith.constant 0 : i32
    %c0_i32_0 = arith.constant 0 : i32
    %c0_i32_1 = arith.constant 0 : i32
    %c0_i32_2 = arith.constant 0 : i32
    return %c0_i32, %c0_i32_0, %c0_i32_1 : i32, i32, i32
  }
  func.func @transform_16(%arg0: i32) -> (i32, i32) {
    %c0_i32 = arith.constant 0 : i32
    %c0_i32_0 = arith.constant 0 : i32
    %c0_i32_1 = arith.constant 0 : i32
    return %c0_i32, %c0_i32_0 : i32, i32
  }
  func.func @transform_17(%arg0: i32) -> (i32, i32) {
    %c0_i32 = arith.constant 0 : i32
    %c0_i32_0 = arith.constant 0 : i32
    %c0_i32_1 = arith.constant 0 : i32
    return %c0_i32, %c0_i32_0 : i32, i32
  }
  func.func @transform_18(%arg0: i32) -> (i32, i32, i32) {
    %c0_i32 = arith.constant 0 : i32
    %c0_i32_0 = arith.constant 0 : i32
    %c0_i32_1 = arith.constant 0 : i32
    return %arg0, %c0_i32, %c0_i32_0 : i32, i32, i32
  }
}

</mosaic_0001>

<bundles_post_ra>
// kernel: tpu_custom_call.1
= control target key start
LH: loop header
LB: loop body
LE: loop exit
PB: predicated region body
PF: predicated region fallthrough
CT: control target
= control target key end

     0   :  { %s13963_s0 = inlined_call_operand.hbm [shape: f32[8,8,32], index: 0, kind: input, shape index: {}]   ;;  %s13964_s1 = inlined_call_operand.hbm [shape: f32[8,32], index: 1, kind: input, shape index: {}]   ;;  %s13965_s2 = inlined_call_operand.hbm [shape: bf16[2,32,32], index: 2, kind: input, shape index: {}]   ;;  %s13966_s3 = inlined_call_operand.vmem [shape: f32[2,1,32], index: 3, kind: input, shape index: {}]   ;;  %s13967_s4 = inlined_call_operand.hbm [shape: bf16[2,32,64], index: 4, kind: input, shape index: {}]   ;;  %s13968_s5 = inlined_call_operand.vmem [shape: f32[2,1,64], index: 5, kind: input, shape index: {}]   ;;  %s13969_s6 = inlined_call_operand.hbm [shape: bf16[2,32,32], index: 6, kind: input, shape index: {}]   ;;  %s13970_s7 = inlined_call_operand.vmem [shape: f32[2,1,32], index: 7, kind: input, shape index: {}]   ;;  %s13971_s8 = inlined_call_operand.vmem [shape: f32[2,1,32], index: 8, kind: input, shape index: {}]   ;;  %s13972_s9 = inlined_call_operand.vmem [shape: f32[2,1,32], index: 9, kind: input, shape index: {}]   ;;  %s13973_s10 = inlined_call_operand.vmem [shape: f32[2,1,32], index: 10, kind: input, shape index: {}]   ;;  %s13974_s11 = inlined_call_operand.vmem [shape: f32[2,1,32], index: 11, kind: input, shape index: {}]   ;;  %s13975_s12 = inlined_call_operand.hbm [shape: bf16[2,32,32], index: 12, kind: input, shape index: {}]   ;;  %s13976_s13 = inlined_call_operand.vmem [shape: f32[2,1,32], index: 13, kind: input, shape index: {}]   ;;  %s13977_s14 = inlined_call_operand.hbm [shape: bf16[2,32,32], index: 14, kind: input, shape index: {}]   ;;  %s13978_s15 = inlined_call_operand.vmem [shape: f32[2,1,32], index: 15, kind: input, shape index: {}]   ;;  %s13979_s16 = inlined_call_operand.vmem [shape: f32[1,32], index: 16, kind: input, shape index: {}]   ;;  %s13980_s17 = inlined_call_operand.vmem [shape: f32[1,32], index: 17, kind: input, shape index: {}]   ;;  %s13981_s18 = inlined_call_operand.hbm [shape: f32[8,8,32], index: 18, kind: output, shape index: {}]  }
   0x1   :  { %14019 = sst [smem:[#allocation24_spill]] %s13963_s0 }
   0x2   :  { %14020 = sst [smem:[#allocation25_spill]] %s13964_s1 }
   0x3   :  { %14021 = sst [smem:[#allocation26_spill]] %s13965_s2 }
   0x4   :  { %14022 = sst [smem:[#allocation27_spill]] %s13967_s4 }
   0x5   :  { %14023 = sst [smem:[#allocation28_spill]] %s13969_s6 }
   0x6   :  { %14024 = sst [smem:[#allocation29_spill]] %s13975_s12 }
   0x7   :  { %14025 = sst [smem:[#allocation30_spill]] %s13977_s14 }
   0x8   :  { %14026 = sst [smem:[#allocation31_spill]] %s13980_s17 }
   0x9   :  { %14027 = sst [smem:[#allocation32_spill]] %s13981_s18 }
   0xa   :  { %23 = vsyncpa [#allocation3], 0 }
   0xb   :  { %25 = vsyncpa [#allocation3 + $0x1], 0 }
   0xc   :  { %26 = vsyncpa [#allocation6], 0 }
   0xd   :  { %27 = vsyncpa [#allocation9], 0 }
   0xe   :  { %28 = vsyncpa [#allocation12], 0 }
   0xf   :  { %29 = vsyncpa [#allocation4], 0 }
  0x10   :  { %31 = vsyncpa [#allocation4 + $0x1], 0  ;;  %s11895_s27 = smov 0   ;;  %s11897_s28 = smov 0  }
  0x11   :  { %s11899_s29 = smov 0   ;;  %s11901_s30 = smov 0  }
  0x12 LB: > { %14028 = sst [smem:[#allocation20_spill]] %s11757_s29  ;;  %s11763_s0 = smov [#allocation5]   ;;  %s11761_s30 = sphi %s11901_s30, %s14094_s30   ;;  %s11757_s29 = sphi %s11899_s29, %s14096_s29   ;;  %s11753_s28 = sphi %s11897_s28, %s14098_s28   ;;  %s11749_s27 = sphi %s11895_s27, %s14097_s27  }
  0x13   : > { %14029 = sst [smem:[#allocation21_spill]] %s11761_s30  ;;  %s464_s19 = sshll.u32 %s11763_s0, 4  ;;  %s465_s19 = int_to_ptr.vmem [resolvable:$true] %s464_s19 }
  0x14   : > { %s11916_s1 = sadd.s32 4294967295, %s11761_s30   ;;  %p9537_p0 = scmp.ge.s32.totalorder %s11761_s30, 1 }
  0x15   : > { %p13987_p1 = scmp.eq.s32.totalorder %s11916_s1, 0  ;;  %p451_p2 = scmp.lt.s32.totalorder %s11761_s30, 3 }
  0x16   : > { %s11764_s21 = smov [#allocation8]   ;;  %s11765_s23 = smov [#allocation11]  }
  0x17   : > { %p11921_p3 = pnand %p9537_p0, %p451_p2  ;;  %s490_s22 = sshll.u32 %s11764_s21, 4  ;;  %s11934_s22 = int_to_ptr.vmem [resolvable:$true] %s490_s22 }
  0x18   : > { %s534_s24 = sshll.u32 %s11765_s23, 4  ;;  %s11512_s26 = scalar_lea.vmem %s465_s19, 128  ;;  %s11936_s24 = int_to_ptr.vmem [resolvable:$true] %s534_s24 }
  0x19   : > { %s14030_s20 = scalar_select %p11921_p3, 1, 0 }
  0x1a   : > { %p10937_p5 = pneg %p11921_p3  ;;  %p11513_p8 = scmp.ne.s32.totalorder %s465_s19, %s11512_s26 }
  0x1b   : > { %p11520_p11 = scmp.lt.s32.totalorder %s465_s19, %s465_s19  ;;  %p11521_p12 = scmp.lt.s32.totalorder %s11512_s26, %s11512_s26 }
  0x1c   : > { %p11930_p6 = pnand %p10937_p5, %p13987_p1 }
  0x1d   : > { %p11522_p13 = por %p11521_p12, %p11520_p11 }
  0x1e   : > { %p11940_p7 = pneg %p11930_p6 }
  0x20   : > { %p11515_p9 = pnand %p11513_p8, %p11940_p7 }
  0x22   : > { %p11516_p10 = pneg %p11515_p9 }
  0x24   : > { %p11523_p0 = pnand %p11522_p13, %p11516_p10 }
  0x26   : > { %11526 = shalt.err (!%p11523_p0)
}
  0x27   : > { %s14033_s23 = sld [smem:[#allocation25_spill]]  ;;  %s11538_s18 = scalar_lea.vmem %s11934_s22, 512 }
  0x28   : > { %p11539_p2 = scmp.ne.s32.totalorder %s11934_s22, %s11538_s18  ;;  %p11546_p9 = scmp.lt.s32.totalorder %s11934_s22, %s11934_s22 }
  0x29   : > { %p11547_p11 = scmp.lt.s32.totalorder %s11538_s18, %s11538_s18 }
  0x2a   : > { %p11541_p5 = pnand %p11539_p2, %p11940_p7 }
  0x2b   : > { %p11548_p10 = por %p11547_p11, %p11546_p9 }
  0x2c   : > { %p11542_p8 = pneg %p11541_p5 }
  0x2d   : > { %10940 = dma.hbm_to_vmem [thread:$0]  (!%p11930_p6), %s14033_s23, 128, %s465_s19, [#allocation6]  }
  0x2e   : > { %p11549_p12 = pnand %p11548_p10, %p11542_p8 }
  0x30   : > { %11552 = shalt.err (!%p11549_p12)
}
  0x31   : > { %s11766_s26 = smov 64   ;;  %s11767_s0 = smov 4  }
  0x32   : > { %s14034_s4 = sld [smem:[#allocation27_spill]]  ;;  %s11564_s18 = scalar_lea.vmem %s11936_s24, 512 }
  0x33   : > { %p11565_p13 = scmp.ne.s32.totalorder %s11936_s24, %s11564_s18  ;;  %p11572_p5 = scmp.lt.s32.totalorder %s11936_s24, %s11936_s24 }
  0x34   : > { %p11573_p8 = scmp.lt.s32.totalorder %s11564_s18, %s11564_s18 }
  0x35   : > { %p11567_p0 = pnand %p11565_p13, %p11940_p7 }
  0x36   : > { %p11574_p9 = por %p11573_p8, %p11572_p5 }
  0x37   : > { %p11568_p2 = pneg %p11567_p0 }
  0x38   : > { %10946 = dma.hbm_to_vmem [thread:$0]  (!%p11930_p6), %s14034_s4, 512, %s11934_s22, [#allocation9], %s11766_s26, %s11766_s26, %s11767_s0  }
  0x39   : > { %p11575_p11 = pnand %p11574_p9, %p11568_p2 }
  0x3b   : > { %11578 = shalt.err (!%p11575_p11)
}
  0x3c   : > { %s14035_s12 = sld [smem:[#allocation29_spill]]  ;;  %s11768_s22 = smov [#allocation7]  }
  0x3d   : > { %s474_s21 = sshll.u32 %s11768_s22, 4  ;;  %s11769_s4 = smov [#allocation10]   ;;  %s475_s21 = int_to_ptr.vmem [resolvable:$true] %s474_s21 }
  0x3e   : > { %s506_s17 = sshll.u32 %s11769_s4, 4  ;;  %s11590_s18 = scalar_lea.vmem %s475_s21, 512  ;;  %s507_s17 = int_to_ptr.vmem [resolvable:$true] %s506_s17 }
  0x3f   : > { %p11591_p10 = scmp.ne.s32.totalorder %s475_s21, %s11590_s18  ;;  %p11598_p0 = scmp.lt.s32.totalorder %s475_s21, %s475_s21 }
  0x40   : > { %p11599_p2 = scmp.lt.s32.totalorder %s11590_s18, %s11590_s18 }
  0x41   : > { %p11593_p12 = pnand %p11591_p10, %p11940_p7 }
  0x42   : > { %10952 = dma.hbm_to_vmem [thread:$0]  (!%p11930_p6), %s14035_s12, 512, %s11936_s24, [#allocation12], %s11766_s26, %s11766_s26, %s11767_s0  }
  0x43   : > { %p11594_p13 = pneg %p11593_p12  ;;  %p11600_p5 = por %p11599_p2, %p11598_p0 }
  0x45   : > { %p11601_p8 = pnand %p11600_p5, %p11594_p13 }
  0x47   : > { %11604 = shalt.err (!%p11601_p8)
}
  0x48   : > { %s14036_s19 = sld [smem:[#allocation26_spill]]  ;;  %s11616_s4 = scalar_lea.vmem %s507_s17, 512 }
  0x49   : > { %p11617_p9 = scmp.ne.s32.totalorder %s507_s17, %s11616_s4  ;;  %p11624_p12 = scmp.lt.s32.totalorder %s507_s17, %s507_s17 }
  0x4a   : > { %p11625_p0 = scmp.lt.s32.totalorder %s11616_s4, %s11616_s4 }
  0x4b   : > { %p11619_p11 = pnand %p11617_p9, %p11940_p7 }
  0x4c   : > { %p11626_p13 = por %p11625_p0, %p11624_p12 }
  0x4d   : > { %p11620_p10 = pneg %p11619_p11 }
  0x4e   : > { %10943 = dma.hbm_to_vmem [thread:$0]  (!%p11930_p6), %s14036_s19, 512, %s475_s21, [#allocation6], %s11766_s26, %s11766_s26, %s11767_s0  }
  0x4f   : > { %p11627_p2 = pnand %p11626_p13, %p11620_p10 }
  0x51   : > { %11630 = shalt.err (!%p11627_p2)
}
  0x52   : > { %s14037_s6 = sld [smem:[#allocation28_spill]]  ;;  %s11770_s21 = smov [#allocation13]  }
  0x53   : > { %s550_s24 = sshll.u32 %s11770_s21, 4  ;;  %s551_s24 = int_to_ptr.vmem [resolvable:$true] %s550_s24 }
  0x54   : > { %s11642_s23 = scalar_lea.vmem %s551_s24, 512  ;;  %p11650_p11 = scmp.lt.s32.totalorder %s551_s24, %s551_s24 }
  0x55   : > { %p11643_p5 = scmp.ne.s32.totalorder %s551_s24, %s11642_s23  ;;  %p11651_p10 = scmp.lt.s32.totalorder %s11642_s23, %s11642_s23 }
  0x57   : > { %p11645_p8 = pnand %p11643_p5, %p11940_p7  ;;  %p11652_p12 = por %p11651_p10, %p11650_p11 }
  0x58   : > { %10949 = dma.hbm_to_vmem [thread:$0]  (!%p11930_p6), %s14037_s6, 512, %s507_s17, [#allocation9], %s11766_s26, %s11766_s26, %s11767_s0  }
  0x59   : > { %p11646_p9 = pneg %p11645_p8 }
  0x5b   : > { %p11653_p0 = pnand %p11652_p12, %p11646_p9 }
  0x5d   : > { %11656 = shalt.err (!%p11653_p0)
}
  0x5e   : > { %s14038_s14 = sld [smem:[#allocation30_spill]]  ;;  %s9536_s2 = sadd.s32 4294967294, %s11761_s30  }
  0x5f   : > { %s12013_s25 = sadd.s32 1, %s11761_s30   ;;  %s44_s22 = sadd.s32 1, %s11757_s29 }
  0x60   : > { %14039 = sst [smem:[#allocation22_spill]] %s12013_s25  ;;  %s41_s4 = ssub.s32 %s11761_s30, %s12013_s25 }
  0x61   : > { %p42_p7 = scmp.eq.s32.totalorder %s41_s4, 0  ;;  %p51_p13 = scmp.ne.s32.totalorder %s11757_s29, %s11753_s28 }
  0x62   : > { %p52_p2 = scmp.eq.s32.totalorder %s11761_s30, 0  ;;  %p57_p5 = scmp.ne.s32.totalorder %s11753_s28, %s11749_s27 }
  0x63   : > { %s12024_s18 = scalar_select %p42_p7, %s11757_s29, %s44_s22  }
  0x64   : > { %10955 = dma.hbm_to_vmem [thread:$0]  (!%p11930_p6), %s14038_s14, 512, %s551_s24, [#allocation12], %s11766_s26, %s11766_s26, %s11767_s0  }
  0x65   : > { %14040 = sst [smem:[#allocation23_spill]] %s12024_s18  ;;  %p12026_p8 = por %p52_p2, %p51_p13 }
  0x66   : > { %p12032_p6 = por %p13987_p1, %p57_p5  ;;  %p438_p9 = scmp.eq.s32.totalorder %s11916_s1, 1 }
  0x67   : > { %p444_p11 = scmp.eq.s32.totalorder %s9536_s2, 1  ;;  %p10970_p10 = scmp.lt.s32.totalorder %s11761_s30, 2 }
  0x68   : > { %s14042_s26 = scalar_select %p12032_p6, 1, 0 }
  0x69   : > { %s573_s0 = sand.u32 1, %s11757_s29   ;;  %p12039_p12 = por %p438_p9, %p51_p13 }
  0x6a   : > { %p12043_p0 = por %p444_p11, %p57_p5  ;;  %s9545_s19 = sshll.u32 %s573_s0, 5 }
  0x6b   : > { %s14043_s24 = scalar_select %p12039_p12, 1, 0 }
  0x6c   : > { %s14044_s23 = scalar_select %p12043_p0, 1, 0 }
  0x6d   : > { %s9763_s17 = sshll.u32 %s11761_s30, 9  ;;  %s14045_s6 = sld [smem:[#allocation24_spill]] }
  0x6e   : > { %s577_s2 = scalar_lea.vmem [#allocation2], %s9545_s19  ;;  %p12057_p7 = pnand %p10970_p10, %p12026_p8 }
  0x6f   : > { %s584_s14 = sshll.u32 %s577_s2, 4  ;;  %s12061_s29 = scalar_lea.sflag [#allocation3], %s573_s0  ;;  %s12053_s14 = int_to_ptr.vmem [resolvable:$true] %s584_s14 }
  0x70   : > { %p11659_p2 = pneg %p12057_p7 }
  0x73   : > { %s12051_s12 = scalar_lea.hbm %s14045_s6, %s9763_s17  ;;  %s11662_s19 = scalar_lea.hbm %s14045_s6, 1024 }
  0x74   : > { %s11657_s25 = scalar_lea.hbm %s12051_s12, 512  ;;  %p11663_p8 = scmp.lt.s32.totalorder %s12051_s12, %s14045_s6 }
  0x75   : > { %p11658_p13 = scmp.ne.s32.totalorder %s12051_s12, %s11657_s25  ;;  %p11664_p11 = scmp.lt.s32.totalorder %s11662_s19, %s11657_s25 }
  0x77   : > { %p11660_p5 = pnand %p11659_p2, %p11658_p13  ;;  %p11665_p10 = por %p11664_p11, %p11663_p8 }
  0x79   : > { %p11661_p9 = pneg %p11660_p5 }
  0x7b   : > { %p11666_p4 = pnand %p11665_p10, %p11661_p9 }
  0x7d   : > { %11669 = shalt.err (!%p11666_p4)
}
  0x7e   : > { %s11670_s21 = scalar_lea.vmem %s12053_s14, 512  ;;  %s11771_s0 = smov [#allocation2]  }
  0x7f   : > { %p11671_p1 = scmp.ne.s32.totalorder %s12053_s14, %s11670_s21  ;;  %s11675_s30 = sshll.u32 %s11771_s0, 4  ;;  %s11676_s30 = int_to_ptr.vmem [resolvable:$false] %s11675_s30 }
  0x80   : > { %s11677_s17 = scalar_lea.vmem %s11676_s30, 1024  ;;  %p11678_p5 = scmp.lt.s32.totalorder %s12053_s14, %s11676_s30 }
  0x81   : > { %p11673_p0 = pnand %p11671_p1, %p11659_p2  ;;  %p11679_p12 = scmp.lt.s32.totalorder %s11677_s17, %s11670_s21 }
  0x83   : > { %p11674_p13 = pneg %p11673_p0  ;;  %p11680_p6 = por %p11679_p12, %p11678_p5 }
  0x85   : > { %p11681_p3 = pnand %p11680_p6, %p11674_p13 }
  0x87   : > { %11684 = shalt.err (!%p11681_p3)
}
  0x88   : > { %s11772_s25 = smov 128   ;;  %s11773_s4 = smov 8  }
  0x89   : > { %10959 = dma.hbm_to_vmem [thread:$0]  (!%p12057_p7), %s12051_s12, 512, %s12053_s14, %s12061_s29, %s11772_s25, %s11772_s25, %s11773_s4  }
  0x8a   : > { %p14047_p1 = scmp.ne.s32.totalorder %s14030_s20, 0 }
  0x8b   : > { %s12085_s19 = sand.u32 (!%p14047_p1), 1, %s11753_s28   ;;  %p14048_p3 = scmp.ne.s32.totalorder (!%p14047_p1), %s14042_s26, 0 }
  0x8c   : > { %596 = sbr.rel (%p14047_p1) target bundleno = 13142 (0x3356), region = 92  ;;  %s13992_s30 = sshll.u32 (!%p14047_p1), %s12085_s19, 5 }
  0x8d   : > { %s599_s22 = scalar_lea.sflag (!%p14047_p1), [#allocation3], %s12085_s19  ;;  %s602_s2 = scalar_lea.vmem (!%p14047_p1), [#allocation2], %s13992_s30 }
  0x91   : > { %11728 = dma.done.wait (%p14048_p3), %s599_s22, 512  }
  0x92   : > { %11730 = vsyncadd (%p14048_p3), %s599_s22, 4294966784  ;;  %p14049_p4 = scmp.eq.s32.totalorder %s11916_s1, 0 }
  0x94   : > { %11732 = dma.done.wait (%p14049_p4), [#allocation6], 640   ;;  %p14050_p6 = pmov %p14049_p4 }
  0x95   : > { %p14051_p12 = pmov %p14049_p4 }
  0x96   : > { %11734 = vsyncadd (%p14050_p6), [#allocation6], 4294966656 }
  0x97   : > { %11736 = dma.done.wait (%p14051_p12), [#allocation9], 1024   ;;  %p14052_p0 = pmov %p14049_p4 }
  0x99   : > { %11738 = vsyncadd (%p14052_p0), [#allocation9], 4294966272  ;;  %p14053_p7 = pmov %p14052_p0 }
  0x9a   : > { %p14054_p2 = pmov %p14052_p0 }
  0x9b   : > { %11740 = dma.done.wait (%p14053_p7), [#allocation12], 1024  }
  0x9c   : > { %11742 = vsyncadd (%p14054_p2), [#allocation12], 4294966272  ;;  %v682_v0 = vld [vmem:[%s602_s2] sm:$0xff]  ;;  %v684_v2 = vld [vmem:[%s602_s2 + $0x10] sm:$0xff]  ;;  %vm741_vm0 = vcmask 261120   ;;  %v13993_v9 = vmov 0.0  }
  0x9d   : > { %v686_v1 = vld [vmem:[#allocation5] sm:$0xff]  ;;  %v683_v5 = vld [vmem:[%s602_s2 + $0x8] sm:$0xff]  ;;  %v685_v6 = vld [vmem:[%s602_s2 + $0x18] sm:$0xff]  ;;  %vm973_vm5 = vcmask 31744   ;;  %vm11775_vm6 = vmmov 0   ;;  %vm1168_vm8 = vcmask 64512  }
  0x9e   : > { %v687_v3 = vadd.f32 %v686_v1, %v682_v0  ;;  %v689_v4 = vadd.f32 %v686_v1, %v684_v2  ;;  %v688_v7 = vadd.f32 %v686_v1, %v683_v5  ;;  %v690_v8 = vadd.f32 %v686_v1, %v685_v6  ;;  %v11185_v42 = vld [vmem:[#allocation8 + $0x8] sm:$0xff]   ;;  %v11186_v43 = vld [vmem:[#allocation8] sm:$0xff]   ;;  %v9561_v62 = vld [vmem:[%s13971_s8] ss:$0 sm:$0xff]  ;;  %s11776_s17 = smov 96   ;;  %s11777_s25 = smov 124  }
  0x9f   : > { %v11187_v45 = vld [vmem:[#allocation7 + $0x8] sm:$0xff]   ;;  %10069 = vmatprep.subr.bf16.mxu1 %v11185_v42  ;;  %v11188_v46 = vld [vmem:[#allocation7] sm:$0xff]   ;;  %vm1223_vm9 = vcmask 1043456   ;;  %s11778_s4 = smov 92   ;;  %s11779_s22 = smov 120   ;;  %vm4674_vm10 = vcmask 97280  }
  0xa0   : > { %vm691_vm1 = vcmp.ne.f32.partialorder %v687_v3, 0.0  ;;  %vm693_vm2 = vcmp.ne.f32.partialorder %v689_v4, 0.0  ;;  %vm692_vm3 = vcmp.ne.f32.partialorder %v688_v7, 0.0  ;;  %vm694_vm4 = vcmp.ne.f32.partialorder %v690_v8, 0.0  ;;  %10070 = vmatpush3.bf16.msra.mxu1 %v11185_v42  ;;  %10061 = vmatprep.subr.bf16.mxu0 %v11187_v45  ;;  %s11780_s2 = smov 88   ;;  %s11781_s12 = smov 116  }
  0xa1   : > { %v12108_v10 = vsel %vm691_vm1, 1.0, %v13993_v9  ;;  %v12111_v11 = vsel %vm693_vm2, 1.0, %v13993_v9  ;;  %v12116_v14 = vsel %vm692_vm3, 1.0, %v13993_v9  ;;  %v12119_v15 = vsel %vm694_vm4, 1.0, %v13993_v9  ;;  %10071 = vmatprep.subr.bf16.mxu1 %v11186_v43  ;;  %10062 = vmatpush3.bf16.msra.mxu0 %v11187_v45  ;;  %s11782_s14 = smov 84   ;;  %s14007_s29 = smov 112  }
  0xa2   : > { %v703_v12 = vmul.f32 %v12108_v10, %v687_v3  ;;  %v705_v13 = vmul.f32 %v12111_v11, %v689_v4  ;;  %v704_v16 = vmul.f32 %v12116_v14, %v688_v7  ;;  %v706_v17 = vmul.f32 %v12119_v15, %v690_v8  ;;  %10063 = vmatprep.subr.bf16.mxu0 %v11188_v46  ;;  %v9562_v3 = vld [vmem:[%s13972_s9] ss:$0 sm:$0xff]  ;;  %s14005_s20 = smov 80   ;;  %s14003_s18 = smov 108  }
  0xa3   : > { %s14001_s26 = smov 76   ;;  %s13999_s21 = smov 104   ;;  %vm4679_vm11 = vcmask 130048   ;;  %vm4684_vm12 = vcmask 162816   ;;  %vm4689_vm13 = vcmask 195584   ;;  %vm4694_vm14 = vcmask 228352  }
  0xa4   : > { %v742_v18 = vsel %vm741_vm0, %v703_v12, 0.0  ;;  %v748_v19 = vsel %vm741_vm0, %v705_v13, 0.0  ;;  %v745_v20 = vsel %vm741_vm0, %v704_v16, 0.0  ;;  %v751_v21 = vsel %vm741_vm0, %v706_v17, 0.0  ;;  %10072 = vmatpush3.bf16.msra.mxu1 %v11186_v43  ;;  %s13997_s0 = smov 72   ;;  %s13995_s30 = smov 100  }
  0xa5   : > { %743 = vadd.xlane.f32.xlu0 %v742_v18  ;;  %749 = vadd.xlane.f32.xlu1 %v748_v19  ;;  %v890_v44 = vpack.c.bf16 %v704_v16, %v703_v12  ;;  %v891_v47 = vpack.c.bf16 %v706_v17, %v705_v13  ;;  %p14090_p8 = scmp.ne.s32.totalorder %s14043_s24, 0 }
  0xa6   : > { %10083 = vmatprep.subr.bf16.mxu1 %v13993_v9  ;;  %10064 = vmatpush3.bf16.msra.mxu0 %v11188_v46 }
  0xa7   : > { %10073 = vmatprep.mubr.msk.bf16.mxu1 %vm741_vm0, %v890_v44  ;;  %10077 = vmatprep.subr.bf16.mxu0 %v13993_v9 }
  0xa8   : > { %10074 = vmatmul.mubr.msk.bf16.vlgmr.msra.gmra.mxu1 %vm741_vm0, %v891_v47 }
  0xa9   : > { %746 = vadd.xlane.f32.xlu0 %v745_v20  ;;  %752 = vadd.xlane.f32.xlu1 %v751_v21  ;;  %v9568_v21 = vld [vmem:[%s13968_s5] ss:$0 sm:$0xff] }
  0xaa   : > { %10085 = vmatprep.mubr.msk.bf16.mxu1 %vm11775_vm6, %v13993_v9 }
 0x12e   : > { %v744_v22 = vpop.xlane.xlu0 %743  ;;  %v750_v23 = vpop.xlane.xlu1 %749 }
 0x12f   : > { %v755_v24 = vmul.f32 0.03125, %v744_v22  ;;  %v757_v25 = vmul.f32 0.03125, %v750_v23 }
 0x131   : > { %v759_v26 = vsub.f32 %v703_v12, %v755_v24  ;;  %v761_v27 = vsub.f32 %v705_v13, %v757_v25 }
 0x132   : > { %v747_v28 = vpop.xlane.xlu0 %746  ;;  %v753_v29 = vpop.xlane.xlu1 %752 }
 0x133   : > { %v756_v30 = vmul.f32 0.03125, %v747_v28  ;;  %v758_v31 = vmul.f32 0.03125, %v753_v29  ;;  %v763_v32 = vmul.f32 %v759_v26, %v759_v26  ;;  %v765_v33 = vmul.f32 %v761_v27, %v761_v27 }
 0x135   : > { %v760_v34 = vsub.f32 %v704_v16, %v756_v30  ;;  %v762_v35 = vsub.f32 %v706_v17, %v758_v31  ;;  %v767_v36 = vsel %vm741_vm0, %v763_v32, 0.0  ;;  %v773_v37 = vsel %vm741_vm0, %v765_v33, 0.0 }
 0x136   : > { %768 = vadd.xlane.f32.xlu0 %v767_v36 }
 0x137   : > { %v764_v38 = vmul.f32 %v760_v34, %v760_v34  ;;  %v766_v39 = vmul.f32 %v762_v35, %v762_v35 }
 0x139   : > { %v770_v40 = vsel %vm741_vm0, %v764_v38, 0.0  ;;  %v776_v41 = vsel %vm741_vm0, %v766_v39, 0.0 }
 0x13a   : > { %774 = vadd.xlane.f32.xlu0 %v773_v37  ;;  %771 = vadd.xlane.f32.xlu1 %v770_v40 }
 0x13e   : > { %777 = vadd.xlane.f32.xlu1 %v776_v41 }
 0x168   : > { %v10075_v22 = vpop.f32.mrf.mxu1 }
 0x169   : > { %v959_v23 = vadd.f32 %v10075_v22, %v9568_v21 }
 0x16a   : > { %v950_v24 = vpop.f32.mrf.mxu1 }
 0x16b   : > { %v951_v25 = vadd.f32 %v9568_v21, %v950_v24  ;;  %v12175_v37 = vpack.c.bf16 %v959_v23, %v959_v23 }
 0x16d   : > { %v1070_v44 = vsel %vm973_vm5, %v12175_v37, 0 }
 0x1bf   : > { %v769_v48 = vpop.xlane.xlu0 %768 }
 0x1c0   : > { %v779_v49 = vmul.f32 0.03125, %v769_v48 }
 0x1c2   : > { %v783_v50 = vadd.f32 1e-08, %v779_v49 }
 0x1c3   : > { %v772_v51 = vpop.xlane.xlu1 %771  ;;  %v775_v52 = vpop.xlane.xlu0 %774 }
 0x1c4   : > { %11205 = vrsqrt.f32 %v783_v50  ;;  %v780_v53 = vmul.f32 0.03125, %v772_v51  ;;  %v781_v54 = vmul.f32 0.03125, %v775_v52  ;;  %v707_v51 = vlaneseq }
 0x1c6   : > { %v784_v55 = vadd.f32 1e-08, %v780_v53  ;;  %v785_v56 = vadd.f32 1e-08, %v781_v54  ;;  %v708_v52 = vshrl.u32 %v707_v51, 7  ;;  %v710_v53 = vand.u32 127, %v707_v51 }
 0x1c7   : > { %v778_v57 = vpop.xlane.xlu1 %777 }
 0x1c8   : > { %11207 = vrsqrt.f32 %v784_v55  ;;  %v782_v58 = vmul.f32 0.03125, %v778_v57  ;;  %vm12209_vm7 = vcmp.ge.s32.totalorder %v708_v52, %v710_v53 }
 0x1c9   : > { %11209 = vrsqrt.f32 %v785_v56 }
 0x1ca   : > { %v786_v59 = vadd.f32 1e-08, %v782_v58 }
 0x1cc   : > { %11211 = vrsqrt.f32 %v786_v59 }
 0x1d1   : > { %v11206_v60 = vpop.eup %11205 }
 0x1d2   : > { %v791_v61 = vmul.f32 %v11206_v60, %v759_v26  ;;  %v10076_v26 = vpop.f32.mrf.mxu1 }
 0x1d3   : > { %v962_v28 = vadd.f32 %v10076_v26, %v9568_v21 }
 0x1d4   : > { %v801_v2 = vmul.f32 %v9561_v62, %v791_v61  ;;  %v953_v29 = vpop.f32.mrf.mxu1 }
 0x1d5   : > { %v11208_v63 = vpop.eup %11207  ;;  %v954_v30 = vadd.f32 %v9568_v21, %v953_v29  ;;  %v12179_v42 = vpack.c.bf16 %v962_v28, %v962_v28 }
 0x1d6   : > { %v11210_v0 = vpop.eup %11209  ;;  %v792_v1 = vmul.f32 %v11208_v63, %v760_v34  ;;  %v12141_v7 = vadd.f32 %v9562_v3, %v801_v2 }
 0x1d7   : > { %v793_v4 = vmul.f32 %v11210_v0, %v761_v27  ;;  %v12158_v27 = vpack.c.bf16 %v951_v25, %v951_v25  ;;  %v12162_v32 = vpack.c.bf16 %v954_v30, %v954_v30  ;;  %v1116_v47 = vsel %vm973_vm5, %v12179_v42, 0 }
 0x1d8   : > { %v802_v5 = vmul.f32 %v9561_v62, %v792_v1 }
 0x1d9   : > { %v11212_v6 = vpop.eup %11211  ;;  %v803_v13 = vmul.f32 %v9561_v62, %v793_v4  ;;  %v978_v31 = vsel %vm973_vm5, %v12158_v27, 0  ;;  %v1024_v33 = vsel %vm973_vm5, %v12162_v32, 0 }
 0x1da   : > { %v12143_v8 = vadd.f32 %v9562_v3, %v802_v5  ;;  %v794_v12 = vmul.f32 %v11212_v6, %v762_v35  ;;  %10084 = vmatpush3.bf16.xpose.msra.mxu1 %v1024_v33  ;;  %v9563_v35 = vld [vmem:[%s13966_s3] ss:$0 sm:$0xff] }
 0x1db   : > { %v12148_v18 = vadd.f32 %v9562_v3, %v803_v13  ;;  %10095 = vmatprep.subr.bf16.mxu1 %v13993_v9 }
 0x1dc   : > { %v815_v16 = vpack.c.bf16 %v12143_v8, %v12141_v7  ;;  %v804_v17 = vmul.f32 %v9561_v62, %v794_v12 }
 0x1de   : > { %10065 = vmatprep.mubr.msk.bf16.mxu0 %vm741_vm0, %v815_v16  ;;  %v12150_v19 = vadd.f32 %v9562_v3, %v804_v17 }
 0x1e0   : > { %v816_v20 = vpack.c.bf16 %v12150_v19, %v12148_v18 }
 0x1e2   : > { %10066 = vmatmul.mubr.msk.bf16.vlgmr.msra.gmra.mxu0 %vm741_vm0, %v816_v20 }
 0x1e3   : > { %10078 = vmatpush3.bf16.xpose.msra.mxu0 %v978_v31  ;;  %10079 = vmatprep.mubr.msk.bf16.mxu0 %vm11775_vm6, %v13993_v9 }
 0x1e4   : > { %10089 = vmatprep.subr.bf16.mxu0 %v13993_v9 }
 0x2a2   : > { %v10067_v34 = vpop.f32.mrf.mxu0 }
 0x2a3   : > { %v884_v45 = vadd.f32 %v10067_v34, %v9563_v35 }
 0x2a4   : > { %v875_v36 = vpop.f32.mrf.mxu0 }
 0x2a5   : > { %v876_v38 = vadd.f32 %v9563_v35, %v875_v36  ;;  %v12196_v48 = vpack.c.bf16 %v884_v45, %v884_v45 }
 0x2a6   : > { %v10068_v39 = vpop.f32.mrf.mxu0 }
 0x2a7   : > { %v12177_v40 = vpack.c.bf16 %v876_v38, %v876_v38  ;;  %v887_v49 = vadd.f32 %v10068_v39, %v9563_v35 }
 0x2a8   : > { %v878_v41 = vpop.f32.mrf.mxu0 }
 0x2a9   : > { %v879_v43 = vadd.f32 %v9563_v35, %v878_v41  ;;  %10080 = vmatmul.mubr.msk.bf16.vlgmr.msra.gmra.mxu0 %vm973_vm5, %v12177_v40  ;;  %v12203_v50 = vpack.c.bf16 %v887_v49, %v887_v49 }
 0x2aa   : > { %10090 = vmatpush3.bf16.xpose.msra.mxu0 %v1070_v44  ;;  %10091 = vmatprep.mubr.msk.bf16.mxu0 %vm11775_vm6, %v13993_v9 }
 0x2ab   : > { %v12187_v46 = vpack.c.bf16 %v879_v43, %v879_v43  ;;  %10101 = vmatprep.subr.bf16.mxu0 %v13993_v9 }
 0x2ad   : > { %10086 = vmatmul.mubr.msk.bf16.vlgmr.msra.gmra.mxu1 %vm973_vm5, %v12187_v46 }
 0x2ae   : > { %10096 = vmatpush3.bf16.xpose.msra.mxu1 %v1116_v47  ;;  %10097 = vmatprep.mubr.msk.bf16.mxu1 %vm11775_vm6, %v13993_v9 }
 0x2af   : > { %10107 = vmatprep.subr.bf16.mxu1 %v13993_v9 }
 0x2b1   : > { %10092 = vmatmul.mubr.msk.bf16.vlgmr.msra.gmra.mxu0 %vm973_vm5, %v12196_v48 }
 0x2b2   : > { %10103 = vmatprep.mubr.msk.bf16.mxu0 %vm11775_vm6, %v13993_v9 }
 0x2b5   : > { %10098 = vmatmul.mubr.msk.bf16.vlgmr.msra.gmra.mxu1 %vm973_vm5, %v12203_v50 }
 0x2b6   : > { %10109 = vmatprep.mubr.msk.bf16.mxu1 %vm11775_vm6, %v13993_v9 }
 0x369   : > { %v1014_v54 = vpop.f32.mrf.mxu0 }
 0x36a   : > { %v1158_v56 = vmul.f32 0.5, %v1014_v54 }
 0x36b   : > { %v10081_v57 = vpop.f32.mrf.mxu0 }
 0x36c   : > { %v1164_v58 = vsel %vm12209_vm7, %v1158_v56, -1e+30 }
 0x36d   : > { %v1017_v59 = vpop.f32.mrf.mxu0  ;;  %v1060_v60 = vpop.f32.mrf.mxu1  ;;  %v1169_v61 = vsel %vm1168_vm8, %v1164_v58, -inf }
 0x36e   : > { %v1159_v62 = vmul.f32 0.5, %v1060_v60  ;;  %1170 = vmax.xlane.f32.xlu0 %v1169_v61 }
 0x36f   : > { %v10082_v63 = vpop.f32.mrf.mxu0  ;;  %v10087_v0 = vpop.f32.mrf.mxu1 }
 0x370   : > { %v1165_v1 = vsel %vm12209_vm7, %v1159_v62, -1e+30 }
 0x371   : > { %v1063_v2 = vpop.f32.mrf.mxu1  ;;  %v1106_v3 = vpop.f32.mrf.mxu0  ;;  %v1172_v4 = vsel %vm1168_vm8, %v1165_v1, -inf }
 0x372   : > { %v1160_v5 = vmul.f32 0.5, %v1106_v3  ;;  %1173 = vmax.xlane.f32.xlu1 %v1172_v4 }
 0x373   : > { %v10088_v6 = vpop.f32.mrf.mxu1  ;;  %v10093_v12 = vpop.f32.mrf.mxu0 }
 0x374   : > { %v1166_v13 = vsel %vm12209_vm7, %v1160_v5, -1e+30 }
 0x375   : > { %v1109_v16 = vpop.f32.mrf.mxu0  ;;  %v1152_v17 = vpop.f32.mrf.mxu1  ;;  %v1175_v20 = vsel %vm1168_vm8, %v1166_v13, -inf }
 0x376   : > { %v1161_v21 = vmul.f32 0.5, %v1152_v17  ;;  %1176 = vmax.xlane.f32.xlu0 %v1175_v20 }
 0x377   : > { %v10094_v22 = vpop.f32.mrf.mxu0  ;;  %v10099_v23 = vpop.f32.mrf.mxu1 }
 0x378   : > { %v1167_v24 = vsel %vm12209_vm7, %v1161_v21, -1e+30 }
 0x379   : > { %v1155_v25 = vpop.f32.mrf.mxu1  ;;  %v1178_v26 = vsel %vm1168_vm8, %v1167_v24, -inf }
 0x37a   : > { %1179 = vmax.xlane.f32.xlu1 %v1178_v26 }
 0x37b   : > { %v10100_v28 = vpop.f32.mrf.mxu1 }
 0x38b   : > { %1268 = vrot.lane.b32.xlu1 %v12162_v32, %s11776_s17 }
 0x38f   : > { %1317 = vrot.lane.b32.xlu1 %v12175_v37, %s11776_s17 }
 0x393   : > { %1366 = vrot.lane.b32.xlu1 %v12179_v42, %s11776_s17 }
 0x3f7   : > { %v1171_v29 = vpop.xlane.xlu0 %1170 }
 0x3f8   : > { %v1181_v30 = vsub.f32 %v1164_v58, %v1171_v29 }
 0x3fa   : > { %v1185_v31 = vmul.f32 1.442695, %v1181_v30 }
 0x3fb   : > { %v1174_v33 = vpop.xlane.xlu1 %1173 }
 0x3fc   : > { %11213 = vpow2.f32 %v1185_v31  ;;  %v1182_v34 = vsub.f32 %v1165_v1, %v1174_v33 }
 0x3fe   : > { %v1187_v35 = vmul.f32 1.442695, %v1182_v34 }
 0x3ff   : > { %v1177_v47 = vpop.xlane.xlu0 %1176 }
 0x400   : > { %11215 = vpow2.f32 %v1187_v35  ;;  %v1183_v49 = vsub.f32 %v1166_v13, %v1177_v47 }
 0x402   : > { %v1189_v51 = vmul.f32 1.442695, %v1183_v49 }
 0x403   : > { %v1180_v36 = vpop.xlane.xlu1 %1179 }
 0x404   : > { %v1184_v52 = vsub.f32 %v1167_v24, %v1180_v36  ;;  %11217 = vpow2.f32 %v1189_v51 }
 0x406   : > { %v1191_v53 = vmul.f32 1.442695, %v1184_v52 }
 0x407   : > { %v1269_v38 = vpop.permute.xlu1 %1268 }
 0x408   : > { %v1274_v39 = vsel %vm1223_vm9, %v1269_v38, 0  ;;  %11219 = vpow2.f32 %v1191_v53 }
 0x409   : > { %v11214_v41 = vpop.eup %11213  ;;  %10108 = vmatpush3.bf16.msra.mxu1 %v1274_v39 }
 0x40a   : > { %v1193_v43 = vsel %vm1168_vm8, %v11214_v41, 0.0  ;;  %10119 = vmatprep.subr.bf16.mxu1 %v13993_v9 }
 0x40b   : > { %1194 = vadd.xlane.f32.xlu0 %v1193_v43  ;;  %v1318_v59 = vpop.permute.xlu1 %1317 }
 0x40c   : > { %v1323_v5 = vsel %vm1223_vm9, %v1318_v59, 0 }
 0x40d   : > { %v11216_v44 = vpop.eup %11215 }
 0x40e   : > { %v1196_v45 = vsel %vm1168_vm8, %v11216_v44, 0.0 }
 0x40f   : > { %1197 = vadd.xlane.f32.xlu1 %v1196_v45  ;;  %v1367_v60 = vpop.permute.xlu1 %1366 }
 0x410   : > { %v1372_v13 = vsel %vm1223_vm9, %v1367_v60, 0 }
 0x411   : > { %v11218_v54 = vpop.eup %11217 }
 0x412   : > { %v1199_v56 = vsel %vm1168_vm8, %v11218_v54, 0.0 }
 0x415   : > { %v11220_v57 = vpop.eup %11219 }
 0x416   : > { %v1202_v58 = vsel %vm1168_vm8, %v11220_v57, 0.0 }
 0x420   : > { %1468 = vrot.lane.b32.xlu1 %v12162_v32, %s11777_s25 }
 0x421   : > { %1218 = vrot.lane.b32.xlu0 %v12158_v27, %s11776_s17 }
 0x440   : > { %1200 = vadd.xlane.f32.xlu0 %v1199_v56 }
 0x444   : > { %1203 = vadd.xlane.f32.xlu1 %v1202_v58 }
 0x455   : > { %1466 = vrot.lane.b32.xlu1 %v12187_v46, %s11777_s25 }
 0x456   : > { %1417 = vrot.lane.b32.xlu0 %v12158_v27, %s11777_s25 }
 0x459   : > { %1570 = vrot.lane.b32.xlu1 %v12179_v42, %s11777_s25 }
 0x45a   : > { %1415 = vrot.lane.b32.xlu0 %v12177_v40, %s11777_s25 }
 0x45d   : > { %1568 = vrot.lane.b32.xlu1 %v12203_v50, %s11777_s25 }
 0x45e   : > { %1519 = vrot.lane.b32.xlu0 %v12175_v37, %s11777_s25 }
 0x462   : > { %1517 = vrot.lane.b32.xlu0 %v12196_v48, %s11777_s25 }
 0x494   : > { %v1195_v61 = vpop.xlane.xlu0 %1194 }
 0x495   : > { %11221 = vrcp.f32 %v1195_v61 }
 0x498   : > { %v1198_v62 = vpop.xlane.xlu1 %1197  ;;  %v1219_v63 = vpop.permute.xlu0 %1218 }
 0x499   : > { %11223 = vrcp.f32 %v1198_v62  ;;  %v1225_v0 = vsel %vm1223_vm9, %v1219_v63, 0 }
 0x49a   : > { %10102 = vmatpush3.bf16.msra.mxu0 %v1225_v0 }
 0x49b   : > { %10113 = vmatprep.subr.bf16.mxu0 %v13993_v9 }
 0x49c   : > { %v1469_v16 = vpop.permute.xlu1 %1468 }
 0x49d   : > { %v1474_v33 = vsel %vm973_vm5, %v1469_v16, 0 }
 0x4a2   : > { %v11222_v1 = vpop.eup %11221 }
 0x4a3   : > { %v1209_v2 = vmul.f32 %v11222_v1, %v11214_v41 }
 0x4a5   : > { %v1213_v3 = vpack.c.bf16 %v1209_v2, %v1209_v2 }
 0x4a6   : > { %v11224_v4 = vpop.eup %11223 }
 0x4a7   : > { %10104 = vmatmul.mubr.msk.bf16.vlgmr.msra.gmra.mxu0 %vm1168_vm8, %v1213_v3  ;;  %v1210_v6 = vmul.f32 %v11224_v4, %v11216_v44 }
 0x4a8   : > { %10114 = vmatpush3.bf16.msra.mxu0 %v1323_v5  ;;  %10115 = vmatprep.mubr.msk.bf16.mxu0 %vm11775_vm6, %v13993_v9 }
 0x4a9   : > { %v1214_v12 = vpack.c.bf16 %v1210_v6, %v1210_v6  ;;  %10125 = vmatprep.subr.bf16.mxu0 %v13993_v9 }
 0x4ab   : > { %10110 = vmatmul.mubr.msk.bf16.vlgmr.msra.gmra.mxu1 %vm1168_vm8, %v1214_v12 }
 0x4ac   : > { %10120 = vmatpush3.bf16.msra.mxu1 %v1372_v13  ;;  %10121 = vmatprep.mubr.msk.bf16.mxu1 %vm11775_vm6, %v13993_v9 }
 0x4ad   : > { %10131 = vmatprep.subr.bf16.mxu1 %v13993_v9 }
 0x4c9   : > { %v1201_v17 = vpop.xlane.xlu0 %1200 }
 0x4ca   : > { %11225 = vrcp.f32 %v1201_v17 }
 0x4cd   : > { %v1204_v20 = vpop.xlane.xlu1 %1203  ;;  %v1418_v21 = vpop.permute.xlu0 %1417 }
 0x4ce   : > { %11227 = vrcp.f32 %v1204_v20  ;;  %v1423_v28 = vsel %vm973_vm5, %v1418_v21, 0 }
 0x4d1   : > { %v1416_v26 = vpop.permute.xlu0 %1415  ;;  %v1467_v31 = vpop.permute.xlu1 %1466 }
 0x4d5   : > { %v1520_v34 = vpop.permute.xlu0 %1519  ;;  %v1571_v36 = vpop.permute.xlu1 %1570 }
 0x4d6   : > { %v1525_v35 = vsel %vm973_vm5, %v1520_v34, 0  ;;  %v1576_v38 = vsel %vm973_vm5, %v1571_v36, 0 }
 0x4d7   : > { %v11226_v22 = vpop.eup %11225 }
 0x4d8   : > { %v1211_v23 = vmul.f32 %v11226_v22, %v11218_v54 }
 0x4d9   : > { %v1518_v39 = vpop.permute.xlu0 %1517  ;;  %v1569_v41 = vpop.permute.xlu1 %1568 }
 0x4da   : > { %v1215_v24 = vpack.c.bf16 %v1211_v23, %v1211_v23 }
 0x4db   : > { %v11228_v25 = vpop.eup %11227 }
 0x4dc   : > { %10116 = vmatmul.mubr.msk.bf16.vlgmr.msra.gmra.mxu0 %vm1168_vm8, %v1215_v24  ;;  %v1212_v29 = vmul.f32 %v11228_v25, %v11220_v57 }
 0x4dd   : > { %10126 = vmatpush3.bf16.xpose.msra.mxu0 %v1423_v28  ;;  %10127 = vmatprep.mubr.msk.bf16.mxu0 %vm11775_vm6, %v13993_v9 }
 0x4de   : > { %v1216_v30 = vpack.c.bf16 %v1212_v29, %v1212_v29  ;;  %10137 = vmatprep.subr.bf16.mxu0 %v13993_v9 }
 0x4e0   : > { %10122 = vmatmul.mubr.msk.bf16.vlgmr.msra.gmra.mxu1 %vm1168_vm8, %v1216_v30 }
 0x4e1   : > { %10132 = vmatpush3.bf16.xpose.msra.mxu1 %v1474_v33  ;;  %10133 = vmatprep.mubr.msk.bf16.mxu1 %vm11775_vm6, %v13993_v9 }
 0x4e2   : > { %10143 = vmatprep.subr.bf16.mxu1 %v13993_v9 }
 0x4e4   : > { %10128 = vmatmul.mubr.msk.bf16.vlgmr.msra.gmra.mxu0 %vm973_vm5, %v1416_v26 }
 0x4e5   : > { %10138 = vmatpush3.bf16.xpose.msra.mxu0 %v1525_v35  ;;  %10139 = vmatprep.mubr.msk.bf16.mxu0 %vm11775_vm6, %v13993_v9 }
 0x4e6   : > { %10149 = vmatprep.subr.bf16.mxu0 %v13993_v9 }
 0x4e8   : > { %10134 = vmatmul.mubr.msk.bf16.vlgmr.msra.gmra.mxu1 %vm973_vm5, %v1467_v31 }
 0x4e9   : > { %10144 = vmatpush3.bf16.xpose.msra.mxu1 %v1576_v38  ;;  %10145 = vmatprep.mubr.msk.bf16.mxu1 %vm11775_vm6, %v13993_v9 }
 0x4ea   : > { %10155 = vmatprep.subr.bf16.mxu1 %v13993_v9 }
 0x4ec   : > { %10140 = vmatmul.mubr.msk.bf16.vlgmr.msra.gmra.mxu0 %vm973_vm5, %v1518_v39 }
 0x4ed   : > { %10151 = vmatprep.mubr.msk.bf16.mxu0 %vm11775_vm6, %v13993_v9 }
 0x4f0   : > { %10146 = vmatmul.mubr.msk.bf16.vlgmr.msra.gmra.mxu1 %vm973_vm5, %v1569_v41 }
 0x4f1   : > { %10157 = vmatprep.mubr.msk.bf16.mxu1 %vm11775_vm6, %v13993_v9 }
 0x567   : > { %v12293_v43 = vpop.f32.mrf.mxu0 }
 0x569   : > { %v10105_v44 = vpop.f32.mrf.mxu0 }
 0x56b   : > { %v1264_v45 = vpop.f32.mrf.mxu0  ;;  %v12295_v47 = vpop.f32.mrf.mxu1 }
 0x56d   : > { %v10106_v49 = vpop.f32.mrf.mxu0  ;;  %v10111_v51 = vpop.f32.mrf.mxu1 }
 0x56f   : > { %v1313_v52 = vpop.f32.mrf.mxu1 }
 0x571   : > { %v10112_v53 = vpop.f32.mrf.mxu1 }
 0x59c   : > { %v12297_v54 = vpop.f32.mrf.mxu0 }
 0x59e   : > { %v10117_v56 = vpop.f32.mrf.mxu0 }
 0x5a0   : > { %v1362_v57 = vpop.f32.mrf.mxu0  ;;  %v12299_v58 = vpop.f32.mrf.mxu1 }
 0x5a2   : > { %v10118_v59 = vpop.f32.mrf.mxu0  ;;  %v10123_v60 = vpop.f32.mrf.mxu1 }
 0x5a4   : > { %v1411_v61 = vpop.f32.mrf.mxu1  ;;  %v1459_v62 = vpop.f32.mrf.mxu0 }
 0x5a5   : > { %v1618_v63 = vmul.f32 0.5, %v1459_v62 }
 0x5a6   : > { %v10124_v0 = vpop.f32.mrf.mxu1  ;;  %v10129_v1 = vpop.f32.mrf.mxu0 }
 0x5a7   : > { %v1622_v2 = vsel %vm12209_vm7, %v1618_v63, -1e+30 }
 0x5a8   : > { %v1462_v3 = vpop.f32.mrf.mxu0  ;;  %v1510_v4 = vpop.f32.mrf.mxu1  ;;  %v1626_v5 = vsel %vm1168_vm8, %v1622_v2, -inf }
 0x5a9   : > { %v1619_v6 = vmul.f32 0.5, %v1510_v4  ;;  %1627 = vmax.xlane.f32.xlu0 %v1626_v5 }
 0x5aa   : > { %v10130_v12 = vpop.f32.mrf.mxu0  ;;  %v10135_v13 = vpop.f32.mrf.mxu1 }
 0x5ab   : > { %v1623_v16 = vsel %vm12209_vm7, %v1619_v6, -1e+30 }
 0x5ac   : > { %v1513_v17 = vpop.f32.mrf.mxu1  ;;  %v1561_v20 = vpop.f32.mrf.mxu0  ;;  %v1629_v21 = vsel %vm1168_vm8, %v1623_v16, -inf }
 0x5ad   : > { %v1620_v22 = vmul.f32 0.5, %v1561_v20  ;;  %1630 = vmax.xlane.f32.xlu1 %v1629_v21 }
 0x5ae   : > { %v10136_v23 = vpop.f32.mrf.mxu1  ;;  %v10141_v24 = vpop.f32.mrf.mxu0 }
 0x5af   : > { %v1624_v25 = vsel %vm12209_vm7, %v1620_v22, -1e+30 }
 0x5b0   : > { %v1564_v26 = vpop.f32.mrf.mxu0  ;;  %v1612_v28 = vpop.f32.mrf.mxu1  ;;  %v1632_v29 = vsel %vm1168_vm8, %v1624_v25, -inf }
 0x5b1   : > { %v1621_v30 = vmul.f32 0.5, %v1612_v28  ;;  %1633 = vmax.xlane.f32.xlu0 %v1632_v29 }
 0x5b2   : > { %v10142_v31 = vpop.f32.mrf.mxu0  ;;  %v10147_v33 = vpop.f32.mrf.mxu1 }
 0x5b3   : > { %v1625_v34 = vsel %vm12209_vm7, %v1621_v30, -1e+30 }
 0x5b4   : > { %v1615_v35 = vpop.f32.mrf.mxu1  ;;  %v1635_v36 = vsel %vm1168_vm8, %v1625_v34, -inf }
 0x5b5   : > { %1636 = vmax.xlane.f32.xlu0 %v1635_v36 }
 0x5b6   : > { %v10148_v38 = vpop.f32.mrf.mxu1 }
 0x5be   : > { %1722 = vrot.lane.b32.xlu1 %v12162_v32, %s11778_s4 }
 0x5c2   : > { %1770 = vrot.lane.b32.xlu1 %v12175_v37, %s11778_s4 }
 0x5c6   : > { %1818 = vrot.lane.b32.xlu1 %v12179_v42, %s11778_s4 }
 0x632   : > { %v1628_v39 = vpop.xlane.xlu0 %1627 }
 0x633   : > { %v1638_v41 = vsub.f32 %v1622_v2, %v1628_v39 }
 0x635   : > { %v1642_v44 = vmul.f32 1.442695, %v1638_v41 }
 0x636   : > { %v1631_v45 = vpop.xlane.xlu1 %1630 }
 0x637   : > { %11229 = vpow2.f32 %v1642_v44  ;;  %v1639_v49 = vsub.f32 %v1623_v16, %v1631_v45 }
 0x639   : > { %v1644_v51 = vmul.f32 1.442695, %v1639_v49 }
 0x63a   : > { %v1723_v52 = vpop.permute.xlu1 %1722  ;;  %v1634_v61 = vpop.xlane.xlu0 %1633 }
 0x63b   : > { %11231 = vpow2.f32 %v1644_v51  ;;  %v1728_v53 = vsel %vm1223_vm9, %v1723_v52, 0  ;;  %v1640_v62 = vsub.f32 %v1624_v25, %v1634_v61 }
 0x63c   : > { %10156 = vmatpush3.bf16.msra.mxu1 %v1728_v53 }
 0x63d   : > { %10167 = vmatprep.subr.bf16.mxu1 %v13993_v9  ;;  %v1646_v0 = vmul.f32 1.442695, %v1640_v62 }
 0x63e   : > { %v1637_v63 = vpop.xlane.xlu0 %1636  ;;  %v1771_v12 = vpop.permute.xlu1 %1770 }
 0x63f   : > { %v1641_v1 = vsub.f32 %v1625_v34, %v1637_v63  ;;  %11233 = vpow2.f32 %v1646_v0  ;;  %v1776_v26 = vsel %vm1223_vm9, %v1771_v12, 0 }
 0x641   : > { %v1648_v2 = vmul.f32 1.442695, %v1641_v1 }
 0x642   : > { %v1819_v13 = vpop.permute.xlu1 %1818 }
 0x643   : > { %11235 = vpow2.f32 %v1648_v2  ;;  %v1824_v30 = vsel %vm1223_vm9, %v1819_v13, 0 }
 0x644   : > { %v11230_v56 = vpop.eup %11229 }
 0x645   : > { %v1650_v57 = vsel %vm1168_vm8, %v11230_v56, 0.0 }
 0x646   : > { %1651 = vadd.xlane.f32.xlu0 %v1650_v57 }
 0x648   : > { %v11232_v59 = vpop.eup %11231 }
 0x649   : > { %v1653_v60 = vsel %vm1168_vm8, %v11232_v59, 0.0 }
 0x64a   : > { %1654 = vadd.xlane.f32.xlu1 %v1653_v60 }
 0x64c   : > { %v11234_v3 = vpop.eup %11233 }
 0x64d   : > { %v1656_v4 = vsel %vm1168_vm8, %v11234_v3, 0.0 }
 0x650   : > { %v11236_v5 = vpop.eup %11235 }
 0x651   : > { %v1659_v6 = vsel %vm1168_vm8, %v11236_v5, 0.0 }
 0x65b   : > { %1918 = vrot.lane.b32.xlu1 %v12162_v32, %s11779_s22 }
 0x65c   : > { %1674 = vrot.lane.b32.xlu0 %v12158_v27, %s11778_s4 }
 0x67b   : > { %1657 = vadd.xlane.f32.xlu0 %v1656_v4 }
 0x67f   : > { %1660 = vadd.xlane.f32.xlu1 %v1659_v6 }
 0x690   : > { %1916 = vrot.lane.b32.xlu1 %v12187_v46, %s11779_s22 }
 0x691   : > { %1868 = vrot.lane.b32.xlu0 %v12158_v27, %s11779_s22 }
 0x694   : > { %2018 = vrot.lane.b32.xlu1 %v12179_v42, %s11779_s22 }
 0x695   : > { %1866 = vrot.lane.b32.xlu0 %v12177_v40, %s11779_s22 }
 0x698   : > { %2016 = vrot.lane.b32.xlu1 %v12203_v50, %s11779_s22 }
 0x699   : > { %1968 = vrot.lane.b32.xlu0 %v12175_v37, %s11779_s22 }
 0x69d   : > { %1966 = vrot.lane.b32.xlu0 %v12196_v48, %s11779_s22 }
 0x6cf   : > { %v1652_v16 = vpop.xlane.xlu0 %1651 }
 0x6d0   : > { %11237 = vrcp.f32 %v1652_v16 }
 0x6d3   : > { %v1655_v17 = vpop.xlane.xlu1 %1654  ;;  %v1675_v20 = vpop.permute.xlu0 %1674 }
 0x6d4   : > { %11239 = vrcp.f32 %v1655_v17  ;;  %v1680_v21 = vsel %vm1223_vm9, %v1675_v20, 0 }
 0x6d5   : > { %10150 = vmatpush3.bf16.msra.mxu0 %v1680_v21 }
 0x6d6   : > { %10161 = vmatprep.subr.bf16.mxu0 %v13993_v9 }
 0x6d7   : > { %v1919_v31 = vpop.permute.xlu1 %1918 }
 0x6d8   : > { %v1924_v53 = vsel %vm973_vm5, %v1919_v31, 0 }
 0x6dd   : > { %v11238_v22 = vpop.eup %11237 }
 0x6de   : > { %v1666_v23 = vmul.f32 %v11238_v22, %v11230_v56 }
 0x6e0   : > { %v1670_v24 = vpack.c.bf16 %v1666_v23, %v1666_v23 }
 0x6e1   : > { %v11240_v25 = vpop.eup %11239 }
 0x6e2   : > { %10152 = vmatmul.mubr.msk.bf16.vlgmr.msra.gmra.mxu0 %vm1168_vm8, %v1670_v24  ;;  %v1667_v28 = vmul.f32 %v11240_v25, %v11232_v59 }
 0x6e3   : > { %10162 = vmatpush3.bf16.msra.mxu0 %v1776_v26  ;;  %10163 = vmatprep.mubr.msk.bf16.mxu0 %vm11775_vm6, %v13993_v9 }
 0x6e4   : > { %v1671_v29 = vpack.c.bf16 %v1667_v28, %v1667_v28  ;;  %10173 = vmatprep.subr.bf16.mxu0 %v13993_v9 }
 0x6e6   : > { %10158 = vmatmul.mubr.msk.bf16.vlgmr.msra.gmra.mxu1 %vm1168_vm8, %v1671_v29 }
 0x6e7   : > { %10168 = vmatpush3.bf16.msra.mxu1 %v1824_v30  ;;  %10169 = vmatprep.mubr.msk.bf16.mxu1 %vm11775_vm6, %v13993_v9 }
 0x6e8   : > { %10179 = vmatprep.subr.bf16.mxu1 %v13993_v9 }
 0x704   : > { %v1658_v33 = vpop.xlane.xlu0 %1657 }
 0x705   : > { %11241 = vrcp.f32 %v1658_v33 }
 0x708   : > { %v1661_v34 = vpop.xlane.xlu1 %1660  ;;  %v1869_v35 = vpop.permute.xlu0 %1868 }
 0x709   : > { %11243 = vrcp.f32 %v1661_v34  ;;  %v1874_v45 = vsel %vm973_vm5, %v1869_v35, 0 }
 0x70c   : > { %v1867_v44 = vpop.permute.xlu0 %1866  ;;  %v1917_v52 = vpop.permute.xlu1 %1916 }
 0x710   : > { %v1969_v56 = vpop.permute.xlu0 %1968  ;;  %v2019_v59 = vpop.permute.xlu1 %2018 }
 0x711   : > { %v1974_v57 = vsel %vm973_vm5, %v1969_v56, 0  ;;  %v2024_v60 = vsel %vm973_vm5, %v2019_v59, 0 }
 0x712   : > { %v11242_v36 = vpop.eup %11241 }
 0x713   : > { %v1668_v38 = vmul.f32 %v11242_v36, %v11234_v3 }
 0x714   : > { %v1967_v61 = vpop.permute.xlu0 %1966  ;;  %v2017_v62 = vpop.permute.xlu1 %2016 }
 0x715   : > { %v1672_v39 = vpack.c.bf16 %v1668_v38, %v1668_v38 }
 0x716   : > { %v11244_v41 = vpop.eup %11243 }
 0x717   : > { %10164 = vmatmul.mubr.msk.bf16.vlgmr.msra.gmra.mxu0 %vm1168_vm8, %v1672_v39  ;;  %v1669_v49 = vmul.f32 %v11244_v41, %v11236_v5 }
 0x718   : > { %10174 = vmatpush3.bf16.xpose.msra.mxu0 %v1874_v45  ;;  %10175 = vmatprep.mubr.msk.bf16.mxu0 %vm11775_vm6, %v13993_v9 }
 0x719   : > { %v1673_v51 = vpack.c.bf16 %v1669_v49, %v1669_v49  ;;  %10185 = vmatprep.subr.bf16.mxu0 %v13993_v9 }
 0x71b   : > { %10170 = vmatmul.mubr.msk.bf16.vlgmr.msra.gmra.mxu1 %vm1168_vm8, %v1673_v51 }
 0x71c   : > { %10180 = vmatpush3.bf16.xpose.msra.mxu1 %v1924_v53  ;;  %10181 = vmatprep.mubr.msk.bf16.mxu1 %vm11775_vm6, %v13993_v9 }
 0x71d   : > { %10191 = vmatprep.subr.bf16.mxu1 %v13993_v9 }
 0x71f   : > { %10176 = vmatmul.mubr.msk.bf16.vlgmr.msra.gmra.mxu0 %vm973_vm5, %v1867_v44 }
 0x720   : > { %10186 = vmatpush3.bf16.xpose.msra.mxu0 %v1974_v57  ;;  %10187 = vmatprep.mubr.msk.bf16.mxu0 %vm11775_vm6, %v13993_v9 }
 0x721   : > { %10197 = vmatprep.subr.bf16.mxu0 %v13993_v9 }
 0x723   : > { %10182 = vmatmul.mubr.msk.bf16.vlgmr.msra.gmra.mxu1 %vm973_vm5, %v1917_v52 }
 0x724   : > { %10192 = vmatpush3.bf16.xpose.msra.mxu1 %v2024_v60  ;;  %10193 = vmatprep.mubr.msk.bf16.mxu1 %vm11775_vm6, %v13993_v9 }
 0x725   : > { %10203 = vmatprep.subr.bf16.mxu1 %v13993_v9 }
 0x727   : > { %10188 = vmatmul.mubr.msk.bf16.vlgmr.msra.gmra.mxu0 %vm973_vm5, %v1967_v61 }
 0x728   : > { %10199 = vmatprep.mubr.msk.bf16.mxu0 %vm11775_vm6, %v13993_v9 }
 0x72b   : > { %10194 = vmatmul.mubr.msk.bf16.vlgmr.msra.gmra.mxu1 %vm973_vm5, %v2017_v62 }
 0x72c   : > { %10205 = vmatprep.mubr.msk.bf16.mxu1 %vm11775_vm6, %v13993_v9 }
 0x7a2   : > { %v12381_v63 = vpop.f32.mrf.mxu0 }
 0x7a4   : > { %v10153_v0 = vpop.f32.mrf.mxu0 }
 0x7a6   : > { %v1719_v1 = vpop.f32.mrf.mxu0  ;;  %v12383_v2 = vpop.f32.mrf.mxu1 }
 0x7a7   : > { %v11045_v3 = vpack.i.bf16 %v12383_v2, %v12381_v63 }
 0x7a8   : > { %v10154_v4 = vpop.f32.mrf.mxu0  ;;  %v10159_v5 = vpop.f32.mrf.mxu1 }
 0x7aa   : > { %v1767_v6 = vpop.f32.mrf.mxu1 }
 0x7ac   : > { %v10160_v12 = vpop.f32.mrf.mxu1 }
 0x7d7   : > { %v12387_v13 = vpop.f32.mrf.mxu0 }
 0x7d9   : > { %v10165_v16 = vpop.f32.mrf.mxu0 }
 0x7db   : > { %v1815_v17 = vpop.f32.mrf.mxu0  ;;  %v12389_v20 = vpop.f32.mrf.mxu1 }
 0x7dd   : > { %v10166_v22 = vpop.f32.mrf.mxu0  ;;  %v10171_v23 = vpop.f32.mrf.mxu1 }
 0x7df   : > { %v1863_v24 = vpop.f32.mrf.mxu1  ;;  %v1910_v25 = vpop.f32.mrf.mxu0 }
 0x7e0   : > { %v2066_v26 = vmul.f32 0.5, %v1910_v25 }
 0x7e1   : > { %v10172_v28 = vpop.f32.mrf.mxu1  ;;  %v10177_v29 = vpop.f32.mrf.mxu0 }
 0x7e2   : > { %v2070_v30 = vsel %vm12209_vm7, %v2066_v26, -1e+30 }
 0x7e3   : > { %v1913_v31 = vpop.f32.mrf.mxu0  ;;  %v1960_v33 = vpop.f32.mrf.mxu1  ;;  %v2074_v34 = vsel %vm1168_vm8, %v2070_v30, -inf }
 0x7e4   : > { %v2067_v35 = vmul.f32 0.5, %v1960_v33  ;;  %2075 = vmax.xlane.f32.xlu0 %v2074_v34 }
 0x7e5   : > { %v10178_v36 = vpop.f32.mrf.mxu0  ;;  %v10183_v38 = vpop.f32.mrf.mxu1 }
 0x7e6   : > { %v2071_v39 = vsel %vm12209_vm7, %v2067_v35, -1e+30 }
 0x7e7   : > { %v1963_v41 = vpop.f32.mrf.mxu1  ;;  %v2010_v44 = vpop.f32.mrf.mxu0  ;;  %v2077_v45 = vsel %vm1168_vm8, %v2071_v39, -inf }
 0x7e8   : > { %v2068_v49 = vmul.f32 0.5, %v2010_v44  ;;  %2078 = vmax.xlane.f32.xlu1 %v2077_v45 }
 0x7e9   : > { %v10184_v51 = vpop.f32.mrf.mxu1  ;;  %v10189_v52 = vpop.f32.mrf.mxu0 }
 0x7ea   : > { %v2072_v53 = vsel %vm12209_vm7, %v2068_v49, -1e+30 }
 0x7eb   : > { %v2013_v56 = vpop.f32.mrf.mxu0  ;;  %v2060_v57 = vpop.f32.mrf.mxu1  ;;  %v2080_v59 = vsel %vm1168_vm8, %v2072_v53, -inf }
 0x7ec   : > { %v2069_v60 = vmul.f32 0.5, %v2060_v57  ;;  %2081 = vmax.xlane.f32.xlu0 %v2080_v59 }
 0x7ed   : > { %v10190_v61 = vpop.f32.mrf.mxu0  ;;  %v10195_v62 = vpop.f32.mrf.mxu1 }
 0x7ee   : > { %v2073_v0 = vsel %vm12209_vm7, %v2069_v60, -1e+30 }
 0x7ef   : > { %v2063_v1 = vpop.f32.mrf.mxu1  ;;  %v2083_v4 = vsel %vm1168_vm8, %v2073_v0, -inf }
 0x7f0   : > { %2084 = vmax.xlane.f32.xlu0 %v2083_v4 }
 0x7f1   : > { %v10196_v5 = vpop.f32.mrf.mxu1 }
 0x7f9   : > { %2170 = vrot.lane.b32.xlu1 %v12162_v32, %s11780_s2 }
 0x7fd   : > { %2218 = vrot.lane.b32.xlu1 %v12175_v37, %s11780_s2 }
 0x801   : > { %2266 = vrot.lane.b32.xlu1 %v12179_v42, %s11780_s2 }
 0x86d   : > { %v2076_v6 = vpop.xlane.xlu0 %2075 }
 0x86e   : > { %v2086_v12 = vsub.f32 %v2070_v30, %v2076_v6 }
 0x870   : > { %v2090_v16 = vmul.f32 1.442695, %v2086_v12 }
 0x871   : > { %v2079_v17 = vpop.xlane.xlu1 %2078 }
 0x872   : > { %11245 = vpow2.f32 %v2090_v16  ;;  %v2087_v22 = vsub.f32 %v2071_v39, %v2079_v17 }
 0x874   : > { %v2092_v23 = vmul.f32 1.442695, %v2087_v22 }
 0x875   : > { %v2171_v24 = vpop.permute.xlu1 %2170  ;;  %v2082_v30 = vpop.xlane.xlu0 %2081 }
 0x876   : > { %11247 = vpow2.f32 %v2092_v23  ;;  %v2176_v25 = vsel %vm1223_vm9, %v2171_v24, 0  ;;  %v2088_v33 = vsub.f32 %v2072_v53, %v2082_v30 }
 0x877   : > { %10204 = vmatpush3.bf16.msra.mxu1 %v2176_v25 }
 0x878   : > { %10215 = vmatprep.subr.bf16.mxu1 %v13993_v9  ;;  %v2094_v35 = vmul.f32 1.442695, %v2088_v33 }
 0x879   : > { %v2085_v34 = vpop.xlane.xlu0 %2084  ;;  %v2219_v49 = vpop.permute.xlu1 %2218 }
 0x87a   : > { %v2089_v36 = vsub.f32 %v2073_v0, %v2085_v34  ;;  %11249 = vpow2.f32 %v2094_v35  ;;  %v2224_v0 = vsel %vm1223_vm9, %v2219_v49, 0 }
 0x87c   : > { %v2096_v38 = vmul.f32 1.442695, %v2089_v36 }
 0x87d   : > { %v2267_v51 = vpop.permute.xlu1 %2266 }
 0x87e   : > { %11251 = vpow2.f32 %v2096_v38  ;;  %v2272_v5 = vsel %vm1223_vm9, %v2267_v51, 0 }
 0x87f   : > { %v11246_v26 = vpop.eup %11245 }
 0x880   : > { %v2098_v28 = vsel %vm1168_vm8, %v11246_v26, 0.0 }
 0x881   : > { %2099 = vadd.xlane.f32.xlu0 %v2098_v28 }
 0x883   : > { %v11248_v29 = vpop.eup %11247 }
 0x884   : > { %v2101_v31 = vsel %vm1168_vm8, %v11248_v29, 0.0 }
 0x885   : > { %2102 = vadd.xlane.f32.xlu1 %v2101_v31 }
 0x887   : > { %v11250_v39 = vpop.eup %11249 }
 0x888   : > { %v2104_v41 = vsel %vm1168_vm8, %v11250_v39, 0.0 }
 0x88b   : > { %v11252_v44 = vpop.eup %11251 }
 0x88c   : > { %v2107_v45 = vsel %vm1168_vm8, %v11252_v44, 0.0 }
 0x896   : > { %2366 = vrot.lane.b32.xlu1 %v12162_v32, %s11781_s12 }
 0x897   : > { %2122 = vrot.lane.b32.xlu0 %v12158_v27, %s11780_s2 }
 0x8b6   : > { %2105 = vadd.xlane.f32.xlu0 %v2104_v41 }
 0x8ba   : > { %2108 = vadd.xlane.f32.xlu1 %v2107_v45 }
 0x8cb   : > { %2364 = vrot.lane.b32.xlu1 %v12187_v46, %s11781_s12 }
 0x8cc   : > { %2316 = vrot.lane.b32.xlu0 %v12158_v27, %s11781_s12 }
 0x8cf   : > { %2466 = vrot.lane.b32.xlu1 %v12179_v42, %s11781_s12 }
 0x8d0   : > { %2314 = vrot.lane.b32.xlu0 %v12177_v40, %s11781_s12 }
 0x8d3   : > { %2464 = vrot.lane.b32.xlu1 %v12203_v50, %s11781_s12 }
 0x8d4   : > { %2416 = vrot.lane.b32.xlu0 %v12175_v37, %s11781_s12 }
 0x8d8   : > { %2414 = vrot.lane.b32.xlu0 %v12196_v48, %s11781_s12 }
 0x90a   : > { %v2100_v52 = vpop.xlane.xlu0 %2099 }
 0x90b   : > { %11253 = vrcp.f32 %v2100_v52 }
 0x90e   : > { %v2103_v53 = vpop.xlane.xlu1 %2102  ;;  %v2123_v56 = vpop.permute.xlu0 %2122 }
 0x90f   : > { %11255 = vrcp.f32 %v2103_v53  ;;  %v2128_v57 = vsel %vm1223_vm9, %v2123_v56, 0 }
 0x910   : > { %10198 = vmatpush3.bf16.msra.mxu0 %v2128_v57 }
 0x911   : > { %10209 = vmatprep.subr.bf16.mxu0 %v13993_v9 }
 0x912   : > { %v2367_v6 = vpop.permute.xlu1 %2366 }
 0x913   : > { %v2372_v33 = vsel %vm973_vm5, %v2367_v6, 0 }
 0x918   : > { %v11254_v59 = vpop.eup %11253 }
 0x919   : > { %v2114_v60 = vmul.f32 %v11254_v59, %v11246_v26 }
 0x91b   : > { %v2118_v61 = vpack.c.bf16 %v2114_v60, %v2114_v60 }
 0x91c   : > { %v11256_v62 = vpop.eup %11255 }
 0x91d   : > { %10200 = vmatmul.mubr.msk.bf16.vlgmr.msra.gmra.mxu0 %vm1168_vm8, %v2118_v61  ;;  %v2115_v1 = vmul.f32 %v11256_v62, %v11248_v29 }
 0x91e   : > { %10210 = vmatpush3.bf16.msra.mxu0 %v2224_v0  ;;  %10211 = vmatprep.mubr.msk.bf16.mxu0 %vm11775_vm6, %v13993_v9 }
 0x91f   : > { %v2119_v4 = vpack.c.bf16 %v2115_v1, %v2115_v1  ;;  %10221 = vmatprep.subr.bf16.mxu0 %v13993_v9 }
 0x921   : > { %10206 = vmatmul.mubr.msk.bf16.vlgmr.msra.gmra.mxu1 %vm1168_vm8, %v2119_v4 }
 0x922   : > { %10216 = vmatpush3.bf16.msra.mxu1 %v2272_v5  ;;  %10217 = vmatprep.mubr.msk.bf16.mxu1 %vm11775_vm6, %v13993_v9 }
 0x923   : > { %10227 = vmatprep.subr.bf16.mxu1 %v13993_v9 }
 0x93f   : > { %v2106_v12 = vpop.xlane.xlu0 %2105 }
 0x940   : > { %11257 = vrcp.f32 %v2106_v12 }
 0x943   : > { %v2109_v16 = vpop.xlane.xlu1 %2108  ;;  %v2317_v17 = vpop.permute.xlu0 %2316 }
 0x944   : > { %11259 = vrcp.f32 %v2109_v16  ;;  %v2322_v28 = vsel %vm973_vm5, %v2317_v17, 0 }
 0x947   : > { %v2315_v26 = vpop.permute.xlu0 %2314  ;;  %v2365_v30 = vpop.permute.xlu1 %2364 }
 0x94b   : > { %v2417_v34 = vpop.permute.xlu0 %2416  ;;  %v2467_v36 = vpop.permute.xlu1 %2466 }
 0x94c   : > { %v2422_v35 = vsel %vm973_vm5, %v2417_v34, 0  ;;  %v2472_v38 = vsel %vm973_vm5, %v2467_v36, 0 }
 0x94d   : > { %v11258_v22 = vpop.eup %11257 }
 0x94e   : > { %v2116_v23 = vmul.f32 %v11258_v22, %v11250_v39 }
 0x94f   : > { %v2415_v39 = vpop.permute.xlu0 %2414  ;;  %v2465_v41 = vpop.permute.xlu1 %2464 }
 0x950   : > { %v2120_v24 = vpack.c.bf16 %v2116_v23, %v2116_v23 }
 0x951   : > { %v11260_v25 = vpop.eup %11259 }
 0x952   : > { %10212 = vmatmul.mubr.msk.bf16.vlgmr.msra.gmra.mxu0 %vm1168_vm8, %v2120_v24  ;;  %v2117_v29 = vmul.f32 %v11260_v25, %v11252_v44 }
 0x953   : > { %10222 = vmatpush3.bf16.xpose.msra.mxu0 %v2322_v28  ;;  %10223 = vmatprep.mubr.msk.bf16.mxu0 %vm11775_vm6, %v13993_v9 }
 0x954   : > { %v2121_v31 = vpack.c.bf16 %v2117_v29, %v2117_v29  ;;  %10233 = vmatprep.subr.bf16.mxu0 %v13993_v9 }
 0x956   : > { %10218 = vmatmul.mubr.msk.bf16.vlgmr.msra.gmra.mxu1 %vm1168_vm8, %v2121_v31 }
 0x957   : > { %10228 = vmatpush3.bf16.xpose.msra.mxu1 %v2372_v33  ;;  %10229 = vmatprep.mubr.msk.bf16.mxu1 %vm11775_vm6, %v13993_v9 }
 0x958   : > { %10239 = vmatprep.subr.bf16.mxu1 %v13993_v9 }
 0x95a   : > { %10224 = vmatmul.mubr.msk.bf16.vlgmr.msra.gmra.mxu0 %vm973_vm5, %v2315_v26 }
 0x95b   : > { %10234 = vmatpush3.bf16.xpose.msra.mxu0 %v2422_v35  ;;  %10235 = vmatprep.mubr.msk.bf16.mxu0 %vm11775_vm6, %v13993_v9 }
 0x95c   : > { %10245 = vmatprep.subr.bf16.mxu0 %v13993_v9 }
 0x95e   : > { %10230 = vmatmul.mubr.msk.bf16.vlgmr.msra.gmra.mxu1 %vm973_vm5, %v2365_v30 }
 0x95f   : > { %10240 = vmatpush3.bf16.xpose.msra.mxu1 %v2472_v38  ;;  %10241 = vmatprep.mubr.msk.bf16.mxu1 %vm11775_vm6, %v13993_v9 }
 0x960   : > { %10251 = vmatprep.subr.bf16.mxu1 %v13993_v9 }
 0x962   : > { %10236 = vmatmul.mubr.msk.bf16.vlgmr.msra.gmra.mxu0 %vm973_vm5, %v2415_v39 }
 0x963   : > { %10247 = vmatprep.mubr.msk.bf16.mxu0 %vm11775_vm6, %v13993_v9 }
 0x966   : > { %10242 = vmatmul.mubr.msk.bf16.vlgmr.msra.gmra.mxu1 %vm973_vm5, %v2465_v41 }
 0x967   : > { %10253 = vmatprep.mubr.msk.bf16.mxu1 %vm11775_vm6, %v13993_v9 }
 0x9dd   : > { %v12473_v44 = vpop.f32.mrf.mxu0 }
 0x9df   : > { %v10201_v45 = vpop.f32.mrf.mxu0 }
 0x9e1   : > { %v2167_v49 = vpop.f32.mrf.mxu0  ;;  %v12475_v51 = vpop.f32.mrf.mxu1 }
 0x9e2   : > { %v11055_v52 = vpack.i.bf16 %v12475_v51, %v12473_v44 }
 0x9e3   : > { %v10202_v53 = vpop.f32.mrf.mxu0  ;;  %v10207_v56 = vpop.f32.mrf.mxu1 }
 0x9e5   : > { %v2215_v57 = vpop.f32.mrf.mxu1 }
 0x9e7   : > { %v10208_v59 = vpop.f32.mrf.mxu1 }
 0xa12   : > { %v12479_v60 = vpop.f32.mrf.mxu0 }
 0xa14   : > { %v10213_v61 = vpop.f32.mrf.mxu0 }
 0xa16   : > { %v2263_v62 = vpop.f32.mrf.mxu0  ;;  %v12481_v0 = vpop.f32.mrf.mxu1 }
 0xa17   : > { %v14060_v44 = vpack.i.bf16 %v12481_v0, %v12479_v60 }
 0xa18   : > { %v10214_v4 = vpop.f32.mrf.mxu0  ;;  %v10219_v5 = vpop.f32.mrf.mxu1 }
 0xa1a   : > { %v2311_v6 = vpop.f32.mrf.mxu1  ;;  %v2358_v12 = vpop.f32.mrf.mxu0 }
 0xa1b   : > { %v2514_v16 = vmul.f32 0.5, %v2358_v12 }
 0xa1c   : > { %v10220_v17 = vpop.f32.mrf.mxu1  ;;  %v10225_v22 = vpop.f32.mrf.mxu0 }
 0xa1d   : > { %v2518_v23 = vsel %vm12209_vm7, %v2514_v16, -1e+30 }
 0xa1e   : > { %v2361_v24 = vpop.f32.mrf.mxu0  ;;  %v2408_v25 = vpop.f32.mrf.mxu1  ;;  %v2522_v26 = vsel %vm1168_vm8, %v2518_v23, -inf }
 0xa1f   : > { %v2515_v28 = vmul.f32 0.5, %v2408_v25  ;;  %2523 = vmax.xlane.f32.xlu0 %v2522_v26 }
 0xa20   : > { %v10226_v29 = vpop.f32.mrf.mxu0  ;;  %v10231_v31 = vpop.f32.mrf.mxu1 }
 0xa21   : > { %v2519_v30 = vsel %vm12209_vm7, %v2515_v28, -1e+30 }
 0xa22   : > { %v2411_v33 = vpop.f32.mrf.mxu1  ;;  %v2458_v34 = vpop.f32.mrf.mxu0  ;;  %v2525_v35 = vsel %vm1168_vm8, %v2519_v30, -inf }
 0xa23   : > { %v2516_v36 = vmul.f32 0.5, %v2458_v34  ;;  %2526 = vmax.xlane.f32.xlu1 %v2525_v35 }
 0xa24   : > { %v10232_v38 = vpop.f32.mrf.mxu1  ;;  %v10237_v39 = vpop.f32.mrf.mxu0 }
 0xa25   : > { %v2520_v41 = vsel %vm12209_vm7, %v2516_v36, -1e+30 }
 0xa26   : > { %v2461_v45 = vpop.f32.mrf.mxu0  ;;  %v2508_v49 = vpop.f32.mrf.mxu1  ;;  %v2528_v53 = vsel %vm1168_vm8, %v2520_v41, -inf }
 0xa27   : > { %v2517_v56 = vmul.f32 0.5, %v2508_v49  ;;  %2529 = vmax.xlane.f32.xlu0 %v2528_v53 }
 0xa28   : > { %v10238_v57 = vpop.f32.mrf.mxu0  ;;  %v10243_v59 = vpop.f32.mrf.mxu1 }
 0xa29   : > { %v2521_v61 = vsel %vm12209_vm7, %v2517_v56, -1e+30 }
 0xa2a   : > { %v2511_v62 = vpop.f32.mrf.mxu1  ;;  %v2531_v4 = vsel %vm1168_vm8, %v2521_v61, -inf }
 0xa2b   : > { %2532 = vmax.xlane.f32.xlu0 %v2531_v4 }
 0xa2c   : > { %v10244_v5 = vpop.f32.mrf.mxu1 }
 0xa34   : > { %2618 = vrot.lane.b32.xlu1 %v12162_v32, %s11782_s14 }
 0xa38   : > { %2666 = vrot.lane.b32.xlu1 %v12175_v37, %s11782_s14 }
 0xa3c   : > { %2714 = vrot.lane.b32.xlu1 %v12179_v42, %s11782_s14 }
 0xaa8   : > { %v2524_v6 = vpop.xlane.xlu0 %2523 }
 0xaa9   : > { %v2534_v12 = vsub.f32 %v2518_v23, %v2524_v6 }
 0xaab   : > { %v2538_v16 = vmul.f32 1.442695, %v2534_v12 }
 0xaac   : > { %v2527_v17 = vpop.xlane.xlu1 %2526 }
 0xaad   : > { %11261 = vpow2.f32 %v2538_v16  ;;  %v2535_v22 = vsub.f32 %v2519_v30, %v2527_v17 }
 0xaaf   : > { %v2540_v24 = vmul.f32 1.442695, %v2535_v22 }
 0xab0   : > { %v2619_v25 = vpop.permute.xlu1 %2618  ;;  %v2530_v23 = vpop.xlane.xlu0 %2529 }
 0xab1   : > { %11263 = vpow2.f32 %v2540_v24  ;;  %v2624_v26 = vsel %vm1223_vm9, %v2619_v25, 0  ;;  %v2536_v30 = vsub.f32 %v2520_v41, %v2530_v23 }
 0xab2   : > { %10252 = vmatpush3.bf16.msra.mxu1 %v2624_v26 }
 0xab3   : > { %10263 = vmatprep.subr.bf16.mxu1 %v13993_v9  ;;  %v2542_v35 = vmul.f32 1.442695, %v2536_v30 }
 0xab4   : > { %v2533_v34 = vpop.xlane.xlu0 %2532  ;;  %v2667_v41 = vpop.permute.xlu1 %2666 }
 0xab5   : > { %v2537_v36 = vsub.f32 %v2521_v61, %v2533_v34  ;;  %11265 = vpow2.f32 %v2542_v35  ;;  %v2672_v16 = vsel %vm1223_vm9, %v2667_v41, 0 }
 0xab7   : > { %v2544_v38 = vmul.f32 1.442695, %v2537_v36 }
 0xab8   : > { %v2715_v56 = vpop.permute.xlu1 %2714 }
 0xab9   : > { %11267 = vpow2.f32 %v2544_v38  ;;  %v2720_v24 = vsel %vm1223_vm9, %v2715_v56, 0 }
 0xaba   : > { %v11262_v28 = vpop.eup %11261 }
 0xabb   : > { %v2546_v29 = vsel %vm1168_vm8, %v11262_v28, 0.0 }
 0xabc   : > { %2547 = vadd.xlane.f32.xlu0 %v2546_v29 }
 0xabe   : > { %v11264_v31 = vpop.eup %11263 }
 0xabf   : > { %v2549_v33 = vsel %vm1168_vm8, %v11264_v31, 0.0 }
 0xac0   : > { %2550 = vadd.xlane.f32.xlu1 %v2549_v33 }
 0xac2   : > { %v11266_v39 = vpop.eup %11265 }
 0xac3   : > { %v2552_v45 = vsel %vm1168_vm8, %v11266_v39, 0.0 }
 0xac6   : > { %v11268_v49 = vpop.eup %11267 }
 0xac7   : > { %v2555_v53 = vsel %vm1168_vm8, %v11268_v49, 0.0 }
 0xad1   : > { %2814 = vrot.lane.b32.xlu1 %v12162_v32, %s14007_s29 }
 0xad2   : > { %2570 = vrot.lane.b32.xlu0 %v12158_v27, %s11782_s14 }
 0xaf1   : > { %2553 = vadd.xlane.f32.xlu0 %v2552_v45 }
 0xaf5   : > { %2556 = vadd.xlane.f32.xlu1 %v2555_v53 }
 0xb06   : > { %2812 = vrot.lane.b32.xlu1 %v12187_v46, %s14007_s29 }
 0xb07   : > { %2764 = vrot.lane.b32.xlu0 %v12158_v27, %s14007_s29 }
 0xb0a   : > { %2914 = vrot.lane.b32.xlu1 %v12179_v42, %s14007_s29 }
 0xb0b   : > { %2762 = vrot.lane.b32.xlu0 %v12177_v40, %s14007_s29 }
 0xb0e   : > { %2912 = vrot.lane.b32.xlu1 %v12203_v50, %s14007_s29 }
 0xb0f   : > { %2864 = vrot.lane.b32.xlu0 %v12175_v37, %s14007_s29 }
 0xb13   : > { %2862 = vrot.lane.b32.xlu0 %v12196_v48, %s14007_s29  ;;  %s14009_s29 = smov 24  }
 0xb45   : > { %v2548_v57 = vpop.xlane.xlu0 %2547 }
 0xb46   : > { %11269 = vrcp.f32 %v2548_v57 }
 0xb49   : > { %v2551_v59 = vpop.xlane.xlu1 %2550  ;;  %v2571_v61 = vpop.permute.xlu0 %2570 }
 0xb4a   : > { %11271 = vrcp.f32 %v2551_v59  ;;  %v2576_v62 = vsel %vm1223_vm9, %v2571_v61, 0 }
 0xb4b   : > { %10246 = vmatpush3.bf16.msra.mxu0 %v2576_v62 }
 0xb4c   : > { %10257 = vmatprep.subr.bf16.mxu0 %v13993_v9 }
 0xb4d   : > { %v2815_v25 = vpop.permute.xlu1 %2814 }
 0xb4e   : > { %v2820_v53 = vsel %vm973_vm5, %v2815_v25, 0 }
 0xb53   : > { %v11270_v4 = vpop.eup %11269 }
 0xb54   : > { %v2562_v5 = vmul.f32 %v11270_v4, %v11262_v28 }
 0xb56   : > { %v2566_v6 = vpack.c.bf16 %v2562_v5, %v2562_v5 }
 0xb57   : > { %v11272_v12 = vpop.eup %11271 }
 0xb58   : > { %10248 = vmatmul.mubr.msk.bf16.vlgmr.msra.gmra.mxu0 %vm1168_vm8, %v2566_v6  ;;  %v2563_v17 = vmul.f32 %v11272_v12, %v11264_v31 }
 0xb59   : > { %10258 = vmatpush3.bf16.msra.mxu0 %v2672_v16  ;;  %10259 = vmatprep.mubr.msk.bf16.mxu0 %vm11775_vm6, %v13993_v9 }
 0xb5a   : > { %v2567_v22 = vpack.c.bf16 %v2563_v17, %v2563_v17  ;;  %10269 = vmatprep.subr.bf16.mxu0 %v13993_v9 }
 0xb5c   : > { %10254 = vmatmul.mubr.msk.bf16.vlgmr.msra.gmra.mxu1 %vm1168_vm8, %v2567_v22 }
 0xb5d   : > { %10264 = vmatpush3.bf16.msra.mxu1 %v2720_v24  ;;  %10265 = vmatprep.mubr.msk.bf16.mxu1 %vm11775_vm6, %v13993_v9 }
 0xb5e   : > { %10275 = vmatprep.subr.bf16.mxu1 %v13993_v9 }
 0xb7a   : > { %v2554_v26 = vpop.xlane.xlu0 %2553 }
 0xb7b   : > { %11273 = vrcp.f32 %v2554_v26 }
 0xb7e   : > { %v2557_v28 = vpop.xlane.xlu1 %2556  ;;  %v2765_v29 = vpop.permute.xlu0 %2764 }
 0xb7f   : > { %11275 = vrcp.f32 %v2557_v28  ;;  %v2770_v35 = vsel %vm973_vm5, %v2765_v29, 0 }
 0xb82   : > { %v2763_v34 = vpop.permute.xlu0 %2762  ;;  %v2813_v45 = vpop.permute.xlu1 %2812 }
 0xb86   : > { %v2915_v41 = vpop.permute.xlu1 %2914 }
 0xb87   : > { %v2920_v56 = vsel %vm973_vm5, %v2915_v41, 0 }
 0xb88   : > { %v11274_v31 = vpop.eup %11273 }
 0xb89   : > { %v2564_v33 = vmul.f32 %v11274_v31, %v11266_v39  ;;  %v2865_v39 = vpop.permute.xlu0 %2864 }
 0xb8a   : > { %v2913_v59 = vpop.permute.xlu1 %2912 }
 0xb8b   : > { %v2568_v23 = vpack.c.bf16 %v2564_v33, %v2564_v33 }
 0xb8c   : > { %v11276_v30 = vpop.eup %11275 }
 0xb8d   : > { %10260 = vmatmul.mubr.msk.bf16.vlgmr.msra.gmra.mxu0 %vm1168_vm8, %v2568_v23  ;;  %v2565_v36 = vmul.f32 %v11276_v30, %v11268_v49  ;;  %v2870_v49 = vsel %vm973_vm5, %v2865_v39, 0  ;;  %v2863_v57 = vpop.permute.xlu0 %2862 }
 0xb8e   : > { %10270 = vmatpush3.bf16.xpose.msra.mxu0 %v2770_v35  ;;  %10271 = vmatprep.mubr.msk.bf16.mxu0 %vm11775_vm6, %v13993_v9 }
 0xb8f   : > { %v2569_v38 = vpack.c.bf16 %v2565_v36, %v2565_v36  ;;  %10281 = vmatprep.subr.bf16.mxu0 %v13993_v9 }
 0xb91   : > { %10266 = vmatmul.mubr.msk.bf16.vlgmr.msra.gmra.mxu1 %vm1168_vm8, %v2569_v38 }
 0xb92   : > { %10276 = vmatpush3.bf16.xpose.msra.mxu1 %v2820_v53  ;;  %10277 = vmatprep.mubr.msk.bf16.mxu1 %vm11775_vm6, %v13993_v9 }
 0xb93   : > { %10287 = vmatprep.subr.bf16.mxu1 %v13993_v9 }
 0xb95   : > { %10272 = vmatmul.mubr.msk.bf16.vlgmr.msra.gmra.mxu0 %vm973_vm5, %v2763_v34 }
 0xb96   : > { %10282 = vmatpush3.bf16.xpose.msra.mxu0 %v2870_v49  ;;  %10283 = vmatprep.mubr.msk.bf16.mxu0 %vm11775_vm6, %v13993_v9 }
 0xb97   : > { %10293 = vmatprep.subr.bf16.mxu0 %v13993_v9 }
 0xb99   : > { %10278 = vmatmul.mubr.msk.bf16.vlgmr.msra.gmra.mxu1 %vm973_vm5, %v2813_v45 }
 0xb9a   : > { %10288 = vmatpush3.bf16.xpose.msra.mxu1 %v2920_v56  ;;  %10289 = vmatprep.mubr.msk.bf16.mxu1 %vm11775_vm6, %v13993_v9 }
 0xb9b   : > { %10299 = vmatprep.subr.bf16.mxu1 %v13993_v9 }
 0xb9d   : > { %10284 = vmatmul.mubr.msk.bf16.vlgmr.msra.gmra.mxu0 %vm973_vm5, %v2863_v57 }
 0xb9e   : > { %10295 = vmatprep.mubr.msk.bf16.mxu0 %vm11775_vm6, %v13993_v9 }
 0xba1   : > { %10290 = vmatmul.mubr.msk.bf16.vlgmr.msra.gmra.mxu1 %vm973_vm5, %v2913_v59 }
 0xba2   : > { %10301 = vmatprep.mubr.msk.bf16.mxu1 %vm11775_vm6, %v13993_v9 }
 0xc18   : > { %v12565_v61 = vpop.f32.mrf.mxu0 }
 0xc1a   : > { %v10249_v62 = vpop.f32.mrf.mxu0 }
 0xc1c   : > { %v2615_v4 = vpop.f32.mrf.mxu0  ;;  %v12567_v5 = vpop.f32.mrf.mxu1 }
 0xc1d   : > { %v11065_v6 = vpack.i.bf16 %v12567_v5, %v12565_v61 }
 0xc1e   : > { %v10250_v12 = vpop.f32.mrf.mxu0  ;;  %v10255_v16 = vpop.f32.mrf.mxu1 }
 0xc20   : > { %v2663_v17 = vpop.f32.mrf.mxu1 }
 0xc22   : > { %v10256_v22 = vpop.f32.mrf.mxu1 }
 0xc4d   : > { %v12571_v24 = vpop.f32.mrf.mxu0 }
 0xc4f   : > { %v10261_v25 = vpop.f32.mrf.mxu0 }
 0xc51   : > { %v2711_v26 = vpop.f32.mrf.mxu0  ;;  %v12573_v28 = vpop.f32.mrf.mxu1 }
 0xc52   : > { %v14061_v51 = vpack.i.bf16 %v12573_v28, %v12571_v24 }
 0xc53   : > { %v10262_v31 = vpop.f32.mrf.mxu0  ;;  %v10267_v33 = vpop.f32.mrf.mxu1 }
 0xc55   : > { %v2759_v23 = vpop.f32.mrf.mxu1  ;;  %v2806_v30 = vpop.f32.mrf.mxu0 }
 0xc56   : > { %v2962_v34 = vmul.f32 0.5, %v2806_v30 }
 0xc57   : > { %v10268_v35 = vpop.f32.mrf.mxu1  ;;  %v10273_v36 = vpop.f32.mrf.mxu0 }
 0xc58   : > { %v2966_v38 = vsel %vm12209_vm7, %v2962_v34, -1e+30 }
 0xc59   : > { %v2809_v45 = vpop.f32.mrf.mxu0  ;;  %v2856_v53 = vpop.f32.mrf.mxu1  ;;  %v2970_v39 = vsel %vm1168_vm8, %v2966_v38, -inf }
 0xc5a   : > { %v2963_v49 = vmul.f32 0.5, %v2856_v53  ;;  %2971 = vmax.xlane.f32.xlu0 %v2970_v39 }
 0xc5b   : > { %v10274_v41 = vpop.f32.mrf.mxu0  ;;  %v10279_v56 = vpop.f32.mrf.mxu1 }
 0xc5c   : > { %v2967_v57 = vsel %vm12209_vm7, %v2963_v49, -1e+30 }
 0xc5d   : > { %v2859_v59 = vpop.f32.mrf.mxu1  ;;  %v2906_v62 = vpop.f32.mrf.mxu0  ;;  %v2973_v4 = vsel %vm1168_vm8, %v2967_v57, -inf }
 0xc5e   : > { %v2964_v12 = vmul.f32 0.5, %v2906_v62  ;;  %2974 = vmax.xlane.f32.xlu1 %v2973_v4 }
 0xc5f   : > { %v10280_v16 = vpop.f32.mrf.mxu1  ;;  %v10285_v17 = vpop.f32.mrf.mxu0 }
 0xc60   : > { %v2968_v22 = vsel %vm12209_vm7, %v2964_v12, -1e+30 }
 0xc61   : > { %v2909_v25 = vpop.f32.mrf.mxu0  ;;  %v2956_v26 = vpop.f32.mrf.mxu1  ;;  %v2976_v31 = vsel %vm1168_vm8, %v2968_v22, -inf }
 0xc62   : > { %v2965_v33 = vmul.f32 0.5, %v2956_v26  ;;  %2977 = vmax.xlane.f32.xlu0 %v2976_v31 }
 0xc63   : > { %v10286_v23 = vpop.f32.mrf.mxu0  ;;  %v10291_v30 = vpop.f32.mrf.mxu1 }
 0xc64   : > { %v2969_v34 = vsel %vm12209_vm7, %v2965_v33, -1e+30 }
 0xc65   : > { %v2959_v35 = vpop.f32.mrf.mxu1  ;;  %v2979_v36 = vsel %vm1168_vm8, %v2969_v34, -inf }
 0xc66   : > { %2980 = vmax.xlane.f32.xlu0 %v2979_v36 }
 0xc67   : > { %v10292_v45 = vpop.f32.mrf.mxu1 }
 0xc6f   : > { %3066 = vrot.lane.b32.xlu1 %v12162_v32, %s14005_s20 }
 0xc73   : > { %3114 = vrot.lane.b32.xlu1 %v12175_v37, %s14005_s20 }
 0xc77   : > { %3162 = vrot.lane.b32.xlu1 %v12179_v42, %s14005_s20 }
 0xce3   : > { %v2972_v53 = vpop.xlane.xlu0 %2971 }
 0xce4   : > { %v2982_v39 = vsub.f32 %v2966_v38, %v2972_v53 }
 0xce6   : > { %v2986_v49 = vmul.f32 1.442695, %v2982_v39 }
 0xce7   : > { %v2975_v41 = vpop.xlane.xlu1 %2974 }
 0xce8   : > { %11277 = vpow2.f32 %v2986_v49  ;;  %v2983_v56 = vsub.f32 %v2967_v57, %v2975_v41 }
 0xcea   : > { %v2988_v59 = vmul.f32 1.442695, %v2983_v56 }
 0xceb   : > { %v3067_v62 = vpop.permute.xlu1 %3066  ;;  %v2978_v38 = vpop.xlane.xlu0 %2977 }
 0xcec   : > { %11279 = vpow2.f32 %v2988_v59  ;;  %v3072_v4 = vsel %vm1223_vm9, %v3067_v62, 0  ;;  %v2984_v57 = vsub.f32 %v2968_v22, %v2978_v38 }
 0xced   : > { %10300 = vmatpush3.bf16.msra.mxu1 %v3072_v4 }
 0xcee   : > { %10311 = vmatprep.subr.bf16.mxu1 %v13993_v9  ;;  %v2990_v31 = vmul.f32 1.442695, %v2984_v57 }
 0xcef   : > { %v2981_v26 = vpop.xlane.xlu0 %2980  ;;  %v3115_v22 = vpop.permute.xlu1 %3114 }
 0xcf0   : > { %v2985_v33 = vsub.f32 %v2969_v34, %v2981_v26  ;;  %11281 = vpow2.f32 %v2990_v31 }
 0xcf2   : > { %v2992_v23 = vmul.f32 1.442695, %v2985_v33 }
 0xcf3   : > { %v3163_v34 = vpop.permute.xlu1 %3162 }
 0xcf4   : > { %11283 = vpow2.f32 %v2992_v23  ;;  %v3168_v57 = vsel %vm1223_vm9, %v3163_v34, 0 }
 0xcf5   : > { %v11278_v12 = vpop.eup %11277 }
 0xcf6   : > { %v2994_v16 = vsel %vm1168_vm8, %v11278_v12, 0.0 }
 0xcf7   : > { %2995 = vadd.xlane.f32.xlu0 %v2994_v16  ;;  %v3120_v16 = vsel %vm1223_vm9, %v3115_v22, 0 }
 0xcf9   : > { %v11280_v17 = vpop.eup %11279 }
 0xcfa   : > { %v2997_v25 = vsel %vm1168_vm8, %v11280_v17, 0.0 }
 0xcfb   : > { %2998 = vadd.xlane.f32.xlu1 %v2997_v25 }
 0xcfd   : > { %v11282_v30 = vpop.eup %11281 }
 0xcfe   : > { %v3000_v35 = vsel %vm1168_vm8, %v11282_v30, 0.0 }
 0xd01   : > { %v11284_v36 = vpop.eup %11283 }
 0xd02   : > { %v3003_v45 = vsel %vm1168_vm8, %v11284_v36, 0.0 }
 0xd0c   : > { %3262 = vrot.lane.b32.xlu1 %v12162_v32, %s14003_s18 }
 0xd0d   : > { %3018 = vrot.lane.b32.xlu0 %v12158_v27, %s14005_s20  ;;  %s14013_s20 = smov 20  }
 0xd2c   : > { %3001 = vadd.xlane.f32.xlu0 %v3000_v35 }
 0xd30   : > { %3004 = vadd.xlane.f32.xlu1 %v3003_v45 }
 0xd41   : > { %3260 = vrot.lane.b32.xlu1 %v12187_v46, %s14003_s18 }
 0xd42   : > { %3212 = vrot.lane.b32.xlu0 %v12158_v27, %s14003_s18 }
 0xd45   : > { %3362 = vrot.lane.b32.xlu1 %v12179_v42, %s14003_s18 }
 0xd46   : > { %3210 = vrot.lane.b32.xlu0 %v12177_v40, %s14003_s18 }
 0xd49   : > { %3360 = vrot.lane.b32.xlu1 %v12203_v50, %s14003_s18 }
 0xd4a   : > { %3312 = vrot.lane.b32.xlu0 %v12175_v37, %s14003_s18 }
 0xd4e   : > { %3310 = vrot.lane.b32.xlu0 %v12196_v48, %s14003_s18  ;;  %s14015_s18 = smov 16  }
 0xd80   : > { %v2996_v53 = vpop.xlane.xlu0 %2995 }
 0xd81   : > { %11285 = vrcp.f32 %v2996_v53 }
 0xd84   : > { %v2999_v39 = vpop.xlane.xlu1 %2998  ;;  %v3019_v49 = vpop.permute.xlu0 %3018 }
 0xd85   : > { %11287 = vrcp.f32 %v2999_v39  ;;  %v3024_v41 = vsel %vm1223_vm9, %v3019_v49, 0 }
 0xd86   : > { %10294 = vmatpush3.bf16.msra.mxu0 %v3024_v41 }
 0xd87   : > { %10305 = vmatprep.subr.bf16.mxu0 %v13993_v9 }
 0xd8e   : > { %v11286_v56 = vpop.eup %11285 }
 0xd8f   : > { %v3010_v59 = vmul.f32 %v11286_v56, %v11278_v12  ;;  %v3263_v12 = vpop.permute.xlu1 %3262 }
 0xd90   : > { %v3268_v41 = vsel %vm973_vm5, %v3263_v12, 0 }
 0xd91   : > { %v3014_v62 = vpack.c.bf16 %v3010_v59, %v3010_v59 }
 0xd92   : > { %v11288_v4 = vpop.eup %11287 }
 0xd93   : > { %10296 = vmatmul.mubr.msk.bf16.vlgmr.msra.gmra.mxu0 %vm1168_vm8, %v3014_v62  ;;  %v3011_v25 = vmul.f32 %v11288_v4, %v11280_v17 }
 0xd94   : > { %10306 = vmatpush3.bf16.msra.mxu0 %v3120_v16  ;;  %10307 = vmatprep.mubr.msk.bf16.mxu0 %vm11775_vm6, %v13993_v9 }
 0xd95   : > { %v3015_v38 = vpack.c.bf16 %v3011_v25, %v3011_v25  ;;  %10317 = vmatprep.subr.bf16.mxu0 %v13993_v9 }
 0xd97   : > { %10302 = vmatmul.mubr.msk.bf16.vlgmr.msra.gmra.mxu1 %vm1168_vm8, %v3015_v38 }
 0xd98   : > { %10312 = vmatpush3.bf16.msra.mxu1 %v3168_v57  ;;  %10313 = vmatprep.mubr.msk.bf16.mxu1 %vm11775_vm6, %v13993_v9 }
 0xd99   : > { %10323 = vmatprep.subr.bf16.mxu1 %v13993_v9 }
 0xdb5   : > { %v3002_v26 = vpop.xlane.xlu0 %3001 }
 0xdb6   : > { %11289 = vrcp.f32 %v3002_v26 }
 0xdb9   : > { %v3005_v17 = vpop.xlane.xlu1 %3004  ;;  %v3213_v31 = vpop.permute.xlu0 %3212 }
 0xdba   : > { %11291 = vrcp.f32 %v3005_v17  ;;  %v3218_v34 = vsel %vm973_vm5, %v3213_v31, 0 }
 0xdbd   : > { %v3211_v22 = vpop.permute.xlu0 %3210  ;;  %v3261_v49 = vpop.permute.xlu1 %3260 }
 0xdc1   : > { %v3363_v56 = vpop.permute.xlu1 %3362 }
 0xdc2   : > { %v3368_v59 = vsel %vm973_vm5, %v3363_v56, 0 }
 0xdc3   : > { %v11290_v33 = vpop.eup %11289 }
 0xdc4   : > { %v3012_v23 = vmul.f32 %v11290_v33, %v11282_v30  ;;  %v3313_v30 = vpop.permute.xlu0 %3312 }
 0xdc5   : > { %v3361_v4 = vpop.permute.xlu1 %3360 }
 0xdc6   : > { %v3016_v35 = vpack.c.bf16 %v3012_v23, %v3012_v23 }
 0xdc7   : > { %v11292_v45 = vpop.eup %11291 }
 0xdc8   : > { %10308 = vmatmul.mubr.msk.bf16.vlgmr.msra.gmra.mxu0 %vm1168_vm8, %v3016_v35  ;;  %v3013_v53 = vmul.f32 %v11292_v45, %v11284_v36  ;;  %v3318_v36 = vsel %vm973_vm5, %v3313_v30, 0  ;;  %v3311_v62 = vpop.permute.xlu0 %3310 }
 0xdc9   : > { %10318 = vmatpush3.bf16.xpose.msra.mxu0 %v3218_v34  ;;  %10319 = vmatprep.mubr.msk.bf16.mxu0 %vm11775_vm6, %v13993_v9 }
 0xdca   : > { %v3017_v39 = vpack.c.bf16 %v3013_v53, %v3013_v53  ;;  %10329 = vmatprep.subr.bf16.mxu0 %v13993_v9 }
 0xdcc   : > { %10314 = vmatmul.mubr.msk.bf16.vlgmr.msra.gmra.mxu1 %vm1168_vm8, %v3017_v39 }
 0xdcd   : > { %10324 = vmatpush3.bf16.xpose.msra.mxu1 %v3268_v41  ;;  %10325 = vmatprep.mubr.msk.bf16.mxu1 %vm11775_vm6, %v13993_v9 }
 0xdce   : > { %10335 = vmatprep.subr.bf16.mxu1 %v13993_v9 }
 0xdd0   : > { %10320 = vmatmul.mubr.msk.bf16.vlgmr.msra.gmra.mxu0 %vm973_vm5, %v3211_v22 }
 0xdd1   : > { %10330 = vmatpush3.bf16.xpose.msra.mxu0 %v3318_v36  ;;  %10331 = vmatprep.mubr.msk.bf16.mxu0 %vm11775_vm6, %v13993_v9 }
 0xdd2   : > { %10341 = vmatprep.subr.bf16.mxu0 %v13993_v9 }
 0xdd4   : > { %10326 = vmatmul.mubr.msk.bf16.vlgmr.msra.gmra.mxu1 %vm973_vm5, %v3261_v49 }
 0xdd5   : > { %10336 = vmatpush3.bf16.xpose.msra.mxu1 %v3368_v59  ;;  %10337 = vmatprep.mubr.msk.bf16.mxu1 %vm11775_vm6, %v13993_v9 }
 0xdd6   : > { %10347 = vmatprep.subr.bf16.mxu1 %v13993_v9 }
 0xdd8   : > { %10332 = vmatmul.mubr.msk.bf16.vlgmr.msra.gmra.mxu0 %vm973_vm5, %v3311_v62 }
 0xdd9   : > { %10343 = vmatprep.mubr.msk.bf16.mxu0 %vm11775_vm6, %v13993_v9 }
 0xddc   : > { %10338 = vmatmul.mubr.msk.bf16.vlgmr.msra.gmra.mxu1 %vm973_vm5, %v3361_v4 }
 0xddd   : > { %10349 = vmatprep.mubr.msk.bf16.mxu1 %vm11775_vm6, %v13993_v9 }
 0xe53   : > { %v12657_v16 = vpop.f32.mrf.mxu0 }
 0xe55   : > { %v10297_v25 = vpop.f32.mrf.mxu0 }
 0xe57   : > { %v3063_v38 = vpop.f32.mrf.mxu0  ;;  %v12659_v57 = vpop.f32.mrf.mxu1 }
 0xe58   : > { %v11075_v12 = vpack.i.bf16 %v12659_v57, %v12657_v16 }
 0xe59   : > { %v10298_v26 = vpop.f32.mrf.mxu0  ;;  %v10303_v17 = vpop.f32.mrf.mxu1 }
 0xe5b   : > { %v3111_v31 = vpop.f32.mrf.mxu1 }
 0xe5d   : > { %v10304_v33 = vpop.f32.mrf.mxu1 }
 0xe88   : > { %v12663_v23 = vpop.f32.mrf.mxu0 }
 0xe8a   : > { %v10309_v35 = vpop.f32.mrf.mxu0 }
 0xe8c   : > { %v3159_v45 = vpop.f32.mrf.mxu0  ;;  %v12665_v22 = vpop.f32.mrf.mxu1 }
 0xe8e   : > { %v10310_v53 = vpop.f32.mrf.mxu0  ;;  %v10315_v39 = vpop.f32.mrf.mxu1 }
 0xe90   : > { %v3207_v49 = vpop.f32.mrf.mxu1  ;;  %v3254_v41 = vpop.f32.mrf.mxu0 }
 0xe91   : > { %v3410_v30 = vmul.f32 0.5, %v3254_v41 }
 0xe92   : > { %v10316_v36 = vpop.f32.mrf.mxu1  ;;  %v10321_v56 = vpop.f32.mrf.mxu0 }
 0xe93   : > { %v3414_v59 = vsel %vm12209_vm7, %v3410_v30, -1e+30 }
 0xe94   : > { %v3257_v62 = vpop.f32.mrf.mxu0  ;;  %v3304_v4 = vpop.f32.mrf.mxu1  ;;  %v3418_v25 = vsel %vm1168_vm8, %v3414_v59, -inf }
 0xe95   : > { %v3411_v38 = vmul.f32 0.5, %v3304_v4  ;;  %3419 = vmax.xlane.f32.xlu0 %v3418_v25 }
 0xe96   : > { %v10322_v26 = vpop.f32.mrf.mxu0  ;;  %v10327_v17 = vpop.f32.mrf.mxu1 }
 0xe97   : > { %v3415_v31 = vsel %vm12209_vm7, %v3411_v38, -1e+30 }
 0xe98   : > { %v3307_v33 = vpop.f32.mrf.mxu1  ;;  %v3354_v35 = vpop.f32.mrf.mxu0  ;;  %v3421_v45 = vsel %vm1168_vm8, %v3415_v31, -inf }
 0xe99   : > { %v3412_v53 = vmul.f32 0.5, %v3354_v35  ;;  %3422 = vmax.xlane.f32.xlu1 %v3421_v45 }
 0xe9a   : > { %v10328_v39 = vpop.f32.mrf.mxu1  ;;  %v10333_v49 = vpop.f32.mrf.mxu0 }
 0xe9b   : > { %v3416_v41 = vsel %vm12209_vm7, %v3412_v53, -1e+30 }
 0xe9c   : > { %v3357_v30 = vpop.f32.mrf.mxu0  ;;  %v3404_v36 = vpop.f32.mrf.mxu1  ;;  %v3424_v56 = vsel %vm1168_vm8, %v3416_v41, -inf }
 0xe9d   : > { %v3413_v62 = vmul.f32 0.5, %v3404_v36  ;;  %3425 = vmax.xlane.f32.xlu0 %v3424_v56 }
 0xe9e   : > { %v10334_v4 = vpop.f32.mrf.mxu0  ;;  %v10339_v25 = vpop.f32.mrf.mxu1 }
 0xe9f   : > { %v3417_v38 = vsel %vm12209_vm7, %v3413_v62, -1e+30 }
 0xea0   : > { %v3407_v26 = vpop.f32.mrf.mxu1  ;;  %v3427_v17 = vsel %vm1168_vm8, %v3417_v38, -inf }
 0xea1   : > { %3428 = vmax.xlane.f32.xlu0 %v3427_v17 }
 0xea2   : > { %v10340_v33 = vpop.f32.mrf.mxu1 }
 0xeaa   : > { %3514 = vrot.lane.b32.xlu1 %v12162_v32, %s14001_s26 }
 0xeae   : > { %3562 = vrot.lane.b32.xlu1 %v12175_v37, %s14001_s26 }
 0xeb2   : > { %3610 = vrot.lane.b32.xlu1 %v12179_v42, %s14001_s26 }
 0xf1e   : > { %v3420_v35 = vpop.xlane.xlu0 %3419 }
 0xf1f   : > { %v3430_v45 = vsub.f32 %v3414_v59, %v3420_v35 }
 0xf21   : > { %v3434_v53 = vmul.f32 1.442695, %v3430_v45 }
 0xf22   : > { %v3423_v39 = vpop.xlane.xlu1 %3422 }
 0xf23   : > { %11293 = vpow2.f32 %v3434_v53  ;;  %v3431_v49 = vsub.f32 %v3415_v31, %v3423_v39 }
 0xf25   : > { %v3436_v30 = vmul.f32 1.442695, %v3431_v49 }
 0xf26   : > { %v3515_v36 = vpop.permute.xlu1 %3514  ;;  %v3426_v59 = vpop.xlane.xlu0 %3425 }
 0xf27   : > { %11295 = vpow2.f32 %v3436_v30  ;;  %v3520_v56 = vsel %vm1223_vm9, %v3515_v36, 0  ;;  %v3432_v31 = vsub.f32 %v3416_v41, %v3426_v59 }
 0xf28   : > { %10348 = vmatpush3.bf16.msra.mxu1 %v3520_v56 }
 0xf29   : > { %10359 = vmatprep.subr.bf16.mxu1 %v13993_v9  ;;  %v3438_v33 = vmul.f32 1.442695, %v3432_v31 }
 0xf2a   : > { %v3429_v17 = vpop.xlane.xlu0 %3428  ;;  %v3563_v41 = vpop.permute.xlu1 %3562 }
 0xf2b   : > { %v3433_v35 = vsub.f32 %v3417_v38, %v3429_v17  ;;  %11297 = vpow2.f32 %v3438_v33 }
 0xf2d   : > { %v3440_v45 = vmul.f32 1.442695, %v3433_v35  ;;  %v3568_v35 = vsel %vm1223_vm9, %v3563_v41, 0 }
 0xf2e   : > { %v3611_v38 = vpop.permute.xlu1 %3610 }
 0xf2f   : > { %11299 = vpow2.f32 %v3440_v45 }
 0xf30   : > { %v11294_v62 = vpop.eup %11293 }
 0xf31   : > { %v3442_v4 = vsel %vm1168_vm8, %v11294_v62, 0.0 }
 0xf32   : > { %3443 = vadd.xlane.f32.xlu0 %v3442_v4 }
 0xf34   : > { %v11296_v25 = vpop.eup %11295 }
 0xf35   : > { %v3445_v26 = vsel %vm1168_vm8, %v11296_v25, 0.0 }
 0xf36   : > { %3446 = vadd.xlane.f32.xlu1 %v3445_v26 }
 0xf38   : > { %v11298_v53 = vpop.eup %11297 }
 0xf39   : > { %v3448_v39 = vsel %vm1168_vm8, %v11298_v53, 0.0 }
 0xf3c   : > { %v11300_v49 = vpop.eup %11299 }
 0xf3d   : > { %v3451_v30 = vsel %vm1168_vm8, %v11300_v49, 0.0 }
 0xf47   : > { %3710 = vrot.lane.b32.xlu1 %v12162_v32, %s13999_s21 }
 0xf48   : > { %3466 = vrot.lane.b32.xlu0 %v12158_v27, %s14001_s26  ;;  %s14017_s26 = smov 12  }
 0xf67   : > { %3449 = vadd.xlane.f32.xlu0 %v3448_v39 }
 0xf6b   : > { %3452 = vadd.xlane.f32.xlu1 %v3451_v30  ;;  %v3616_v30 = vsel %vm1223_vm9, %v3611_v38, 0 }
 0xf7c   : > { %3708 = vrot.lane.b32.xlu1 %v12187_v46, %s13999_s21 }
 0xf7d   : > { %3660 = vrot.lane.b32.xlu0 %v12158_v27, %s13999_s21 }
 0xf80   : > { %3810 = vrot.lane.b32.xlu1 %v12179_v42, %s13999_s21 }
 0xf81   : > { %3658 = vrot.lane.b32.xlu0 %v12177_v40, %s13999_s21 }
 0xf84   : > { %3808 = vrot.lane.b32.xlu1 %v12203_v50, %s13999_s21 }
 0xf85   : > { %3760 = vrot.lane.b32.xlu0 %v12175_v37, %s13999_s21 }
 0xf89   : > { %3758 = vrot.lane.b32.xlu0 %v12196_v48, %s13999_s21  ;;  %s11792_s21 = smov 8  }
 0xfbb   : > { %v3444_v36 = vpop.xlane.xlu0 %3443 }
 0xfbc   : > { %11301 = vrcp.f32 %v3444_v36 }
 0xfbf   : > { %v3447_v56 = vpop.xlane.xlu1 %3446  ;;  %v3467_v4 = vpop.permute.xlu0 %3466 }
 0xfc0   : > { %11303 = vrcp.f32 %v3447_v56  ;;  %v3472_v26 = vsel %vm1223_vm9, %v3467_v4, 0 }
 0xfc1   : > { %10342 = vmatpush3.bf16.msra.mxu0 %v3472_v26 }
 0xfc2   : > { %10353 = vmatprep.subr.bf16.mxu0 %v13993_v9 }
 0xfc9   : > { %v11302_v59 = vpop.eup %11301 }
 0xfca   : > { %v3458_v31 = vmul.f32 %v11302_v59, %v11294_v62  ;;  %v3711_v62 = vpop.permute.xlu1 %3710 }
 0xfcc   : > { %v3462_v17 = vpack.c.bf16 %v3458_v31, %v3458_v31 }
 0xfcd   : > { %v11304_v33 = vpop.eup %11303 }
 0xfce   : > { %10344 = vmatmul.mubr.msk.bf16.vlgmr.msra.gmra.mxu0 %vm1168_vm8, %v3462_v17  ;;  %v3459_v45 = vmul.f32 %v11304_v33, %v11296_v25 }
 0xfcf   : > { %10354 = vmatpush3.bf16.msra.mxu0 %v3568_v35  ;;  %10355 = vmatprep.mubr.msk.bf16.mxu0 %vm11775_vm6, %v13993_v9 }
 0xfd0   : > { %v3463_v39 = vpack.c.bf16 %v3459_v45, %v3459_v45  ;;  %10365 = vmatprep.subr.bf16.mxu0 %v13993_v9  ;;  %v3716_v45 = vsel %vm973_vm5, %v3711_v62, 0 }
 0xfd2   : > { %10350 = vmatmul.mubr.msk.bf16.vlgmr.msra.gmra.mxu1 %vm1168_vm8, %v3463_v39 }
 0xfd3   : > { %10360 = vmatpush3.bf16.msra.mxu1 %v3616_v30  ;;  %10361 = vmatprep.mubr.msk.bf16.mxu1 %vm11775_vm6, %v13993_v9 }
 0xfd4   : > { %10371 = vmatprep.subr.bf16.mxu1 %v13993_v9 }
 0xff0   : > { %v3450_v41 = vpop.xlane.xlu0 %3449 }
 0xff1   : > { %11305 = vrcp.f32 %v3450_v41 }
 0xff4   : > { %v3453_v25 = vpop.xlane.xlu1 %3452  ;;  %v3661_v36 = vpop.permute.xlu0 %3660 }
 0xff5   : > { %11307 = vrcp.f32 %v3453_v25  ;;  %v3666_v38 = vsel %vm973_vm5, %v3661_v36, 0 }
 0xff8   : > { %v3659_v31 = vpop.permute.xlu0 %3658  ;;  %v3709_v35 = vpop.permute.xlu1 %3708 }
 0xffc   : > { %v3811_v39 = vpop.permute.xlu1 %3810 }
 0xffd   : > { %v3816_v30 = vsel %vm973_vm5, %v3811_v39, 0 }
 0xffe   : > { %v11306_v56 = vpop.eup %11305 }
 0xfff   : > { %v3460_v4 = vmul.f32 %v11306_v56, %v11298_v53  ;;  %v3761_v53 = vpop.permute.xlu0 %3760 }
0x1000   : > { %v3809_v41 = vpop.permute.xlu1 %3808 }
0x1001   : > { %v3464_v26 = vpack.c.bf16 %v3460_v4, %v3460_v4 }
0x1002   : > { %v11308_v59 = vpop.eup %11307 }
0x1003   : > { %10356 = vmatmul.mubr.msk.bf16.vlgmr.msra.gmra.mxu0 %vm1168_vm8, %v3464_v26  ;;  %v3461_v17 = vmul.f32 %v11308_v59, %v11300_v49  ;;  %v3766_v49 = vsel %vm973_vm5, %v3761_v53, 0  ;;  %v3759_v62 = vpop.permute.xlu0 %3758 }
0x1004   : > { %10366 = vmatpush3.bf16.xpose.msra.mxu0 %v3666_v38  ;;  %10367 = vmatprep.mubr.msk.bf16.mxu0 %vm11775_vm6, %v13993_v9 }
0x1005   : > { %v3465_v33 = vpack.c.bf16 %v3461_v17, %v3461_v17  ;;  %10377 = vmatprep.subr.bf16.mxu0 %v13993_v9 }
0x1007   : > { %10362 = vmatmul.mubr.msk.bf16.vlgmr.msra.gmra.mxu1 %vm1168_vm8, %v3465_v33 }
0x1008   : > { %10372 = vmatpush3.bf16.xpose.msra.mxu1 %v3716_v45  ;;  %10373 = vmatprep.mubr.msk.bf16.mxu1 %vm11775_vm6, %v13993_v9 }
0x1009   : > { %10383 = vmatprep.subr.bf16.mxu1 %v13993_v9 }
0x100b   : > { %10368 = vmatmul.mubr.msk.bf16.vlgmr.msra.gmra.mxu0 %vm973_vm5, %v3659_v31 }
0x100c   : > { %10378 = vmatpush3.bf16.xpose.msra.mxu0 %v3766_v49  ;;  %10379 = vmatprep.mubr.msk.bf16.mxu0 %vm11775_vm6, %v13993_v9 }
0x100d   : > { %10389 = vmatprep.subr.bf16.mxu0 %v13993_v9 }
0x100f   : > { %10374 = vmatmul.mubr.msk.bf16.vlgmr.msra.gmra.mxu1 %vm973_vm5, %v3709_v35 }
0x1010   : > { %10384 = vmatpush3.bf16.xpose.msra.mxu1 %v3816_v30  ;;  %10385 = vmatprep.mubr.msk.bf16.mxu1 %vm11775_vm6, %v13993_v9 }
0x1011   : > { %10395 = vmatprep.subr.bf16.mxu1 %v13993_v9 }
0x1013   : > { %10380 = vmatmul.mubr.msk.bf16.vlgmr.msra.gmra.mxu0 %vm973_vm5, %v3759_v62 }
0x1014   : > { %10391 = vmatprep.mubr.msk.bf16.mxu0 %vm11775_vm6, %v13993_v9 }
0x1017   : > { %10386 = vmatmul.mubr.msk.bf16.vlgmr.msra.gmra.mxu1 %vm973_vm5, %v3809_v41 }
0x1018   : > { %10397 = vmatprep.mubr.msk.bf16.mxu1 %vm11775_vm6, %v13993_v9 }
0x108e   : > { %v12749_v25 = vpop.f32.mrf.mxu0 }
0x1090   : > { %v10345_v36 = vpop.f32.mrf.mxu0 }
0x1092   : > { %v3511_v56 = vpop.f32.mrf.mxu0  ;;  %v12751_v4 = vpop.f32.mrf.mxu1 }
0x1094   : > { %v10346_v59 = vpop.f32.mrf.mxu0  ;;  %v10351_v31 = vpop.f32.mrf.mxu1 }
0x1096   : > { %v3559_v38 = vpop.f32.mrf.mxu1 }
0x1098   : > { %v10352_v17 = vpop.f32.mrf.mxu1 }
0x10c3   : > { %v12755_v33 = vpop.f32.mrf.mxu0 }
0x10c5   : > { %v10357_v35 = vpop.f32.mrf.mxu0 }
0x10c7   : > { %v3607_v45 = vpop.f32.mrf.mxu0  ;;  %v12757_v53 = vpop.f32.mrf.mxu1 }
0x10c9   : > { %v10358_v39 = vpop.f32.mrf.mxu0  ;;  %v10363_v30 = vpop.f32.mrf.mxu1 }
0x10cb   : > { %v3655_v62 = vpop.f32.mrf.mxu1  ;;  %v3702_v41 = vpop.f32.mrf.mxu0 }
0x10cc   : > { %v3858_v36 = vmul.f32 0.5, %v3702_v41 }
0x10cd   : > { %v10364_v56 = vpop.f32.mrf.mxu1  ;;  %v10369_v34 = vpop.f32.mrf.mxu0 }
0x10ce   : > { %v3862_v59 = vsel %vm12209_vm7, %v3858_v36, -1e+30 }
0x10cf   : > { %v3705_v31 = vpop.f32.mrf.mxu0  ;;  %v3752_v38 = vpop.f32.mrf.mxu1  ;;  %v3866_v17 = vsel %vm1168_vm8, %v3862_v59, -inf }
0x10d0   : > { %v3859_v35 = vmul.f32 0.5, %v3752_v38  ;;  %3867 = vmax.xlane.f32.xlu0 %v3866_v17 }
0x10d1   : > { %v10370_v45 = vpop.f32.mrf.mxu0  ;;  %v10375_v29 = vpop.f32.mrf.mxu1 }
0x10d2   : > { %v3863_v39 = vsel %vm12209_vm7, %v3859_v35, -1e+30 }
0x10d3   : > { %v3755_v30 = vpop.f32.mrf.mxu1  ;;  %v3802_v62 = vpop.f32.mrf.mxu0  ;;  %v3869_v41 = vsel %vm1168_vm8, %v3863_v39, -inf }
0x10d4   : > { %v3860_v56 = vmul.f32 0.5, %v3802_v62  ;;  %3870 = vmax.xlane.f32.xlu1 %v3869_v41 }
0x10d5   : > { %v10376_v34 = vpop.f32.mrf.mxu1  ;;  %v10381_v49 = vpop.f32.mrf.mxu0 }
0x10d6   : > { %v3864_v36 = vsel %vm12209_vm7, %v3860_v56, -1e+30 }
0x10d7   : > { %v3805_v31 = vpop.f32.mrf.mxu0  ;;  %v3852_v1 = vpop.f32.mrf.mxu1  ;;  %v3872_v38 = vsel %vm1168_vm8, %v3864_v36, -inf }
0x10d8   : > { %v3861_v17 = vmul.f32 0.5, %v3852_v1  ;;  %3873 = vmax.xlane.f32.xlu0 %v3872_v38 }
0x10d9   : > { %v10382_v29 = vpop.f32.mrf.mxu0  ;;  %v10387_v45 = vpop.f32.mrf.mxu1 }
0x10da   : > { %v3865_v35 = vsel %vm12209_vm7, %v3861_v17, -1e+30 }
0x10db   : > { %v3855_v30 = vpop.f32.mrf.mxu1  ;;  %v3875_v62 = vsel %vm1168_vm8, %v3865_v35, -inf }
0x10dc   : > { %3876 = vmax.xlane.f32.xlu0 %v3875_v62 }
0x10dd   : > { %v10388_v41 = vpop.f32.mrf.mxu1 }
0x10e5   : > { %3962 = vrot.lane.b32.xlu1 %v12162_v32, %s13997_s0 }
0x10e9   : > { %4010 = vrot.lane.b32.xlu1 %v12175_v37, %s13997_s0 }
0x10ed   : > { %4058 = vrot.lane.b32.xlu1 %v12179_v42, %s13997_s0 }
0x1159   : > { %v3868_v1 = vpop.xlane.xlu0 %3867 }
0x115a   : > { %v3878_v49 = vsub.f32 %v3862_v59, %v3868_v1 }
0x115c   : > { %v3882_v56 = vmul.f32 1.442695, %v3878_v49 }
0x115d   : > { %v3871_v34 = vpop.xlane.xlu1 %3870 }
0x115e   : > { %11309 = vpow2.f32 %v3882_v56  ;;  %v3879_v31 = vsub.f32 %v3863_v39, %v3871_v34 }
0x1160   : > { %v3884_v38 = vmul.f32 1.442695, %v3879_v31 }
0x1161   : > { %v3963_v17 = vpop.permute.xlu1 %3962  ;;  %v3874_v59 = vpop.xlane.xlu0 %3873 }
0x1162   : > { %11311 = vpow2.f32 %v3884_v38  ;;  %v3968_v29 = vsel %vm1223_vm9, %v3963_v17, 0  ;;  %v3880_v39 = vsub.f32 %v3864_v36, %v3874_v59 }
0x1163   : > { %10396 = vmatpush3.bf16.msra.mxu1 %v3968_v29 }
0x1164   : > { %10407 = vmatprep.subr.bf16.mxu1 %v13993_v9  ;;  %v3886_v49 = vmul.f32 1.442695, %v3880_v39 }
0x1165   : > { %v3877_v1 = vpop.xlane.xlu0 %3876  ;;  %v4011_v36 = vpop.permute.xlu1 %4010 }
0x1166   : > { %v3881_v56 = vsub.f32 %v3865_v35, %v3877_v1  ;;  %11313 = vpow2.f32 %v3886_v49  ;;  %v4016_v49 = vsel %vm1223_vm9, %v4011_v36, 0 }
0x1168   : > { %v3888_v34 = vmul.f32 1.442695, %v3881_v56 }
0x116a   : > { %11315 = vpow2.f32 %v3888_v34 }
0x116b   : > { %v11310_v45 = vpop.eup %11309 }
0x116c   : > { %v3890_v30 = vsel %vm1168_vm8, %v11310_v45, 0.0 }
0x116d   : > { %3891 = vadd.xlane.f32.xlu0 %v3890_v30 }
0x116f   : > { %v11312_v62 = vpop.eup %11311 }
0x1170   : > { %v3893_v41 = vsel %vm1168_vm8, %v11312_v62, 0.0 }
0x1171   : > { %3894 = vadd.xlane.f32.xlu1 %v3893_v41 }
0x1173   : > { %v11314_v31 = vpop.eup %11313 }
0x1174   : > { %v3896_v38 = vsel %vm1168_vm8, %v11314_v31, 0.0 }
0x1177   : > { %v11316_v17 = vpop.eup %11315 }
0x1178   : > { %v3899_v29 = vsel %vm1168_vm8, %v11316_v17, 0.0 }
0x1182   : > { %4158 = vrot.lane.b32.xlu1 %v12162_v32, %s13995_s30 }
0x1183   : > { %3914 = vrot.lane.b32.xlu0 %v12158_v27, %s13997_s0  ;;  %s11791_s0 = smov 4  }
0x11a2   : > { %3897 = vadd.xlane.f32.xlu0 %v3896_v38 }
0x11a6   : > { %3900 = vadd.xlane.f32.xlu1 %v3899_v29 }
0x11b7   : > { %4156 = vrot.lane.b32.xlu1 %v12187_v46, %s13995_s30  ;;  %v4059_v46 = vpop.permute.xlu1 %4058 }
0x11b8   : > { %4108 = vrot.lane.b32.xlu0 %v12158_v27, %s13995_s30  ;;  %v4064_v34 = vsel %vm1223_vm9, %v4059_v46, 0 }
0x11bb   : > { %4258 = vrot.lane.b32.xlu1 %v12179_v42, %s13995_s30 }
0x11bc   : > { %4106 = vrot.lane.b32.xlu0 %v12177_v40, %s13995_s30 }
0x11bf   : > { %4256 = vrot.lane.b32.xlu1 %v12203_v50, %s13995_s30 }
0x11c0   : > { %4208 = vrot.lane.b32.xlu0 %v12175_v37, %s13995_s30 }
0x11c4   : > { %4206 = vrot.lane.b32.xlu0 %v12196_v48, %s13995_s30  ;;  %s11790_s30 = smov 68  }
0x11f6   : > { %v3892_v35 = vpop.xlane.xlu0 %3891 }
0x11f7   : > { %11317 = vrcp.f32 %v3892_v35 }
0x11fa   : > { %v3895_v30 = vpop.xlane.xlu1 %3894  ;;  %v3915_v41 = vpop.permute.xlu0 %3914 }
0x11fb   : > { %11319 = vrcp.f32 %v3895_v30  ;;  %v3920_v59 = vsel %vm1223_vm9, %v3915_v41, 0 }
0x11fc   : > { %10390 = vmatpush3.bf16.msra.mxu0 %v3920_v59 }
0x11fd   : > { %10401 = vmatprep.subr.bf16.mxu0 %v13993_v9 }
0x1204   : > { %v11318_v40 = vpop.eup %11317 }
0x1205   : > { %v3906_v50 = vmul.f32 %v11318_v40, %v11310_v45  ;;  %v4159_v45 = vpop.permute.xlu1 %4158 }
0x1207   : > { %v3910_v39 = vpack.c.bf16 %v3906_v50, %v3906_v50 }
0x1208   : > { %v11320_v1 = vpop.eup %11319 }
0x1209   : > { %10392 = vmatmul.mubr.msk.bf16.vlgmr.msra.gmra.mxu0 %vm1168_vm8, %v3910_v39  ;;  %v3907_v48 = vmul.f32 %v11320_v1, %v11312_v62  ;;  %v4164_v1 = vsel %vm973_vm5, %v4159_v45, 0 }
0x120a   : > { %10402 = vmatpush3.bf16.msra.mxu0 %v4016_v49  ;;  %10403 = vmatprep.mubr.msk.bf16.mxu0 %vm11775_vm6, %v13993_v9 }
0x120b   : > { %v3911_v56 = vpack.c.bf16 %v3907_v48, %v3907_v48  ;;  %10413 = vmatprep.subr.bf16.mxu0 %v13993_v9 }
0x120d   : > { %10398 = vmatmul.mubr.msk.bf16.vlgmr.msra.gmra.mxu1 %vm1168_vm8, %v3911_v56 }
0x120e   : > { %10408 = vmatpush3.bf16.msra.mxu1 %v4064_v34  ;;  %10409 = vmatprep.mubr.msk.bf16.mxu1 %vm11775_vm6, %v13993_v9 }
0x120f   : > { %10419 = vmatprep.subr.bf16.mxu1 %v13993_v9 }
0x122b   : > { %v3898_v38 = vpop.xlane.xlu0 %3897 }
0x122c   : > { %11321 = vrcp.f32 %v3898_v38 }
0x122f   : > { %v3901_v62 = vpop.xlane.xlu1 %3900  ;;  %v4109_v29 = vpop.permute.xlu0 %4108 }
0x1230   : > { %11323 = vrcp.f32 %v3901_v62  ;;  %v4114_v40 = vsel %vm973_vm5, %v4109_v29, 0 }
0x1233   : > { %v4107_v59 = vpop.permute.xlu0 %4106  ;;  %v4157_v39 = vpop.permute.xlu1 %4156 }
0x1237   : > { %v4259_v49 = vpop.permute.xlu1 %4258 }
0x1238   : > { %v4264_v48 = vsel %vm973_vm5, %v4259_v49, 0 }
0x1239   : > { %v11322_v36 = vpop.eup %11321 }
0x123a   : > { %v3908_v35 = vmul.f32 %v11322_v36, %v11314_v31  ;;  %v4209_v31 = vpop.permute.xlu0 %4208 }
0x123b   : > { %v4257_v34 = vpop.permute.xlu1 %4256 }
0x123c   : > { %v3912_v30 = vpack.c.bf16 %v3908_v35, %v3908_v35 }
0x123d   : > { %v11324_v41 = vpop.eup %11323 }
0x123e   : > { %v3909_v46 = vmul.f32 %v11324_v41, %v11316_v17  ;;  %10404 = vmatmul.mubr.msk.bf16.vlgmr.msra.gmra.mxu0 %vm1168_vm8, %v3912_v30  ;;  %v4214_v17 = vsel %vm973_vm5, %v4209_v31, 0  ;;  %v4207_v56 = vpop.permute.xlu0 %4206 }
0x123f   : > { %10414 = vmatpush3.bf16.xpose.msra.mxu0 %v4114_v40  ;;  %10415 = vmatprep.mubr.msk.bf16.mxu0 %vm11775_vm6, %v13993_v9 }
0x1240   : > { %v3913_v50 = vpack.c.bf16 %v3909_v46, %v3909_v46  ;;  %10425 = vmatprep.subr.bf16.mxu0 %v13993_v9 }
0x1242   : > { %10410 = vmatmul.mubr.msk.bf16.vlgmr.msra.gmra.mxu1 %vm1168_vm8, %v3913_v50 }
0x1243   : > { %10420 = vmatpush3.bf16.xpose.msra.mxu1 %v4164_v1  ;;  %10421 = vmatprep.mubr.msk.bf16.mxu1 %vm11775_vm6, %v13993_v9 }
0x1244   : > { %10431 = vmatprep.subr.bf16.mxu1 %v13993_v9 }
0x1246   : > { %10416 = vmatmul.mubr.msk.bf16.vlgmr.msra.gmra.mxu0 %vm973_vm5, %v4107_v59 }
0x1247   : > { %10426 = vmatpush3.bf16.xpose.msra.mxu0 %v4214_v17  ;;  %10427 = vmatprep.mubr.msk.bf16.mxu0 %vm11775_vm6, %v13993_v9 }
0x1248   : > { %10437 = vmatprep.subr.bf16.mxu0 %v13993_v9 }
0x124a   : > { %10422 = vmatmul.mubr.msk.bf16.vlgmr.msra.gmra.mxu1 %vm973_vm5, %v4157_v39 }
0x124b   : > { %10432 = vmatpush3.bf16.xpose.msra.mxu1 %v4264_v48  ;;  %10433 = vmatprep.mubr.msk.bf16.mxu1 %vm11775_vm6, %v13993_v9 }
0x124c   : > { %10443 = vmatprep.subr.bf16.mxu1 %v13993_v9 }
0x124e   : > { %10428 = vmatmul.mubr.msk.bf16.vlgmr.msra.gmra.mxu0 %vm973_vm5, %v4207_v56 }
0x124f   : > { %10439 = vmatprep.mubr.msk.bf16.mxu0 %vm11775_vm6, %v13993_v9 }
0x1252   : > { %10434 = vmatmul.mubr.msk.bf16.vlgmr.msra.gmra.mxu1 %vm973_vm5, %v4257_v34 }
0x1253   : > { %10445 = vmatprep.mubr.msk.bf16.mxu1 %vm11775_vm6, %v13993_v9 }
0x12c9   : > { %v12841_v45 = vpop.f32.mrf.mxu0 }
0x12cb   : > { %v10393_v38 = vpop.f32.mrf.mxu0 }
0x12cd   : > { %v3959_v62 = vpop.f32.mrf.mxu0  ;;  %v12843_v29 = vpop.f32.mrf.mxu1 }
0x12cf   : > { %v10394_v35 = vpop.f32.mrf.mxu0  ;;  %v10399_v30 = vpop.f32.mrf.mxu1 }
0x12d1   : > { %v4007_v41 = vpop.f32.mrf.mxu1 }
0x12d3   : > { %v10400_v59 = vpop.f32.mrf.mxu1 }
0x12fe   : > { %v12847_v46 = vpop.f32.mrf.mxu0 }
0x1300   : > { %v10405_v40 = vpop.f32.mrf.mxu0 }
0x1302   : > { %v4055_v50 = vpop.f32.mrf.mxu0  ;;  %v12849_v39 = vpop.f32.mrf.mxu1 }
0x1304   : > { %v10406_v31 = vpop.f32.mrf.mxu0  ;;  %v10411_v17 = vpop.f32.mrf.mxu1 }
0x1306   : > { %v4103_v49 = vpop.f32.mrf.mxu1  ;;  %v4150_v48 = vpop.f32.mrf.mxu0 }
0x1307   : > { %v4306_v56 = vmul.f32 0.5, %v4150_v48 }
0x1308   : > { %v10412_v34 = vpop.f32.mrf.mxu1  ;;  %v10417_v38 = vpop.f32.mrf.mxu0 }
0x1309   : > { %v4310_v62 = vsel %vm12209_vm7, %v4306_v56, -1e+30 }
0x130a   : > { %v4153_v35 = vpop.f32.mrf.mxu0  ;;  %v4200_v30 = vpop.f32.mrf.mxu1  ;;  %v4314_v41 = vsel %vm1168_vm8, %v4310_v62, -inf }
0x130b   : > { %v4307_v59 = vmul.f32 0.5, %v4200_v30  ;;  %4315 = vmax.xlane.f32.xlu0 %v4314_v41 }
0x130c   : > { %v10418_v40 = vpop.f32.mrf.mxu0  ;;  %v10423_v50 = vpop.f32.mrf.mxu1 }
0x130d   : > { %v4311_v31 = vsel %vm12209_vm7, %v4307_v59, -1e+30 }
0x130e   : > { %v4203_v17 = vpop.f32.mrf.mxu1  ;;  %v4250_v49 = vpop.f32.mrf.mxu0  ;;  %v4317_v48 = vsel %vm1168_vm8, %v4311_v31, -inf }
0x130f   : > { %v4308_v34 = vmul.f32 0.5, %v4250_v49  ;;  %4318 = vmax.xlane.f32.xlu1 %v4317_v48 }
0x1310   : > { %v10424_v38 = vpop.f32.mrf.mxu1  ;;  %v10429_v9 = vpop.f32.mrf.mxu0 }
0x1311   : > { %v4312_v56 = vsel %vm12209_vm7, %v4308_v34, -1e+30 }
0x1312   : > { %v4253_v35 = vpop.f32.mrf.mxu0  ;;  %v4300_v1 = vpop.f32.mrf.mxu1  ;;  %v4320_v30 = vsel %vm1168_vm8, %v4312_v56, -inf }
0x1313   : > { %v4309_v41 = vmul.f32 0.5, %v4300_v1  ;;  %4321 = vmax.xlane.f32.xlu0 %v4320_v30 }
0x1314   : > { %v10430_v40 = vpop.f32.mrf.mxu0  ;;  %v10435_v50 = vpop.f32.mrf.mxu1 }
0x1315   : > { %v4313_v59 = vsel %vm12209_vm7, %v4309_v41, -1e+30 }
0x1316   : > { %v4303_v17 = vpop.f32.mrf.mxu1  ;;  %v4323_v49 = vsel %vm1168_vm8, %v4313_v59, -inf }
0x1317   : > { %4324 = vmax.xlane.f32.xlu0 %v4323_v49 }
0x1318   : > { %v10436_v48 = vpop.f32.mrf.mxu1 }
0x1319   : > { %v11189_v48 = vld [vmem:[#allocation10 + $0x8] sm:$0xff]  }
0x1394   : > { %v4316_v9 = vpop.xlane.xlu0 %4315 }
0x1395   : > { %v4326_v38 = vsub.f32 %v4310_v62, %v4316_v9 }
0x1397   : > { %v4330_v21 = vmul.f32 1.442695, %v4326_v38 }
0x1398   : > { %v4319_v34 = vpop.xlane.xlu1 %4318 }
0x1399   : > { %11325 = vpow2.f32 %v4330_v21  ;;  %v4327_v35 = vsub.f32 %v4311_v31, %v4319_v34 }
0x139b   : > { %v4332_v36 = vmul.f32 1.442695, %v4327_v35 }
0x139c   : > { %v4322_v26 = vpop.xlane.xlu0 %4321 }
0x139d   : > { %11327 = vpow2.f32 %v4332_v36  ;;  %v4328_v1 = vsub.f32 %v4312_v56, %v4322_v26 }
0x139f   : > { %v4334_v30 = vmul.f32 1.442695, %v4328_v1 }
0x13a0   : > { %v4325_v21 = vpop.xlane.xlu0 %4324 }
0x13a1   : > { %11329 = vpow2.f32 %v4334_v30  ;;  %v4329_v26 = vsub.f32 %v4313_v59, %v4325_v21 }
0x13a6   : > { %v11326_v40 = vpop.eup %11325 }
0x13a7   : > { %v4338_v41 = vsel %vm1168_vm8, %v11326_v40, 0.0 }
0x13a8   : > { %4339 = vadd.xlane.f32.xlu0 %v4338_v41 }
0x13aa   : > { %v11328_v50 = vpop.eup %11327 }
0x13ab   : > { %v4341_v17 = vsel %vm1168_vm8, %v11328_v50, 0.0 }
0x13ac   : > { %4342 = vadd.xlane.f32.xlu1 %v4341_v17 }
0x13ae   : > { %v11330_v49 = vpop.eup %11329 }
0x13af   : > { %v4344_v62 = vsel %vm1168_vm8, %v11330_v49, 0.0 }
0x13b0   : > { %4345 = vadd.xlane.f32.xlu0 %v4344_v62 }
0x13bd   : > { %4410 = vrot.lane.b32.xlu1 %v12162_v32, %s11790_s30  ;;  %v4336_v32 = vmul.f32 1.442695, %v4329_v26  ;;  %v11190_v26 = vld [vmem:[#allocation10] sm:$0xff]  }
0x13bf   : > { %11331 = vpow2.f32 %v4336_v32 }
0x13c1   : > { %4458 = vrot.lane.b32.xlu1 %v12175_v37, %s11790_s30  ;;  %v14058_v37 = vpack.i.bf16 %v12843_v29, %v12841_v45 }
0x13c6   : > { %4362 = vrot.lane.b32.xlu0 %v12158_v27, %s11790_s30  ;;  %v14057_v27 = vpack.i.bf16 %v12751_v4, %v12749_v25 }
0x13ca   : > { %11046 = vrot.lane.b32.xlu0 %v11045_v3, %s11791_s0  ;;  %v14059_v3 = vpack.i.bf16 %v12389_v20, %v12387_v13  ;;  %v14064_v13 = vpack.i.bf16 %v12849_v39, %v12847_v46 }
0x13cc   : > { %v11332_v63 = vpop.eup %11331 }
0x13cd   : > { %v4347_v2 = vsel %vm1168_vm8, %v11332_v63, 0.0 }
0x13ce   : > { %11056 = vrot.lane.b32.xlu0 %v11055_v52, %s11792_s21  ;;  %v14062_v52 = vpack.i.bf16 %v12665_v22, %v12663_v23 }
0x13d2   : > { %11066 = vrot.lane.b32.xlu0 %v11065_v6, %s14017_s26  ;;  %v14065_v6 = vmov 0.0  }
0x13d6   : > { %11076 = vrot.lane.b32.xlu0 %v11075_v12, %s14015_s18 }
0x13da   : > { %11086 = vrot.lane.b32.xlu0 %v14057_v27, %s14013_s20 }
0x13de   : > { %11096 = vrot.lane.b32.xlu0 %v14058_v37, %s14009_s29 }
0x13e5   : > { %4348 = vadd.xlane.f32.xlu1 %v4347_v2 }
0x13f6   : > { %4506 = vrot.lane.b32.xlu1 %v12179_v42, %s11790_s30  ;;  %v14063_v42 = vpack.i.bf16 %v12757_v53, %v12755_v33 }
0x13fa   : > { %11051 = vrot.lane.b32.xlu1 %v14059_v3, %s11791_s0 }
0x13fe   : > { %11061 = vrot.lane.b32.xlu1 %v14060_v44, %s11792_s21 }
0x1402   : > { %11071 = vrot.lane.b32.xlu1 %v14061_v51, %s14017_s26  ;;  %s14074_s26 = smov 16  }
0x1406   : > { %11081 = vrot.lane.b32.xlu1 %v14062_v52, %s14015_s18  ;;  %s14073_s18 = smov 12  }
0x140a   : > { %11091 = vrot.lane.b32.xlu1 %v14063_v42, %s14013_s20  ;;  %s14078_s20 = smov 24  }
0x140e   : > { %11101 = vrot.lane.b32.xlu1 %v14064_v13, %s14009_s29  ;;  %s14011_s29 = smov 28  }
0x1431   : > { %v4340_v20 = vpop.xlane.xlu0 %4339 }
0x1432   : > { %11333 = vrcp.f32 %v4340_v20 }
0x1435   : > { %v4343_v60 = vpop.xlane.xlu1 %4342 }
0x1436   : > { %11335 = vrcp.f32 %v4343_v60 }
0x1439   : > { %v4411_v0 = vpop.permute.xlu1 %4410  ;;  %v4346_v61 = vpop.xlane.xlu0 %4345 }
0x143a   : > { %v4416_v5 = vsel %vm1223_vm9, %v4411_v0, 0  ;;  %11337 = vrcp.f32 %v4346_v61 }
0x143b   : > { %10444 = vmatpush3.bf16.msra.mxu1 %v4416_v5 }
0x143c   : > { %10455 = vmatprep.subr.bf16.mxu1 %v14065_v6 }
0x143d   : > { %v4363_v24 = vpop.permute.xlu0 %4362  ;;  %v4459_v12 = vpop.permute.xlu1 %4458 }
0x143e   : > { %v4368_v28 = vsel %vm1223_vm9, %v4363_v24, 0  ;;  %v4464_v4 = vsel %vm1223_vm9, %v4459_v12, 0 }
0x143f   : > { %v11334_v16 = vpop.eup %11333  ;;  %10438 = vmatpush3.bf16.msra.mxu0 %v4368_v28 }
0x1440   : > { %v4354_v57 = vmul.f32 %v11334_v16, %v11326_v40  ;;  %10449 = vmatprep.subr.bf16.mxu0 %v14065_v6 }
0x1441   : > { %v11047_v3 = vpop.permute.xlu0 %11046 }
0x1442   : > { %v4358_v23 = vpack.c.bf16 %v4354_v57, %v4354_v57  ;;  %v11049_v13 = vunpack.i.h.bf16 %v11047_v3  ;;  %v11048_v20 = vunpack.i.l.bf16 %v11047_v3 }
0x1443   : > { %v11336_v22 = vpop.eup %11335 }
0x1444   : > { %v4355_v25 = vmul.f32 %v11336_v22, %v11328_v50  ;;  %10440 = vmatmul.mubr.msk.bf16.vlgmr.msra.gmra.mxu0 %vm1168_vm8, %v4358_v23  ;;  %v4667_v57 = vsel %vm973_vm5, %v12295_v47, %v11049_v13  ;;  %v4666_v12 = vsel %vm973_vm5, %v12293_v43, %v11048_v20 }
0x1445   : > { %10450 = vmatpush3.bf16.msra.mxu0 %v4464_v4  ;;  %10451 = vmatprep.mubr.msk.bf16.mxu0 %vm11775_vm6, %v14065_v6  ;;  %v11057_v44 = vpop.permute.xlu0 %11056 }
0x1446   : > { %v4359_v33 = vpack.c.bf16 %v4355_v25, %v4355_v25  ;;  %10461 = vmatprep.subr.bf16.mxu0 %v11189_v48  ;;  %v11059_v60 = vunpack.i.h.bf16 %v11057_v44  ;;  %v11058_v0 = vunpack.i.l.bf16 %v11057_v44 }
0x1447   : > { %v11338_v53 = vpop.eup %11337 }
0x1448   : > { %v4356_v45 = vmul.f32 %v11338_v53, %v11330_v49  ;;  %10446 = vmatmul.mubr.msk.bf16.vlgmr.msra.gmra.mxu1 %vm1168_vm8, %v4359_v33  ;;  %v4670_v25 = vsel %vm1168_vm8, %v4666_v12, %v11058_v0  ;;  %v4671_v4 = vsel %vm1168_vm8, %v4667_v57, %v11059_v60 }
0x1449   : > { %10457 = vmatprep.mubr.msk.bf16.mxu1 %vm11775_vm6, %v14065_v6  ;;  %v11067_v51 = vpop.permute.xlu0 %11066 }
0x144a   : > { %v4360_v29 = vpack.c.bf16 %v4356_v45, %v4356_v45  ;;  %v11069_v61 = vunpack.i.h.bf16 %v11067_v51  ;;  %v11068_v5 = vunpack.i.l.bf16 %v11067_v51 }
0x144c   : > { %10452 = vmatmul.mubr.msk.bf16.vlgmr.msra.gmra.mxu0 %vm1168_vm8, %v4360_v29  ;;  %v4675_v45 = vsel %vm4674_vm10, %v4670_v25, %v11068_v5  ;;  %v4676_v29 = vsel %vm4674_vm10, %v4671_v4, %v11069_v61  ;;  %v9637_v4 = vld [vmem:[%s13970_s7] ss:$0 sm:$0xff] }
0x144d   : > { %10462 = vmatpush3.bf16.msra.mxu0 %v11189_v48  ;;  %v11077_v52 = vpop.permute.xlu0 %11076 }
0x144e   : > { %10463 = vmatprep.subr.bf16.mxu0 %v11190_v26  ;;  %v11079_v28 = vunpack.i.h.bf16 %v11077_v52  ;;  %v11078_v16 = vunpack.i.l.bf16 %v11077_v52 }
0x1450   : > { %v4681_v47 = vsel %vm4679_vm11, %v4676_v29, %v11079_v28 }
0x1451   : > { %10464 = vmatpush3.bf16.msra.mxu0 %v11190_v26  ;;  %v11087_v42 = vpop.permute.xlu0 %11086 }
0x1452   : > { %v11089_v23 = vunpack.i.h.bf16 %v11087_v42  ;;  %v11088_v22 = vunpack.i.l.bf16 %v11087_v42 }
0x1455   : > { %v11097_v24 = vpop.permute.xlu0 %11096 }
0x1456   : > { %v11099_v33 = vunpack.i.h.bf16 %v11097_v24  ;;  %v11098_v53 = vunpack.i.l.bf16 %v11097_v24 }
0x146e   : > { %v4349_v36 = vpop.xlane.xlu1 %4348 }
0x146f   : > { %11339 = vrcp.f32 %v4349_v36  ;;  %v4680_v36 = vsel %vm4679_vm11, %v4675_v45, %v11078_v16 }
0x1470   : > { %v4685_v43 = vsel %vm4684_vm12, %v4680_v36, %v11088_v22 }
0x1472   : > { %v4507_v46 = vpop.permute.xlu1 %4506 }
0x1473   : > { %v4512_v39 = vsel %vm1223_vm9, %v4507_v46, 0 }
0x1474   : > { %10456 = vmatpush3.bf16.msra.mxu1 %v4512_v39  ;;  %v4686_v39 = vsel %vm4684_vm12, %v4681_v47, %v11089_v23 }
0x1475   : > { %v4691_v48 = vsel %vm4689_vm13, %v4686_v39, %v11099_v33 }
0x147c   : > { %v11340_v31 = vpop.eup %11339 }
0x147d   : > { %v4357_v56 = vmul.f32 %v11340_v31, %v11332_v63 }
0x147f   : > { %v4361_v59 = vpack.c.bf16 %v4357_v56, %v4357_v56 }
0x1481   : > { %10458 = vmatmul.mubr.msk.bf16.vlgmr.msra.gmra.mxu1 %vm1168_vm8, %v4361_v59  ;;  %v4690_v59 = vsel %vm4689_vm13, %v4685_v43, %v11098_v53 }
0x1504   : > { %v4404_v9 = vpop.f32.mrf.mxu0 }
0x1506   : > { %v10441_v38 = vpop.f32.mrf.mxu0 }
0x1508   : > { %v4407_v34 = vpop.f32.mrf.mxu0  ;;  %v4452_v35 = vpop.f32.mrf.mxu1 }
0x1509   : > { %v11105_v1 = vpack.i.bf16 %v4452_v35, %v4404_v9  ;;  %v11052_v35 = vpop.permute.xlu1 %11051 }
0x150a   : > { %v10442_v30 = vpop.f32.mrf.mxu0  ;;  %v10447_v40 = vpop.f32.mrf.mxu1 }
0x150b   : > { %11106 = vrot.lane.b32.xlu0 %v11105_v1, %s14011_s29 }
0x150c   : > { %v4455_v41 = vpop.f32.mrf.mxu1  ;;  %v4500_v50 = vpop.f32.mrf.mxu0 }
0x150d   : > { %v11062_v1 = vpop.permute.xlu1 %11061 }
0x150e   : > { %v10448_v17 = vpop.f32.mrf.mxu1  ;;  %v10453_v49 = vpop.f32.mrf.mxu0 }
0x150f   : > { %v11053_v17 = vunpack.i.l.bf16 %v11052_v35  ;;  %v11064_v49 = vunpack.i.h.bf16 %v11062_v1 }
0x1510   : > { %v4503_v62 = vpop.f32.mrf.mxu0 }
0x1511   : > { %v11072_v30 = vpop.permute.xlu1 %11071  ;;  %v11063_v62 = vunpack.i.l.bf16 %v11062_v1 }
0x1512   : > { %v10454_v21 = vpop.f32.mrf.mxu0  ;;  %v11073_v26 = vunpack.i.l.bf16 %v11072_v30 }
0x1513   : > { %v11074_v21 = vunpack.i.h.bf16 %v11072_v30 }
0x1515   : > { %v11082_v40 = vpop.permute.xlu1 %11081 }
0x1519   : > { %v11092_v41 = vpop.permute.xlu1 %11091 }
0x151a   : > { %v11094_v3 = vunpack.i.h.bf16 %v11092_v41  ;;  %v11093_v44 = vunpack.i.l.bf16 %v11092_v41 }
0x1541   : > { %v4548_v32 = vpop.f32.mrf.mxu1 }
0x1542   : > { %v11110_v27 = vpack.i.bf16 %v4548_v32, %v4500_v50  ;;  %v11054_v50 = vunpack.i.h.bf16 %v11052_v35  ;;  %v11102_v32 = vpop.permute.xlu1 %11101 }
0x1543   : > { %v10459_v37 = vpop.f32.mrf.mxu1  ;;  %v11104_v42 = vunpack.i.h.bf16 %v11102_v32  ;;  %v11103_v13 = vunpack.i.l.bf16 %v11102_v32 }
0x1544   : > { %11111 = vrot.lane.b32.xlu1 %v11110_v27, %s14011_s29  ;;  %v11084_v27 = vunpack.i.h.bf16 %v11082_v40  ;;  %v11083_v37 = vunpack.i.l.bf16 %v11082_v40  ;;  %s14076_s29 = smov 20  }
0x1545   : > { %v4551_v63 = vpop.f32.mrf.mxu1 }
0x1546   : > { %v4669_v63 = vsel %vm973_vm5, %v12299_v58, %v11054_v50 }
0x1547   : > { %v10460_v2 = vpop.f32.mrf.mxu1  ;;  %v4673_v52 = vsel %vm1168_vm8, %v4669_v63, %v11064_v49 }
0x1548   : > { %v4668_v2 = vsel %vm973_vm5, %v12297_v54, %v11053_v17  ;;  %v4678_v60 = vsel %vm4674_vm10, %v4673_v52, %v11074_v21 }
0x1549   : > { %v4672_v51 = vsel %vm1168_vm8, %v4668_v2, %v11063_v62  ;;  %v4683_v61 = vsel %vm4679_vm11, %v4678_v60, %v11084_v27  ;;  %v11191_v2 = vld [vmem:[#allocation11 + $0x8] sm:$0xff]  }
0x154a   : > { %v4677_v20 = vsel %vm4674_vm10, %v4672_v51, %v11073_v26  ;;  %v4688_v54 = vsel %vm4684_vm12, %v4683_v61, %v11094_v3  ;;  %v11192_v3 = vld [vmem:[#allocation11] sm:$0xff]   ;;  %10469 = vmatprep.subr.bf16.mxu1 %v11191_v2 }
0x154b   : > { %v4682_v0 = vsel %vm4679_vm11, %v4677_v20, %v11083_v37  ;;  %v4693_v57 = vsel %vm4689_vm13, %v4688_v54, %v11104_v42  ;;  %10470 = vmatpush3.bf16.msra.mxu1 %v11191_v2 }
0x154c   : > { %v4687_v5 = vsel %vm4684_vm12, %v4682_v0, %v11093_v44  ;;  %10471 = vmatprep.subr.bf16.mxu1 %v11192_v3 }
0x154d   : > { %v4692_v16 = vsel %vm4689_vm13, %v4687_v5, %v11103_v13 }
0x154f   : > { %10472 = vmatpush3.bf16.msra.mxu1 %v11192_v3 }
0x157d   : > { %v11107_v46 = vpop.permute.xlu0 %11106 }
0x157e   : > { %v11109_v31 = vunpack.i.h.bf16 %v11107_v46  ;;  %v11108_v56 = vunpack.i.l.bf16 %v11107_v46 }
0x1580   : > { %v4696_v9 = vsel %vm4694_vm14, %v4691_v48, %v11109_v31  ;;  %v4695_v38 = vsel %vm4694_vm14, %v4690_v59, %v11108_v56 }
0x1581   : > { %v4699_v34 = vpack.c.bf16 %v4696_v9, %v4695_v38 }
0x1583   : > { %10465 = vmatprep.mubr.msk.bf16.mxu0 %vm741_vm0, %v4699_v34 }
0x15b6   : > { %v11112_v58 = vpop.permute.xlu1 %11111 }
0x15b7   : > { %v11114_v24 = vunpack.i.h.bf16 %v11112_v58  ;;  %v11113_v28 = vunpack.i.l.bf16 %v11112_v58 }
0x15b9   : > { %v4698_v12 = vsel %vm4694_vm14, %v4693_v57, %v11114_v24  ;;  %v4697_v23 = vsel %vm4694_vm14, %v4692_v16, %v11113_v28  ;;  %v9642_v16 = vld [vmem:[%s13973_s10] ss:$0 sm:$0xff] }
0x15ba   : > { %v4700_v22 = vpack.c.bf16 %v4698_v12, %v4697_v23 }
0x15bc   : > { %10466 = vmatmul.mubr.msk.bf16.vlgmr.msra.gmra.mxu0 %vm741_vm0, %v4700_v22 }
0x167c   : > { %v10467_v25 = vpop.f32.mrf.mxu0 }
0x167d   : > { %v4768_v53 = vadd.f32 %v10467_v25, %v9637_v4 }
0x167e   : > { %v4759_v33 = vpop.f32.mrf.mxu0 }
0x167f   : > { %v4760_v45 = vadd.f32 %v9637_v4, %v4759_v33  ;;  %v4776_v46 = vadd.f32 %v4768_v53, %v12148_v18 }
0x1680   : > { %v10468_v29 = vpop.f32.mrf.mxu0 }
0x1681   : > { %v4774_v36 = vadd.f32 %v4760_v45, %v12141_v7  ;;  %v4771_v43 = vadd.f32 %v10468_v29, %v9637_v4  ;;  %v4784_v9 = vsel %vm741_vm0, %v4776_v46, 0.0 }
0x1682   : > { %v4762_v47 = vpop.f32.mrf.mxu0 }
0x1683   : > { %v4763_v39 = vadd.f32 %v9637_v4, %v4762_v47  ;;  %v4778_v31 = vsel %vm741_vm0, %v4774_v36, 0.0  ;;  %v4777_v59 = vadd.f32 %v4771_v43, %v12150_v19  ;;  %v9643_v4 = vld [vmem:[%s13974_s11] ss:$0 sm:$0xff] }
0x1684   : > { %4779 = vadd.xlane.f32.xlu0 %v4778_v31 }
0x1685   : > { %v4775_v56 = vadd.f32 %v4763_v39, %v12143_v8  ;;  %v4787_v7 = vsel %vm741_vm0, %v4777_v59, 0.0 }
0x1687   : > { %v4781_v48 = vsel %vm741_vm0, %v4775_v56, 0.0 }
0x1688   : > { %4782 = vadd.xlane.f32.xlu1 %v4781_v48  ;;  %4785 = vadd.xlane.f32.xlu0 %v4784_v9  ;;  %v11194_v48 = vld [vmem:[#allocation13] sm:$0xff]  }
0x168c   : > { %4788 = vadd.xlane.f32.xlu0 %v4787_v7 }
0x170d   : > { %v4780_v38 = vpop.xlane.xlu0 %4779 }
0x170e   : > { %v4790_v18 = vmul.f32 0.03125, %v4780_v38  ;;  %v9644_v38 = vld [vmem:[%s13976_s13] ss:$0 sm:$0xff] }
0x1710   : > { %v4794_v34 = vsub.f32 %v4774_v36, %v4790_v18 }
0x1711   : > { %v4783_v35 = vpop.xlane.xlu1 %4782  ;;  %v4786_v1 = vpop.xlane.xlu0 %4785 }
0x1712   : > { %v4791_v30 = vmul.f32 0.03125, %v4783_v35  ;;  %v4792_v40 = vmul.f32 0.03125, %v4786_v1  ;;  %v4798_v41 = vmul.f32 %v4794_v34, %v4794_v34 }
0x1714   : > { %v4795_v8 = vsub.f32 %v4775_v56, %v4791_v30  ;;  %v4796_v50 = vsub.f32 %v4776_v46, %v4792_v40  ;;  %v4802_v19 = vsel %vm741_vm0, %v4798_v41, 0.0 }
0x1715   : > { %4803 = vadd.xlane.f32.xlu0 %v4802_v19  ;;  %v4789_v17 = vpop.xlane.xlu0 %4788 }
0x1716   : > { %v4793_v49 = vmul.f32 0.03125, %v4789_v17  ;;  %v4799_v62 = vmul.f32 %v4795_v8, %v4795_v8  ;;  %v4800_v21 = vmul.f32 %v4796_v50, %v4796_v50 }
0x1718   : > { %v4797_v26 = vsub.f32 %v4777_v59, %v4793_v49  ;;  %v4805_v32 = vsel %vm741_vm0, %v4799_v62, 0.0  ;;  %v4808_v27 = vsel %vm741_vm0, %v4800_v21, 0.0  ;;  %v11193_v59 = vld [vmem:[#allocation13 + $0x8] sm:$0xff]   ;;  %v11195_v62 = vld [vmem:[#allocation8 + $0x18] sm:$0xff]   ;;  %v11196_v21 = vld [vmem:[#allocation8 + $0x10] sm:$0xff]  }
0x1719   : > { %4806 = vadd.xlane.f32.xlu1 %v4805_v32  ;;  %4809 = vadd.xlane.f32.xlu0 %v4808_v27 }
0x171a   : > { %v4801_v37 = vmul.f32 %v4797_v26, %v4797_v26  ;;  %10477 = vmatprep.subr.bf16.mxu0 %v11193_v59 }
0x171b   : > { %10478 = vmatpush3.bf16.msra.mxu0 %v11193_v59 }
0x171c   : > { %v4811_v63 = vsel %vm741_vm0, %v4801_v37, 0.0  ;;  %10479 = vmatprep.subr.bf16.mxu0 %v11194_v48 }
0x171d   : > { %4812 = vadd.xlane.f32.xlu1 %v4811_v63 }
0x171f   : > { %10480 = vmatpush3.bf16.msra.mxu0 %v11194_v48 }
0x1720   : > { %10493 = vmatprep.subr.bf16.mxu0 %v11195_v62 }
0x179e   : > { %v4804_v44 = vpop.xlane.xlu0 %4803 }
0x179f   : > { %v4814_v51 = vmul.f32 0.03125, %v4804_v44 }
0x17a1   : > { %v4818_v52 = vadd.f32 1e-08, %v4814_v51 }
0x17a2   : > { %v4807_v42 = vpop.xlane.xlu1 %4806  ;;  %v4810_v13 = vpop.xlane.xlu0 %4809 }
0x17a3   : > { %11341 = vrsqrt.f32 %v4818_v52  ;;  %v4815_v20 = vmul.f32 0.03125, %v4807_v42  ;;  %v4816_v60 = vmul.f32 0.03125, %v4810_v13 }
0x17a5   : > { %v4819_v0 = vadd.f32 1e-08, %v4815_v20  ;;  %v4820_v61 = vadd.f32 1e-08, %v4816_v60 }
0x17a6   : > { %v4813_v58 = vpop.xlane.xlu1 %4812 }
0x17a7   : > { %11343 = vrsqrt.f32 %v4819_v0  ;;  %v4817_v5 = vmul.f32 0.03125, %v4813_v58 }
0x17a8   : > { %11345 = vrsqrt.f32 %v4820_v61 }
0x17a9   : > { %v4821_v54 = vadd.f32 1e-08, %v4817_v5 }
0x17ab   : > { %11347 = vrsqrt.f32 %v4821_v54 }
0x17b0   : > { %v11342_v24 = vpop.eup %11341 }
0x17b1   : > { %v4826_v28 = vmul.f32 %v11342_v24, %v4794_v34 }
0x17b3   : > { %v4836_v22 = vmul.f32 %v9642_v16, %v4826_v28 }
0x17b4   : > { %v11344_v57 = vpop.eup %11343 }
0x17b5   : > { %v11346_v12 = vpop.eup %11345  ;;  %v4827_v23 = vmul.f32 %v11344_v57, %v4795_v8  ;;  %v4846_v36 = vadd.f32 %v9643_v4, %v4836_v22 }
0x17b6   : > { %v4828_v25 = vmul.f32 %v11346_v12, %v4796_v50 }
0x17b7   : > { %v4837_v33 = vmul.f32 %v9642_v16, %v4827_v23 }
0x17b8   : > { %v11348_v53 = vpop.eup %11347  ;;  %v4838_v29 = vmul.f32 %v9642_v16, %v4828_v25 }
0x17b9   : > { %v4829_v45 = vmul.f32 %v11348_v53, %v4797_v26  ;;  %v4847_v47 = vadd.f32 %v9643_v4, %v4837_v33  ;;  %v9649_v26 = vld [vmem:[%s13978_s15] ss:$0 sm:$0xff] }
0x17ba   : > { %v4848_v39 = vadd.f32 %v9643_v4, %v4838_v29 }
0x17bb   : > { %v4839_v46 = vmul.f32 %v9642_v16, %v4829_v45  ;;  %v4850_v43 = vpack.c.bf16 %v4847_v47, %v4846_v36 }
0x17bd   : > { %v4849_v31 = vadd.f32 %v9643_v4, %v4839_v46  ;;  %10473 = vmatprep.mubr.msk.bf16.mxu1 %vm741_vm0, %v4850_v43 }
0x17bf   : > { %v4851_v56 = vpack.c.bf16 %v4849_v31, %v4848_v39 }
0x17c1   : > { %10474 = vmatmul.mubr.msk.bf16.vlgmr.msra.gmra.mxu1 %vm741_vm0, %v4851_v56 }
0x1881   : > { %v10475_v9 = vpop.f32.mrf.mxu1 }
0x1882   : > { %v4919_v1 = vadd.f32 %v10475_v9, %v9644_v38 }
0x1883   : > { %v4910_v7 = vpop.f32.mrf.mxu1 }
0x1884   : > { %v4911_v34 = vadd.f32 %v9644_v38, %v4910_v7  ;;  %v4927_v19 = vmax.f32 %v4919_v1, 0.0 }
0x1885   : > { %v10476_v18 = vpop.f32.mrf.mxu1 }
0x1886   : > { %v4922_v35 = vadd.f32 %v10476_v18, %v9644_v38  ;;  %v4925_v8 = vmax.f32 %v4911_v34, 0.0  ;;  %v11198_v18 = vld [vmem:[#allocation7 + $0x10] sm:$0xff]   ;;  %v9670_v34 = vld [vmem:[%s13968_s5 + $0x1] ss:$0 sm:$0xff] }
0x1887   : > { %v4913_v30 = vpop.f32.mrf.mxu1 }
0x1888   : > { %v4914_v40 = vadd.f32 %v9644_v38, %v4913_v30  ;;  %v4928_v41 = vmax.f32 %v4922_v35, 0.0  ;;  %v11197_v38 = vld [vmem:[#allocation7 + $0x18] sm:$0xff]  }
0x1889   : > { %10485 = vmatprep.subr.bf16.mxu1 %v11197_v38 }
0x188a   : > { %v4926_v50 = vmax.f32 %v4914_v40, 0.0  ;;  %v4930_v49 = vpack.c.bf16 %v4928_v41, %v4927_v19  ;;  %10486 = vmatpush3.bf16.msra.mxu1 %v11197_v38 }
0x188b   : > { %10487 = vmatprep.subr.bf16.mxu1 %v11198_v18 }
0x188c   : > { %v4929_v17 = vpack.c.bf16 %v4926_v50, %v4925_v8 }
0x188e   : > { %10481 = vmatprep.mubr.msk.bf16.mxu0 %vm741_vm0, %v4929_v17  ;;  %10488 = vmatpush3.bf16.msra.mxu1 %v11198_v18 }
0x188f   : > { %10482 = vmatmul.mubr.msk.bf16.vlgmr.msra.gmra.mxu0 %vm741_vm0, %v4930_v49  ;;  %10501 = vmatprep.subr.bf16.mxu1 %v14065_v6 }
0x1890   : > { %10494 = vmatpush3.bf16.msra.mxu0 %v11195_v62 }
0x1891   : > { %10495 = vmatprep.subr.bf16.mxu0 %v11196_v21 }
0x1894   : > { %10496 = vmatpush3.bf16.msra.mxu0 %v11196_v21 }
0x1895   : > { %10507 = vmatprep.subr.bf16.mxu0 %v14065_v6 }
0x194f   : > { %v10483_v32 = vpop.f32.mrf.mxu0 }
0x1950   : > { %v4998_v27 = vadd.f32 %v10483_v32, %v9649_v26 }
0x1951   : > { %v4989_v37 = vpop.f32.mrf.mxu0 }
0x1952   : > { %v4990_v63 = vadd.f32 %v9649_v26, %v4989_v37  ;;  %v5006_v3 = vadd.f32 %v4998_v27, %v4848_v39 }
0x1953   : > { %v10484_v2 = vpop.f32.mrf.mxu0 }
0x1954   : > { %v5004_v44 = vadd.f32 %v4990_v63, %v4846_v36  ;;  %v5001_v51 = vadd.f32 %v10484_v2, %v9649_v26  ;;  %v5010_v60 = vmul.f32 %v12111_v11, %v5006_v3 }
0x1955   : > { %v4992_v52 = vpop.f32.mrf.mxu0 }
0x1956   : > { %v5008_v42 = vmul.f32 %v12108_v10, %v5004_v44  ;;  %v5007_v13 = vadd.f32 %v5001_v51, %v4849_v31  ;;  %v4993_v20 = vadd.f32 %v9649_v26, %v4992_v52  ;;  %v5061_v24 = vsel %vm741_vm0, %v5010_v60, 0.0 }
0x1958   : > { %v5005_v0 = vadd.f32 %v4993_v20, %v4847_v47  ;;  %v5055_v61 = vsel %vm741_vm0, %v5008_v42, 0.0  ;;  %v5011_v58 = vmul.f32 %v12119_v15, %v5007_v13  ;;  %v9663_v20 = vld [vmem:[%s13971_s8 + $0x1] ss:$0 sm:$0xff] }
0x1959   : > { %5056 = vadd.xlane.f32.xlu0 %v5055_v61 }
0x195a   : > { %v5009_v5 = vmul.f32 %v12116_v14, %v5005_v0  ;;  %v5203_v16 = vpack.c.bf16 %v5011_v58, %v5010_v60  ;;  %v5064_v57 = vsel %vm741_vm0, %v5011_v58, 0.0 }
0x195c   : > { %v5058_v54 = vsel %vm741_vm0, %v5009_v5, 0.0  ;;  %v5202_v28 = vpack.c.bf16 %v5009_v5, %v5008_v42 }
0x195d   : > { %5059 = vadd.xlane.f32.xlu1 %v5058_v54  ;;  %5062 = vadd.xlane.f32.xlu0 %v5061_v24  ;;  %v9664_v54 = vld [vmem:[%s13972_s9 + $0x1] ss:$0 sm:$0xff] }
0x195e   : > { %10497 = vmatprep.mubr.msk.bf16.mxu0 %vm741_vm0, %v5202_v28 }
0x195f   : > { %10498 = vmatmul.mubr.msk.bf16.vlgmr.msra.gmra.mxu0 %vm741_vm0, %v5203_v16 }
0x1960   : > { %10509 = vmatprep.mubr.msk.bf16.mxu0 %vm11775_vm6, %v14065_v6 }
0x1961   : > { %5065 = vadd.xlane.f32.xlu1 %v5064_v57 }
0x19e2   : > { %v5057_v12 = vpop.xlane.xlu0 %5056 }
0x19e3   : > { %v5067_v23 = vmul.f32 0.03125, %v5057_v12 }
0x19e5   : > { %v5071_v22 = vsub.f32 %v5008_v42, %v5067_v23 }
0x19e6   : > { %v5060_v25 = vpop.xlane.xlu1 %5059  ;;  %v5063_v4 = vpop.xlane.xlu0 %5062 }
0x19e7   : > { %v5068_v33 = vmul.f32 0.03125, %v5060_v25  ;;  %v5069_v53 = vmul.f32 0.03125, %v5063_v4  ;;  %v5075_v45 = vmul.f32 %v5071_v22, %v5071_v22 }
0x19e9   : > { %v5072_v29 = vsub.f32 %v5009_v5, %v5068_v33  ;;  %v5073_v36 = vsub.f32 %v5010_v60, %v5069_v53  ;;  %v5079_v47 = vsel %vm741_vm0, %v5075_v45, 0.0 }
0x19ea   : > { %v5066_v46 = vpop.xlane.xlu1 %5065  ;;  %5080 = vadd.xlane.f32.xlu0 %v5079_v47  ;;  %v9665_v47 = vld [vmem:[%s13966_s3 + $0x1] ss:$0 sm:$0xff] }
0x19eb   : > { %v5070_v43 = vmul.f32 0.03125, %v5066_v46  ;;  %v5076_v39 = vmul.f32 %v5072_v29, %v5072_v29  ;;  %v5077_v31 = vmul.f32 %v5073_v36, %v5073_v36 }
0x19ed   : > { %v5074_v56 = vsub.f32 %v5011_v58, %v5070_v43  ;;  %v5082_v59 = vsel %vm741_vm0, %v5076_v39, 0.0  ;;  %v5085_v48 = vsel %vm741_vm0, %v5077_v31, 0.0 }
0x19ee   : > { %5083 = vadd.xlane.f32.xlu1 %v5082_v59  ;;  %5086 = vadd.xlane.f32.xlu0 %v5085_v48 }
0x19ef   : > { %v5078_v9 = vmul.f32 %v5074_v56, %v5074_v56 }
0x19f1   : > { %v5088_v7 = vsel %vm741_vm0, %v5078_v9, 0.0 }
0x19f2   : > { %5089 = vadd.xlane.f32.xlu1 %v5088_v7 }
0x1a1f   : > { %v10499_v35 = vpop.f32.mrf.mxu0 }
0x1a20   : > { %v5271_v1 = vadd.f32 %v10499_v35, %v9670_v34 }
0x1a21   : > { %v5262_v30 = vpop.f32.mrf.mxu0 }
0x1a22   : > { %v5263_v40 = vadd.f32 %v9670_v34, %v5262_v30  ;;  %v13062_v43 = vpack.c.bf16 %v5271_v1, %v5271_v1 }
0x1a23   : > { %v10500_v41 = vpop.f32.mrf.mxu0 }
0x1a24   : > { %v5274_v8 = vadd.f32 %v10500_v41, %v9670_v34  ;;  %v13044_v4 = vpack.c.bf16 %v5263_v40, %v5263_v40  ;;  %v5381_v7 = vsel %vm973_vm5, %v13062_v43, 0 }
0x1a25   : > { %v5265_v50 = vpop.f32.mrf.mxu0 }
0x1a26   : > { %v5266_v19 = vadd.f32 %v9670_v34, %v5265_v50  ;;  %v13066_v48 = vpack.c.bf16 %v5274_v8, %v5274_v8 }
0x1a28   : > { %v13027_v17 = vpack.c.bf16 %v5266_v19, %v5266_v19  ;;  %v5427_v34 = vsel %vm973_vm5, %v13066_v48, 0 }
0x1a2a   : > { %v5335_v49 = vsel %vm973_vm5, %v13027_v17, 0 }
0x1a2b   : > { %10508 = vmatpush3.bf16.xpose.msra.mxu0 %v5335_v49 }
0x1a2c   : > { %10519 = vmatprep.subr.bf16.mxu0 %v14065_v6 }
0x1a73   : > { %v5081_v62 = vpop.xlane.xlu0 %5080 }
0x1a74   : > { %v5091_v21 = vmul.f32 0.03125, %v5081_v62 }
0x1a76   : > { %v5095_v26 = vadd.f32 1e-08, %v5091_v21 }
0x1a77   : > { %v5084_v32 = vpop.xlane.xlu1 %5083  ;;  %v5087_v27 = vpop.xlane.xlu0 %5086 }
0x1a78   : > { %11349 = vrsqrt.f32 %v5095_v26  ;;  %v5092_v37 = vmul.f32 0.03125, %v5084_v32  ;;  %v5093_v63 = vmul.f32 0.03125, %v5087_v27 }
0x1a7a   : > { %v5096_v2 = vadd.f32 1e-08, %v5092_v37  ;;  %v5097_v3 = vadd.f32 1e-08, %v5093_v63 }
0x1a7b   : > { %v5090_v44 = vpop.xlane.xlu1 %5089 }
0x1a7c   : > { %11351 = vrsqrt.f32 %v5096_v2  ;;  %v5094_v51 = vmul.f32 0.03125, %v5090_v44 }
0x1a7d   : > { %11353 = vrsqrt.f32 %v5097_v3 }
0x1a7e   : > { %v5098_v52 = vadd.f32 1e-08, %v5094_v51 }
0x1a80   : > { %11355 = vrsqrt.f32 %v5098_v52 }
0x1a85   : > { %v11350_v42 = vpop.eup %11349 }
0x1a86   : > { %v5103_v13 = vmul.f32 %v11350_v42, %v5071_v22 }
0x1a88   : > { %v5113_v58 = vmul.f32 %v9663_v20, %v5103_v13 }
0x1a89   : > { %v11352_v60 = vpop.eup %11351 }
0x1a8a   : > { %v11354_v0 = vpop.eup %11353  ;;  %v5104_v61 = vmul.f32 %v11352_v60, %v5072_v29  ;;  %v13038_v12 = vadd.f32 %v9664_v54, %v5113_v58  ;;  %v5289_v29 = vsel %vm973_vm5, %v13044_v4, 0 }
0x1a8b   : > { %v5105_v5 = vmul.f32 %v11354_v0, %v5073_v36 }
0x1a8c   : > { %v5114_v24 = vmul.f32 %v9663_v20, %v5104_v61 }
0x1a8d   : > { %v11356_v28 = vpop.eup %11355  ;;  %v5115_v57 = vmul.f32 %v9663_v20, %v5105_v5 }
0x1a8e   : > { %v5106_v16 = vmul.f32 %v11356_v28, %v5074_v56  ;;  %v13040_v23 = vadd.f32 %v9664_v54, %v5114_v24 }
0x1a8f   : > { %v13046_v33 = vadd.f32 %v9664_v54, %v5115_v57 }
0x1a90   : > { %v5116_v22 = vmul.f32 %v9663_v20, %v5106_v16  ;;  %v5127_v25 = vpack.c.bf16 %v13040_v23, %v13038_v12 }
0x1a92   : > { %v13048_v53 = vadd.f32 %v9664_v54, %v5116_v22  ;;  %10489 = vmatprep.mubr.msk.bf16.mxu1 %vm741_vm0, %v5127_v25 }
0x1a94   : > { %v5128_v45 = vpack.c.bf16 %v13048_v53, %v13046_v33 }
0x1a96   : > { %10490 = vmatmul.mubr.msk.bf16.vlgmr.msra.gmra.mxu1 %vm741_vm0, %v5128_v45 }
0x1a97   : > { %10502 = vmatpush3.bf16.xpose.msra.mxu1 %v5289_v29  ;;  %10503 = vmatprep.mubr.msk.bf16.mxu1 %vm11775_vm6, %v14065_v6 }
0x1a98   : > { %10513 = vmatprep.subr.bf16.mxu1 %v14065_v6 }
0x1b56   : > { %v10491_v36 = vpop.f32.mrf.mxu1 }
0x1b57   : > { %v5196_v38 = vadd.f32 %v10491_v36, %v9665_v47 }
0x1b58   : > { %v5187_v46 = vpop.f32.mrf.mxu1 }
0x1b59   : > { %v5188_v39 = vadd.f32 %v9665_v47, %v5187_v46  ;;  %v13083_v35 = vpack.c.bf16 %v5196_v38, %v5196_v38 }
0x1b5a   : > { %v10492_v31 = vpop.f32.mrf.mxu1 }
0x1b5b   : > { %v13064_v56 = vpack.c.bf16 %v5188_v39, %v5188_v39  ;;  %v5199_v1 = vadd.f32 %v10492_v31, %v9665_v47 }
0x1b5c   : > { %v5190_v59 = vpop.f32.mrf.mxu1 }
0x1b5d   : > { %v5191_v9 = vadd.f32 %v9665_v47, %v5190_v59  ;;  %10504 = vmatmul.mubr.msk.bf16.vlgmr.msra.gmra.mxu1 %vm973_vm5, %v13064_v56  ;;  %v13090_v30 = vpack.c.bf16 %v5199_v1, %v5199_v1 }
0x1b5e   : > { %10514 = vmatpush3.bf16.xpose.msra.mxu1 %v5381_v7  ;;  %10515 = vmatprep.mubr.msk.bf16.mxu1 %vm11775_vm6, %v14065_v6 }
0x1b5f   : > { %v13074_v18 = vpack.c.bf16 %v5191_v9, %v5191_v9  ;;  %10525 = vmatprep.subr.bf16.mxu1 %v14065_v6 }
0x1b61   : > { %10510 = vmatmul.mubr.msk.bf16.vlgmr.msra.gmra.mxu0 %vm973_vm5, %v13074_v18 }
0x1b62   : > { %10520 = vmatpush3.bf16.xpose.msra.mxu0 %v5427_v34  ;;  %10521 = vmatprep.mubr.msk.bf16.mxu0 %vm11775_vm6, %v14065_v6 }
0x1b63   : > { %10531 = vmatprep.subr.bf16.mxu0 %v14065_v6 }
0x1b65   : > { %10516 = vmatmul.mubr.msk.bf16.vlgmr.msra.gmra.mxu1 %vm973_vm5, %v13083_v35 }
0x1b66   : > { %10527 = vmatprep.mubr.msk.bf16.mxu1 %vm11775_vm6, %v14065_v6 }
0x1b69   : > { %10522 = vmatmul.mubr.msk.bf16.vlgmr.msra.gmra.mxu0 %vm973_vm5, %v13090_v30 }
0x1b6a   : > { %10533 = vmatprep.mubr.msk.bf16.mxu0 %vm11775_vm6, %v14065_v6 }
0x1c1d   : > { %v5325_v40 = vpop.f32.mrf.mxu1 }
0x1c1e   : > { %v5469_v41 = vmul.f32 0.5, %v5325_v40 }
0x1c1f   : > { %v10505_v8 = vpop.f32.mrf.mxu1 }
0x1c20   : > { %v5473_v50 = vsel %vm12209_vm7, %v5469_v41, -1e+30 }
0x1c21   : > { %v5328_v19 = vpop.f32.mrf.mxu1  ;;  %v5371_v49 = vpop.f32.mrf.mxu0  ;;  %v5477_v62 = vsel %vm1168_vm8, %v5473_v50, -inf }
0x1c22   : > { %v5470_v21 = vmul.f32 0.5, %v5371_v49  ;;  %5478 = vmax.xlane.f32.xlu0 %v5477_v62 }
0x1c23   : > { %v10506_v26 = vpop.f32.mrf.mxu1  ;;  %v10511_v32 = vpop.f32.mrf.mxu0 }
0x1c24   : > { %v5474_v27 = vsel %vm12209_vm7, %v5470_v21, -1e+30 }
0x1c25   : > { %v5374_v37 = vpop.f32.mrf.mxu0  ;;  %v5417_v63 = vpop.f32.mrf.mxu1  ;;  %v5480_v2 = vsel %vm1168_vm8, %v5474_v27, -inf }
0x1c26   : > { %v5471_v3 = vmul.f32 0.5, %v5417_v63  ;;  %5481 = vmax.xlane.f32.xlu1 %v5480_v2 }
0x1c27   : > { %v10512_v44 = vpop.f32.mrf.mxu0  ;;  %v10517_v51 = vpop.f32.mrf.mxu1 }
0x1c28   : > { %v5475_v52 = vsel %vm12209_vm7, %v5471_v3, -1e+30 }
0x1c29   : > { %v5420_v42 = vpop.f32.mrf.mxu1  ;;  %v5463_v13 = vpop.f32.mrf.mxu0  ;;  %v5483_v20 = vsel %vm1168_vm8, %v5475_v52, -inf }
0x1c2a   : > { %v5472_v60 = vmul.f32 0.5, %v5463_v13  ;;  %5484 = vmax.xlane.f32.xlu0 %v5483_v20 }
0x1c2b   : > { %v10518_v0 = vpop.f32.mrf.mxu1  ;;  %v10523_v61 = vpop.f32.mrf.mxu0 }
0x1c2c   : > { %v5476_v58 = vsel %vm12209_vm7, %v5472_v60, -1e+30 }
0x1c2d   : > { %v5466_v5 = vpop.f32.mrf.mxu0  ;;  %v5486_v54 = vsel %vm1168_vm8, %v5476_v58, -inf }
0x1c2e   : > { %5487 = vmax.xlane.f32.xlu1 %v5486_v54 }
0x1c2f   : > { %v10524_v24 = vpop.f32.mrf.mxu0 }
0x1c3f   : > { %5575 = vrot.lane.b32.xlu1 %v13027_v17, %s11776_s17 }
0x1c43   : > { %5624 = vrot.lane.b32.xlu1 %v13062_v43, %s11776_s17 }
0x1c47   : > { %5673 = vrot.lane.b32.xlu1 %v13066_v48, %s11776_s17 }
0x1cab   : > { %v5479_v28 = vpop.xlane.xlu0 %5478 }
0x1cac   : > { %v5489_v16 = vsub.f32 %v5473_v50, %v5479_v28 }
0x1cae   : > { %v5493_v57 = vmul.f32 1.442695, %v5489_v16 }
0x1caf   : > { %v5482_v22 = vpop.xlane.xlu1 %5481 }
0x1cb0   : > { %11357 = vpow2.f32 %v5493_v57  ;;  %v5490_v25 = vsub.f32 %v5474_v27, %v5482_v22 }
0x1cb2   : > { %v5495_v45 = vmul.f32 1.442695, %v5490_v25 }
0x1cb3   : > { %v5485_v9 = vpop.xlane.xlu0 %5484 }
0x1cb4   : > { %11359 = vpow2.f32 %v5495_v45  ;;  %v5491_v7 = vsub.f32 %v5475_v52, %v5485_v9 }
0x1cb6   : > { %v5497_v38 = vmul.f32 1.442695, %v5491_v7 }
0x1cb7   : > { %v5488_v29 = vpop.xlane.xlu1 %5487 }
0x1cb8   : > { %v5492_v34 = vsub.f32 %v5476_v58, %v5488_v29  ;;  %11361 = vpow2.f32 %v5497_v38 }
0x1cba   : > { %v5499_v1 = vmul.f32 1.442695, %v5492_v34 }
0x1cbb   : > { %v5576_v36 = vpop.permute.xlu1 %5575 }
0x1cbc   : > { %v5581_v47 = vsel %vm1223_vm9, %v5576_v36, 0  ;;  %11363 = vpow2.f32 %v5499_v1 }
0x1cbd   : > { %v11358_v46 = vpop.eup %11357  ;;  %10532 = vmatpush3.bf16.msra.mxu0 %v5581_v47 }
0x1cbe   : > { %v5501_v39 = vsel %vm1168_vm8, %v11358_v46, 0.0  ;;  %10543 = vmatprep.subr.bf16.mxu0 %v14065_v6 }
0x1cbf   : > { %5502 = vadd.xlane.f32.xlu0 %v5501_v39  ;;  %v5625_v19 = vpop.permute.xlu1 %5624 }
0x1cc0   : > { %v5630_v3 = vsel %vm1223_vm9, %v5625_v19, 0 }
0x1cc1   : > { %v11360_v31 = vpop.eup %11359 }
0x1cc2   : > { %v5504_v59 = vsel %vm1168_vm8, %v11360_v31, 0.0 }
0x1cc3   : > { %5505 = vadd.xlane.f32.xlu1 %v5504_v59  ;;  %v5674_v49 = vpop.permute.xlu1 %5673 }
0x1cc4   : > { %v5679_v52 = vsel %vm1223_vm9, %v5674_v49, 0 }
0x1cc5   : > { %v11362_v40 = vpop.eup %11361 }
0x1cc6   : > { %v5507_v41 = vsel %vm1168_vm8, %v11362_v40, 0.0 }
0x1cc9   : > { %v11364_v8 = vpop.eup %11363 }
0x1cca   : > { %v5510_v50 = vsel %vm1168_vm8, %v11364_v8, 0.0 }
0x1cd4   : > { %5775 = vrot.lane.b32.xlu1 %v13027_v17, %s11777_s25 }
0x1cd5   : > { %5526 = vrot.lane.b32.xlu0 %v13044_v4, %s11776_s17  ;;  %s14066_s17 = smov 112  }
0x1cf4   : > { %5508 = vadd.xlane.f32.xlu0 %v5507_v41 }
0x1cf8   : > { %5511 = vadd.xlane.f32.xlu1 %v5510_v50 }
0x1d09   : > { %5773 = vrot.lane.b32.xlu1 %v13074_v18, %s11777_s25 }
0x1d0a   : > { %5724 = vrot.lane.b32.xlu0 %v13044_v4, %s11777_s25 }
0x1d0d   : > { %5877 = vrot.lane.b32.xlu1 %v13066_v48, %s11777_s25 }
0x1d0e   : > { %5722 = vrot.lane.b32.xlu0 %v13064_v56, %s11777_s25 }
0x1d11   : > { %5875 = vrot.lane.b32.xlu1 %v13090_v30, %s11777_s25 }
0x1d12   : > { %5826 = vrot.lane.b32.xlu0 %v13062_v43, %s11777_s25 }
0x1d16   : > { %5824 = vrot.lane.b32.xlu0 %v13083_v35, %s11777_s25  ;;  %s14067_s25 = smov 80  }
0x1d48   : > { %v5503_v62 = vpop.xlane.xlu0 %5502 }
0x1d49   : > { %11365 = vrcp.f32 %v5503_v62 }
0x1d4c   : > { %v5506_v21 = vpop.xlane.xlu1 %5505  ;;  %v5527_v26 = vpop.permute.xlu0 %5526 }
0x1d4d   : > { %11367 = vrcp.f32 %v5506_v21  ;;  %v5532_v32 = vsel %vm1223_vm9, %v5527_v26, 0 }
0x1d4e   : > { %10526 = vmatpush3.bf16.msra.mxu1 %v5532_v32 }
0x1d4f   : > { %10537 = vmatprep.subr.bf16.mxu1 %v14065_v6 }
0x1d50   : > { %v5776_v42 = vpop.permute.xlu1 %5775 }
0x1d51   : > { %v5781_v22 = vsel %vm973_vm5, %v5776_v42, 0 }
0x1d56   : > { %v11366_v27 = vpop.eup %11365 }
0x1d57   : > { %v5517_v37 = vmul.f32 %v11366_v27, %v11358_v46 }
0x1d59   : > { %v5521_v63 = vpack.c.bf16 %v5517_v37, %v5517_v37 }
0x1d5a   : > { %v11368_v2 = vpop.eup %11367 }
0x1d5b   : > { %v5518_v44 = vmul.f32 %v11368_v2, %v11360_v31  ;;  %10528 = vmatmul.mubr.msk.bf16.vlgmr.msra.gmra.mxu1 %vm1168_vm8, %v5521_v63 }
0x1d5c   : > { %10538 = vmatpush3.bf16.msra.mxu1 %v5630_v3  ;;  %10539 = vmatprep.mubr.msk.bf16.mxu1 %vm11775_vm6, %v14065_v6 }
0x1d5d   : > { %v5522_v51 = vpack.c.bf16 %v5518_v44, %v5518_v44  ;;  %10549 = vmatprep.subr.bf16.mxu1 %v14065_v6 }
0x1d5f   : > { %10534 = vmatmul.mubr.msk.bf16.vlgmr.msra.gmra.mxu0 %vm1168_vm8, %v5522_v51 }
0x1d60   : > { %10544 = vmatpush3.bf16.msra.mxu0 %v5679_v52  ;;  %10545 = vmatprep.mubr.msk.bf16.mxu0 %vm11775_vm6, %v14065_v6 }
0x1d61   : > { %10555 = vmatprep.subr.bf16.mxu0 %v14065_v6 }
0x1d7d   : > { %v5509_v13 = vpop.xlane.xlu0 %5508 }
0x1d7e   : > { %11369 = vrcp.f32 %v5509_v13 }
0x1d81   : > { %v5512_v20 = vpop.xlane.xlu1 %5511  ;;  %v5725_v60 = vpop.permute.xlu0 %5724 }
0x1d82   : > { %11371 = vrcp.f32 %v5512_v20  ;;  %v5730_v28 = vsel %vm973_vm5, %v5725_v60, 0 }
0x1d85   : > { %v5723_v54 = vpop.permute.xlu0 %5722  ;;  %v5774_v57 = vpop.permute.xlu1 %5773 }
0x1d89   : > { %v5827_v25 = vpop.permute.xlu0 %5826  ;;  %v5878_v29 = vpop.permute.xlu1 %5877 }
0x1d8a   : > { %v5832_v45 = vsel %vm973_vm5, %v5827_v25, 0  ;;  %v5883_v36 = vsel %vm973_vm5, %v5878_v29, 0 }
0x1d8b   : > { %v11370_v0 = vpop.eup %11369 }
0x1d8c   : > { %v5519_v61 = vmul.f32 %v11370_v0, %v11362_v40 }
0x1d8d   : > { %v5825_v47 = vpop.permute.xlu0 %5824  ;;  %v5876_v46 = vpop.permute.xlu1 %5875 }
0x1d8e   : > { %v5523_v58 = vpack.c.bf16 %v5519_v61, %v5519_v61 }
0x1d8f   : > { %v11372_v5 = vpop.eup %11371 }
0x1d90   : > { %v5520_v24 = vmul.f32 %v11372_v5, %v11364_v8  ;;  %10540 = vmatmul.mubr.msk.bf16.vlgmr.msra.gmra.mxu1 %vm1168_vm8, %v5523_v58 }
0x1d91   : > { %10550 = vmatpush3.bf16.xpose.msra.mxu1 %v5730_v28  ;;  %10551 = vmatprep.mubr.msk.bf16.mxu1 %vm11775_vm6, %v14065_v6 }
0x1d92   : > { %v5524_v16 = vpack.c.bf16 %v5520_v24, %v5520_v24  ;;  %10561 = vmatprep.subr.bf16.mxu1 %v14065_v6 }
0x1d94   : > { %10546 = vmatmul.mubr.msk.bf16.vlgmr.msra.gmra.mxu0 %vm1168_vm8, %v5524_v16 }
0x1d95   : > { %10556 = vmatpush3.bf16.xpose.msra.mxu0 %v5781_v22  ;;  %10557 = vmatprep.mubr.msk.bf16.mxu0 %vm11775_vm6, %v14065_v6 }
0x1d96   : > { %10567 = vmatprep.subr.bf16.mxu0 %v14065_v6 }
0x1d98   : > { %10552 = vmatmul.mubr.msk.bf16.vlgmr.msra.gmra.mxu1 %vm973_vm5, %v5723_v54 }
0x1d99   : > { %10562 = vmatpush3.bf16.xpose.msra.mxu1 %v5832_v45  ;;  %10563 = vmatprep.mubr.msk.bf16.mxu1 %vm11775_vm6, %v14065_v6 }
0x1d9a   : > { %10573 = vmatprep.subr.bf16.mxu1 %v14065_v6 }
0x1d9c   : > { %10558 = vmatmul.mubr.msk.bf16.vlgmr.msra.gmra.mxu0 %vm973_vm5, %v5774_v57 }
0x1d9d   : > { %10568 = vmatpush3.bf16.xpose.msra.mxu0 %v5883_v36  ;;  %10569 = vmatprep.mubr.msk.bf16.mxu0 %vm11775_vm6, %v14065_v6 }
0x1d9e   : > { %10579 = vmatprep.subr.bf16.mxu0 %v14065_v6 }
0x1da0   : > { %10564 = vmatmul.mubr.msk.bf16.vlgmr.msra.gmra.mxu1 %vm973_vm5, %v5825_v47 }
0x1da1   : > { %10575 = vmatprep.mubr.msk.bf16.mxu1 %vm11775_vm6, %v14065_v6 }
0x1da4   : > { %10570 = vmatmul.mubr.msk.bf16.vlgmr.msra.gmra.mxu0 %vm973_vm5, %v5876_v46 }
0x1da5   : > { %10581 = vmatprep.mubr.msk.bf16.mxu0 %vm11775_vm6, %v14065_v6 }
0x1e1b   : > { %v13176_v39 = vpop.f32.mrf.mxu1 }
0x1e1d   : > { %v10529_v31 = vpop.f32.mrf.mxu1 }
0x1e1f   : > { %v5571_v59 = vpop.f32.mrf.mxu1  ;;  %v13178_v9 = vpop.f32.mrf.mxu0 }
0x1e21   : > { %v10530_v7 = vpop.f32.mrf.mxu1  ;;  %v10535_v38 = vpop.f32.mrf.mxu0 }
0x1e23   : > { %v5620_v34 = vpop.f32.mrf.mxu0 }
0x1e25   : > { %v10536_v1 = vpop.f32.mrf.mxu0 }
0x1e50   : > { %v13180_v40 = vpop.f32.mrf.mxu1 }
0x1e52   : > { %v10541_v41 = vpop.f32.mrf.mxu1 }
0x1e54   : > { %v5669_v8 = vpop.f32.mrf.mxu1  ;;  %v13182_v50 = vpop.f32.mrf.mxu0 }
0x1e56   : > { %v10542_v19 = vpop.f32.mrf.mxu1  ;;  %v10547_v49 = vpop.f32.mrf.mxu0 }
0x1e58   : > { %v5718_v62 = vpop.f32.mrf.mxu0  ;;  %v5766_v21 = vpop.f32.mrf.mxu1 }
0x1e59   : > { %v5925_v26 = vmul.f32 0.5, %v5766_v21 }
0x1e5a   : > { %v10548_v32 = vpop.f32.mrf.mxu0  ;;  %v10553_v27 = vpop.f32.mrf.mxu1 }
0x1e5b   : > { %v5929_v37 = vsel %vm12209_vm7, %v5925_v26, -1e+30 }
0x1e5c   : > { %v5769_v63 = vpop.f32.mrf.mxu1  ;;  %v5817_v2 = vpop.f32.mrf.mxu0  ;;  %v5933_v3 = vsel %vm1168_vm8, %v5929_v37, -inf }
0x1e5d   : > { %v5926_v44 = vmul.f32 0.5, %v5817_v2  ;;  %5934 = vmax.xlane.f32.xlu0 %v5933_v3 }
0x1e5e   : > { %v10554_v51 = vpop.f32.mrf.mxu1  ;;  %v10559_v52 = vpop.f32.mrf.mxu0 }
0x1e5f   : > { %v5930_v42 = vsel %vm12209_vm7, %v5926_v44, -1e+30 }
0x1e60   : > { %v5820_v13 = vpop.f32.mrf.mxu0  ;;  %v5868_v20 = vpop.f32.mrf.mxu1  ;;  %v5936_v60 = vsel %vm1168_vm8, %v5930_v42, -inf }
0x1e61   : > { %v5927_v0 = vmul.f32 0.5, %v5868_v20  ;;  %5937 = vmax.xlane.f32.xlu1 %v5936_v60 }
0x1e62   : > { %v10560_v61 = vpop.f32.mrf.mxu0  ;;  %v10565_v58 = vpop.f32.mrf.mxu1 }
0x1e63   : > { %v5931_v5 = vsel %vm12209_vm7, %v5927_v0, -1e+30 }
0x1e64   : > { %v5871_v54 = vpop.f32.mrf.mxu1  ;;  %v5919_v24 = vpop.f32.mrf.mxu0  ;;  %v5939_v28 = vsel %vm1168_vm8, %v5931_v5, -inf }
0x1e65   : > { %v5928_v16 = vmul.f32 0.5, %v5919_v24  ;;  %5940 = vmax.xlane.f32.xlu0 %v5939_v28 }
0x1e66   : > { %v10566_v57 = vpop.f32.mrf.mxu1  ;;  %v10571_v22 = vpop.f32.mrf.mxu0 }
0x1e67   : > { %v5932_v25 = vsel %vm12209_vm7, %v5928_v16, -1e+30 }
0x1e68   : > { %v5922_v45 = vpop.f32.mrf.mxu0  ;;  %v5942_v29 = vsel %vm1168_vm8, %v5932_v25, -inf }
0x1e69   : > { %5943 = vmax.xlane.f32.xlu0 %v5942_v29 }
0x1e6a   : > { %v10572_v36 = vpop.f32.mrf.mxu0 }
0x1e72   : > { %6029 = vrot.lane.b32.xlu1 %v13027_v17, %s11778_s4 }
0x1e76   : > { %6077 = vrot.lane.b32.xlu1 %v13062_v43, %s11778_s4 }
0x1e7a   : > { %6125 = vrot.lane.b32.xlu1 %v13066_v48, %s11778_s4 }
0x1ee6   : > { %v5935_v47 = vpop.xlane.xlu0 %5934 }
0x1ee7   : > { %v5945_v46 = vsub.f32 %v5929_v37, %v5935_v47 }
0x1ee9   : > { %v5949_v31 = vmul.f32 1.442695, %v5945_v46 }
0x1eea   : > { %v5938_v59 = vpop.xlane.xlu1 %5937 }
0x1eeb   : > { %11373 = vpow2.f32 %v5949_v31  ;;  %v5946_v7 = vsub.f32 %v5930_v42, %v5938_v59 }
0x1eed   : > { %v5951_v38 = vmul.f32 1.442695, %v5946_v7 }
0x1eee   : > { %v6030_v34 = vpop.permute.xlu1 %6029  ;;  %v5941_v62 = vpop.xlane.xlu0 %5940 }
0x1eef   : > { %11375 = vpow2.f32 %v5951_v38  ;;  %v6035_v1 = vsel %vm1223_vm9, %v6030_v34, 0  ;;  %v5947_v21 = vsub.f32 %v5931_v5, %v5941_v62 }
0x1ef0   : > { %10580 = vmatpush3.bf16.msra.mxu0 %v6035_v1 }
0x1ef1   : > { %10591 = vmatprep.subr.bf16.mxu0 %v14065_v6  ;;  %v5953_v32 = vmul.f32 1.442695, %v5947_v21 }
0x1ef2   : > { %v5944_v26 = vpop.xlane.xlu0 %5943  ;;  %v6078_v51 = vpop.permute.xlu1 %6077 }
0x1ef3   : > { %v5948_v27 = vsub.f32 %v5932_v25, %v5944_v26  ;;  %11377 = vpow2.f32 %v5953_v32  ;;  %v6083_v54 = vsel %vm1223_vm9, %v6078_v51, 0 }
0x1ef5   : > { %v5955_v37 = vmul.f32 1.442695, %v5948_v27 }
0x1ef6   : > { %v6126_v52 = vpop.permute.xlu1 %6125 }
0x1ef7   : > { %11379 = vpow2.f32 %v5955_v37  ;;  %v6131_v16 = vsel %vm1223_vm9, %v6126_v52, 0 }
0x1ef8   : > { %v11374_v41 = vpop.eup %11373 }
0x1ef9   : > { %v5957_v8 = vsel %vm1168_vm8, %v11374_v41, 0.0 }
0x1efa   : > { %5958 = vadd.xlane.f32.xlu0 %v5957_v8 }
0x1efc   : > { %v11376_v19 = vpop.eup %11375 }
0x1efd   : > { %v5960_v49 = vsel %vm1168_vm8, %v11376_v19, 0.0 }
0x1efe   : > { %5961 = vadd.xlane.f32.xlu1 %v5960_v49 }
0x1f00   : > { %v11378_v63 = vpop.eup %11377 }
0x1f01   : > { %v5963_v2 = vsel %vm1168_vm8, %v11378_v63, 0.0 }
0x1f04   : > { %v11380_v3 = vpop.eup %11379 }
0x1f05   : > { %v5966_v44 = vsel %vm1168_vm8, %v11380_v3, 0.0 }
0x1f0f   : > { %6225 = vrot.lane.b32.xlu1 %v13027_v17, %s11779_s22 }
0x1f10   : > { %5981 = vrot.lane.b32.xlu0 %v13044_v4, %s11778_s4  ;;  %s14068_s4 = smov 108  }
0x1f2f   : > { %5964 = vadd.xlane.f32.xlu0 %v5963_v2 }
0x1f33   : > { %5967 = vadd.xlane.f32.xlu1 %v5966_v44 }
0x1f44   : > { %6223 = vrot.lane.b32.xlu1 %v13074_v18, %s11779_s22 }
0x1f45   : > { %6175 = vrot.lane.b32.xlu0 %v13044_v4, %s11779_s22 }
0x1f48   : > { %6325 = vrot.lane.b32.xlu1 %v13066_v48, %s11779_s22 }
0x1f49   : > { %6173 = vrot.lane.b32.xlu0 %v13064_v56, %s11779_s22 }
0x1f4c   : > { %6323 = vrot.lane.b32.xlu1 %v13090_v30, %s11779_s22 }
0x1f4d   : > { %6275 = vrot.lane.b32.xlu0 %v13062_v43, %s11779_s22 }
0x1f51   : > { %6273 = vrot.lane.b32.xlu0 %v13083_v35, %s11779_s22  ;;  %s14069_s22 = smov 76  }
0x1f83   : > { %v5959_v42 = vpop.xlane.xlu0 %5958 }
0x1f84   : > { %11381 = vrcp.f32 %v5959_v42 }
0x1f87   : > { %v5962_v13 = vpop.xlane.xlu1 %5961  ;;  %v5982_v20 = vpop.permute.xlu0 %5981 }
0x1f88   : > { %11383 = vrcp.f32 %v5962_v13  ;;  %v5987_v60 = vsel %vm1223_vm9, %v5982_v20, 0 }
0x1f89   : > { %10574 = vmatpush3.bf16.msra.mxu1 %v5987_v60 }
0x1f8a   : > { %10585 = vmatprep.subr.bf16.mxu1 %v14065_v6 }
0x1f8b   : > { %v6226_v57 = vpop.permute.xlu1 %6225 }
0x1f8c   : > { %v6231_v1 = vsel %vm973_vm5, %v6226_v57, 0 }
0x1f91   : > { %v11382_v0 = vpop.eup %11381 }
0x1f92   : > { %v5973_v61 = vmul.f32 %v11382_v0, %v11374_v41 }
0x1f94   : > { %v5977_v58 = vpack.c.bf16 %v5973_v61, %v5973_v61 }
0x1f95   : > { %v11384_v5 = vpop.eup %11383 }
0x1f96   : > { %v5974_v24 = vmul.f32 %v11384_v5, %v11376_v19  ;;  %10576 = vmatmul.mubr.msk.bf16.vlgmr.msra.gmra.mxu1 %vm1168_vm8, %v5977_v58 }
0x1f97   : > { %10586 = vmatpush3.bf16.msra.mxu1 %v6083_v54  ;;  %10587 = vmatprep.mubr.msk.bf16.mxu1 %vm11775_vm6, %v14065_v6 }
0x1f98   : > { %v5978_v28 = vpack.c.bf16 %v5974_v24, %v5974_v24  ;;  %10597 = vmatprep.subr.bf16.mxu1 %v14065_v6 }
0x1f9a   : > { %10582 = vmatmul.mubr.msk.bf16.vlgmr.msra.gmra.mxu0 %vm1168_vm8, %v5978_v28 }
0x1f9b   : > { %10592 = vmatpush3.bf16.msra.mxu0 %v6131_v16  ;;  %10593 = vmatprep.mubr.msk.bf16.mxu0 %vm11775_vm6, %v14065_v6 }
0x1f9c   : > { %10603 = vmatprep.subr.bf16.mxu0 %v14065_v6 }
0x1fb8   : > { %v5965_v22 = vpop.xlane.xlu0 %5964 }
0x1fb9   : > { %11385 = vrcp.f32 %v5965_v22 }
0x1fbc   : > { %v5968_v25 = vpop.xlane.xlu1 %5967  ;;  %v6176_v45 = vpop.permute.xlu0 %6175 }
0x1fbd   : > { %11387 = vrcp.f32 %v5968_v25  ;;  %v6181_v7 = vsel %vm973_vm5, %v6176_v45, 0 }
0x1fc0   : > { %v6174_v31 = vpop.permute.xlu0 %6173  ;;  %v6224_v34 = vpop.permute.xlu1 %6223 }
0x1fc4   : > { %v6276_v41 = vpop.permute.xlu0 %6275  ;;  %v6326_v19 = vpop.permute.xlu1 %6325 }
0x1fc5   : > { %v6281_v8 = vsel %vm973_vm5, %v6276_v41, 0  ;;  %v6331_v49 = vsel %vm973_vm5, %v6326_v19, 0 }
0x1fc6   : > { %v11386_v29 = vpop.eup %11385 }
0x1fc7   : > { %v5975_v36 = vmul.f32 %v11386_v29, %v11378_v63 }
0x1fc8   : > { %v6274_v62 = vpop.permute.xlu0 %6273  ;;  %v6324_v21 = vpop.permute.xlu1 %6323 }
0x1fc9   : > { %v5979_v47 = vpack.c.bf16 %v5975_v36, %v5975_v36 }
0x1fca   : > { %v11388_v46 = vpop.eup %11387 }
0x1fcb   : > { %v5976_v59 = vmul.f32 %v11388_v46, %v11380_v3  ;;  %10588 = vmatmul.mubr.msk.bf16.vlgmr.msra.gmra.mxu1 %vm1168_vm8, %v5979_v47 }
0x1fcc   : > { %10598 = vmatpush3.bf16.xpose.msra.mxu1 %v6181_v7  ;;  %10599 = vmatprep.mubr.msk.bf16.mxu1 %vm11775_vm6, %v14065_v6 }
0x1fcd   : > { %v5980_v38 = vpack.c.bf16 %v5976_v59, %v5976_v59  ;;  %10609 = vmatprep.subr.bf16.mxu1 %v14065_v6 }
0x1fcf   : > { %10594 = vmatmul.mubr.msk.bf16.vlgmr.msra.gmra.mxu0 %vm1168_vm8, %v5980_v38 }
0x1fd0   : > { %10604 = vmatpush3.bf16.xpose.msra.mxu0 %v6231_v1  ;;  %10605 = vmatprep.mubr.msk.bf16.mxu0 %vm11775_vm6, %v14065_v6 }
0x1fd1   : > { %10615 = vmatprep.subr.bf16.mxu0 %v14065_v6 }
0x1fd3   : > { %10600 = vmatmul.mubr.msk.bf16.vlgmr.msra.gmra.mxu1 %vm973_vm5, %v6174_v31 }
0x1fd4   : > { %10610 = vmatpush3.bf16.xpose.msra.mxu1 %v6281_v8  ;;  %10611 = vmatprep.mubr.msk.bf16.mxu1 %vm11775_vm6, %v14065_v6 }
0x1fd5   : > { %10621 = vmatprep.subr.bf16.mxu1 %v14065_v6 }
0x1fd7   : > { %10606 = vmatmul.mubr.msk.bf16.vlgmr.msra.gmra.mxu0 %vm973_vm5, %v6224_v34 }
0x1fd8   : > { %10616 = vmatpush3.bf16.xpose.msra.mxu0 %v6331_v49  ;;  %10617 = vmatprep.mubr.msk.bf16.mxu0 %vm11775_vm6, %v14065_v6 }
0x1fd9   : > { %10627 = vmatprep.subr.bf16.mxu0 %v14065_v6 }
0x1fdb   : > { %10612 = vmatmul.mubr.msk.bf16.vlgmr.msra.gmra.mxu1 %vm973_vm5, %v6274_v62 }
0x1fdc   : > { %10623 = vmatprep.mubr.msk.bf16.mxu1 %vm11775_vm6, %v14065_v6 }
0x1fdf   : > { %10618 = vmatmul.mubr.msk.bf16.vlgmr.msra.gmra.mxu0 %vm973_vm5, %v6324_v21 }
0x1fe0   : > { %10629 = vmatprep.mubr.msk.bf16.mxu0 %vm11775_vm6, %v14065_v6 }
0x2056   : > { %v13264_v26 = vpop.f32.mrf.mxu1 }
0x2058   : > { %v10577_v32 = vpop.f32.mrf.mxu1 }
0x205a   : > { %v6026_v27 = vpop.f32.mrf.mxu1  ;;  %v13266_v37 = vpop.f32.mrf.mxu0 }
0x205b   : > { %v11115_v63 = vpack.i.bf16 %v13266_v37, %v13264_v26 }
0x205c   : > { %v10578_v2 = vpop.f32.mrf.mxu1  ;;  %v10583_v3 = vpop.f32.mrf.mxu0 }
0x205e   : > { %v6074_v44 = vpop.f32.mrf.mxu0 }
0x2060   : > { %v10584_v51 = vpop.f32.mrf.mxu0 }
0x208b   : > { %v13270_v52 = vpop.f32.mrf.mxu1 }
0x208d   : > { %v10589_v42 = vpop.f32.mrf.mxu1 }
0x208f   : > { %v6122_v13 = vpop.f32.mrf.mxu1  ;;  %v13272_v20 = vpop.f32.mrf.mxu0 }
0x2091   : > { %v10590_v0 = vpop.f32.mrf.mxu1  ;;  %v10595_v61 = vpop.f32.mrf.mxu0 }
0x2093   : > { %v6170_v58 = vpop.f32.mrf.mxu0  ;;  %v6217_v5 = vpop.f32.mrf.mxu1 }
0x2094   : > { %v6373_v54 = vmul.f32 0.5, %v6217_v5 }
0x2095   : > { %v10596_v24 = vpop.f32.mrf.mxu0  ;;  %v10601_v28 = vpop.f32.mrf.mxu1 }
0x2096   : > { %v6377_v16 = vsel %vm12209_vm7, %v6373_v54, -1e+30 }
0x2097   : > { %v6220_v57 = vpop.f32.mrf.mxu1  ;;  %v6267_v22 = vpop.f32.mrf.mxu0  ;;  %v6381_v25 = vsel %vm1168_vm8, %v6377_v16, -inf }
0x2098   : > { %v6374_v45 = vmul.f32 0.5, %v6267_v22  ;;  %6382 = vmax.xlane.f32.xlu0 %v6381_v25 }
0x2099   : > { %v10602_v29 = vpop.f32.mrf.mxu1  ;;  %v10607_v36 = vpop.f32.mrf.mxu0 }
0x209a   : > { %v6378_v47 = vsel %vm12209_vm7, %v6374_v45, -1e+30 }
0x209b   : > { %v6270_v46 = vpop.f32.mrf.mxu0  ;;  %v6317_v31 = vpop.f32.mrf.mxu1  ;;  %v6384_v59 = vsel %vm1168_vm8, %v6378_v47, -inf }
0x209c   : > { %v6375_v7 = vmul.f32 0.5, %v6317_v31  ;;  %6385 = vmax.xlane.f32.xlu1 %v6384_v59 }
0x209d   : > { %v10608_v38 = vpop.f32.mrf.mxu0  ;;  %v10613_v34 = vpop.f32.mrf.mxu1 }
0x209e   : > { %v6379_v1 = vsel %vm12209_vm7, %v6375_v7, -1e+30 }
0x209f   : > { %v6320_v41 = vpop.f32.mrf.mxu1  ;;  %v6367_v8 = vpop.f32.mrf.mxu0  ;;  %v6387_v19 = vsel %vm1168_vm8, %v6379_v1, -inf }
0x20a0   : > { %v6376_v49 = vmul.f32 0.5, %v6367_v8  ;;  %6388 = vmax.xlane.f32.xlu0 %v6387_v19 }
0x20a1   : > { %v10614_v62 = vpop.f32.mrf.mxu1  ;;  %v10619_v21 = vpop.f32.mrf.mxu0 }
0x20a2   : > { %v6380_v32 = vsel %vm12209_vm7, %v6376_v49, -1e+30 }
0x20a3   : > { %v6370_v27 = vpop.f32.mrf.mxu0  ;;  %v6390_v2 = vsel %vm1168_vm8, %v6380_v32, -inf }
0x20a4   : > { %6391 = vmax.xlane.f32.xlu0 %v6390_v2 }
0x20a5   : > { %v10620_v3 = vpop.f32.mrf.mxu0 }
0x20ad   : > { %6477 = vrot.lane.b32.xlu1 %v13027_v17, %s11780_s2 }
0x20b1   : > { %6525 = vrot.lane.b32.xlu1 %v13062_v43, %s11780_s2 }
0x20b5   : > { %6573 = vrot.lane.b32.xlu1 %v13066_v48, %s11780_s2 }
0x2121   : > { %v6383_v44 = vpop.xlane.xlu0 %6382 }
0x2122   : > { %v6393_v51 = vsub.f32 %v6377_v16, %v6383_v44 }
0x2124   : > { %v6397_v42 = vmul.f32 1.442695, %v6393_v51 }
0x2125   : > { %v6386_v13 = vpop.xlane.xlu1 %6385 }
0x2126   : > { %11389 = vpow2.f32 %v6397_v42  ;;  %v6394_v0 = vsub.f32 %v6378_v47, %v6386_v13 }
0x2128   : > { %v6399_v61 = vmul.f32 1.442695, %v6394_v0 }
0x2129   : > { %v6478_v58 = vpop.permute.xlu1 %6477  ;;  %v6389_v16 = vpop.xlane.xlu0 %6388 }
0x212a   : > { %11391 = vpow2.f32 %v6399_v61  ;;  %v6483_v5 = vsel %vm1223_vm9, %v6478_v58, 0  ;;  %v6395_v22 = vsub.f32 %v6379_v1, %v6389_v16 }
0x212b   : > { %10628 = vmatpush3.bf16.msra.mxu0 %v6483_v5 }
0x212c   : > { %10639 = vmatprep.subr.bf16.mxu0 %v14065_v6  ;;  %v6401_v45 = vmul.f32 1.442695, %v6395_v22 }
0x212d   : > { %v6392_v25 = vpop.xlane.xlu0 %6391  ;;  %v6526_v7 = vpop.permute.xlu1 %6525 }
0x212e   : > { %v6396_v29 = vsub.f32 %v6380_v32, %v6392_v25  ;;  %11393 = vpow2.f32 %v6401_v45  ;;  %v6531_v32 = vsel %vm1223_vm9, %v6526_v7, 0 }
0x2130   : > { %v6403_v36 = vmul.f32 1.442695, %v6396_v29 }
0x2131   : > { %v6574_v38 = vpop.permute.xlu1 %6573 }
0x2132   : > { %11395 = vpow2.f32 %v6403_v36  ;;  %v6579_v3 = vsel %vm1223_vm9, %v6574_v38, 0 }
0x2133   : > { %v11390_v54 = vpop.eup %11389 }
0x2134   : > { %v6405_v24 = vsel %vm1168_vm8, %v11390_v54, 0.0 }
0x2135   : > { %6406 = vadd.xlane.f32.xlu0 %v6405_v24 }
0x2137   : > { %v11392_v28 = vpop.eup %11391 }
0x2138   : > { %v6408_v57 = vsel %vm1168_vm8, %v11392_v28, 0.0 }
0x2139   : > { %6409 = vadd.xlane.f32.xlu1 %v6408_v57 }
0x213b   : > { %v11394_v47 = vpop.eup %11393 }
0x213c   : > { %v6411_v46 = vsel %vm1168_vm8, %v11394_v47, 0.0 }
0x213f   : > { %v11396_v31 = vpop.eup %11395 }
0x2140   : > { %v6414_v59 = vsel %vm1168_vm8, %v11396_v31, 0.0 }
0x214a   : > { %6673 = vrot.lane.b32.xlu1 %v13027_v17, %s11781_s12 }
0x214b   : > { %6429 = vrot.lane.b32.xlu0 %v13044_v4, %s11780_s2  ;;  %s14070_s2 = smov 104  }
0x216a   : > { %6412 = vadd.xlane.f32.xlu0 %v6411_v46 }
0x216e   : > { %6415 = vadd.xlane.f32.xlu1 %v6414_v59 }
0x217f   : > { %6671 = vrot.lane.b32.xlu1 %v13074_v18, %s11781_s12 }
0x2180   : > { %6623 = vrot.lane.b32.xlu0 %v13044_v4, %s11781_s12 }
0x2183   : > { %6773 = vrot.lane.b32.xlu1 %v13066_v48, %s11781_s12 }
0x2184   : > { %6621 = vrot.lane.b32.xlu0 %v13064_v56, %s11781_s12 }
0x2187   : > { %6771 = vrot.lane.b32.xlu1 %v13090_v30, %s11781_s12 }
0x2188   : > { %6723 = vrot.lane.b32.xlu0 %v13062_v43, %s11781_s12 }
0x218c   : > { %6721 = vrot.lane.b32.xlu0 %v13083_v35, %s11781_s12  ;;  %s14071_s12 = smov 72  }
0x21be   : > { %v6407_v34 = vpop.xlane.xlu0 %6406 }
0x21bf   : > { %11397 = vrcp.f32 %v6407_v34 }
0x21c2   : > { %v6410_v1 = vpop.xlane.xlu1 %6409  ;;  %v6430_v41 = vpop.permute.xlu0 %6429 }
0x21c3   : > { %11399 = vrcp.f32 %v6410_v1  ;;  %v6435_v8 = vsel %vm1223_vm9, %v6430_v41, 0 }
0x21c4   : > { %10622 = vmatpush3.bf16.msra.mxu1 %v6435_v8 }
0x21c5   : > { %10633 = vmatprep.subr.bf16.mxu1 %v14065_v6 }
0x21c6   : > { %v6674_v44 = vpop.permute.xlu1 %6673 }
0x21c7   : > { %v6679_v22 = vsel %vm973_vm5, %v6674_v44, 0 }
0x21cc   : > { %v11398_v19 = vpop.eup %11397 }
0x21cd   : > { %v6421_v49 = vmul.f32 %v11398_v19, %v11390_v54 }
0x21cf   : > { %v6425_v62 = vpack.c.bf16 %v6421_v49, %v6421_v49 }
0x21d0   : > { %v11400_v21 = vpop.eup %11399 }
0x21d1   : > { %v6422_v27 = vmul.f32 %v11400_v21, %v11392_v28  ;;  %10624 = vmatmul.mubr.msk.bf16.vlgmr.msra.gmra.mxu1 %vm1168_vm8, %v6425_v62 }
0x21d2   : > { %10634 = vmatpush3.bf16.msra.mxu1 %v6531_v32  ;;  %10635 = vmatprep.mubr.msk.bf16.mxu1 %vm11775_vm6, %v14065_v6 }
0x21d3   : > { %v6426_v2 = vpack.c.bf16 %v6422_v27, %v6422_v27  ;;  %10645 = vmatprep.subr.bf16.mxu1 %v14065_v6 }
0x21d5   : > { %10630 = vmatmul.mubr.msk.bf16.vlgmr.msra.gmra.mxu0 %vm1168_vm8, %v6426_v2 }
0x21d6   : > { %10640 = vmatpush3.bf16.msra.mxu0 %v6579_v3  ;;  %10641 = vmatprep.mubr.msk.bf16.mxu0 %vm11775_vm6, %v14065_v6 }
0x21d7   : > { %10651 = vmatprep.subr.bf16.mxu0 %v14065_v6 }
0x21f3   : > { %v6413_v51 = vpop.xlane.xlu0 %6412 }
0x21f4   : > { %11401 = vrcp.f32 %v6413_v51 }
0x21f7   : > { %v6416_v42 = vpop.xlane.xlu1 %6415  ;;  %v6624_v13 = vpop.permute.xlu0 %6623 }
0x21f8   : > { %11403 = vrcp.f32 %v6416_v42  ;;  %v6629_v28 = vsel %vm973_vm5, %v6624_v13, 0 }
0x21fb   : > { %v6622_v54 = vpop.permute.xlu0 %6621  ;;  %v6672_v16 = vpop.permute.xlu1 %6671 }
0x21ff   : > { %v6724_v25 = vpop.permute.xlu0 %6723  ;;  %v6774_v29 = vpop.permute.xlu1 %6773 }
0x2200   : > { %v6729_v45 = vsel %vm973_vm5, %v6724_v25, 0  ;;  %v6779_v36 = vsel %vm973_vm5, %v6774_v29, 0 }
0x2201   : > { %v11402_v0 = vpop.eup %11401 }
0x2202   : > { %v6423_v61 = vmul.f32 %v11402_v0, %v11394_v47 }
0x2203   : > { %v6722_v47 = vpop.permute.xlu0 %6721  ;;  %v6772_v46 = vpop.permute.xlu1 %6771 }
0x2204   : > { %v6427_v58 = vpack.c.bf16 %v6423_v61, %v6423_v61 }
0x2205   : > { %v11404_v5 = vpop.eup %11403 }
0x2206   : > { %v6424_v24 = vmul.f32 %v11404_v5, %v11396_v31  ;;  %10636 = vmatmul.mubr.msk.bf16.vlgmr.msra.gmra.mxu1 %vm1168_vm8, %v6427_v58 }
0x2207   : > { %10646 = vmatpush3.bf16.xpose.msra.mxu1 %v6629_v28  ;;  %10647 = vmatprep.mubr.msk.bf16.mxu1 %vm11775_vm6, %v14065_v6 }
0x2208   : > { %v6428_v57 = vpack.c.bf16 %v6424_v24, %v6424_v24  ;;  %10657 = vmatprep.subr.bf16.mxu1 %v14065_v6 }
0x220a   : > { %10642 = vmatmul.mubr.msk.bf16.vlgmr.msra.gmra.mxu0 %vm1168_vm8, %v6428_v57 }
0x220b   : > { %10652 = vmatpush3.bf16.xpose.msra.mxu0 %v6679_v22  ;;  %10653 = vmatprep.mubr.msk.bf16.mxu0 %vm11775_vm6, %v14065_v6 }
0x220c   : > { %10663 = vmatprep.subr.bf16.mxu0 %v14065_v6 }
0x220e   : > { %10648 = vmatmul.mubr.msk.bf16.vlgmr.msra.gmra.mxu1 %vm973_vm5, %v6622_v54 }
0x220f   : > { %10658 = vmatpush3.bf16.xpose.msra.mxu1 %v6729_v45  ;;  %10659 = vmatprep.mubr.msk.bf16.mxu1 %vm11775_vm6, %v14065_v6 }
0x2210   : > { %10669 = vmatprep.subr.bf16.mxu1 %v14065_v6 }
0x2212   : > { %10654 = vmatmul.mubr.msk.bf16.vlgmr.msra.gmra.mxu0 %vm973_vm5, %v6672_v16 }
0x2213   : > { %10664 = vmatpush3.bf16.xpose.msra.mxu0 %v6779_v36  ;;  %10665 = vmatprep.mubr.msk.bf16.mxu0 %vm11775_vm6, %v14065_v6 }
0x2214   : > { %10675 = vmatprep.subr.bf16.mxu0 %v14065_v6 }
0x2216   : > { %10660 = vmatmul.mubr.msk.bf16.vlgmr.msra.gmra.mxu1 %vm973_vm5, %v6722_v47 }
0x2217   : > { %10671 = vmatprep.mubr.msk.bf16.mxu1 %vm11775_vm6, %v14065_v6 }
0x221a   : > { %10666 = vmatmul.mubr.msk.bf16.vlgmr.msra.gmra.mxu0 %vm973_vm5, %v6772_v46 }
0x221b   : > { %10677 = vmatprep.mubr.msk.bf16.mxu0 %vm11775_vm6, %v14065_v6 }
0x2291   : > { %v13356_v31 = vpop.f32.mrf.mxu1 }
0x2293   : > { %v10625_v59 = vpop.f32.mrf.mxu1 }
0x2295   : > { %v6474_v7 = vpop.f32.mrf.mxu1  ;;  %v13358_v38 = vpop.f32.mrf.mxu0 }
0x2296   : > { %v11125_v34 = vpack.i.bf16 %v13358_v38, %v13356_v31 }
0x2297   : > { %v10626_v1 = vpop.f32.mrf.mxu1  ;;  %v10631_v41 = vpop.f32.mrf.mxu0 }
0x2299   : > { %v6522_v8 = vpop.f32.mrf.mxu0 }
0x229b   : > { %v10632_v19 = vpop.f32.mrf.mxu0 }
0x22c6   : > { %v13362_v49 = vpop.f32.mrf.mxu1 }
0x22c8   : > { %v10637_v62 = vpop.f32.mrf.mxu1 }
0x22ca   : > { %v6570_v21 = vpop.f32.mrf.mxu1  ;;  %v13364_v32 = vpop.f32.mrf.mxu0 }
0x22cb   : > { %v14081_v31 = vpack.i.bf16 %v13364_v32, %v13362_v49 }
0x22cc   : > { %v10638_v2 = vpop.f32.mrf.mxu1  ;;  %v10643_v3 = vpop.f32.mrf.mxu0 }
0x22ce   : > { %v6618_v44 = vpop.f32.mrf.mxu0  ;;  %v6665_v51 = vpop.f32.mrf.mxu1 }
0x22cf   : > { %v6821_v42 = vmul.f32 0.5, %v6665_v51 }
0x22d0   : > { %v10644_v13 = vpop.f32.mrf.mxu0  ;;  %v10649_v0 = vpop.f32.mrf.mxu1 }
0x22d1   : > { %v6825_v61 = vsel %vm12209_vm7, %v6821_v42, -1e+30 }
0x22d2   : > { %v6668_v58 = vpop.f32.mrf.mxu1  ;;  %v6715_v5 = vpop.f32.mrf.mxu0  ;;  %v6829_v54 = vsel %vm1168_vm8, %v6825_v61, -inf }
0x22d3   : > { %v6822_v24 = vmul.f32 0.5, %v6715_v5  ;;  %6830 = vmax.xlane.f32.xlu0 %v6829_v54 }
0x22d4   : > { %v10650_v28 = vpop.f32.mrf.mxu1  ;;  %v10655_v57 = vpop.f32.mrf.mxu0 }
0x22d5   : > { %v6826_v16 = vsel %vm12209_vm7, %v6822_v24, -1e+30 }
0x22d6   : > { %v6718_v22 = vpop.f32.mrf.mxu0  ;;  %v6765_v25 = vpop.f32.mrf.mxu1  ;;  %v6832_v45 = vsel %vm1168_vm8, %v6826_v16, -inf }
0x22d7   : > { %v6823_v29 = vmul.f32 0.5, %v6765_v25  ;;  %6833 = vmax.xlane.f32.xlu1 %v6832_v45 }
0x22d8   : > { %v10656_v36 = vpop.f32.mrf.mxu0  ;;  %v10661_v47 = vpop.f32.mrf.mxu1 }
0x22d9   : > { %v6827_v46 = vsel %vm12209_vm7, %v6823_v29, -1e+30 }
0x22da   : > { %v6768_v59 = vpop.f32.mrf.mxu1  ;;  %v6815_v7 = vpop.f32.mrf.mxu0  ;;  %v6835_v1 = vsel %vm1168_vm8, %v6827_v46, -inf }
0x22db   : > { %v6824_v41 = vmul.f32 0.5, %v6815_v7  ;;  %6836 = vmax.xlane.f32.xlu0 %v6835_v1 }
0x22dc   : > { %v10662_v8 = vpop.f32.mrf.mxu1  ;;  %v10667_v19 = vpop.f32.mrf.mxu0 }
0x22dd   : > { %v6828_v62 = vsel %vm12209_vm7, %v6824_v41, -1e+30 }
0x22de   : > { %v6818_v21 = vpop.f32.mrf.mxu0  ;;  %v6838_v2 = vsel %vm1168_vm8, %v6828_v62, -inf }
0x22df   : > { %6839 = vmax.xlane.f32.xlu0 %v6838_v2 }
0x22e0   : > { %v10668_v3 = vpop.f32.mrf.mxu0 }
0x22e8   : > { %6925 = vrot.lane.b32.xlu1 %v13027_v17, %s11782_s14 }
0x22ec   : > { %6973 = vrot.lane.b32.xlu1 %v13062_v43, %s11782_s14 }
0x22f0   : > { %7021 = vrot.lane.b32.xlu1 %v13066_v48, %s11782_s14 }
0x235c   : > { %v6831_v44 = vpop.xlane.xlu0 %6830 }
0x235d   : > { %v6841_v51 = vsub.f32 %v6825_v61, %v6831_v44 }
0x235f   : > { %v6845_v42 = vmul.f32 1.442695, %v6841_v51 }
0x2360   : > { %v6834_v13 = vpop.xlane.xlu1 %6833 }
0x2361   : > { %11405 = vpow2.f32 %v6845_v42  ;;  %v6842_v0 = vsub.f32 %v6826_v16, %v6834_v13 }
0x2363   : > { %v6847_v58 = vmul.f32 1.442695, %v6842_v0 }
0x2364   : > { %v6926_v5 = vpop.permute.xlu1 %6925  ;;  %v6837_v61 = vpop.xlane.xlu0 %6836 }
0x2365   : > { %11407 = vpow2.f32 %v6847_v58  ;;  %v6931_v54 = vsel %vm1223_vm9, %v6926_v5, 0  ;;  %v6843_v16 = vsub.f32 %v6827_v46, %v6837_v61 }
0x2366   : > { %10676 = vmatpush3.bf16.msra.mxu0 %v6931_v54 }
0x2367   : > { %10687 = vmatprep.subr.bf16.mxu0 %v14065_v6  ;;  %v6849_v45 = vmul.f32 1.442695, %v6843_v16 }
0x2368   : > { %v6840_v25 = vpop.xlane.xlu0 %6839  ;;  %v6974_v46 = vpop.permute.xlu1 %6973 }
0x2369   : > { %v6844_v29 = vsub.f32 %v6828_v62, %v6840_v25  ;;  %11409 = vpow2.f32 %v6849_v45  ;;  %v6979_v42 = vsel %vm1223_vm9, %v6974_v46, 0 }
0x236b   : > { %v6851_v36 = vmul.f32 1.442695, %v6844_v29 }
0x236c   : > { %v7022_v41 = vpop.permute.xlu1 %7021 }
0x236d   : > { %11411 = vpow2.f32 %v6851_v36  ;;  %v7027_v58 = vsel %vm1223_vm9, %v7022_v41, 0 }
0x236e   : > { %v11406_v24 = vpop.eup %11405 }
0x236f   : > { %v6853_v28 = vsel %vm1168_vm8, %v11406_v24, 0.0 }
0x2370   : > { %6854 = vadd.xlane.f32.xlu0 %v6853_v28 }
0x2372   : > { %v11408_v57 = vpop.eup %11407 }
0x2373   : > { %v6856_v22 = vsel %vm1168_vm8, %v11408_v57, 0.0 }
0x2374   : > { %6857 = vadd.xlane.f32.xlu1 %v6856_v22 }
0x2376   : > { %v11410_v47 = vpop.eup %11409 }
0x2377   : > { %v6859_v59 = vsel %vm1168_vm8, %v11410_v47, 0.0 }
0x237a   : > { %v11412_v7 = vpop.eup %11411 }
0x237b   : > { %v6862_v1 = vsel %vm1168_vm8, %v11412_v7, 0.0 }
0x2385   : > { %7121 = vrot.lane.b32.xlu1 %v13027_v17, %s14066_s17 }
0x2386   : > { %6877 = vrot.lane.b32.xlu0 %v13044_v4, %s11782_s14  ;;  %s14072_s14 = smov 100  }
0x23a5   : > { %6860 = vadd.xlane.f32.xlu0 %v6859_v59 }
0x23a9   : > { %6863 = vadd.xlane.f32.xlu1 %v6862_v1 }
0x23ba   : > { %7119 = vrot.lane.b32.xlu1 %v13074_v18, %s14066_s17 }
0x23bb   : > { %7071 = vrot.lane.b32.xlu0 %v13044_v4, %s14066_s17 }
0x23be   : > { %7221 = vrot.lane.b32.xlu1 %v13066_v48, %s14066_s17 }
0x23bf   : > { %7069 = vrot.lane.b32.xlu0 %v13064_v56, %s14066_s17 }
0x23c2   : > { %7219 = vrot.lane.b32.xlu1 %v13090_v30, %s14066_s17 }
0x23c3   : > { %7171 = vrot.lane.b32.xlu0 %v13062_v43, %s14066_s17 }
0x23c7   : > { %7169 = vrot.lane.b32.xlu0 %v13083_v35, %s14066_s17  ;;  %s14087_s17 = sld [smem:[#allocation31_spill]] }
0x23f9   : > { %v6855_v8 = vpop.xlane.xlu0 %6854 }
0x23fa   : > { %11413 = vrcp.f32 %v6855_v8 }
0x23fd   : > { %v6858_v19 = vpop.xlane.xlu1 %6857  ;;  %v6878_v62 = vpop.permute.xlu0 %6877 }
0x23fe   : > { %11415 = vrcp.f32 %v6858_v19  ;;  %v6883_v21 = vsel %vm1223_vm9, %v6878_v62, 0 }
0x23ff   : > { %10670 = vmatpush3.bf16.msra.mxu1 %v6883_v21 }
0x2400   : > { %10681 = vmatprep.subr.bf16.mxu1 %v14065_v6 }
0x2401   : > { %v7122_v5 = vpop.permute.xlu1 %7121 }
0x2402   : > { %v7127_v1 = vsel %vm973_vm5, %v7122_v5, 0 }
0x2407   : > { %v11414_v2 = vpop.eup %11413 }
0x2408   : > { %v6869_v3 = vmul.f32 %v11414_v2, %v11406_v24 }
0x240a   : > { %v6873_v44 = vpack.c.bf16 %v6869_v3, %v6869_v3 }
0x240b   : > { %v11416_v51 = vpop.eup %11415 }
0x240c   : > { %v6870_v13 = vmul.f32 %v11416_v51, %v11408_v57  ;;  %10672 = vmatmul.mubr.msk.bf16.vlgmr.msra.gmra.mxu1 %vm1168_vm8, %v6873_v44 }
0x240d   : > { %10682 = vmatpush3.bf16.msra.mxu1 %v6979_v42  ;;  %10683 = vmatprep.mubr.msk.bf16.mxu1 %vm11775_vm6, %v14065_v6 }
0x240e   : > { %v6874_v0 = vpack.c.bf16 %v6870_v13, %v6870_v13  ;;  %10693 = vmatprep.subr.bf16.mxu1 %v14065_v6 }
0x2410   : > { %10678 = vmatmul.mubr.msk.bf16.vlgmr.msra.gmra.mxu0 %vm1168_vm8, %v6874_v0 }
0x2411   : > { %10688 = vmatpush3.bf16.msra.mxu0 %v7027_v58  ;;  %10689 = vmatprep.mubr.msk.bf16.mxu0 %vm11775_vm6, %v14065_v6 }
0x2412   : > { %10699 = vmatprep.subr.bf16.mxu0 %v14065_v6 }
0x242e   : > { %v6861_v54 = vpop.xlane.xlu0 %6860 }
0x242f   : > { %11417 = vrcp.f32 %v6861_v54 }
0x2432   : > { %v6864_v24 = vpop.xlane.xlu1 %6863  ;;  %v7072_v28 = vpop.permute.xlu0 %7071 }
0x2433   : > { %11419 = vrcp.f32 %v6864_v24  ;;  %v7077_v29 = vsel %vm973_vm5, %v7072_v28, 0 }
0x2436   : > { %v7070_v25 = vpop.permute.xlu0 %7069  ;;  %v7120_v59 = vpop.permute.xlu1 %7119 }
0x243a   : > { %v7222_v46 = vpop.permute.xlu1 %7221 }
0x243b   : > { %v7227_v41 = vsel %vm973_vm5, %v7222_v46, 0 }
0x243c   : > { %v11418_v57 = vpop.eup %11417 }
0x243d   : > { %v6871_v22 = vmul.f32 %v11418_v57, %v11410_v47  ;;  %v7172_v47 = vpop.permute.xlu0 %7171 }
0x243e   : > { %v7220_v19 = vpop.permute.xlu1 %7219 }
0x243f   : > { %v6875_v61 = vpack.c.bf16 %v6871_v22, %v6871_v22 }
0x2440   : > { %v11420_v16 = vpop.eup %11419 }
0x2441   : > { %v6872_v45 = vmul.f32 %v11420_v16, %v11412_v7  ;;  %10684 = vmatmul.mubr.msk.bf16.vlgmr.msra.gmra.mxu1 %vm1168_vm8, %v6875_v61  ;;  %v7177_v7 = vsel %vm973_vm5, %v7172_v47, 0  ;;  %v7170_v8 = vpop.permute.xlu0 %7169 }
0x2442   : > { %10694 = vmatpush3.bf16.xpose.msra.mxu1 %v7077_v29  ;;  %10695 = vmatprep.mubr.msk.bf16.mxu1 %vm11775_vm6, %v14065_v6 }
0x2443   : > { %v6876_v36 = vpack.c.bf16 %v6872_v45, %v6872_v45  ;;  %10705 = vmatprep.subr.bf16.mxu1 %v14065_v6 }
0x2445   : > { %10690 = vmatmul.mubr.msk.bf16.vlgmr.msra.gmra.mxu0 %vm1168_vm8, %v6876_v36 }
0x2446   : > { %10700 = vmatpush3.bf16.xpose.msra.mxu0 %v7127_v1  ;;  %10701 = vmatprep.mubr.msk.bf16.mxu0 %vm11775_vm6, %v14065_v6 }
0x2447   : > { %10711 = vmatprep.subr.bf16.mxu0 %v14065_v6 }
0x2449   : > { %10696 = vmatmul.mubr.msk.bf16.vlgmr.msra.gmra.mxu1 %vm973_vm5, %v7070_v25 }
0x244a   : > { %10706 = vmatpush3.bf16.xpose.msra.mxu1 %v7177_v7  ;;  %10707 = vmatprep.mubr.msk.bf16.mxu1 %vm11775_vm6, %v14065_v6 }
0x244b   : > { %10717 = vmatprep.subr.bf16.mxu1 %v14065_v6 }
0x244d   : > { %10702 = vmatmul.mubr.msk.bf16.vlgmr.msra.gmra.mxu0 %vm973_vm5, %v7120_v59 }
0x244e   : > { %10712 = vmatpush3.bf16.xpose.msra.mxu0 %v7227_v41  ;;  %10713 = vmatprep.mubr.msk.bf16.mxu0 %vm11775_vm6, %v14065_v6 }
0x244f   : > { %10723 = vmatprep.subr.bf16.mxu0 %v14065_v6 }
0x2451   : > { %10708 = vmatmul.mubr.msk.bf16.vlgmr.msra.gmra.mxu1 %vm973_vm5, %v7170_v8 }
0x2452   : > { %10719 = vmatprep.mubr.msk.bf16.mxu1 %vm11775_vm6, %v14065_v6 }
0x2455   : > { %10714 = vmatmul.mubr.msk.bf16.vlgmr.msra.gmra.mxu0 %vm973_vm5, %v7220_v19 }
0x2456   : > { %10725 = vmatprep.mubr.msk.bf16.mxu0 %vm11775_vm6, %v14065_v6 }
0x24cc   : > { %v13448_v62 = vpop.f32.mrf.mxu1 }
0x24ce   : > { %v10673_v21 = vpop.f32.mrf.mxu1 }
0x24d0   : > { %v6922_v2 = vpop.f32.mrf.mxu1  ;;  %v13450_v3 = vpop.f32.mrf.mxu0 }
0x24d1   : > { %v11135_v44 = vpack.i.bf16 %v13450_v3, %v13448_v62 }
0x24d2   : > { %v10674_v51 = vpop.f32.mrf.mxu1  ;;  %v10679_v42 = vpop.f32.mrf.mxu0 }
0x24d4   : > { %v6970_v13 = vpop.f32.mrf.mxu0 }
0x24d6   : > { %v10680_v0 = vpop.f32.mrf.mxu0 }
0x2501   : > { %v13454_v58 = vpop.f32.mrf.mxu1 }
0x2503   : > { %v10685_v5 = vpop.f32.mrf.mxu1 }
0x2505   : > { %v7018_v54 = vpop.f32.mrf.mxu1  ;;  %v13456_v24 = vpop.f32.mrf.mxu0 }
0x2506   : > { %v14082_v38 = vpack.i.bf16 %v13456_v24, %v13454_v58 }
0x2507   : > { %v10686_v57 = vpop.f32.mrf.mxu1  ;;  %v10691_v22 = vpop.f32.mrf.mxu0 }
0x2509   : > { %v7066_v61 = vpop.f32.mrf.mxu0  ;;  %v7113_v16 = vpop.f32.mrf.mxu1 }
0x250a   : > { %v7269_v25 = vmul.f32 0.5, %v7113_v16 }
0x250b   : > { %v10692_v45 = vpop.f32.mrf.mxu0  ;;  %v10697_v29 = vpop.f32.mrf.mxu1 }
0x250c   : > { %v7273_v36 = vsel %vm12209_vm7, %v7269_v25, -1e+30 }
0x250d   : > { %v7116_v59 = vpop.f32.mrf.mxu1  ;;  %v7163_v1 = vpop.f32.mrf.mxu0  ;;  %v7277_v47 = vsel %vm1168_vm8, %v7273_v36, -inf }
0x250e   : > { %v7270_v7 = vmul.f32 0.5, %v7163_v1  ;;  %7278 = vmax.xlane.f32.xlu0 %v7277_v47 }
0x250f   : > { %v10698_v46 = vpop.f32.mrf.mxu1  ;;  %v10703_v41 = vpop.f32.mrf.mxu0 }
0x2510   : > { %v7274_v8 = vsel %vm12209_vm7, %v7270_v7, -1e+30 }
0x2511   : > { %v7166_v19 = vpop.f32.mrf.mxu0  ;;  %v7213_v21 = vpop.f32.mrf.mxu1  ;;  %v7280_v2 = vsel %vm1168_vm8, %v7274_v8, -inf }
0x2512   : > { %v7271_v51 = vmul.f32 0.5, %v7213_v21  ;;  %7281 = vmax.xlane.f32.xlu1 %v7280_v2 }
0x2513   : > { %v10704_v42 = vpop.f32.mrf.mxu0  ;;  %v10709_v13 = vpop.f32.mrf.mxu1 }
0x2514   : > { %v7275_v0 = vsel %vm12209_vm7, %v7271_v51, -1e+30 }
0x2515   : > { %v7216_v5 = vpop.f32.mrf.mxu1  ;;  %v7263_v54 = vpop.f32.mrf.mxu0  ;;  %v7283_v57 = vsel %vm1168_vm8, %v7275_v0, -inf }
0x2516   : > { %v7272_v22 = vmul.f32 0.5, %v7263_v54  ;;  %7284 = vmax.xlane.f32.xlu0 %v7283_v57 }
0x2517   : > { %v10710_v61 = vpop.f32.mrf.mxu1  ;;  %v10715_v16 = vpop.f32.mrf.mxu0 }
0x2518   : > { %v7276_v25 = vsel %vm12209_vm7, %v7272_v22, -1e+30 }
0x2519   : > { %v7266_v45 = vpop.f32.mrf.mxu0  ;;  %v7286_v29 = vsel %vm1168_vm8, %v7276_v25, -inf }
0x251a   : > { %7287 = vmax.xlane.f32.xlu0 %v7286_v29 }
0x251b   : > { %v10716_v59 = vpop.f32.mrf.mxu0 }
0x2523   : > { %7373 = vrot.lane.b32.xlu1 %v13027_v17, %s14067_s25 }
0x2527   : > { %7421 = vrot.lane.b32.xlu1 %v13062_v43, %s14067_s25 }
0x252b   : > { %7469 = vrot.lane.b32.xlu1 %v13066_v48, %s14067_s25 }
0x2597   : > { %v7279_v1 = vpop.xlane.xlu0 %7278 }
0x2598   : > { %v7289_v47 = vsub.f32 %v7273_v36, %v7279_v1 }
0x259a   : > { %v7293_v7 = vmul.f32 1.442695, %v7289_v47 }
0x259b   : > { %v7282_v46 = vpop.xlane.xlu1 %7281 }
0x259c   : > { %11421 = vpow2.f32 %v7293_v7  ;;  %v7290_v41 = vsub.f32 %v7274_v8, %v7282_v46 }
0x259e   : > { %v7295_v19 = vmul.f32 1.442695, %v7290_v41 }
0x259f   : > { %v7374_v21 = vpop.permute.xlu1 %7373  ;;  %v7285_v36 = vpop.xlane.xlu0 %7284 }
0x25a0   : > { %11423 = vpow2.f32 %v7295_v19  ;;  %v7379_v2 = vsel %vm1223_vm9, %v7374_v21, 0  ;;  %v7291_v8 = vsub.f32 %v7275_v0, %v7285_v36 }
0x25a1   : > { %10724 = vmatpush3.bf16.msra.mxu0 %v7379_v2 }
0x25a2   : > { %10735 = vmatprep.subr.bf16.mxu0 %v14065_v6  ;;  %v7297_v57 = vmul.f32 1.442695, %v7291_v8 }
0x25a3   : > { %v7288_v54 = vpop.xlane.xlu0 %7287  ;;  %v7422_v0 = vpop.permute.xlu1 %7421 }
0x25a4   : > { %v7292_v22 = vsub.f32 %v7276_v25, %v7288_v54  ;;  %11425 = vpow2.f32 %v7297_v57 }
0x25a6   : > { %v7299_v61 = vmul.f32 1.442695, %v7292_v22 }
0x25a7   : > { %v7470_v25 = vpop.permute.xlu1 %7469 }
0x25a8   : > { %11427 = vpow2.f32 %v7299_v61  ;;  %v7475_v8 = vsel %vm1223_vm9, %v7470_v25, 0 }
0x25a9   : > { %v11422_v51 = vpop.eup %11421 }
0x25aa   : > { %v7301_v42 = vsel %vm1168_vm8, %v11422_v51, 0.0 }
0x25ab   : > { %7302 = vadd.xlane.f32.xlu0 %v7301_v42  ;;  %v7427_v42 = vsel %vm1223_vm9, %v7422_v0, 0 }
0x25ad   : > { %v11424_v13 = vpop.eup %11423 }
0x25ae   : > { %v7304_v5 = vsel %vm1168_vm8, %v11424_v13, 0.0 }
0x25af   : > { %7305 = vadd.xlane.f32.xlu1 %v7304_v5 }
0x25b1   : > { %v11426_v16 = vpop.eup %11425 }
0x25b2   : > { %v7307_v45 = vsel %vm1168_vm8, %v11426_v16, 0.0 }
0x25b5   : > { %v11428_v29 = vpop.eup %11427 }
0x25b6   : > { %v7310_v59 = vsel %vm1168_vm8, %v11428_v29, 0.0 }
0x25c0   : > { %7569 = vrot.lane.b32.xlu1 %v13027_v17, %s14068_s4 }
0x25c1   : > { %7325 = vrot.lane.b32.xlu0 %v13044_v4, %s14067_s25  ;;  %s14088_s25 = sshll.u32 %s12085_s19, 5 }
0x25e0   : > { %7308 = vadd.xlane.f32.xlu0 %v7307_v45 }
0x25e4   : > { %7311 = vadd.xlane.f32.xlu1 %v7310_v59 }
0x25f5   : > { %7567 = vrot.lane.b32.xlu1 %v13074_v18, %s14068_s4 }
0x25f6   : > { %7519 = vrot.lane.b32.xlu0 %v13044_v4, %s14068_s4 }
0x25f9   : > { %7669 = vrot.lane.b32.xlu1 %v13066_v48, %s14068_s4 }
0x25fa   : > { %7517 = vrot.lane.b32.xlu0 %v13064_v56, %s14068_s4 }
0x25fd   : > { %7667 = vrot.lane.b32.xlu1 %v13090_v30, %s14068_s4 }
0x25fe   : > { %7619 = vrot.lane.b32.xlu0 %v13062_v43, %s14068_s4 }
0x2602   : > { %7617 = vrot.lane.b32.xlu0 %v13083_v35, %s14068_s4  ;;  %s678_s4 = scalar_lea.vmem [#allocation14], %s14088_s25 }
0x2634   : > { %v7303_v1 = vpop.xlane.xlu0 %7302 }
0x2635   : > { %11429 = vrcp.f32 %v7303_v1 }
0x2638   : > { %v7306_v47 = vpop.xlane.xlu1 %7305  ;;  %v7326_v7 = vpop.permute.xlu0 %7325 }
0x2639   : > { %11431 = vrcp.f32 %v7306_v47  ;;  %v7331_v46 = vsel %vm1223_vm9, %v7326_v7, 0 }
0x263a   : > { %10718 = vmatpush3.bf16.msra.mxu1 %v7331_v46 }
0x263b   : > { %10729 = vmatprep.subr.bf16.mxu1 %v14065_v6 }
0x2642   : > { %v11430_v41 = vpop.eup %11429 }
0x2643   : > { %v7317_v19 = vmul.f32 %v11430_v41, %v11422_v51  ;;  %v7570_v51 = vpop.permute.xlu1 %7569 }
0x2644   : > { %v7575_v46 = vsel %vm973_vm5, %v7570_v51, 0 }
0x2645   : > { %v7321_v21 = vpack.c.bf16 %v7317_v19, %v7317_v19 }
0x2646   : > { %v11432_v2 = vpop.eup %11431 }
0x2647   : > { %v7318_v5 = vmul.f32 %v11432_v2, %v11424_v13  ;;  %10720 = vmatmul.mubr.msk.bf16.vlgmr.msra.gmra.mxu1 %vm1168_vm8, %v7321_v21 }
0x2648   : > { %10730 = vmatpush3.bf16.msra.mxu1 %v7427_v42  ;;  %10731 = vmatprep.mubr.msk.bf16.mxu1 %vm11775_vm6, %v14065_v6 }
0x2649   : > { %v7322_v36 = vpack.c.bf16 %v7318_v5, %v7318_v5  ;;  %10741 = vmatprep.subr.bf16.mxu1 %v14065_v6 }
0x264b   : > { %10726 = vmatmul.mubr.msk.bf16.vlgmr.msra.gmra.mxu0 %vm1168_vm8, %v7322_v36 }
0x264c   : > { %10736 = vmatpush3.bf16.msra.mxu0 %v7475_v8  ;;  %10737 = vmatprep.mubr.msk.bf16.mxu0 %vm11775_vm6, %v14065_v6 }
0x264d   : > { %10747 = vmatprep.subr.bf16.mxu0 %v14065_v6 }
0x2669   : > { %v7309_v13 = vpop.xlane.xlu0 %7308 }
0x266a   : > { %11433 = vrcp.f32 %v7309_v13 }
0x266d   : > { %v7312_v54 = vpop.xlane.xlu1 %7311  ;;  %v7520_v57 = vpop.permute.xlu0 %7519 }
0x266e   : > { %11435 = vrcp.f32 %v7312_v54  ;;  %v7525_v1 = vsel %vm973_vm5, %v7520_v57, 0 }
0x2671   : > { %v7518_v0 = vpop.permute.xlu0 %7517  ;;  %v7568_v7 = vpop.permute.xlu1 %7567 }
0x2675   : > { %v7670_v41 = vpop.permute.xlu1 %7669 }
0x2676   : > { %v7675_v19 = vsel %vm973_vm5, %v7670_v41, 0 }
0x2677   : > { %v11434_v22 = vpop.eup %11433 }
0x2678   : > { %v7319_v61 = vmul.f32 %v11434_v22, %v11426_v16  ;;  %v7620_v16 = vpop.permute.xlu0 %7619 }
0x2679   : > { %v7668_v2 = vpop.permute.xlu1 %7667 }
0x267a   : > { %v7323_v45 = vpack.c.bf16 %v7319_v61, %v7319_v61 }
0x267b   : > { %v11436_v59 = vpop.eup %11435 }
0x267c   : > { %v7320_v25 = vmul.f32 %v11436_v59, %v11428_v29  ;;  %10732 = vmatmul.mubr.msk.bf16.vlgmr.msra.gmra.mxu1 %vm1168_vm8, %v7323_v45  ;;  %v7625_v29 = vsel %vm973_vm5, %v7620_v16, 0  ;;  %v7618_v21 = vpop.permute.xlu0 %7617 }
0x267d   : > { %10742 = vmatpush3.bf16.xpose.msra.mxu1 %v7525_v1  ;;  %10743 = vmatprep.mubr.msk.bf16.mxu1 %vm11775_vm6, %v14065_v6 }
0x267e   : > { %v7324_v47 = vpack.c.bf16 %v7320_v25, %v7320_v25  ;;  %10753 = vmatprep.subr.bf16.mxu1 %v14065_v6 }
0x2680   : > { %10738 = vmatmul.mubr.msk.bf16.vlgmr.msra.gmra.mxu0 %vm1168_vm8, %v7324_v47 }
0x2681   : > { %10748 = vmatpush3.bf16.xpose.msra.mxu0 %v7575_v46  ;;  %10749 = vmatprep.mubr.msk.bf16.mxu0 %vm11775_vm6, %v14065_v6 }
0x2682   : > { %10759 = vmatprep.subr.bf16.mxu0 %v14065_v6 }
0x2684   : > { %10744 = vmatmul.mubr.msk.bf16.vlgmr.msra.gmra.mxu1 %vm973_vm5, %v7518_v0 }
0x2685   : > { %10754 = vmatpush3.bf16.xpose.msra.mxu1 %v7625_v29  ;;  %10755 = vmatprep.mubr.msk.bf16.mxu1 %vm11775_vm6, %v14065_v6 }
0x2686   : > { %10765 = vmatprep.subr.bf16.mxu1 %v14065_v6 }
0x2688   : > { %10750 = vmatmul.mubr.msk.bf16.vlgmr.msra.gmra.mxu0 %vm973_vm5, %v7568_v7 }
0x2689   : > { %10760 = vmatpush3.bf16.xpose.msra.mxu0 %v7675_v19  ;;  %10761 = vmatprep.mubr.msk.bf16.mxu0 %vm11775_vm6, %v14065_v6 }
0x268a   : > { %10771 = vmatprep.subr.bf16.mxu0 %v14065_v6 }
0x268c   : > { %10756 = vmatmul.mubr.msk.bf16.vlgmr.msra.gmra.mxu1 %vm973_vm5, %v7618_v21 }
0x268d   : > { %10767 = vmatprep.mubr.msk.bf16.mxu1 %vm11775_vm6, %v14065_v6 }
0x2690   : > { %10762 = vmatmul.mubr.msk.bf16.vlgmr.msra.gmra.mxu0 %vm973_vm5, %v7668_v2 }
0x2691   : > { %10773 = vmatprep.mubr.msk.bf16.mxu0 %vm11775_vm6, %v14065_v6 }
0x2707   : > { %v13540_v42 = vpop.f32.mrf.mxu1 }
0x2709   : > { %v10721_v5 = vpop.f32.mrf.mxu1 }
0x270b   : > { %v7370_v36 = vpop.f32.mrf.mxu1  ;;  %v13542_v8 = vpop.f32.mrf.mxu0 }
0x270d   : > { %v10722_v13 = vpop.f32.mrf.mxu1  ;;  %v10727_v54 = vpop.f32.mrf.mxu0 }
0x270f   : > { %v7418_v57 = vpop.f32.mrf.mxu0 }
0x2711   : > { %v10728_v22 = vpop.f32.mrf.mxu0 }
0x273c   : > { %v13546_v61 = vpop.f32.mrf.mxu1 }
0x273e   : > { %v10733_v45 = vpop.f32.mrf.mxu1 }
0x2740   : > { %v7466_v59 = vpop.f32.mrf.mxu1  ;;  %v13548_v0 = vpop.f32.mrf.mxu0 }
0x2742   : > { %v10734_v1 = vpop.f32.mrf.mxu1  ;;  %v10739_v47 = vpop.f32.mrf.mxu0 }
0x2744   : > { %v7514_v7 = vpop.f32.mrf.mxu0  ;;  %v7561_v46 = vpop.f32.mrf.mxu1 }
0x2745   : > { %v7717_v16 = vmul.f32 0.5, %v7561_v46 }
0x2746   : > { %v10740_v29 = vpop.f32.mrf.mxu0  ;;  %v10745_v41 = vpop.f32.mrf.mxu1 }
0x2747   : > { %v7721_v19 = vsel %vm12209_vm7, %v7717_v16, -1e+30 }
0x2748   : > { %v7564_v21 = vpop.f32.mrf.mxu1  ;;  %v7611_v2 = vpop.f32.mrf.mxu0  ;;  %v7725_v5 = vsel %vm1168_vm8, %v7721_v19, -inf }
0x2749   : > { %v7718_v36 = vmul.f32 0.5, %v7611_v2  ;;  %7726 = vmax.xlane.f32.xlu0 %v7725_v5 }
0x274a   : > { %v10746_v13 = vpop.f32.mrf.mxu1  ;;  %v10751_v54 = vpop.f32.mrf.mxu0 }
0x274b   : > { %v7722_v57 = vsel %vm12209_vm7, %v7718_v36, -1e+30 }
0x274c   : > { %v7614_v22 = vpop.f32.mrf.mxu0  ;;  %v7661_v45 = vpop.f32.mrf.mxu1  ;;  %v7728_v59 = vsel %vm1168_vm8, %v7722_v57, -inf }
0x274d   : > { %v7719_v1 = vmul.f32 0.5, %v7661_v45  ;;  %7729 = vmax.xlane.f32.xlu1 %v7728_v59 }
0x274e   : > { %v10752_v47 = vpop.f32.mrf.mxu0  ;;  %v10757_v7 = vpop.f32.mrf.mxu1 }
0x274f   : > { %v7723_v46 = vsel %vm12209_vm7, %v7719_v1, -1e+30 }
0x2750   : > { %v7664_v16 = vpop.f32.mrf.mxu1  ;;  %v7711_v29 = vpop.f32.mrf.mxu0  ;;  %v7731_v41 = vsel %vm1168_vm8, %v7723_v46, -inf }
0x2751   : > { %v7720_v21 = vmul.f32 0.5, %v7711_v29  ;;  %7732 = vmax.xlane.f32.xlu0 %v7731_v41 }
0x2752   : > { %v10758_v2 = vpop.f32.mrf.mxu1  ;;  %v10763_v5 = vpop.f32.mrf.mxu0 }
0x2753   : > { %v7724_v36 = vsel %vm12209_vm7, %v7720_v21, -1e+30 }
0x2754   : > { %v7714_v13 = vpop.f32.mrf.mxu0  ;;  %v7734_v54 = vsel %vm1168_vm8, %v7724_v36, -inf }
0x2755   : > { %7735 = vmax.xlane.f32.xlu0 %v7734_v54 }
0x2756   : > { %v10764_v22 = vpop.f32.mrf.mxu0 }
0x275e   : > { %7821 = vrot.lane.b32.xlu1 %v13027_v17, %s14069_s22 }
0x2762   : > { %7869 = vrot.lane.b32.xlu1 %v13062_v43, %s14069_s22 }
0x2766   : > { %7917 = vrot.lane.b32.xlu1 %v13066_v48, %s14069_s22 }
0x27d2   : > { %v7727_v45 = vpop.xlane.xlu0 %7726 }
0x27d3   : > { %v7737_v59 = vsub.f32 %v7721_v19, %v7727_v45 }
0x27d5   : > { %v7741_v1 = vmul.f32 1.442695, %v7737_v59 }
0x27d6   : > { %v7730_v47 = vpop.xlane.xlu1 %7729 }
0x27d7   : > { %11437 = vpow2.f32 %v7741_v1  ;;  %v7738_v7 = vsub.f32 %v7722_v57, %v7730_v47 }
0x27d9   : > { %v7743_v16 = vmul.f32 1.442695, %v7738_v7 }
0x27da   : > { %v7822_v29 = vpop.permute.xlu1 %7821  ;;  %v7733_v19 = vpop.xlane.xlu0 %7732 }
0x27db   : > { %11439 = vpow2.f32 %v7743_v16  ;;  %v7827_v41 = vsel %vm1223_vm9, %v7822_v29, 0  ;;  %v7739_v57 = vsub.f32 %v7723_v46, %v7733_v19 }
0x27dc   : > { %10772 = vmatpush3.bf16.msra.mxu0 %v7827_v41 }
0x27dd   : > { %10783 = vmatprep.subr.bf16.mxu0 %v14065_v6  ;;  %v7745_v22 = vmul.f32 1.442695, %v7739_v57 }
0x27de   : > { %v7736_v54 = vpop.xlane.xlu0 %7735  ;;  %v7870_v46 = vpop.permute.xlu1 %7869 }
0x27df   : > { %v7740_v45 = vsub.f32 %v7724_v36, %v7736_v54  ;;  %11441 = vpow2.f32 %v7745_v22 }
0x27e1   : > { %v7747_v59 = vmul.f32 1.442695, %v7740_v45  ;;  %v7875_v45 = vsel %vm1223_vm9, %v7870_v46, 0 }
0x27e2   : > { %v7918_v36 = vpop.permute.xlu1 %7917 }
0x27e3   : > { %11443 = vpow2.f32 %v7747_v59 }
0x27e4   : > { %v11438_v21 = vpop.eup %11437 }
0x27e5   : > { %v7749_v2 = vsel %vm1168_vm8, %v11438_v21, 0.0 }
0x27e6   : > { %7750 = vadd.xlane.f32.xlu0 %v7749_v2 }
0x27e8   : > { %v11440_v5 = vpop.eup %11439 }
0x27e9   : > { %v7752_v13 = vsel %vm1168_vm8, %v11440_v5, 0.0 }
0x27ea   : > { %7753 = vadd.xlane.f32.xlu1 %v7752_v13 }
0x27ec   : > { %v11442_v1 = vpop.eup %11441 }
0x27ed   : > { %v7755_v47 = vsel %vm1168_vm8, %v11442_v1, 0.0 }
0x27f0   : > { %v11444_v7 = vpop.eup %11443 }
0x27f1   : > { %v7758_v16 = vsel %vm1168_vm8, %v11444_v7, 0.0 }
0x27fb   : > { %8017 = vrot.lane.b32.xlu1 %v13027_v17, %s14070_s2 }
0x27fc   : > { %7773 = vrot.lane.b32.xlu0 %v13044_v4, %s14069_s22  ;;  %s9764_s22 = sshll.u32 %s11916_s1, 9  ;;  %s9393_s1 = scalar_lea.sflag [#allocation4], %s12085_s19 }
0x281b   : > { %7756 = vadd.xlane.f32.xlu0 %v7755_v47 }
0x281f   : > { %7759 = vadd.xlane.f32.xlu1 %v7758_v16  ;;  %v7923_v16 = vsel %vm1223_vm9, %v7918_v36, 0 }
0x2830   : > { %8015 = vrot.lane.b32.xlu1 %v13074_v18, %s14070_s2 }
0x2831   : > { %7967 = vrot.lane.b32.xlu0 %v13044_v4, %s14070_s2 }
0x2834   : > { %8117 = vrot.lane.b32.xlu1 %v13066_v48, %s14070_s2 }
0x2835   : > { %7965 = vrot.lane.b32.xlu0 %v13064_v56, %s14070_s2 }
0x2838   : > { %8115 = vrot.lane.b32.xlu1 %v13090_v30, %s14070_s2 }
0x2839   : > { %8067 = vrot.lane.b32.xlu0 %v13062_v43, %s14070_s2 }
0x283d   : > { %8065 = vrot.lane.b32.xlu0 %v13083_v35, %s14070_s2  ;;  %s9406_s2 = sshll.u32 %s678_s4, 4  ;;  %s13918_s2 = int_to_ptr.vmem [resolvable:$true] %s9406_s2 }
0x286f   : > { %v7751_v29 = vpop.xlane.xlu0 %7750 }
0x2870   : > { %11445 = vrcp.f32 %v7751_v29 }
0x2873   : > { %v7754_v41 = vpop.xlane.xlu1 %7753  ;;  %v7774_v2 = vpop.permute.xlu0 %7773 }
0x2874   : > { %11447 = vrcp.f32 %v7754_v41  ;;  %v7779_v13 = vsel %vm1223_vm9, %v7774_v2, 0 }
0x2875   : > { %10766 = vmatpush3.bf16.msra.mxu1 %v7779_v13 }
0x2876   : > { %10777 = vmatprep.subr.bf16.mxu1 %v14065_v6 }
0x287d   : > { %v11446_v19 = vpop.eup %11445 }
0x287e   : > { %v7765_v57 = vmul.f32 %v11446_v19, %v11438_v21  ;;  %v8018_v21 = vpop.permute.xlu1 %8017 }
0x2880   : > { %v7769_v54 = vpack.c.bf16 %v7765_v57, %v7765_v57 }
0x2881   : > { %v11448_v22 = vpop.eup %11447 }
0x2882   : > { %v7766_v59 = vmul.f32 %v11448_v22, %v11440_v5  ;;  %10768 = vmatmul.mubr.msk.bf16.vlgmr.msra.gmra.mxu1 %vm1168_vm8, %v7769_v54 }
0x2883   : > { %10778 = vmatpush3.bf16.msra.mxu1 %v7875_v45  ;;  %10779 = vmatprep.mubr.msk.bf16.mxu1 %vm11775_vm6, %v14065_v6 }
0x2884   : > { %v7770_v47 = vpack.c.bf16 %v7766_v59, %v7766_v59  ;;  %10789 = vmatprep.subr.bf16.mxu1 %v14065_v6  ;;  %v8023_v59 = vsel %vm973_vm5, %v8018_v21, 0 }
0x2886   : > { %10774 = vmatmul.mubr.msk.bf16.vlgmr.msra.gmra.mxu0 %vm1168_vm8, %v7770_v47 }
0x2887   : > { %10784 = vmatpush3.bf16.msra.mxu0 %v7923_v16  ;;  %10785 = vmatprep.mubr.msk.bf16.mxu0 %vm11775_vm6, %v14065_v6 }
0x2888   : > { %10795 = vmatprep.subr.bf16.mxu0 %v14065_v6 }
0x28a4   : > { %v7757_v5 = vpop.xlane.xlu0 %7756 }
0x28a5   : > { %11449 = vrcp.f32 %v7757_v5 }
0x28a8   : > { %v7760_v46 = vpop.xlane.xlu1 %7759  ;;  %v7968_v29 = vpop.permute.xlu0 %7967 }
0x28a9   : > { %11451 = vrcp.f32 %v7760_v46  ;;  %v7973_v54 = vsel %vm973_vm5, %v7968_v29, 0 }
0x28ac   : > { %v7966_v57 = vpop.permute.xlu0 %7965  ;;  %v8016_v45 = vpop.permute.xlu1 %8015 }
0x28b0   : > { %v8118_v47 = vpop.permute.xlu1 %8117 }
0x28b1   : > { %v8123_v16 = vsel %vm973_vm5, %v8118_v47, 0 }
0x28b2   : > { %v11450_v41 = vpop.eup %11449 }
0x28b3   : > { %v7767_v2 = vmul.f32 %v11450_v41, %v11442_v1  ;;  %v8068_v1 = vpop.permute.xlu0 %8067 }
0x28b4   : > { %v8116_v5 = vpop.permute.xlu1 %8115 }
0x28b5   : > { %v7771_v13 = vpack.c.bf16 %v7767_v2, %v7767_v2 }
0x28b6   : > { %v11452_v19 = vpop.eup %11451 }
0x28b7   : > { %v7768_v36 = vmul.f32 %v11452_v19, %v11444_v7  ;;  %10780 = vmatmul.mubr.msk.bf16.vlgmr.msra.gmra.mxu1 %vm1168_vm8, %v7771_v13  ;;  %v8073_v7 = vsel %vm973_vm5, %v8068_v1, 0  ;;  %v8066_v21 = vpop.permute.xlu0 %8065 }
0x28b8   : > { %10790 = vmatpush3.bf16.xpose.msra.mxu1 %v7973_v54  ;;  %10791 = vmatprep.mubr.msk.bf16.mxu1 %vm11775_vm6, %v14065_v6 }
0x28b9   : > { %v7772_v22 = vpack.c.bf16 %v7768_v36, %v7768_v36  ;;  %10801 = vmatprep.subr.bf16.mxu1 %v14065_v6 }
0x28bb   : > { %10786 = vmatmul.mubr.msk.bf16.vlgmr.msra.gmra.mxu0 %vm1168_vm8, %v7772_v22 }
0x28bc   : > { %10796 = vmatpush3.bf16.xpose.msra.mxu0 %v8023_v59  ;;  %10797 = vmatprep.mubr.msk.bf16.mxu0 %vm11775_vm6, %v14065_v6 }
0x28bd   : > { %10807 = vmatprep.subr.bf16.mxu0 %v14065_v6 }
0x28bf   : > { %10792 = vmatmul.mubr.msk.bf16.vlgmr.msra.gmra.mxu1 %vm973_vm5, %v7966_v57 }
0x28c0   : > { %10802 = vmatpush3.bf16.xpose.msra.mxu1 %v8073_v7  ;;  %10803 = vmatprep.mubr.msk.bf16.mxu1 %vm11775_vm6, %v14065_v6 }
0x28c1   : > { %10813 = vmatprep.subr.bf16.mxu1 %v14065_v6 }
0x28c3   : > { %10798 = vmatmul.mubr.msk.bf16.vlgmr.msra.gmra.mxu0 %vm973_vm5, %v8016_v45 }
0x28c4   : > { %10808 = vmatpush3.bf16.xpose.msra.mxu0 %v8123_v16  ;;  %10809 = vmatprep.mubr.msk.bf16.mxu0 %vm11775_vm6, %v14065_v6 }
0x28c5   : > { %10819 = vmatprep.subr.bf16.mxu0 %v14065_v6 }
0x28c7   : > { %10804 = vmatmul.mubr.msk.bf16.vlgmr.msra.gmra.mxu1 %vm973_vm5, %v8066_v21 }
0x28c8   : > { %10815 = vmatprep.mubr.msk.bf16.mxu1 %vm11775_vm6, %v14065_v6 }
0x28cb   : > { %10810 = vmatmul.mubr.msk.bf16.vlgmr.msra.gmra.mxu0 %vm973_vm5, %v8116_v5 }
0x28cc   : > { %10821 = vmatprep.mubr.msk.bf16.mxu0 %vm11775_vm6, %v14065_v6 }
0x2942   : > { %v13632_v46 = vpop.f32.mrf.mxu1 }
0x2944   : > { %v10769_v29 = vpop.f32.mrf.mxu1 }
0x2946   : > { %v7818_v41 = vpop.f32.mrf.mxu1  ;;  %v13634_v2 = vpop.f32.mrf.mxu0 }
0x2948   : > { %v10770_v19 = vpop.f32.mrf.mxu1  ;;  %v10775_v57 = vpop.f32.mrf.mxu0 }
0x294a   : > { %v7866_v36 = vpop.f32.mrf.mxu0 }
0x294c   : > { %v10776_v54 = vpop.f32.mrf.mxu0 }
0x2977   : > { %v13638_v22 = vpop.f32.mrf.mxu1 }
0x2979   : > { %v10781_v45 = vpop.f32.mrf.mxu1 }
0x297b   : > { %v7914_v59 = vpop.f32.mrf.mxu1  ;;  %v13640_v1 = vpop.f32.mrf.mxu0 }
0x297d   : > { %v10782_v47 = vpop.f32.mrf.mxu1  ;;  %v10787_v16 = vpop.f32.mrf.mxu0 }
0x297f   : > { %v7962_v21 = vpop.f32.mrf.mxu0  ;;  %v8009_v5 = vpop.f32.mrf.mxu1 }
0x2980   : > { %v8165_v29 = vmul.f32 0.5, %v8009_v5 }
0x2981   : > { %v10788_v41 = vpop.f32.mrf.mxu0  ;;  %v10793_v25 = vpop.f32.mrf.mxu1 }
0x2982   : > { %v8169_v19 = vsel %vm12209_vm7, %v8165_v29, -1e+30 }
0x2983   : > { %v8012_v57 = vpop.f32.mrf.mxu1  ;;  %v8059_v36 = vpop.f32.mrf.mxu0  ;;  %v8173_v54 = vsel %vm1168_vm8, %v8169_v19, -inf }
0x2984   : > { %v8166_v45 = vmul.f32 0.5, %v8059_v36  ;;  %8174 = vmax.xlane.f32.xlu0 %v8173_v54 }
0x2985   : > { %v10794_v59 = vpop.f32.mrf.mxu1  ;;  %v10799_v28 = vpop.f32.mrf.mxu0 }
0x2986   : > { %v8170_v47 = vsel %vm12209_vm7, %v8166_v45, -1e+30 }
0x2987   : > { %v8062_v16 = vpop.f32.mrf.mxu0  ;;  %v8109_v21 = vpop.f32.mrf.mxu1  ;;  %v8176_v5 = vsel %vm1168_vm8, %v8170_v47, -inf }
0x2988   : > { %v8167_v41 = vmul.f32 0.5, %v8109_v21  ;;  %8177 = vmax.xlane.f32.xlu1 %v8176_v5 }
0x2989   : > { %v10800_v25 = vpop.f32.mrf.mxu0  ;;  %v10805_v7 = vpop.f32.mrf.mxu1 }
0x298a   : > { %v8171_v29 = vsel %vm12209_vm7, %v8167_v41, -1e+30 }
0x298b   : > { %v8112_v57 = vpop.f32.mrf.mxu1  ;;  %v8159_v27 = vpop.f32.mrf.mxu0  ;;  %v8179_v36 = vsel %vm1168_vm8, %v8171_v29, -inf }
0x298c   : > { %v8168_v54 = vmul.f32 0.5, %v8159_v27  ;;  %8180 = vmax.xlane.f32.xlu0 %v8179_v36 }
0x298d   : > { %v10806_v28 = vpop.f32.mrf.mxu1  ;;  %v10811_v59 = vpop.f32.mrf.mxu0 }
0x298e   : > { %v8172_v45 = vsel %vm12209_vm7, %v8168_v54, -1e+30 }
0x298f   : > { %v8162_v16 = vpop.f32.mrf.mxu0  ;;  %v8182_v21 = vsel %vm1168_vm8, %v8172_v45, -inf }
0x2990   : > { %8183 = vmax.xlane.f32.xlu0 %v8182_v21 }
0x2991   : > { %v10812_v5 = vpop.f32.mrf.mxu0 }
0x2999   : > { %8269 = vrot.lane.b32.xlu1 %v13027_v17, %s14071_s12 }
0x299d   : > { %8317 = vrot.lane.b32.xlu1 %v13062_v43, %s14071_s12 }
0x29a1   : > { %8365 = vrot.lane.b32.xlu1 %v13066_v48, %s14071_s12 }
0x2a0d   : > { %v8175_v27 = vpop.xlane.xlu0 %8174 }
0x2a0e   : > { %v8185_v7 = vsub.f32 %v8169_v19, %v8175_v27 }
0x2a10   : > { %v8189_v41 = vmul.f32 1.442695, %v8185_v7 }
0x2a11   : > { %v8178_v25 = vpop.xlane.xlu1 %8177 }
0x2a12   : > { %11453 = vpow2.f32 %v8189_v41  ;;  %v8186_v57 = vsub.f32 %v8170_v47, %v8178_v25 }
0x2a14   : > { %v8191_v36 = vmul.f32 1.442695, %v8186_v57 }
0x2a15   : > { %v8270_v54 = vpop.permute.xlu1 %8269  ;;  %v8181_v19 = vpop.xlane.xlu0 %8180 }
0x2a16   : > { %11455 = vpow2.f32 %v8191_v36  ;;  %v8275_v28 = vsel %vm1223_vm9, %v8270_v54, 0  ;;  %v8187_v47 = vsub.f32 %v8171_v29, %v8181_v19 }
0x2a17   : > { %10820 = vmatpush3.bf16.msra.mxu0 %v8275_v28 }
0x2a18   : > { %10831 = vmatprep.subr.bf16.mxu0 %v14065_v6  ;;  %v8193_v7 = vmul.f32 1.442695, %v8187_v47 }
0x2a19   : > { %v8184_v27 = vpop.xlane.xlu0 %8183  ;;  %v8318_v29 = vpop.permute.xlu1 %8317 }
0x2a1a   : > { %v8188_v41 = vsub.f32 %v8172_v45, %v8184_v27  ;;  %11457 = vpow2.f32 %v8193_v7  ;;  %v8323_v7 = vsel %vm1223_vm9, %v8318_v29, 0 }
0x2a1c   : > { %v8195_v25 = vmul.f32 1.442695, %v8188_v41 }
0x2a1e   : > { %11459 = vpow2.f32 %v8195_v25 }
0x2a1f   : > { %v11454_v59 = vpop.eup %11453 }
0x2a20   : > { %v8197_v16 = vsel %vm1168_vm8, %v11454_v59, 0.0 }
0x2a21   : > { %8198 = vadd.xlane.f32.xlu0 %v8197_v16 }
0x2a23   : > { %v11456_v21 = vpop.eup %11455 }
0x2a24   : > { %v8200_v5 = vsel %vm1168_vm8, %v11456_v21, 0.0 }
0x2a25   : > { %8201 = vadd.xlane.f32.xlu1 %v8200_v5 }
0x2a27   : > { %v11458_v57 = vpop.eup %11457 }
0x2a28   : > { %v8203_v36 = vsel %vm1168_vm8, %v11458_v57, 0.0 }
0x2a2b   : > { %v11460_v54 = vpop.eup %11459 }
0x2a2c   : > { %v8206_v28 = vsel %vm1168_vm8, %v11460_v54, 0.0 }
0x2a36   : > { %8465 = vrot.lane.b32.xlu1 %v13027_v17, %s14072_s14 }
0x2a37   : > { %8221 = vrot.lane.b32.xlu0 %v13044_v4, %s14071_s12 }
0x2a56   : > { %8204 = vadd.xlane.f32.xlu0 %v8203_v36 }
0x2a5a   : > { %8207 = vadd.xlane.f32.xlu1 %v8206_v28 }
0x2a6b   : > { %8463 = vrot.lane.b32.xlu1 %v13074_v18, %s14072_s14  ;;  %v8366_v18 = vpop.permute.xlu1 %8365 }
0x2a6c   : > { %8415 = vrot.lane.b32.xlu0 %v13044_v4, %s14072_s14  ;;  %v8371_v25 = vsel %vm1223_vm9, %v8366_v18, 0 }
0x2a6f   : > { %8565 = vrot.lane.b32.xlu1 %v13066_v48, %s14072_s14 }
0x2a70   : > { %8413 = vrot.lane.b32.xlu0 %v13064_v56, %s14072_s14 }
0x2a73   : > { %8563 = vrot.lane.b32.xlu1 %v13090_v30, %s14072_s14 }
0x2a74   : > { %8515 = vrot.lane.b32.xlu0 %v13062_v43, %s14072_s14 }
0x2a78   : > { %8513 = vrot.lane.b32.xlu0 %v13083_v35, %s14072_s14 }
0x2aaa   : > { %v8199_v45 = vpop.xlane.xlu0 %8198 }
0x2aab   : > { %11461 = vrcp.f32 %v8199_v45 }
0x2aae   : > { %v8202_v16 = vpop.xlane.xlu1 %8201  ;;  %v8222_v5 = vpop.permute.xlu0 %8221 }
0x2aaf   : > { %11463 = vrcp.f32 %v8202_v16  ;;  %v8227_v19 = vsel %vm1223_vm9, %v8222_v5, 0 }
0x2ab0   : > { %10814 = vmatpush3.bf16.msra.mxu1 %v8227_v19 }
0x2ab1   : > { %10825 = vmatprep.subr.bf16.mxu1 %v14065_v6 }
0x2ab8   : > { %v11462_v56 = vpop.eup %11461 }
0x2ab9   : > { %v8213_v30 = vmul.f32 %v11462_v56, %v11454_v59  ;;  %v8466_v59 = vpop.permute.xlu1 %8465 }
0x2abb   : > { %v8217_v47 = vpack.c.bf16 %v8213_v30, %v8213_v30 }
0x2abc   : > { %v11464_v27 = vpop.eup %11463 }
0x2abd   : > { %v8214_v41 = vmul.f32 %v11464_v27, %v11456_v21  ;;  %10816 = vmatmul.mubr.msk.bf16.vlgmr.msra.gmra.mxu1 %vm1168_vm8, %v8217_v47  ;;  %v8471_v27 = vsel %vm973_vm5, %v8466_v59, 0 }
0x2abe   : > { %10826 = vmatpush3.bf16.msra.mxu1 %v8323_v7  ;;  %10827 = vmatprep.mubr.msk.bf16.mxu1 %vm11775_vm6, %v14065_v6 }
0x2abf   : > { %v8218_v35 = vpack.c.bf16 %v8214_v41, %v8214_v41  ;;  %10837 = vmatprep.subr.bf16.mxu1 %v14065_v6 }
0x2ac1   : > { %10822 = vmatmul.mubr.msk.bf16.vlgmr.msra.gmra.mxu0 %vm1168_vm8, %v8218_v35 }
0x2ac2   : > { %10832 = vmatpush3.bf16.msra.mxu0 %v8371_v25  ;;  %10833 = vmatprep.mubr.msk.bf16.mxu0 %vm11775_vm6, %v14065_v6 }
0x2ac3   : > { %10843 = vmatprep.subr.bf16.mxu0 %v14065_v6 }
0x2adf   : > { %v8205_v21 = vpop.xlane.xlu0 %8204 }
0x2ae0   : > { %11465 = vrcp.f32 %v8205_v21 }
0x2ae3   : > { %v8208_v36 = vpop.xlane.xlu1 %8207  ;;  %v8416_v28 = vpop.permute.xlu0 %8415 }
0x2ae4   : > { %11467 = vrcp.f32 %v8208_v36  ;;  %v8421_v56 = vsel %vm973_vm5, %v8416_v28, 0 }
0x2ae7   : > { %v8414_v19 = vpop.permute.xlu0 %8413  ;;  %v8464_v47 = vpop.permute.xlu1 %8463 }
0x2aeb   : > { %v8566_v7 = vpop.permute.xlu1 %8565 }
0x2aec   : > { %v8571_v41 = vsel %vm973_vm5, %v8566_v7, 0 }
0x2aed   : > { %v11466_v29 = vpop.eup %11465 }
0x2aee   : > { %v8215_v45 = vmul.f32 %v11466_v29, %v11458_v57  ;;  %v8516_v57 = vpop.permute.xlu0 %8515 }
0x2aef   : > { %v8564_v25 = vpop.permute.xlu1 %8563 }
0x2af0   : > { %v8219_v16 = vpack.c.bf16 %v8215_v45, %v8215_v45 }
0x2af1   : > { %v11468_v5 = vpop.eup %11467 }
0x2af2   : > { %v8216_v18 = vmul.f32 %v11468_v5, %v11460_v54  ;;  %10828 = vmatmul.mubr.msk.bf16.vlgmr.msra.gmra.mxu1 %vm1168_vm8, %v8219_v16  ;;  %v8521_v54 = vsel %vm973_vm5, %v8516_v57, 0  ;;  %v8514_v35 = vpop.permute.xlu0 %8513 }
0x2af3   : > { %10838 = vmatpush3.bf16.xpose.msra.mxu1 %v8421_v56  ;;  %10839 = vmatprep.mubr.msk.bf16.mxu1 %vm11775_vm6, %v14065_v6 }
0x2af4   : > { %v8220_v30 = vpack.c.bf16 %v8216_v18, %v8216_v18  ;;  %10849 = vmatprep.subr.bf16.mxu1 %v14065_v6 }
0x2af6   : > { %10834 = vmatmul.mubr.msk.bf16.vlgmr.msra.gmra.mxu0 %vm1168_vm8, %v8220_v30 }
0x2af7   : > { %10844 = vmatpush3.bf16.xpose.msra.mxu0 %v8471_v27  ;;  %10845 = vmatprep.mubr.msk.bf16.mxu0 %vm11775_vm6, %v14065_v6 }
0x2af8   : > { %10855 = vmatprep.subr.bf16.mxu0 %v14065_v6 }
0x2afa   : > { %10840 = vmatmul.mubr.msk.bf16.vlgmr.msra.gmra.mxu1 %vm973_vm5, %v8414_v19 }
0x2afb   : > { %10850 = vmatpush3.bf16.xpose.msra.mxu1 %v8521_v54  ;;  %10851 = vmatprep.mubr.msk.bf16.mxu1 %vm11775_vm6, %v14065_v6 }
0x2afc   : > { %10861 = vmatprep.subr.bf16.mxu1 %v14065_v6 }
0x2afe   : > { %10846 = vmatmul.mubr.msk.bf16.vlgmr.msra.gmra.mxu0 %vm973_vm5, %v8464_v47 }
0x2aff   : > { %10856 = vmatpush3.bf16.xpose.msra.mxu0 %v8571_v41  ;;  %10857 = vmatprep.mubr.msk.bf16.mxu0 %vm11775_vm6, %v14065_v6 }
0x2b00   : > { %10867 = vmatprep.subr.bf16.mxu0 %v14065_v6 }
0x2b02   : > { %10852 = vmatmul.mubr.msk.bf16.vlgmr.msra.gmra.mxu1 %vm973_vm5, %v8514_v35 }
0x2b03   : > { %10863 = vmatprep.mubr.msk.bf16.mxu1 %vm11775_vm6, %v14065_v6 }
0x2b06   : > { %10858 = vmatmul.mubr.msk.bf16.vlgmr.msra.gmra.mxu0 %vm973_vm5, %v8564_v25 }
0x2b07   : > { %10869 = vmatprep.mubr.msk.bf16.mxu0 %vm11775_vm6, %v14065_v6 }
0x2b7d   : > { %v13724_v59 = vpop.f32.mrf.mxu1 }
0x2b7f   : > { %v10817_v21 = vpop.f32.mrf.mxu1 }
0x2b81   : > { %v8266_v36 = vpop.f32.mrf.mxu1  ;;  %v13726_v28 = vpop.f32.mrf.mxu0 }
0x2b83   : > { %v10818_v45 = vpop.f32.mrf.mxu1  ;;  %v10823_v16 = vpop.f32.mrf.mxu0 }
0x2b85   : > { %v8314_v5 = vpop.f32.mrf.mxu0 }
0x2b87   : > { %v10824_v19 = vpop.f32.mrf.mxu0 }
0x2bb2   : > { %v13730_v18 = vpop.f32.mrf.mxu1 }
0x2bb4   : > { %v10829_v56 = vpop.f32.mrf.mxu1 }
0x2bb6   : > { %v8362_v30 = vpop.f32.mrf.mxu1  ;;  %v13732_v47 = vpop.f32.mrf.mxu0 }
0x2bb8   : > { %v10830_v57 = vpop.f32.mrf.mxu1  ;;  %v10835_v54 = vpop.f32.mrf.mxu0 }
0x2bba   : > { %v8410_v7 = vpop.f32.mrf.mxu0  ;;  %v8457_v41 = vpop.f32.mrf.mxu1 }
0x2bbb   : > { %v8613_v35 = vmul.f32 0.5, %v8457_v41 }
0x2bbc   : > { %v10836_v25 = vpop.f32.mrf.mxu0  ;;  %v10841_v21 = vpop.f32.mrf.mxu1 }
0x2bbd   : > { %v8617_v36 = vsel %vm12209_vm7, %v8613_v35, -1e+30 }
0x2bbe   : > { %v8460_v45 = vpop.f32.mrf.mxu1  ;;  %v8507_v16 = vpop.f32.mrf.mxu0  ;;  %v8621_v5 = vsel %vm1168_vm8, %v8617_v36, -inf }
0x2bbf   : > { %v8614_v19 = vmul.f32 0.5, %v8507_v16  ;;  %8622 = vmax.xlane.f32.xlu0 %v8621_v5 }
0x2bc0   : > { %v10842_v56 = vpop.f32.mrf.mxu1  ;;  %v10847_v30 = vpop.f32.mrf.mxu0 }
0x2bc1   : > { %v8618_v57 = vsel %vm12209_vm7, %v8614_v19, -1e+30 }
0x2bc2   : > { %v8510_v54 = vpop.f32.mrf.mxu0  ;;  %v8557_v7 = vpop.f32.mrf.mxu1  ;;  %v8624_v41 = vsel %vm1168_vm8, %v8618_v57, -inf }
0x2bc3   : > { %v8615_v25 = vmul.f32 0.5, %v8557_v7  ;;  %8625 = vmax.xlane.f32.xlu1 %v8624_v41 }
0x2bc4   : > { %v10848_v21 = vpop.f32.mrf.mxu0  ;;  %v10853_v27 = vpop.f32.mrf.mxu1 }
0x2bc5   : > { %v8619_v35 = vsel %vm12209_vm7, %v8615_v25, -1e+30 }
0x2bc6   : > { %v8560_v45 = vpop.f32.mrf.mxu1  ;;  %v8607_v60 = vpop.f32.mrf.mxu0  ;;  %v8627_v16 = vsel %vm1168_vm8, %v8619_v35, -inf }
0x2bc7   : > { %v8616_v5 = vmul.f32 0.5, %v8607_v60  ;;  %8628 = vmax.xlane.f32.xlu0 %v8627_v16 }
0x2bc8   : > { %v10854_v56 = vpop.f32.mrf.mxu1  ;;  %v10859_v30 = vpop.f32.mrf.mxu0 }
0x2bc9   : > { %v8620_v19 = vsel %vm12209_vm7, %v8616_v5, -1e+30 }
0x2bca   : > { %v8610_v54 = vpop.f32.mrf.mxu0  ;;  %v8630_v7 = vsel %vm1168_vm8, %v8620_v19, -inf }
0x2bcb   : > { %8631 = vmax.xlane.f32.xlu0 %v8630_v7 }
0x2bcc   : > { %v10860_v41 = vpop.f32.mrf.mxu0 }
0x2bcd   : > { %v11199_v41 = vld [vmem:[#allocation10 + $0x18] sm:$0xff]  }
0x2c48   : > { %v8623_v27 = vpop.xlane.xlu0 %8622 }
0x2c49   : > { %v8633_v21 = vsub.f32 %v8617_v36, %v8623_v27 }
0x2c4b   : > { %v8637_v29 = vmul.f32 1.442695, %v8633_v21 }
0x2c4c   : > { %v8626_v25 = vpop.xlane.xlu1 %8625 }
0x2c4d   : > { %11469 = vpow2.f32 %v8637_v29  ;;  %v8634_v45 = vsub.f32 %v8618_v57, %v8626_v25 }
0x2c4f   : > { %v8639_v13 = vmul.f32 1.442695, %v8634_v45 }
0x2c50   : > { %v8629_v51 = vpop.xlane.xlu0 %8628 }
0x2c51   : > { %11471 = vpow2.f32 %v8639_v13  ;;  %v8635_v60 = vsub.f32 %v8619_v35, %v8629_v51 }
0x2c53   : > { %v8641_v16 = vmul.f32 1.442695, %v8635_v60 }
0x2c54   : > { %v8632_v51 = vpop.xlane.xlu0 %8631 }
0x2c55   : > { %11473 = vpow2.f32 %v8641_v16  ;;  %v8636_v13 = vsub.f32 %v8620_v19, %v8632_v51  ;;  %v11200_v51 = vld [vmem:[#allocation10 + $0x10] sm:$0xff]  }
0x2c57   : > { %v8643_v29 = vmul.f32 1.442695, %v8636_v13 }
0x2c59   : > { %11475 = vpow2.f32 %v8643_v29 }
0x2c5a   : > { %v11470_v56 = vpop.eup %11469 }
0x2c5b   : > { %v8645_v55 = vsel %vm1168_vm8, %v11470_v56, 0.0 }
0x2c5c   : > { %8646 = vadd.xlane.f32.xlu0 %v8645_v55 }
0x2c5e   : > { %v11472_v5 = vpop.eup %11471 }
0x2c5f   : > { %v8648_v30 = vsel %vm1168_vm8, %v11472_v5, 0.0 }
0x2c60   : > { %8649 = vadd.xlane.f32.xlu1 %v8648_v30 }
0x2c62   : > { %v11474_v54 = vpop.eup %11473 }
0x2c63   : > { %v8651_v36 = vsel %vm1168_vm8, %v11474_v54, 0.0 }
0x2c64   : > { %8652 = vadd.xlane.f32.xlu0 %v8651_v36 }
0x2c66   : > { %v11476_v26 = vpop.eup %11475 }
0x2c67   : > { %v8654_v37 = vsel %vm1168_vm8, %v11476_v26, 0.0 }
0x2c71   : > { %8717 = vrot.lane.b32.xlu1 %v13027_v17, %s11790_s30  ;;  %v14075_v17 = vpack.i.bf16 %v13542_v8, %v13540_v42 }
0x2c75   : > { %8765 = vrot.lane.b32.xlu1 %v13062_v43, %s11790_s30  ;;  %v14079_v43 = vpack.i.bf16 %v13726_v28, %v13724_v59 }
0x2c7a   : > { %8669 = vrot.lane.b32.xlu0 %v13044_v4, %s11790_s30  ;;  %v14077_v4 = vpack.i.bf16 %v13634_v2, %v13632_v46 }
0x2c7e   : > { %11116 = vrot.lane.b32.xlu0 %v11115_v63, %s11791_s0  ;;  %v14080_v63 = vpack.i.bf16 %v13272_v20, %v13270_v52  ;;  %v14085_v52 = vpack.i.bf16 %v13732_v47, %v13730_v18 }
0x2c82   : > { %11126 = vrot.lane.b32.xlu0 %v11125_v34, %s11792_s21  ;;  %v14083_v34 = vpack.i.bf16 %v13548_v0, %v13546_v61 }
0x2c86   : > { %11136 = vrot.lane.b32.xlu0 %v11135_v44, %s14073_s18 }
0x2c8a   : > { %11146 = vrot.lane.b32.xlu0 %v14075_v17, %s14074_s26 }
0x2c8e   : > { %11156 = vrot.lane.b32.xlu0 %v14077_v4, %s14076_s29 }
0x2c92   : > { %11166 = vrot.lane.b32.xlu0 %v14079_v43, %s14078_s20 }
0x2c99   : > { %8655 = vadd.xlane.f32.xlu1 %v8654_v37 }
0x2caa   : > { %8813 = vrot.lane.b32.xlu1 %v13066_v48, %s11790_s30  ;;  %v14084_v48 = vpack.i.bf16 %v13640_v1, %v13638_v22  ;;  %s14086_s30 = smov 28  }
0x2cae   : > { %11121 = vrot.lane.b32.xlu1 %v14080_v63, %s11791_s0 }
0x2cb2   : > { %11131 = vrot.lane.b32.xlu1 %v14081_v31, %s11792_s21 }
0x2cb6   : > { %11141 = vrot.lane.b32.xlu1 %v14082_v38, %s14073_s18  ;;  %s14089_s18 = sld [smem:[#allocation32_spill]] }
0x2cba   : > { %11151 = vrot.lane.b32.xlu1 %v14083_v34, %s14074_s26 }
0x2cbc   : > { %s13916_s26 = scalar_lea.hbm %s14089_s18, %s9764_s22 }
0x2cbe   : > { %11161 = vrot.lane.b32.xlu1 %v14084_v48, %s14076_s29  ;;  %s11685_s29 = scalar_lea.vmem %s13918_s2, 512 }
0x2cbf   : > { %p11686_p9 = scmp.ne.s32.totalorder %s13918_s2, %s11685_s29 }
0x2cc1   : > { %p11687_p11 = pnand %p11686_p9, %p14090_p8 }
0x2cc2   : > { %11171 = vrot.lane.b32.xlu1 %v14085_v52, %s14078_s20  ;;  %s11798_s20 = smov [#allocation14]  }
0x2cc3   : > { %p11688_p10 = pneg %p11687_p11 }
0x2ce5   : > { %v8647_v20 = vpop.xlane.xlu0 %8646 }
0x2ce6   : > { %11477 = vrcp.f32 %v8647_v20 }
0x2ce9   : > { %v8650_v49 = vpop.xlane.xlu1 %8649 }
0x2cea   : > { %11479 = vrcp.f32 %v8650_v49 }
0x2ced   : > { %v8718_v32 = vpop.permute.xlu1 %8717  ;;  %v8653_v62 = vpop.xlane.xlu0 %8652 }
0x2cee   : > { %v8723_v3 = vsel %vm1223_vm9, %v8718_v32, 0  ;;  %11481 = vrcp.f32 %v8653_v62 }
0x2cef   : > { %10868 = vmatpush3.bf16.msra.mxu0 %v8723_v3 }
0x2cf0   : > { %10879 = vmatprep.subr.bf16.mxu0 %v14065_v6 }
0x2cf1   : > { %v8670_v44 = vpop.permute.xlu0 %8669  ;;  %v8766_v8 = vpop.permute.xlu1 %8765 }
0x2cf2   : > { %v8675_v58 = vsel %vm1223_vm9, %v8670_v44, 0  ;;  %v8771_v2 = vsel %vm1223_vm9, %v8766_v8, 0 }
0x2cf3   : > { %v11478_v24 = vpop.eup %11477  ;;  %10862 = vmatpush3.bf16.msra.mxu1 %v8675_v58 }
0x2cf4   : > { %v8661_v42 = vmul.f32 %v11478_v24, %v11470_v56  ;;  %10873 = vmatprep.subr.bf16.mxu1 %v14065_v6 }
0x2cf6   : > { %v8665_v61 = vpack.c.bf16 %v8661_v42, %v8661_v42 }
0x2cf7   : > { %v11480_v0 = vpop.eup %11479 }
0x2cf8   : > { %v8662_v46 = vmul.f32 %v11480_v0, %v11472_v5  ;;  %10864 = vmatmul.mubr.msk.bf16.vlgmr.msra.gmra.mxu1 %vm1168_vm8, %v8665_v61 }
0x2cf9   : > { %10874 = vmatpush3.bf16.msra.mxu1 %v8771_v2  ;;  %10875 = vmatprep.mubr.msk.bf16.mxu1 %vm11775_vm6, %v14065_v6 }
0x2cfa   : > { %v8666_v22 = vpack.c.bf16 %v8662_v46, %v8662_v46  ;;  %10885 = vmatprep.subr.bf16.mxu1 %v11199_v41 }
0x2cfb   : > { %v11482_v1 = vpop.eup %11481 }
0x2cfc   : > { %v8663_v59 = vmul.f32 %v11482_v1, %v11474_v54  ;;  %10870 = vmatmul.mubr.msk.bf16.vlgmr.msra.gmra.mxu0 %vm1168_vm8, %v8666_v22 }
0x2cfd   : > { %10881 = vmatprep.mubr.msk.bf16.mxu0 %vm11775_vm6, %v14065_v6 }
0x2cfe   : > { %v8667_v28 = vpack.c.bf16 %v8663_v59, %v8663_v59 }
0x2d00   : > { %10876 = vmatmul.mubr.msk.bf16.vlgmr.msra.gmra.mxu1 %vm1168_vm8, %v8667_v28 }
0x2d01   : > { %10886 = vmatpush3.bf16.msra.mxu1 %v11199_v41 }
0x2d02   : > { %10887 = vmatprep.subr.bf16.mxu1 %v11200_v51 }
0x2d05   : > { %10888 = vmatpush3.bf16.msra.mxu1 %v11200_v51 }
0x2d22   : > { %v8656_v18 = vpop.xlane.xlu1 %8655 }
0x2d23   : > { %11483 = vrcp.f32 %v8656_v18 }
0x2d26   : > { %v8814_v47 = vpop.permute.xlu1 %8813 }
0x2d27   : > { %v8819_v57 = vsel %vm1223_vm9, %v8814_v47, 0 }
0x2d28   : > { %10880 = vmatpush3.bf16.msra.mxu0 %v8819_v57 }
0x2d30   : > { %v11484_v35 = vpop.eup %11483 }
0x2d31   : > { %v8664_v19 = vmul.f32 %v11484_v35, %v11476_v26  ;;  %v11117_v26 = vpop.permute.xlu0 %11116 }
0x2d32   : > { %v11119_v34 = vunpack.i.h.bf16 %v11117_v26  ;;  %v11118_v48 = vunpack.i.l.bf16 %v11117_v26 }
0x2d33   : > { %v8668_v7 = vpack.c.bf16 %v8664_v19, %v8664_v19 }
0x2d34   : > { %v8974_v58 = vsel %vm973_vm5, %v13178_v9, %v11119_v34  ;;  %v8973_v24 = vsel %vm973_vm5, %v13176_v39, %v11118_v48 }
0x2d35   : > { %10882 = vmatmul.mubr.msk.bf16.vlgmr.msra.gmra.mxu0 %vm1168_vm8, %v8668_v7  ;;  %v11127_v37 = vpop.permute.xlu0 %11126 }
0x2d36   : > { %v11129_v52 = vunpack.i.h.bf16 %v11127_v37  ;;  %v11128_v20 = vunpack.i.l.bf16 %v11127_v37 }
0x2d38   : > { %v8977_v61 = vsel %vm1168_vm8, %v8973_v24, %v11128_v20  ;;  %v8978_v0 = vsel %vm1168_vm8, %v8974_v58, %v11129_v52 }
0x2d39   : > { %v11137_v63 = vpop.permute.xlu0 %11136 }
0x2d3a   : > { %v11139_v49 = vunpack.i.h.bf16 %v11137_v63  ;;  %v11138_v32 = vunpack.i.l.bf16 %v11137_v63 }
0x2d3c   : > { %v8981_v22 = vsel %vm4674_vm10, %v8977_v61, %v11138_v32  ;;  %v8982_v1 = vsel %vm4674_vm10, %v8978_v0, %v11139_v49 }
0x2d3d   : > { %v11147_v31 = vpop.permute.xlu0 %11146 }
0x2d3e   : > { %v11149_v3 = vunpack.i.h.bf16 %v11147_v31  ;;  %v11148_v44 = vunpack.i.l.bf16 %v11147_v31 }
0x2d40   : > { %v8985_v59 = vsel %vm4679_vm11, %v8981_v22, %v11148_v44  ;;  %v8986_v28 = vsel %vm4679_vm11, %v8982_v1, %v11149_v3 }
0x2d41   : > { %v11157_v38 = vpop.permute.xlu0 %11156 }
0x2d42   : > { %v11159_v42 = vunpack.i.h.bf16 %v11157_v38  ;;  %v11158_v8 = vunpack.i.l.bf16 %v11157_v38 }
0x2d44   : > { %v8989_v18 = vsel %vm4684_vm12, %v8985_v59, %v11158_v8  ;;  %v8990_v39 = vsel %vm4684_vm12, %v8986_v28, %v11159_v42  ;;  %v9739_v8 = vld [vmem:[%s13970_s7 + $0x1] ss:$0 sm:$0xff] }
0x2d45   : > { %v11167_v62 = vpop.permute.xlu0 %11166 }
0x2d46   : > { %v11169_v46 = vunpack.i.h.bf16 %v11167_v62  ;;  %v11168_v2 = vunpack.i.l.bf16 %v11167_v62 }
0x2d48   : > { %v8993_v35 = vsel %vm4689_vm13, %v8989_v18, %v11168_v2  ;;  %v8994_v19 = vsel %vm4689_vm13, %v8990_v39, %v11169_v46 }
0x2db8   : > { %v8711_v27 = vpop.f32.mrf.mxu1 }
0x2dba   : > { %v10865_v21 = vpop.f32.mrf.mxu1 }
0x2dbb   : > { %v11122_v21 = vpop.permute.xlu1 %11121 }
0x2dbc   : > { %v8714_v6 = vpop.f32.mrf.mxu1  ;;  %v8759_v25 = vpop.f32.mrf.mxu0 }
0x2dbd   : > { %v11175_v45 = vpack.i.bf16 %v8759_v25, %v8711_v27 }
0x2dbe   : > { %v10866_v60 = vpop.f32.mrf.mxu1  ;;  %v10871_v16 = vpop.f32.mrf.mxu0 }
0x2dbf   : > { %11176 = vrot.lane.b32.xlu0 %v11175_v45, %s14086_s30  ;;  %v11132_v6 = vpop.permute.xlu1 %11131  ;;  %v11124_v16 = vunpack.i.h.bf16 %v11122_v21 }
0x2dc0   : > { %v8762_v56 = vpop.f32.mrf.mxu0  ;;  %v8807_v55 = vpop.f32.mrf.mxu1 }
0x2dc1   : > { %v11123_v56 = vunpack.i.l.bf16 %v11122_v21 }
0x2dc2   : > { %v10872_v5 = vpop.f32.mrf.mxu0  ;;  %v10877_v30 = vpop.f32.mrf.mxu1 }
0x2dc3   : > { %v11142_v25 = vpop.permute.xlu1 %11141  ;;  %v11133_v5 = vunpack.i.l.bf16 %v11132_v6 }
0x2dc4   : > { %v8810_v54 = vpop.f32.mrf.mxu1  ;;  %v11144_v30 = vunpack.i.h.bf16 %v11142_v25 }
0x2dc5   : > { %v11143_v54 = vunpack.i.l.bf16 %v11142_v25 }
0x2dc6   : > { %v10878_v36 = vpop.f32.mrf.mxu1 }
0x2dc7   : > { %v11152_v45 = vpop.permute.xlu1 %11151 }
0x2dc8   : > { %v11154_v51 = vunpack.i.h.bf16 %v11152_v45 }
0x2dcb   : > { %v11162_v60 = vpop.permute.xlu1 %11161 }
0x2dcf   : > { %v11172_v36 = vpop.permute.xlu1 %11171 }
0x2dd0   : > { %v11174_v63 = vunpack.i.h.bf16 %v11172_v36  ;;  %v11173_v31 = vunpack.i.l.bf16 %v11172_v36 }
0x2df5   : > { %v8855_v13 = vpop.f32.mrf.mxu0 }
0x2df6   : > { %v11180_v29 = vpack.i.bf16 %v8855_v13, %v8807_v55  ;;  %v11134_v55 = vunpack.i.h.bf16 %v11132_v6  ;;  %v11153_v13 = vunpack.i.l.bf16 %v11152_v45 }
0x2df7   : > { %v10883_v17 = vpop.f32.mrf.mxu0 }
0x2df8   : > { %11181 = vrot.lane.b32.xlu1 %v11180_v29, %s14086_s30  ;;  %v8976_v29 = vsel %vm973_vm5, %v13182_v50, %v11124_v16  ;;  %v8975_v17 = vsel %vm973_vm5, %v13180_v40, %v11123_v56  ;;  %s11689_s30 = sshll.u32 %s11798_s20, 4  ;;  %s11690_s30 = int_to_ptr.vmem [resolvable:$false] %s11689_s30 }
0x2df9   : > { %v8858_v4 = vpop.f32.mrf.mxu0  ;;  %v8979_v26 = vsel %vm1168_vm8, %v8975_v17, %v11133_v5  ;;  %v8980_v37 = vsel %vm1168_vm8, %v8976_v29, %v11134_v55  ;;  %v11202_v29 = vld [vmem:[#allocation11 + $0x10] sm:$0xff]   ;;  %s11691_s0 = scalar_lea.vmem %s11690_s30, 1024  ;;  %p11692_p13 = scmp.lt.s32.totalorder %s13918_s2, %s11690_s30 }
0x2dfa   : > { %v11164_v4 = vunpack.i.h.bf16 %v11162_v60  ;;  %v8983_v38 = vsel %vm4674_vm10, %v8979_v26, %v11143_v54  ;;  %v8984_v34 = vsel %vm4674_vm10, %v8980_v37, %v11144_v30  ;;  %p11693_p5 = scmp.lt.s32.totalorder %s11691_s0, %s11685_s29 }
0x2dfb   : > { %v10884_v43 = vpop.f32.mrf.mxu0  ;;  %v8987_v48 = vsel %vm4679_vm11, %v8983_v38, %v11153_v13  ;;  %v8988_v52 = vsel %vm4679_vm11, %v8984_v34, %v11154_v51  ;;  %v11201_v13 = vld [vmem:[#allocation11 + $0x18] sm:$0xff]  }
0x2dfc   : > { %v11163_v43 = vunpack.i.l.bf16 %v11162_v60  ;;  %v8992_v40 = vsel %vm4684_vm12, %v8988_v52, %v11164_v4  ;;  %10893 = vmatprep.subr.bf16.mxu0 %v11201_v13  ;;  %p11694_p1 = por %p11693_p5, %p11692_p13 }
0x2dfd   : > { %v8996_v3 = vsel %vm4689_vm13, %v8992_v40, %v11174_v63  ;;  %10894 = vmatpush3.bf16.msra.mxu0 %v11201_v13 }
0x2dfe   : > { %v8991_v20 = vsel %vm4684_vm12, %v8987_v48, %v11163_v43  ;;  %10895 = vmatprep.subr.bf16.mxu0 %v11202_v29  ;;  %p11695_p3 = pnand %p11694_p1, %p11688_p10 }
0x2dff   : > { %v8995_v62 = vsel %vm4689_vm13, %v8991_v20, %v11173_v31 }
0x2e01   : > { %10896 = vmatpush3.bf16.msra.mxu0 %v11202_v29 }
0x2e31   : > { %v11177_v9 = vpop.permute.xlu0 %11176 }
0x2e32   : > { %v11179_v47 = vunpack.i.h.bf16 %v11177_v9  ;;  %v11178_v57 = vunpack.i.l.bf16 %v11177_v9 }
0x2e34   : > { %v8998_v7 = vsel %vm4694_vm14, %v8994_v19, %v11179_v47  ;;  %v8997_v41 = vsel %vm4694_vm14, %v8993_v35, %v11178_v57 }
0x2e35   : > { %v9001_v27 = vpack.c.bf16 %v8998_v7, %v8997_v41 }
0x2e37   : > { %10889 = vmatprep.mubr.msk.bf16.mxu1 %vm741_vm0, %v9001_v27 }
0x2e6a   : > { %v11182_v50 = vpop.permute.xlu1 %11181 }
0x2e6b   : > { %v11184_v49 = vunpack.i.h.bf16 %v11182_v50  ;;  %v11183_v32 = vunpack.i.l.bf16 %v11182_v50 }
0x2e6d   : > { %v9000_v44 = vsel %vm4694_vm14, %v8996_v3, %v11184_v49  ;;  %v8999_v58 = vsel %vm4694_vm14, %v8995_v62, %v11183_v32  ;;  %v9744_v49 = vld [vmem:[%s13973_s10 + $0x1] ss:$0 sm:$0xff] }
0x2e6e   : > { %v9002_v24 = vpack.c.bf16 %v9000_v44, %v8999_v58 }
0x2e70   : > { %10890 = vmatmul.mubr.msk.bf16.vlgmr.msra.gmra.mxu1 %vm741_vm0, %v9002_v24  ;;  %v9745_v24 = vld [vmem:[%s13974_s11 + $0x1] ss:$0 sm:$0xff] }
0x2f30   : > { %v10891_v42 = vpop.f32.mrf.mxu1 }
0x2f31   : > { %v9070_v0 = vadd.f32 %v10891_v42, %v9739_v8 }
0x2f32   : > { %v9061_v61 = vpop.f32.mrf.mxu1 }
0x2f33   : > { %v9062_v46 = vadd.f32 %v9739_v8, %v9061_v61  ;;  %v9078_v59 = vadd.f32 %v9070_v0, %v13046_v33 }
0x2f34   : > { %v10892_v2 = vpop.f32.mrf.mxu1 }
0x2f35   : > { %v9076_v22 = vadd.f32 %v9062_v46, %v13038_v12  ;;  %v9073_v28 = vadd.f32 %v10892_v2, %v9739_v8  ;;  %v9086_v35 = vsel %vm741_vm0, %v9078_v59, 0.0 }
0x2f36   : > { %v9064_v1 = vpop.f32.mrf.mxu1 }
0x2f37   : > { %v9065_v9 = vadd.f32 %v9739_v8, %v9064_v1  ;;  %v9080_v18 = vsel %vm741_vm0, %v9076_v22, 0.0  ;;  %v9079_v47 = vadd.f32 %v9073_v28, %v13048_v53 }
0x2f38   : > { %9081 = vadd.xlane.f32.xlu0 %v9080_v18  ;;  %v11203_v18 = vld [vmem:[#allocation13 + $0x18] sm:$0xff]  }
0x2f39   : > { %v9077_v39 = vadd.f32 %v9065_v9, %v13040_v23  ;;  %v9089_v12 = vsel %vm741_vm0, %v9079_v47, 0.0  ;;  %10901 = vmatprep.subr.bf16.mxu1 %v11203_v18 }
0x2f3a   : > { %10902 = vmatpush3.bf16.msra.mxu1 %v11203_v18 }
0x2f3b   : > { %v9083_v57 = vsel %vm741_vm0, %v9077_v39, 0.0 }
0x2f3c   : > { %9084 = vadd.xlane.f32.xlu1 %v9083_v57  ;;  %9087 = vadd.xlane.f32.xlu0 %v9086_v35  ;;  %v9746_v35 = vld [vmem:[%s13976_s13 + $0x1] ss:$0 sm:$0xff] }
0x2f40   : > { %9090 = vadd.xlane.f32.xlu0 %v9089_v12 }
0x2fc1   : > { %v9082_v19 = vpop.xlane.xlu0 %9081 }
0x2fc2   : > { %v9092_v33 = vmul.f32 0.03125, %v9082_v19 }
0x2fc4   : > { %v9096_v7 = vsub.f32 %v9076_v22, %v9092_v33 }
0x2fc5   : > { %v9085_v41 = vpop.xlane.xlu1 %9084  ;;  %v9088_v27 = vpop.xlane.xlu0 %9087 }
0x2fc6   : > { %v9093_v21 = vmul.f32 0.03125, %v9085_v41  ;;  %v9094_v6 = vmul.f32 0.03125, %v9088_v27  ;;  %v9100_v25 = vmul.f32 %v9096_v7, %v9096_v7 }
0x2fc8   : > { %v9097_v23 = vsub.f32 %v9077_v39, %v9093_v21  ;;  %v9098_v45 = vsub.f32 %v9078_v59, %v9094_v6  ;;  %v9104_v53 = vsel %vm741_vm0, %v9100_v25, 0.0  ;;  %v11204_v39 = vld [vmem:[#allocation13 + $0x10] sm:$0xff]  }
0x2fc9   : > { %9105 = vadd.xlane.f32.xlu0 %v9104_v53  ;;  %v9091_v60 = vpop.xlane.xlu0 %9090  ;;  %10903 = vmatprep.subr.bf16.mxu1 %v11204_v39 }
0x2fca   : > { %v9095_v16 = vmul.f32 0.03125, %v9091_v60  ;;  %v9101_v56 = vmul.f32 %v9097_v23, %v9097_v23  ;;  %v9102_v55 = vmul.f32 %v9098_v45, %v9098_v45  ;;  %10904 = vmatpush3.bf16.msra.mxu1 %v11204_v39  ;;  %v9751_v60 = vld [vmem:[%s13978_s15 + $0x1] ss:$0 sm:$0xff] }
0x2fcc   : > { %v9099_v5 = vsub.f32 %v9079_v47, %v9095_v16  ;;  %v9107_v30 = vsel %vm741_vm0, %v9101_v56, 0.0  ;;  %v9110_v54 = vsel %vm741_vm0, %v9102_v55, 0.0 }
0x2fcd   : > { %9108 = vadd.xlane.f32.xlu1 %v9107_v30  ;;  %9111 = vadd.xlane.f32.xlu0 %v9110_v54 }
0x2fce   : > { %v9103_v36 = vmul.f32 %v9099_v5, %v9099_v5 }
0x2fd0   : > { %v9113_v51 = vsel %vm741_vm0, %v9103_v36, 0.0 }
0x2fd1   : > { %9114 = vadd.xlane.f32.xlu1 %v9113_v51 }
0x3052   : > { %v9106_v17 = vpop.xlane.xlu0 %9105 }
0x3053   : > { %v9116_v4 = vmul.f32 0.03125, %v9106_v17 }
0x3055   : > { %v9120_v43 = vadd.f32 1e-08, %v9116_v4 }
0x3056   : > { %v9109_v26 = vpop.xlane.xlu1 %9108  ;;  %v9112_v37 = vpop.xlane.xlu0 %9111 }
0x3057   : > { %11485 = vrsqrt.f32 %v9120_v43  ;;  %v9117_v63 = vmul.f32 0.03125, %v9109_v26  ;;  %v9118_v31 = vmul.f32 0.03125, %v9112_v37 }
0x3059   : > { %v9121_v38 = vadd.f32 1e-08, %v9117_v63  ;;  %v9122_v34 = vadd.f32 1e-08, %v9118_v31 }
0x305a   : > { %v9115_v48 = vpop.xlane.xlu1 %9114 }
0x305b   : > { %11487 = vrsqrt.f32 %v9121_v38  ;;  %v9119_v52 = vmul.f32 0.03125, %v9115_v48 }
0x305c   : > { %11489 = vrsqrt.f32 %v9122_v34 }
0x305d   : > { %v9123_v50 = vadd.f32 1e-08, %v9119_v52 }
0x305f   : > { %11491 = vrsqrt.f32 %v9123_v50 }
0x3064   : > { %v11486_v20 = vpop.eup %11485 }
0x3065   : > { %v9128_v40 = vmul.f32 %v11486_v20, %v9096_v7 }
0x3067   : > { %v9138_v44 = vmul.f32 %v9744_v49, %v9128_v40 }
0x3068   : > { %v11488_v32 = vpop.eup %11487 }
0x3069   : > { %v11490_v62 = vpop.eup %11489  ;;  %v9129_v3 = vmul.f32 %v11488_v32, %v9097_v23  ;;  %v9148_v46 = vadd.f32 %v9745_v24, %v9138_v44 }
0x306a   : > { %v9130_v58 = vmul.f32 %v11490_v62, %v9098_v45 }
0x306b   : > { %v9139_v42 = vmul.f32 %v9744_v49, %v9129_v3 }
0x306c   : > { %v11492_v8 = vpop.eup %11491  ;;  %v9140_v0 = vmul.f32 %v9744_v49, %v9130_v58 }
0x306d   : > { %v9131_v61 = vmul.f32 %v11492_v8, %v9099_v5  ;;  %v9149_v2 = vadd.f32 %v9745_v24, %v9139_v42 }
0x306e   : > { %v9150_v59 = vadd.f32 %v9745_v24, %v9140_v0 }
0x306f   : > { %v9141_v22 = vmul.f32 %v9744_v49, %v9131_v61  ;;  %v9152_v1 = vpack.c.bf16 %v9149_v2, %v9148_v46 }
0x3071   : > { %v9151_v28 = vadd.f32 %v9745_v24, %v9141_v22  ;;  %10897 = vmatprep.mubr.msk.bf16.mxu0 %vm741_vm0, %v9152_v1 }
0x3073   : > { %v9153_v9 = vpack.c.bf16 %v9151_v28, %v9150_v59 }
0x3075   : > { %10898 = vmatmul.mubr.msk.bf16.vlgmr.msra.gmra.mxu0 %vm741_vm0, %v9153_v9 }
0x3135   : > { %v10899_v47 = vpop.f32.mrf.mxu0 }
0x3136   : > { %v9221_v7 = vadd.f32 %v10899_v47, %v9746_v35 }
0x3137   : > { %v9212_v57 = vpop.f32.mrf.mxu0 }
0x3138   : > { %v9213_v19 = vadd.f32 %v9746_v35, %v9212_v57  ;;  %v9229_v23 = vmax.f32 %v9221_v7, 0.0 }
0x3139   : > { %v10900_v12 = vpop.f32.mrf.mxu0 }
0x313a   : > { %v9224_v33 = vadd.f32 %v10900_v12, %v9746_v35  ;;  %v9227_v6 = vmax.f32 %v9213_v19, 0.0 }
0x313b   : > { %v9215_v41 = vpop.f32.mrf.mxu0 }
0x313c   : > { %v9216_v27 = vadd.f32 %v9746_v35, %v9215_v41  ;;  %v9230_v21 = vmax.f32 %v9224_v33, 0.0  ;;  %v9756_v33 = vld [vmem:[%s13979_s16] ss:$0 sm:$0xff] }
0x313d   : > { %v9757_v41 = vld [vmem:[%s14087_s17] ss:$0 sm:$0xff] }
0x313e   : > { %v9228_v25 = vmax.f32 %v9216_v27, 0.0  ;;  %v9232_v53 = vpack.c.bf16 %v9230_v21, %v9229_v23 }
0x3140   : > { %v9231_v45 = vpack.c.bf16 %v9228_v25, %v9227_v6 }
0x3142   : > { %10905 = vmatprep.mubr.msk.bf16.mxu1 %vm741_vm0, %v9231_v45 }
0x3143   : > { %10906 = vmatmul.mubr.msk.bf16.vlgmr.msra.gmra.mxu1 %vm741_vm0, %v9232_v53 }
0x3203   : > { %v10907_v16 = vpop.f32.mrf.mxu1 }
0x3204   : > { %v9300_v56 = vadd.f32 %v10907_v16, %v9751_v60 }
0x3205   : > { %v9291_v55 = vpop.f32.mrf.mxu1 }
0x3206   : > { %v9292_v5 = vadd.f32 %v9751_v60, %v9291_v55  ;;  %v9308_v54 = vadd.f32 %v9300_v56, %v9150_v59 }
0x3207   : > { %v10908_v30 = vpop.f32.mrf.mxu1 }
0x3208   : > { %v9306_v36 = vadd.f32 %v9292_v5, %v9148_v46  ;;  %v9303_v51 = vadd.f32 %v10908_v30, %v9751_v60  ;;  %v9312_v37 = vmul.f32 %v12111_v11, %v9308_v54 }
0x3209   : > { %v9294_v13 = vpop.f32.mrf.mxu1 }
0x320a   : > { %v9295_v29 = vadd.f32 %v9751_v60, %v9294_v13  ;;  %v9310_v17 = vmul.f32 %v12108_v10, %v9306_v36  ;;  %v9309_v4 = vadd.f32 %v9303_v51, %v9151_v28  ;;  %v9322_v38 = vsel %vm741_vm0, %v9312_v37, 0.0 }
0x320c   : > { %v9307_v43 = vadd.f32 %v9295_v29, %v9149_v2  ;;  %v9316_v26 = vsel %vm741_vm0, %v9310_v17, 0.0  ;;  %v9313_v34 = vmul.f32 %v12119_v15, %v9309_v4 }
0x320d   : > { %9317 = vadd.xlane.f32.xlu0 %v9316_v26 }
0x320e   : > { %v9311_v63 = vmul.f32 %v12116_v14, %v9307_v43  ;;  %v9325_v48 = vsel %vm741_vm0, %v9313_v34, 0.0 }
0x3210   : > { %v9319_v31 = vsel %vm741_vm0, %v9311_v63, 0.0 }
0x3211   : > { %9320 = vadd.xlane.f32.xlu1 %v9319_v31  ;;  %9323 = vadd.xlane.f32.xlu0 %v9322_v38 }
0x3215   : > { %9326 = vadd.xlane.f32.xlu1 %v9325_v48 }
0x3296   : > { %v9318_v10 = vpop.xlane.xlu0 %9317 }
0x3297   : > { %v9328_v52 = vmul.f32 0.03125, %v9318_v10 }
0x3299   : > { %v9332_v50 = vsub.f32 %v9310_v17, %v9328_v52 }
0x329a   : > { %v9321_v20 = vpop.xlane.xlu1 %9320  ;;  %v9324_v40 = vpop.xlane.xlu0 %9323 }
0x329b   : > { %v9329_v11 = vmul.f32 0.03125, %v9321_v20  ;;  %v9330_v49 = vmul.f32 0.03125, %v9324_v40  ;;  %v9336_v32 = vmul.f32 %v9332_v50, %v9332_v50 }
0x329d   : > { %v9333_v14 = vsub.f32 %v9311_v63, %v9329_v11  ;;  %v9334_v62 = vsub.f32 %v9312_v37, %v9330_v49  ;;  %v9340_v3 = vsel %vm741_vm0, %v9336_v32, 0.0 }
0x329e   : > { %v9327_v44 = vpop.xlane.xlu1 %9326  ;;  %9341 = vadd.xlane.f32.xlu0 %v9340_v3 }
0x329f   : > { %v9331_v15 = vmul.f32 0.03125, %v9327_v44  ;;  %v9337_v58 = vmul.f32 %v9333_v14, %v9333_v14  ;;  %v9338_v24 = vmul.f32 %v9334_v62, %v9334_v62 }
0x32a1   : > { %v9335_v42 = vsub.f32 %v9313_v34, %v9331_v15  ;;  %v9343_v8 = vsel %vm741_vm0, %v9337_v58, 0.0  ;;  %v9346_v61 = vsel %vm741_vm0, %v9338_v24, 0.0 }
0x32a2   : > { %9344 = vadd.xlane.f32.xlu1 %v9343_v8  ;;  %9347 = vadd.xlane.f32.xlu0 %v9346_v61 }
0x32a3   : > { %v9339_v0 = vmul.f32 %v9335_v42, %v9335_v42 }
0x32a5   : > { %v9349_v46 = vsel %vm741_vm0, %v9339_v0, 0.0 }
0x32a6   : > { %9350 = vadd.xlane.f32.xlu1 %v9349_v46 }
0x3327   : > { %v9342_v2 = vpop.xlane.xlu0 %9341 }
0x3328   : > { %v9352_v22 = vmul.f32 0.03125, %v9342_v2 }
0x332a   : > { %v9356_v1 = vadd.f32 1e-08, %v9352_v22 }
0x332b   : > { %v9345_v59 = vpop.xlane.xlu1 %9344  ;;  %v9348_v28 = vpop.xlane.xlu0 %9347 }
0x332c   : > { %11493 = vrsqrt.f32 %v9356_v1  ;;  %v9353_v9 = vmul.f32 0.03125, %v9345_v59  ;;  %v9354_v18 = vmul.f32 0.03125, %v9348_v28 }
0x332e   : > { %v9357_v39 = vadd.f32 1e-08, %v9353_v9  ;;  %v9358_v47 = vadd.f32 1e-08, %v9354_v18 }
0x332f   : > { %v9351_v57 = vpop.xlane.xlu1 %9350 }
0x3330   : > { %11495 = vrsqrt.f32 %v9357_v39  ;;  %v9355_v35 = vmul.f32 0.03125, %v9351_v57 }
0x3331   : > { %11497 = vrsqrt.f32 %v9358_v47 }
0x3332   : > { %v9359_v12 = vadd.f32 1e-08, %v9355_v35 }
0x3334   : > { %11499 = vrsqrt.f32 %v9359_v12 }
0x3339   : > { %v11494_v19 = vpop.eup %11493 }
0x333a   : > { %v9364_v7 = vmul.f32 %v11494_v19, %v9332_v50 }
0x333c   : > { %v9374_v27 = vmul.f32 %v9756_v33, %v9364_v7 }
0x333d   : > { %v11496_v21 = vpop.eup %11495 }
0x333e   : > { %v11498_v6 = vpop.eup %11497  ;;  %v9384_v25 = vadd.f32 %v9757_v41, %v9374_v27  ;;  %v9365_v23 = vmul.f32 %v11496_v21, %v9333_v14 }
0x333f   : > { %v9366_v45 = vmul.f32 %v11498_v6, %v9334_v62 }
0x3340   : > { %v9375_v53 = vmul.f32 %v9756_v33, %v9365_v23  ;;  %9388 = vst.msk [vmem:[%s678_s4] sm:$0xff] %vm741_vm0, %v9384_v25 }
0x3341   : > { %v11500_v60 = vpop.eup %11499  ;;  %v9376_v16 = vmul.f32 %v9756_v33, %v9366_v45 }
0x3342   : > { %v9385_v56 = vadd.f32 %v9757_v41, %v9375_v53  ;;  %v9367_v55 = vmul.f32 %v11500_v60, %v9335_v42 }
0x3343   : > { %v9386_v5 = vadd.f32 %v9757_v41, %v9376_v16 }
0x3344   : > { %v9377_v30 = vmul.f32 %v9756_v33, %v9367_v55  ;;  %9389 = vst.msk [vmem:[%s678_s4 + $0x8] sm:$0xff] %vm741_vm0, %v9385_v56 }
0x3345   : > { %9390 = vst.msk [vmem:[%s678_s4 + $0x10] sm:$0xff] %vm741_vm0, %v9386_v5 }
0x3346   : > { %v9387_v54 = vadd.f32 %v9757_v41, %v9377_v30 }
0x3348   : > { %9391 = vst.msk [vmem:[%s678_s4 + $0x18] sm:$0xff] %vm741_vm0, %v9387_v54 }
0x3349   : > { %11698 = shalt.err (!%p11695_p3)
}
0x334a   : > { %s11699_s17 = scalar_lea.hbm %s13916_s26, 512  ;;  %s11703_s22 = scalar_lea.hbm %s14089_s18, 1024 }
0x334b   : > { %p11700_p4 = scmp.ne.s32.totalorder %s13916_s26, %s11699_s17  ;;  %p11704_p0 = scmp.lt.s32.totalorder %s13916_s26, %s14089_s18 }
0x334c   : > { %p11705_p7 = scmp.lt.s32.totalorder %s11703_s22, %s11699_s17 }
0x334d   : > { %p11701_p6 = pnand %p11700_p4, %p14090_p8 }
0x334e   : > { %p11706_p2 = por %p11705_p7, %p11704_p0 }
0x334f   : > { %p11702_p12 = pneg %p11701_p6 }
0x3351   : > { %p11707_p9 = pnand %p11706_p2, %p11702_p12 }
0x3353   : > { %11710 = shalt.err (!%p11707_p9)
}
0x3354   : > { %s11799_s29 = smov 128  }
0x3355   : > { %10935 = dma.vmem_to_hbm [thread:$0]  (%p14090_p8), %s13918_s2, 512, %s13916_s26, %s9393_s1, %s11799_s29, %s11799_s29, %s11792_s21  }
0x3356 PF: > { %s14091_s20 = sld [smem:[#allocation21_spill]]  ;;  %s9421_s30 = sand.u32 1, %s11749_s27  }
0x3357   : > { %p14092_p11 = scmp.ne.s32.totalorder %s14044_s23, 0  ;;  %s9422_s0 = scalar_lea.sflag [#allocation4], %s9421_s30 }
0x335c   : > { %p14093_p10 = scmp.ge.s32.totalorder %s14091_s20, 2 }
0x335e   : > { %p10961_p13 = pnand %p14093_p10, %p14092_p11 }
0x3360   : > { %p10962_p5 = pneg %p10961_p13 }
0x3362   : > { %11744 = dma.done.wait (%p10962_p5), %s9422_s0, 512  }
0x3363   : > { %11746 = vsyncadd (%p10962_p5), %s9422_s0, 4294966784  ;;  %s14094_s30 = sld [smem:[#allocation22_spill]]  ;;  %s14097_s27 = smov %s11753_s28 }
0x3364   : > { %s14095_s24 = sld [smem:[#allocation20_spill]] }
0x3365   : > { %s14096_s29 = sld [smem:[#allocation23_spill]] }
0x3369   : > { %p34_p1 = scmp.ge.s32.totalorder %s14094_s30, 4  }
0x336a   : > { %s14098_s28 = smov %s14095_s24 }
0x336b   :  { %36 = sbr.rel (!%p34_p1) target bundleno = 18 (0x12), region = 175 }
0x3370   :  { %9427 = vsyncpa [#allocation3], 1 }
0x3371   :  { %9429 = vsyncpa [#allocation3 + $0x1], 1 }
0x3372   :  { %9430 = vsyncpa [#allocation6], 1 }
0x3373   :  { %9431 = vsyncpa [#allocation9], 1 }
0x3374   :  { %9432 = vsyncpa [#allocation12], 1 }
0x3375   :  { %9433 = vsyncpa [#allocation4], 1 }
0x3376   :  { %9435 = vsyncpa [#allocation4 + $0x1], 1 }

</bundles_post_ra>
